<compile_context>
chip_gen: v7x
topology: tpu7x:2x2x1
jax: 0.10.0
libtpu: 0.0.40
codegen_flags: <defaults>
</compile_context>

<pallas_src>
import jax
import jax.numpy as jnp
from jax.experimental import pallas as pl
from jax.experimental.pallas import tpu as pltpu

F32 = jnp.float32

# ---------------- config (small synthetic sizes) ----------------
B = 2              # batch
T_ENC_FULL = 16    # raw encoder sequence length
MAX_LEN = 8        # config.window_length (sliding_window=True)
PRED_LEN = 8       # decoder horizon
F_ENC = 4          # x_enc features
E_EMB = 3          # *_emb features
E_CAL = 3          # x_cal_*_emb features
F_DEC = 4          # x_dec features
H = 32             # rnn hidden size
L = 2              # config.rnn_num_layers
S = sum(2 ** i for i in range(L))   # = 3, stacked dilated hidden states
N_OUT = 9          # decoder output width (9 quantiles)

DIN_ENC = F_ENC + E_EMB + E_CAL     # 10
DIN_DEC = F_DEC + E_EMB + E_CAL     # 10 (static decoder features; feedback handled separately)

VMEM_SPEC = lambda: pl.BlockSpec(memory_space=pltpu.MemorySpace.VMEM)
SMEM_SPEC = lambda: pl.BlockSpec(memory_space=pltpu.MemorySpace.SMEM)


# ---------------- fused Seq2Seq kernel (encoder + fc_h* + decode loop) ----------------
def seq2seq_kernel(fc0_w_ref, fc0_b_ref, fc1_w_ref, fc1_b_ref,          # SMEM scalars
                   enc_in_ref, xdec_ref, xprev0_ref,                    # VMEM activations
                   w_enc_ref, b_enc_ref, w_h0_ref, b_h0_ref, w_h1_ref, b_h1_ref,
                   w_din_ref, w_fb_ref, b_in_ref,
                   w_ih_ref, w_hh_ref, b_h_ref,
                   w_o1_ref, w_o2_ref, b_out_ref,
                   pred_ref):                                           # (B, P*N_OUT) out
    bsz, t_enc, _ = enc_in_ref.shape
    pred_len = xdec_ref.shape[1]
    n_layers = w_ih_ref.shape[0]
    n_out = w_o1_ref.shape[1]

    # dilated hidden stack: encoder timestep rows feeding fc_h0 / fc_h1
    # (layer i contributes its 2^i most recent hidden states, in time order)
    stack_rows = []
    for i in range(n_layers):
        d = 2 ** i
        stack_rows.extend(range(t_enc - d, t_enc))
    n_stack = len(stack_rows)

    xprev0 = xprev0_ref[...]                                            # (B, 1)

    for b in range(bsz):
        # ---------- encoder (synthetic tanh projection) ----------
        x_b = enc_in_ref[b]                                             # (T, DIN_ENC)
        e_b = jnp.tanh(jnp.dot(x_b, w_enc_ref[...],
                               preferred_element_type=F32) + b_enc_ref[...])   # (T, H)
        h0_b = jnp.tanh(jnp.dot(e_b, w_h0_ref[...],
                                preferred_element_type=F32) + b_h0_ref[...])   # (T, H)
        h1_b = jnp.tanh(jnp.dot(e_b, w_h1_ref[...],
                                preferred_element_type=F32) + b_h1_ref[...])   # (T, H)

        # ---------- fc_h0 / fc_h1 : Linear(S -> L) over the dilated hidden stack ----------
        h_state, c_state = [], []
        for l in range(n_layers):
            acc0 = jnp.zeros((1, h0_b.shape[1]), F32)
            acc1 = jnp.zeros((1, h1_b.shape[1]), F32)
            for s, r in enumerate(stack_rows):
                acc0 = acc0 + fc0_w_ref[l * n_stack + s] * h0_b[r:r + 1, :]
                acc1 = acc1 + fc1_w_ref[l * n_stack + s] * h1_b[r:r + 1, :]
            h_state.append(acc0 + fc0_b_ref[l])                         # (1, H)
            c_state.append(acc1 + fc1_b_ref[l])                         # (1, H)

        # ---------- hoisted out of the decode loop ----------
        # static part of the decoder input projection for ALL timesteps (one matmul)
        xproj_b = jnp.dot(xdec_ref[b], w_din_ref[...],
                          preferred_element_type=F32) + b_in_ref[...]   # (P, H)
        # fold context->output projection into the encoder output (associativity)
        encv_b = jnp.dot(e_b, w_o2_ref[...],
                         preferred_element_type=F32)                    # (T, N_OUT)

        fb = xprev0[b:b + 1, :]                                         # (1, 1) prev-day sales @ t=0

        # ---------- autoregressive decode, fully unrolled ----------
        for t in range(pred_len):
            x0 = xproj_b[t:t + 1, :] + fb * w_fb_ref[...]               # (1, H)
            layer_in = jnp.tanh(x0)

            for l in range(n_layers):
                g = jnp.tanh(jnp.dot(layer_in, w_ih_ref[l], preferred_element_type=F32)
                             + jnp.dot(h_state[l], w_hh_ref[l], preferred_element_type=F32)
                             + b_h_ref[l])
                c_new = 0.5 * c_state[l] + 0.5 * g
                h_new = jnp.tanh(c_new)
                h_state[l] = h_new
                c_state[l] = c_new
                layer_in = h_new
            h_top = layer_in                                            # (1, H)

            # attention on hidden: dot scores, softmax over encoder time
            scores = jnp.sum(h_top * e_b, axis=-1, keepdims=True)       # (T, 1)
            scores = scores - jnp.max(scores, axis=0, keepdims=True)
            ew = jnp.exp(scores)
            inv = pl.reciprocal(jnp.sum(ew, axis=0, keepdims=True), approx=True)
            attn = ew * inv                                             # (T, 1)
            ctx_out = jnp.sum(attn * encv_b, axis=0, keepdims=True)     # (1, N_OUT) == (attn^T enc) W_o2

            out = (jnp.dot(h_top, w_o1_ref[...], preferred_element_type=F32)
                   + ctx_out + b_out_ref[...])                          # (1, N_OUT)

            # lane-dense output slab; single HBM writeback happens at kernel exit
            pred_ref[b:b + 1, t * n_out:(t + 1) * n_out] = out
            fb = out[:, 4:5]                                            # decoder_output[:, 4] fed back


# ---------------- Seq2Seq forward (thin host glue: slices + concats only) ----------------
def seq2seq_forward(params, x_enc, x_enc_emb, x_cal_enc_emb,
                    x_dec, x_dec_emb, x_cal_dec_emb, x_prev_day_sales_dec):
    # slice encoder inputs to the last max_length timesteps (as in the module)
    enc_in = jnp.concatenate([x_enc[:, -MAX_LEN:], x_enc_emb[:, -MAX_LEN:],
                              x_cal_enc_emb[:, -MAX_LEN:]], axis=-1)        # (B, T, DIN_ENC)
    # static decoder features, batch-major (consumed directly inside the kernel)
    xdec_all = jnp.concatenate([x_dec, x_dec_emb, x_cal_dec_emb], axis=-1)  # (B, P, DIN_DEC)
    xprev0 = x_prev_day_sales_dec[:, 0]                                     # (B, 1), used at t=0

    bsz, pred_len = x_dec.shape[0], x_dec.shape[1]
    n_out = params['W_o1'].shape[1]

    preds2d = pl.pallas_call(
        seq2seq_kernel,
        out_shape=jax.ShapeDtypeStruct((bsz, pred_len * n_out), F32),
        in_specs=[SMEM_SPEC()] * 4 + [VMEM_SPEC()] * 18,
        out_specs=VMEM_SPEC(),
    )(params['fc_h0_W'], params['fc_h0_b'], params['fc_h1_W'], params['fc_h1_b'],
      enc_in, xdec_all, xprev0,
      params['W_enc'], params['b_enc'], params['W_h0'], params['b_h0'],
      params['W_h1'], params['b_h1'],
      params['W_din'], params['W_fb'], params['b_in'],
      params['W_ih'], params['W_hh'], params['b_h'],
      params['W_o1'], params['W_o2'], params['b_out'])

    return preds2d.reshape(bsz, pred_len, n_out)                            # (B, P, 9)


# ---------------- deterministic parameter init ----------------
def init_params(key):
    ks = jax.random.split(key, 18)
    w = lambda k, shape: (0.1 * jax.random.normal(k, shape)).astype(F32)
    p = {}
    # synthetic encoder
    p['W_enc'] = w(ks[0], (DIN_ENC, H)); p['b_enc'] = w(ks[1], (1, H))
    p['W_h0'] = w(ks[2], (H, H));        p['b_h0'] = w(ks[3], (1, H))
    p['W_h1'] = w(ks[4], (H, H));        p['b_h1'] = w(ks[5], (1, H))
    # Seq2Seq's own fc_h0 / fc_h1 : nn.Linear(S, L); weight (L, S) flattened row-major (1-D SMEM)
    p['fc_h0_W'] = w(ks[6], (L, S)).reshape(-1); p['fc_h0_b'] = w(ks[7], (L,))
    p['fc_h1_W'] = w(ks[8], (L, S)).reshape(-1); p['fc_h1_b'] = w(ks[9], (L,))
    # synthetic attention decoder; W_din == concat([W_xd, W_de, W_ce], axis=0) (fused host-side)
    p['W_din'] = w(ks[10], (DIN_DEC, H))
    p['W_fb'] = w(ks[11], (1, H));       p['b_in'] = w(ks[12], (1, H))
    p['W_ih'] = w(ks[13], (L, H, H));    p['W_hh'] = w(ks[14], (L, H, H))
    p['b_h'] = w(ks[15], (L, 1, H))
    p['W_o1'] = w(ks[16], (H, N_OUT));   p['W_o2'] = w(ks[17], (H, N_OUT))
    p['b_out'] = jnp.zeros((1, N_OUT), F32)
    return p


if __name__ == "__main__":
    key = jax.random.PRNGKey(0)
    pkey, dkey = jax.random.split(key)
    params = init_params(pkey)

    dks = jax.random.split(dkey, 7)
    x_enc = jax.random.normal(dks[0], (B, T_ENC_FULL, F_ENC), F32)
    x_enc_emb = jax.random.normal(dks[1], (B, T_ENC_FULL, E_EMB), F32)
    x_cal_enc_emb = jax.random.normal(dks[2], (B, T_ENC_FULL, E_CAL), F32)
    x_dec = jax.random.normal(dks[3], (B, PRED_LEN, F_DEC), F32)
    x_dec_emb = jax.random.normal(dks[4], (B, PRED_LEN, E_EMB), F32)
    x_cal_dec_emb = jax.random.normal(dks[5], (B, PRED_LEN, E_CAL), F32)
    x_prev_day_sales_dec = jax.random.normal(dks[6], (B, PRED_LEN, 1), F32)

    preds = jax.jit(seq2seq_forward)(params, x_enc, x_enc_emb, x_cal_enc_emb,
                                     x_dec, x_dec_emb, x_cal_dec_emb,
                                     x_prev_day_sales_dec)
    jax.block_until_ready(preds)
    assert preds.shape == (B, PRED_LEN, N_OUT), preds.shape
    assert bool(jnp.all(jnp.isfinite(preds)))
    print("KERNEL_OK")
</pallas_src>

<mosaic_0001>
module attributes {stable_mosaic.version = 11 : i64} {
  func.func @seq2seq_kernel(%arg0: memref<6xf32, #tpu.memory_space<smem>>, %arg1: memref<2xf32, #tpu.memory_space<smem>>, %arg2: memref<6xf32, #tpu.memory_space<smem>>, %arg3: memref<2xf32, #tpu.memory_space<smem>>, %arg4: memref<2x8x10xf32, #tpu.memory_space<vmem>>, %arg5: memref<2x8x10xf32, #tpu.memory_space<vmem>>, %arg6: memref<2x1xf32, #tpu.memory_space<vmem>>, %arg7: memref<10x32xf32, #tpu.memory_space<vmem>>, %arg8: memref<1x32xf32, #tpu.memory_space<vmem>>, %arg9: memref<32x32xf32, #tpu.memory_space<vmem>>, %arg10: memref<1x32xf32, #tpu.memory_space<vmem>>, %arg11: memref<32x32xf32, #tpu.memory_space<vmem>>, %arg12: memref<1x32xf32, #tpu.memory_space<vmem>>, %arg13: memref<10x32xf32, #tpu.memory_space<vmem>>, %arg14: memref<1x32xf32, #tpu.memory_space<vmem>>, %arg15: memref<1x32xf32, #tpu.memory_space<vmem>>, %arg16: memref<2x32x32xf32, #tpu.memory_space<vmem>>, %arg17: memref<2x32x32xf32, #tpu.memory_space<vmem>>, %arg18: memref<2x1x32xf32, #tpu.memory_space<vmem>>, %arg19: memref<32x9xf32, #tpu.memory_space<vmem>>, %arg20: memref<32x9xf32, #tpu.memory_space<vmem>>, %arg21: memref<1x9xf32, #tpu.memory_space<vmem>>, %arg22: memref<2x72xf32, #tpu.memory_space<vmem>>) attributes {dimension_semantics = [], scalar_prefetch = 0 : i64, scratch_operands = 0 : i64, tpu.core_type = #tpu.core_type<tc>} {
    %c0 = arith.constant 0 : index
    %c0_0 = arith.constant 0 : index
    %0 = vector.load %arg6[%c0, %c0_0] : memref<2x1xf32, #tpu.memory_space<vmem>>, vector<2x1xf32>
    %c0_1 = arith.constant 0 : index
    %c0_2 = arith.constant 0 : index
    %c0_3 = arith.constant 0 : index
    %1 = vector.load %arg4[%c0_1, %c0_2, %c0_3] : memref<2x8x10xf32, #tpu.memory_space<vmem>>, vector<1x8x10xf32>
    %2 = vector.shape_cast %1 : vector<1x8x10xf32> to vector<8x10xf32>
    %c0_4 = arith.constant 0 : index
    %c0_5 = arith.constant 0 : index
    %3 = vector.load %arg7[%c0_4, %c0_5] : memref<10x32xf32, #tpu.memory_space<vmem>>, vector<10x32xf32>
    %cst = arith.constant dense<0.000000e+00> : vector<8x32xf32>
    %4 = tpu.matmul %2, %3, %cst {dimension_numbers = #tpu.dot_dimension_numbers<[1], [0], [0], [1], [0, 0, 1, 1], [], []>} : vector<8x10xf32>, vector<10x32xf32>, vector<8x32xf32> -> vector<8x32xf32>
    %c0_6 = arith.constant 0 : index
    %c0_7 = arith.constant 0 : index
    %5 = vector.load %arg8[%c0_6, %c0_7] : memref<1x32xf32, #tpu.memory_space<vmem>>, vector<1x32xf32>
    %6 = vector.broadcast %5 : vector<1x32xf32> to vector<8x32xf32>
    %7 = arith.addf %4, %6 : vector<8x32xf32>
    %8 = math.tanh %7 : vector<8x32xf32>
    %c0_8 = arith.constant 0 : index
    %c0_9 = arith.constant 0 : index
    %9 = vector.load %arg9[%c0_8, %c0_9] : memref<32x32xf32, #tpu.memory_space<vmem>>, vector<32x32xf32>
    %cst_10 = arith.constant dense<0.000000e+00> : vector<8x32xf32>
    %10 = tpu.matmul %8, %9, %cst_10 {dimension_numbers = #tpu.dot_dimension_numbers<[1], [0], [0], [1], [0, 0, 1, 1], [], []>} : vector<8x32xf32>, vector<32x32xf32>, vector<8x32xf32> -> vector<8x32xf32>
    %c0_11 = arith.constant 0 : index
    %c0_12 = arith.constant 0 : index
    %11 = vector.load %arg10[%c0_11, %c0_12] : memref<1x32xf32, #tpu.memory_space<vmem>>, vector<1x32xf32>
    %12 = vector.broadcast %11 : vector<1x32xf32> to vector<8x32xf32>
    %13 = arith.addf %10, %12 : vector<8x32xf32>
    %14 = math.tanh %13 : vector<8x32xf32>
    %c0_13 = arith.constant 0 : index
    %c0_14 = arith.constant 0 : index
    %15 = vector.load %arg11[%c0_13, %c0_14] : memref<32x32xf32, #tpu.memory_space<vmem>>, vector<32x32xf32>
    %cst_15 = arith.constant dense<0.000000e+00> : vector<8x32xf32>
    %16 = tpu.matmul %8, %15, %cst_15 {dimension_numbers = #tpu.dot_dimension_numbers<[1], [0], [0], [1], [0, 0, 1, 1], [], []>} : vector<8x32xf32>, vector<32x32xf32>, vector<8x32xf32> -> vector<8x32xf32>
    %c0_16 = arith.constant 0 : index
    %c0_17 = arith.constant 0 : index
    %17 = vector.load %arg12[%c0_16, %c0_17] : memref<1x32xf32, #tpu.memory_space<vmem>>, vector<1x32xf32>
    %18 = vector.broadcast %17 : vector<1x32xf32> to vector<8x32xf32>
    %19 = arith.addf %16, %18 : vector<8x32xf32>
    %20 = math.tanh %19 : vector<8x32xf32>
    %cst_18 = arith.constant 0.000000e+00 : f32
    %21 = vector.broadcast %cst_18 : f32 to vector<1x32xf32>
    %cst_19 = arith.constant 0.000000e+00 : f32
    %22 = vector.broadcast %cst_19 : f32 to vector<1x32xf32>
    %c0_20 = arith.constant 0 : index
    %23 = memref.load %arg0[%c0_20] : memref<6xf32, #tpu.memory_space<smem>>
    %24 = vector.extract_strided_slice %14 {offsets = [7, 0], sizes = [1, 32], strides = [1, 1]} : vector<8x32xf32> to vector<1x32xf32>
    %25 = vector.broadcast %23 : f32 to vector<1x32xf32>
    %26 = arith.mulf %25, %24 : vector<1x32xf32>
    %27 = arith.addf %21, %26 : vector<1x32xf32>
    %c0_21 = arith.constant 0 : index
    %28 = memref.load %arg2[%c0_21] : memref<6xf32, #tpu.memory_space<smem>>
    %29 = vector.extract_strided_slice %20 {offsets = [7, 0], sizes = [1, 32], strides = [1, 1]} : vector<8x32xf32> to vector<1x32xf32>
    %30 = vector.broadcast %28 : f32 to vector<1x32xf32>
    %31 = arith.mulf %30, %29 : vector<1x32xf32>
    %32 = arith.addf %22, %31 : vector<1x32xf32>
    %c1 = arith.constant 1 : index
    %33 = memref.load %arg0[%c1] : memref<6xf32, #tpu.memory_space<smem>>
    %34 = vector.extract_strided_slice %14 {offsets = [6, 0], sizes = [1, 32], strides = [1, 1]} : vector<8x32xf32> to vector<1x32xf32>
    %35 = vector.broadcast %33 : f32 to vector<1x32xf32>
    %36 = arith.mulf %35, %34 : vector<1x32xf32>
    %37 = arith.addf %27, %36 : vector<1x32xf32>
    %c1_22 = arith.constant 1 : index
    %38 = memref.load %arg2[%c1_22] : memref<6xf32, #tpu.memory_space<smem>>
    %39 = vector.extract_strided_slice %20 {offsets = [6, 0], sizes = [1, 32], strides = [1, 1]} : vector<8x32xf32> to vector<1x32xf32>
    %40 = vector.broadcast %38 : f32 to vector<1x32xf32>
    %41 = arith.mulf %40, %39 : vector<1x32xf32>
    %42 = arith.addf %32, %41 : vector<1x32xf32>
    %c2 = arith.constant 2 : index
    %43 = memref.load %arg0[%c2] : memref<6xf32, #tpu.memory_space<smem>>
    %44 = vector.extract_strided_slice %14 {offsets = [7, 0], sizes = [1, 32], strides = [1, 1]} : vector<8x32xf32> to vector<1x32xf32>
    %45 = vector.broadcast %43 : f32 to vector<1x32xf32>
    %46 = arith.mulf %45, %44 : vector<1x32xf32>
    %47 = arith.addf %37, %46 : vector<1x32xf32>
    %c2_23 = arith.constant 2 : index
    %48 = memref.load %arg2[%c2_23] : memref<6xf32, #tpu.memory_space<smem>>
    %49 = vector.extract_strided_slice %20 {offsets = [7, 0], sizes = [1, 32], strides = [1, 1]} : vector<8x32xf32> to vector<1x32xf32>
    %50 = vector.broadcast %48 : f32 to vector<1x32xf32>
    %51 = arith.mulf %50, %49 : vector<1x32xf32>
    %52 = arith.addf %42, %51 : vector<1x32xf32>
    %c0_24 = arith.constant 0 : index
    %53 = memref.load %arg1[%c0_24] : memref<2xf32, #tpu.memory_space<smem>>
    %54 = vector.broadcast %53 : f32 to vector<1x32xf32>
    %55 = arith.addf %47, %54 : vector<1x32xf32>
    %c0_25 = arith.constant 0 : index
    %56 = memref.load %arg3[%c0_25] : memref<2xf32, #tpu.memory_space<smem>>
    %57 = vector.broadcast %56 : f32 to vector<1x32xf32>
    %58 = arith.addf %52, %57 : vector<1x32xf32>
    %cst_26 = arith.constant 0.000000e+00 : f32
    %59 = vector.broadcast %cst_26 : f32 to vector<1x32xf32>
    %cst_27 = arith.constant 0.000000e+00 : f32
    %60 = vector.broadcast %cst_27 : f32 to vector<1x32xf32>
    %c3 = arith.constant 3 : index
    %61 = memref.load %arg0[%c3] : memref<6xf32, #tpu.memory_space<smem>>
    %62 = vector.extract_strided_slice %14 {offsets = [7, 0], sizes = [1, 32], strides = [1, 1]} : vector<8x32xf32> to vector<1x32xf32>
    %63 = vector.broadcast %61 : f32 to vector<1x32xf32>
    %64 = arith.mulf %63, %62 : vector<1x32xf32>
    %65 = arith.addf %59, %64 : vector<1x32xf32>
    %c3_28 = arith.constant 3 : index
    %66 = memref.load %arg2[%c3_28] : memref<6xf32, #tpu.memory_space<smem>>
    %67 = vector.extract_strided_slice %20 {offsets = [7, 0], sizes = [1, 32], strides = [1, 1]} : vector<8x32xf32> to vector<1x32xf32>
    %68 = vector.broadcast %66 : f32 to vector<1x32xf32>
    %69 = arith.mulf %68, %67 : vector<1x32xf32>
    %70 = arith.addf %60, %69 : vector<1x32xf32>
    %c4 = arith.constant 4 : index
    %71 = memref.load %arg0[%c4] : memref<6xf32, #tpu.memory_space<smem>>
    %72 = vector.extract_strided_slice %14 {offsets = [6, 0], sizes = [1, 32], strides = [1, 1]} : vector<8x32xf32> to vector<1x32xf32>
    %73 = vector.broadcast %71 : f32 to vector<1x32xf32>
    %74 = arith.mulf %73, %72 : vector<1x32xf32>
    %75 = arith.addf %65, %74 : vector<1x32xf32>
    %c4_29 = arith.constant 4 : index
    %76 = memref.load %arg2[%c4_29] : memref<6xf32, #tpu.memory_space<smem>>
    %77 = vector.extract_strided_slice %20 {offsets = [6, 0], sizes = [1, 32], strides = [1, 1]} : vector<8x32xf32> to vector<1x32xf32>
    %78 = vector.broadcast %76 : f32 to vector<1x32xf32>
    %79 = arith.mulf %78, %77 : vector<1x32xf32>
    %80 = arith.addf %70, %79 : vector<1x32xf32>
    %c5 = arith.constant 5 : index
    %81 = memref.load %arg0[%c5] : memref<6xf32, #tpu.memory_space<smem>>
    %82 = vector.extract_strided_slice %14 {offsets = [7, 0], sizes = [1, 32], strides = [1, 1]} : vector<8x32xf32> to vector<1x32xf32>
    %83 = vector.broadcast %81 : f32 to vector<1x32xf32>
    %84 = arith.mulf %83, %82 : vector<1x32xf32>
    %85 = arith.addf %75, %84 : vector<1x32xf32>
    %c5_30 = arith.constant 5 : index
    %86 = memref.load %arg2[%c5_30] : memref<6xf32, #tpu.memory_space<smem>>
    %87 = vector.extract_strided_slice %20 {offsets = [7, 0], sizes = [1, 32], strides = [1, 1]} : vector<8x32xf32> to vector<1x32xf32>
    %88 = vector.broadcast %86 : f32 to vector<1x32xf32>
    %89 = arith.mulf %88, %87 : vector<1x32xf32>
    %90 = arith.addf %80, %89 : vector<1x32xf32>
    %c1_31 = arith.constant 1 : index
    %91 = memref.load %arg1[%c1_31] : memref<2xf32, #tpu.memory_space<smem>>
    %92 = vector.broadcast %91 : f32 to vector<1x32xf32>
    %93 = arith.addf %85, %92 : vector<1x32xf32>
    %c1_32 = arith.constant 1 : index
    %94 = memref.load %arg3[%c1_32] : memref<2xf32, #tpu.memory_space<smem>>
    %95 = vector.broadcast %94 : f32 to vector<1x32xf32>
    %96 = arith.addf %90, %95 : vector<1x32xf32>
    %c0_33 = arith.constant 0 : index
    %c0_34 = arith.constant 0 : index
    %c0_35 = arith.constant 0 : index
    %97 = vector.load %arg5[%c0_33, %c0_34, %c0_35] : memref<2x8x10xf32, #tpu.memory_space<vmem>>, vector<1x8x10xf32>
    %98 = vector.shape_cast %97 : vector<1x8x10xf32> to vector<8x10xf32>
    %c0_36 = arith.constant 0 : index
    %c0_37 = arith.constant 0 : index
    %99 = vector.load %arg13[%c0_36, %c0_37] : memref<10x32xf32, #tpu.memory_space<vmem>>, vector<10x32xf32>
    %cst_38 = arith.constant dense<0.000000e+00> : vector<8x32xf32>
    %100 = tpu.matmul %98, %99, %cst_38 {dimension_numbers = #tpu.dot_dimension_numbers<[1], [0], [0], [1], [0, 0, 1, 1], [], []>} : vector<8x10xf32>, vector<10x32xf32>, vector<8x32xf32> -> vector<8x32xf32>
    %c0_39 = arith.constant 0 : index
    %c0_40 = arith.constant 0 : index
    %101 = vector.load %arg15[%c0_39, %c0_40] : memref<1x32xf32, #tpu.memory_space<vmem>>, vector<1x32xf32>
    %102 = vector.broadcast %101 : vector<1x32xf32> to vector<8x32xf32>
    %103 = arith.addf %100, %102 : vector<8x32xf32>
    %c0_41 = arith.constant 0 : index
    %c0_42 = arith.constant 0 : index
    %104 = vector.load %arg20[%c0_41, %c0_42] : memref<32x9xf32, #tpu.memory_space<vmem>>, vector<32x9xf32>
    %cst_43 = arith.constant dense<0.000000e+00> : vector<8x9xf32>
    %105 = tpu.matmul %8, %104, %cst_43 {dimension_numbers = #tpu.dot_dimension_numbers<[1], [0], [0], [1], [0, 0, 1, 1], [], []>} : vector<8x32xf32>, vector<32x9xf32>, vector<8x9xf32> -> vector<8x9xf32>
    %106 = vector.extract_strided_slice %0 {offsets = [0, 0], sizes = [1, 1], strides = [1, 1]} : vector<2x1xf32> to vector<1x1xf32>
    %107 = vector.extract_strided_slice %103 {offsets = [0, 0], sizes = [1, 32], strides = [1, 1]} : vector<8x32xf32> to vector<1x32xf32>
    %c0_44 = arith.constant 0 : index
    %c0_45 = arith.constant 0 : index
    %108 = vector.load %arg14[%c0_44, %c0_45] : memref<1x32xf32, #tpu.memory_space<vmem>>, vector<1x32xf32>
    %109 = vector.broadcast %106 : vector<1x1xf32> to vector<1x32xf32>
    %110 = arith.mulf %109, %108 : vector<1x32xf32>
    %111 = arith.addf %107, %110 : vector<1x32xf32>
    %112 = math.tanh %111 : vector<1x32xf32>
    %c0_46 = arith.constant 0 : index
    %c0_47 = arith.constant 0 : index
    %c0_48 = arith.constant 0 : index
    %113 = vector.load %arg16[%c0_46, %c0_47, %c0_48] : memref<2x32x32xf32, #tpu.memory_space<vmem>>, vector<1x32x32xf32>
    %114 = vector.shape_cast %113 : vector<1x32x32xf32> to vector<32x32xf32>
    %cst_49 = arith.constant dense<0.000000e+00> : vector<1x32xf32>
    %115 = tpu.matmul %112, %114, %cst_49 {dimension_numbers = #tpu.dot_dimension_numbers<[1], [0], [0], [1], [0, 0, 1, 1], [], []>} : vector<1x32xf32>, vector<32x32xf32>, vector<1x32xf32> -> vector<1x32xf32>
    %c0_50 = arith.constant 0 : index
    %c0_51 = arith.constant 0 : index
    %c0_52 = arith.constant 0 : index
    %116 = vector.load %arg17[%c0_50, %c0_51, %c0_52] : memref<2x32x32xf32, #tpu.memory_space<vmem>>, vector<1x32x32xf32>
    %117 = vector.shape_cast %116 : vector<1x32x32xf32> to vector<32x32xf32>
    %cst_53 = arith.constant dense<0.000000e+00> : vector<1x32xf32>
    %118 = tpu.matmul %55, %117, %cst_53 {dimension_numbers = #tpu.dot_dimension_numbers<[1], [0], [0], [1], [0, 0, 1, 1], [], []>} : vector<1x32xf32>, vector<32x32xf32>, vector<1x32xf32> -> vector<1x32xf32>
    %119 = arith.addf %115, %118 : vector<1x32xf32>
    %c0_54 = arith.constant 0 : index
    %c0_55 = arith.constant 0 : index
    %c0_56 = arith.constant 0 : index
    %120 = vector.load %arg18[%c0_54, %c0_55, %c0_56] : memref<2x1x32xf32, #tpu.memory_space<vmem>>, vector<1x1x32xf32>
    %121 = vector.shape_cast %120 : vector<1x1x32xf32> to vector<1x32xf32>
    %122 = arith.addf %119, %121 : vector<1x32xf32>
    %123 = math.tanh %122 : vector<1x32xf32>
    %cst_57 = arith.constant 5.000000e-01 : f32
    %124 = vector.broadcast %cst_57 : f32 to vector<1x32xf32>
    %125 = arith.mulf %124, %58 : vector<1x32xf32>
    %cst_58 = arith.constant 5.000000e-01 : f32
    %126 = vector.broadcast %cst_58 : f32 to vector<1x32xf32>
    %127 = arith.mulf %126, %123 : vector<1x32xf32>
    %128 = arith.addf %125, %127 : vector<1x32xf32>
    %129 = math.tanh %128 : vector<1x32xf32>
    %c1_59 = arith.constant 1 : index
    %c0_60 = arith.constant 0 : index
    %c0_61 = arith.constant 0 : index
    %130 = vector.load %arg16[%c1_59, %c0_60, %c0_61] : memref<2x32x32xf32, #tpu.memory_space<vmem>>, vector<1x32x32xf32>
    %131 = vector.shape_cast %130 : vector<1x32x32xf32> to vector<32x32xf32>
    %cst_62 = arith.constant dense<0.000000e+00> : vector<1x32xf32>
    %132 = tpu.matmul %129, %131, %cst_62 {dimension_numbers = #tpu.dot_dimension_numbers<[1], [0], [0], [1], [0, 0, 1, 1], [], []>} : vector<1x32xf32>, vector<32x32xf32>, vector<1x32xf32> -> vector<1x32xf32>
    %c1_63 = arith.constant 1 : index
    %c0_64 = arith.constant 0 : index
    %c0_65 = arith.constant 0 : index
    %133 = vector.load %arg17[%c1_63, %c0_64, %c0_65] : memref<2x32x32xf32, #tpu.memory_space<vmem>>, vector<1x32x32xf32>
    %134 = vector.shape_cast %133 : vector<1x32x32xf32> to vector<32x32xf32>
    %cst_66 = arith.constant dense<0.000000e+00> : vector<1x32xf32>
    %135 = tpu.matmul %93, %134, %cst_66 {dimension_numbers = #tpu.dot_dimension_numbers<[1], [0], [0], [1], [0, 0, 1, 1], [], []>} : vector<1x32xf32>, vector<32x32xf32>, vector<1x32xf32> -> vector<1x32xf32>
    %136 = arith.addf %132, %135 : vector<1x32xf32>
    %c1_67 = arith.constant 1 : index
    %c0_68 = arith.constant 0 : index
    %c0_69 = arith.constant 0 : index
    %137 = vector.load %arg18[%c1_67, %c0_68, %c0_69] : memref<2x1x32xf32, #tpu.memory_space<vmem>>, vector<1x1x32xf32>
    %138 = vector.shape_cast %137 : vector<1x1x32xf32> to vector<1x32xf32>
    %139 = arith.addf %136, %138 : vector<1x32xf32>
    %140 = math.tanh %139 : vector<1x32xf32>
    %cst_70 = arith.constant 5.000000e-01 : f32
    %141 = vector.broadcast %cst_70 : f32 to vector<1x32xf32>
    %142 = arith.mulf %141, %96 : vector<1x32xf32>
    %cst_71 = arith.constant 5.000000e-01 : f32
    %143 = vector.broadcast %cst_71 : f32 to vector<1x32xf32>
    %144 = arith.mulf %143, %140 : vector<1x32xf32>
    %145 = arith.addf %142, %144 : vector<1x32xf32>
    %146 = math.tanh %145 : vector<1x32xf32>
    %147 = vector.broadcast %146 : vector<1x32xf32> to vector<8x32xf32>
    %148 = arith.mulf %147, %8 : vector<8x32xf32>
    %cst_72 = arith.constant dense<0.000000e+00> : vector<8xf32>
    %149 = vector.multi_reduction <add>, %148, %cst_72 [1] : vector<8x32xf32> to vector<8xf32>
    %150 = vector.shape_cast %149 : vector<8xf32> to vector<8x1xf32>
    %cst_73 = arith.constant dense<0xFF800000> : vector<1xf32>
    %151 = vector.multi_reduction <maximumf>, %150, %cst_73 [0] : vector<8x1xf32> to vector<1xf32>
    %152 = vector.shape_cast %151 : vector<1xf32> to vector<1x1xf32>
    %153 = vector.broadcast %152 : vector<1x1xf32> to vector<8x1xf32>
    %154 = arith.subf %150, %153 : vector<8x1xf32>
    %155 = math.exp %154 : vector<8x1xf32>
    %cst_74 = arith.constant dense<0.000000e+00> : vector<1xf32>
    %156 = vector.multi_reduction <add>, %155, %cst_74 [0] : vector<8x1xf32> to vector<1xf32>
    %157 = vector.shape_cast %156 : vector<1xf32> to vector<1x1xf32>
    %158 = tpu.reciprocal %157 {approx = true} : vector<1x1xf32> -> vector<1x1xf32>
    %159 = vector.broadcast %158 : vector<1x1xf32> to vector<8x1xf32>
    %160 = arith.mulf %155, %159 : vector<8x1xf32>
    %161 = vector.broadcast %160 : vector<8x1xf32> to vector<8x9xf32>
    %162 = arith.mulf %161, %105 : vector<8x9xf32>
    %cst_75 = arith.constant dense<0.000000e+00> : vector<9xf32>
    %163 = vector.multi_reduction <add>, %162, %cst_75 [0] : vector<8x9xf32> to vector<9xf32>
    %164 = vector.shape_cast %163 : vector<9xf32> to vector<1x9xf32>
    %c0_76 = arith.constant 0 : index
    %c0_77 = arith.constant 0 : index
    %165 = vector.load %arg19[%c0_76, %c0_77] : memref<32x9xf32, #tpu.memory_space<vmem>>, vector<32x9xf32>
    %cst_78 = arith.constant dense<0.000000e+00> : vector<1x9xf32>
    %166 = tpu.matmul %146, %165, %cst_78 {dimension_numbers = #tpu.dot_dimension_numbers<[1], [0], [0], [1], [0, 0, 1, 1], [], []>} : vector<1x32xf32>, vector<32x9xf32>, vector<1x9xf32> -> vector<1x9xf32>
    %167 = arith.addf %166, %164 : vector<1x9xf32>
    %c0_79 = arith.constant 0 : index
    %c0_80 = arith.constant 0 : index
    %168 = vector.load %arg21[%c0_79, %c0_80] : memref<1x9xf32, #tpu.memory_space<vmem>>, vector<1x9xf32>
    %169 = arith.addf %167, %168 : vector<1x9xf32>
    %c0_81 = arith.constant 0 : index
    %c0_82 = arith.constant 0 : index
    %170 = vector.load %arg22[%c0_81, %c0_82] : memref<2x72xf32, #tpu.memory_space<vmem>>, vector<1x9xf32>
    tpu.vector_store %arg22[%c0_81, %c0_82], %169 {strides = array<i32>} : memref<2x72xf32, #tpu.memory_space<vmem>>, vector<1x9xf32>,
    %171 = vector.extract_strided_slice %169 {offsets = [0, 4], sizes = [1, 1], strides = [1, 1]} : vector<1x9xf32> to vector<1x1xf32>
    %172 = vector.extract_strided_slice %103 {offsets = [1, 0], sizes = [1, 32], strides = [1, 1]} : vector<8x32xf32> to vector<1x32xf32>
    %c0_83 = arith.constant 0 : index
    %c0_84 = arith.constant 0 : index
    %173 = vector.load %arg14[%c0_83, %c0_84] : memref<1x32xf32, #tpu.memory_space<vmem>>, vector<1x32xf32>
    %174 = vector.broadcast %171 : vector<1x1xf32> to vector<1x32xf32>
    %175 = arith.mulf %174, %173 : vector<1x32xf32>
    %176 = arith.addf %172, %175 : vector<1x32xf32>
    %177 = math.tanh %176 : vector<1x32xf32>
    %c0_85 = arith.constant 0 : index
    %c0_86 = arith.constant 0 : index
    %c0_87 = arith.constant 0 : index
    %178 = vector.load %arg16[%c0_85, %c0_86, %c0_87] : memref<2x32x32xf32, #tpu.memory_space<vmem>>, vector<1x32x32xf32>
    %179 = vector.shape_cast %178 : vector<1x32x32xf32> to vector<32x32xf32>
    %cst_88 = arith.constant dense<0.000000e+00> : vector<1x32xf32>
    %180 = tpu.matmul %177, %179, %cst_88 {dimension_numbers = #tpu.dot_dimension_numbers<[1], [0], [0], [1], [0, 0, 1, 1], [], []>} : vector<1x32xf32>, vector<32x32xf32>, vector<1x32xf32> -> vector<1x32xf32>
    %c0_89 = arith.constant 0 : index
    %c0_90 = arith.constant 0 : index
    %c0_91 = arith.constant 0 : index
    %181 = vector.load %arg17[%c0_89, %c0_90, %c0_91] : memref<2x32x32xf32, #tpu.memory_space<vmem>>, vector<1x32x32xf32>
    %182 = vector.shape_cast %181 : vector<1x32x32xf32> to vector<32x32xf32>
    %cst_92 = arith.constant dense<0.000000e+00> : vector<1x32xf32>
    %183 = tpu.matmul %129, %182, %cst_92 {dimension_numbers = #tpu.dot_dimension_numbers<[1], [0], [0], [1], [0, 0, 1, 1], [], []>} : vector<1x32xf32>, vector<32x32xf32>, vector<1x32xf32> -> vector<1x32xf32>
    %184 = arith.addf %180, %183 : vector<1x32xf32>
    %c0_93 = arith.constant 0 : index
    %c0_94 = arith.constant 0 : index
    %c0_95 = arith.constant 0 : index
    %185 = vector.load %arg18[%c0_93, %c0_94, %c0_95] : memref<2x1x32xf32, #tpu.memory_space<vmem>>, vector<1x1x32xf32>
    %186 = vector.shape_cast %185 : vector<1x1x32xf32> to vector<1x32xf32>
    %187 = arith.addf %184, %186 : vector<1x32xf32>
    %188 = math.tanh %187 : vector<1x32xf32>
    %cst_96 = arith.constant 5.000000e-01 : f32
    %189 = vector.broadcast %cst_96 : f32 to vector<1x32xf32>
    %190 = arith.mulf %189, %128 : vector<1x32xf32>
    %cst_97 = arith.constant 5.000000e-01 : f32
    %191 = vector.broadcast %cst_97 : f32 to vector<1x32xf32>
    %192 = arith.mulf %191, %188 : vector<1x32xf32>
    %193 = arith.addf %190, %192 : vector<1x32xf32>
    %194 = math.tanh %193 : vector<1x32xf32>
    %c1_98 = arith.constant 1 : index
    %c0_99 = arith.constant 0 : index
    %c0_100 = arith.constant 0 : index
    %195 = vector.load %arg16[%c1_98, %c0_99, %c0_100] : memref<2x32x32xf32, #tpu.memory_space<vmem>>, vector<1x32x32xf32>
    %196 = vector.shape_cast %195 : vector<1x32x32xf32> to vector<32x32xf32>
    %cst_101 = arith.constant dense<0.000000e+00> : vector<1x32xf32>
    %197 = tpu.matmul %194, %196, %cst_101 {dimension_numbers = #tpu.dot_dimension_numbers<[1], [0], [0], [1], [0, 0, 1, 1], [], []>} : vector<1x32xf32>, vector<32x32xf32>, vector<1x32xf32> -> vector<1x32xf32>
    %c1_102 = arith.constant 1 : index
    %c0_103 = arith.constant 0 : index
    %c0_104 = arith.constant 0 : index
    %198 = vector.load %arg17[%c1_102, %c0_103, %c0_104] : memref<2x32x32xf32, #tpu.memory_space<vmem>>, vector<1x32x32xf32>
    %199 = vector.shape_cast %198 : vector<1x32x32xf32> to vector<32x32xf32>
    %cst_105 = arith.constant dense<0.000000e+00> : vector<1x32xf32>
    %200 = tpu.matmul %146, %199, %cst_105 {dimension_numbers = #tpu.dot_dimension_numbers<[1], [0], [0], [1], [0, 0, 1, 1], [], []>} : vector<1x32xf32>, vector<32x32xf32>, vector<1x32xf32> -> vector<1x32xf32>
    %201 = arith.addf %197, %200 : vector<1x32xf32>
    %c1_106 = arith.constant 1 : index
    %c0_107 = arith.constant 0 : index
    %c0_108 = arith.constant 0 : index
    %202 = vector.load %arg18[%c1_106, %c0_107, %c0_108] : memref<2x1x32xf32, #tpu.memory_space<vmem>>, vector<1x1x32xf32>
    %203 = vector.shape_cast %202 : vector<1x1x32xf32> to vector<1x32xf32>
    %204 = arith.addf %201, %203 : vector<1x32xf32>
    %205 = math.tanh %204 : vector<1x32xf32>
    %cst_109 = arith.constant 5.000000e-01 : f32
    %206 = vector.broadcast %cst_109 : f32 to vector<1x32xf32>
    %207 = arith.mulf %206, %145 : vector<1x32xf32>
    %cst_110 = arith.constant 5.000000e-01 : f32
    %208 = vector.broadcast %cst_110 : f32 to vector<1x32xf32>
    %209 = arith.mulf %208, %205 : vector<1x32xf32>
    %210 = arith.addf %207, %209 : vector<1x32xf32>
    %211 = math.tanh %210 : vector<1x32xf32>
    %212 = vector.broadcast %211 : vector<1x32xf32> to vector<8x32xf32>
    %213 = arith.mulf %212, %8 : vector<8x32xf32>
    %cst_111 = arith.constant dense<0.000000e+00> : vector<8xf32>
    %214 = vector.multi_reduction <add>, %213, %cst_111 [1] : vector<8x32xf32> to vector<8xf32>
    %215 = vector.shape_cast %214 : vector<8xf32> to vector<8x1xf32>
    %cst_112 = arith.constant dense<0xFF800000> : vector<1xf32>
    %216 = vector.multi_reduction <maximumf>, %215, %cst_112 [0] : vector<8x1xf32> to vector<1xf32>
    %217 = vector.shape_cast %216 : vector<1xf32> to vector<1x1xf32>
    %218 = vector.broadcast %217 : vector<1x1xf32> to vector<8x1xf32>
    %219 = arith.subf %215, %218 : vector<8x1xf32>
    %220 = math.exp %219 : vector<8x1xf32>
    %cst_113 = arith.constant dense<0.000000e+00> : vector<1xf32>
    %221 = vector.multi_reduction <add>, %220, %cst_113 [0] : vector<8x1xf32> to vector<1xf32>
    %222 = vector.shape_cast %221 : vector<1xf32> to vector<1x1xf32>
    %223 = tpu.reciprocal %222 {approx = true} : vector<1x1xf32> -> vector<1x1xf32>
    %224 = vector.broadcast %223 : vector<1x1xf32> to vector<8x1xf32>
    %225 = arith.mulf %220, %224 : vector<8x1xf32>
    %226 = vector.broadcast %225 : vector<8x1xf32> to vector<8x9xf32>
    %227 = arith.mulf %226, %105 : vector<8x9xf32>
    %cst_114 = arith.constant dense<0.000000e+00> : vector<9xf32>
    %228 = vector.multi_reduction <add>, %227, %cst_114 [0] : vector<8x9xf32> to vector<9xf32>
    %229 = vector.shape_cast %228 : vector<9xf32> to vector<1x9xf32>
    %c0_115 = arith.constant 0 : index
    %c0_116 = arith.constant 0 : index
    %230 = vector.load %arg19[%c0_115, %c0_116] : memref<32x9xf32, #tpu.memory_space<vmem>>, vector<32x9xf32>
    %cst_117 = arith.constant dense<0.000000e+00> : vector<1x9xf32>
    %231 = tpu.matmul %211, %230, %cst_117 {dimension_numbers = #tpu.dot_dimension_numbers<[1], [0], [0], [1], [0, 0, 1, 1], [], []>} : vector<1x32xf32>, vector<32x9xf32>, vector<1x9xf32> -> vector<1x9xf32>
    %232 = arith.addf %231, %229 : vector<1x9xf32>
    %c0_118 = arith.constant 0 : index
    %c0_119 = arith.constant 0 : index
    %233 = vector.load %arg21[%c0_118, %c0_119] : memref<1x9xf32, #tpu.memory_space<vmem>>, vector<1x9xf32>
    %234 = arith.addf %232, %233 : vector<1x9xf32>
    %c0_120 = arith.constant 0 : index
    %c9 = arith.constant 9 : index
    %235 = vector.load %arg22[%c0_120, %c9] : memref<2x72xf32, #tpu.memory_space<vmem>>, vector<1x9xf32>
    tpu.vector_store %arg22[%c0_120, %c9], %234 {strides = array<i32>} : memref<2x72xf32, #tpu.memory_space<vmem>>, vector<1x9xf32>,
    %236 = vector.extract_strided_slice %234 {offsets = [0, 4], sizes = [1, 1], strides = [1, 1]} : vector<1x9xf32> to vector<1x1xf32>
    %237 = vector.extract_strided_slice %103 {offsets = [2, 0], sizes = [1, 32], strides = [1, 1]} : vector<8x32xf32> to vector<1x32xf32>
    %c0_121 = arith.constant 0 : index
    %c0_122 = arith.constant 0 : index
    %238 = vector.load %arg14[%c0_121, %c0_122] : memref<1x32xf32, #tpu.memory_space<vmem>>, vector<1x32xf32>
    %239 = vector.broadcast %236 : vector<1x1xf32> to vector<1x32xf32>
    %240 = arith.mulf %239, %238 : vector<1x32xf32>
    %241 = arith.addf %237, %240 : vector<1x32xf32>
    %242 = math.tanh %241 : vector<1x32xf32>
    %c0_123 = arith.constant 0 : index
    %c0_124 = arith.constant 0 : index
    %c0_125 = arith.constant 0 : index
    %243 = vector.load %arg16[%c0_123, %c0_124, %c0_125] : memref<2x32x32xf32, #tpu.memory_space<vmem>>, vector<1x32x32xf32>
    %244 = vector.shape_cast %243 : vector<1x32x32xf32> to vector<32x32xf32>
    %cst_126 = arith.constant dense<0.000000e+00> : vector<1x32xf32>
    %245 = tpu.matmul %242, %244, %cst_126 {dimension_numbers = #tpu.dot_dimension_numbers<[1], [0], [0], [1], [0, 0, 1, 1], [], []>} : vector<1x32xf32>, vector<32x32xf32>, vector<1x32xf32> -> vector<1x32xf32>
    %c0_127 = arith.constant 0 : index
    %c0_128 = arith.constant 0 : index
    %c0_129 = arith.constant 0 : index
    %246 = vector.load %arg17[%c0_127, %c0_128, %c0_129] : memref<2x32x32xf32, #tpu.memory_space<vmem>>, vector<1x32x32xf32>
    %247 = vector.shape_cast %246 : vector<1x32x32xf32> to vector<32x32xf32>
    %cst_130 = arith.constant dense<0.000000e+00> : vector<1x32xf32>
    %248 = tpu.matmul %194, %247, %cst_130 {dimension_numbers = #tpu.dot_dimension_numbers<[1], [0], [0], [1], [0, 0, 1, 1], [], []>} : vector<1x32xf32>, vector<32x32xf32>, vector<1x32xf32> -> vector<1x32xf32>
    %249 = arith.addf %245, %248 : vector<1x32xf32>
    %c0_131 = arith.constant 0 : index
    %c0_132 = arith.constant 0 : index
    %c0_133 = arith.constant 0 : index
    %250 = vector.load %arg18[%c0_131, %c0_132, %c0_133] : memref<2x1x32xf32, #tpu.memory_space<vmem>>, vector<1x1x32xf32>
    %251 = vector.shape_cast %250 : vector<1x1x32xf32> to vector<1x32xf32>
    %252 = arith.addf %249, %251 : vector<1x32xf32>
    %253 = math.tanh %252 : vector<1x32xf32>
    %cst_134 = arith.constant 5.000000e-01 : f32
    %254 = vector.broadcast %cst_134 : f32 to vector<1x32xf32>
    %255 = arith.mulf %254, %193 : vector<1x32xf32>
    %cst_135 = arith.constant 5.000000e-01 : f32
    %256 = vector.broadcast %cst_135 : f32 to vector<1x32xf32>
    %257 = arith.mulf %256, %253 : vector<1x32xf32>
    %258 = arith.addf %255, %257 : vector<1x32xf32>
    %259 = math.tanh %258 : vector<1x32xf32>
    %c1_136 = arith.constant 1 : index
    %c0_137 = arith.constant 0 : index
    %c0_138 = arith.constant 0 : index
    %260 = vector.load %arg16[%c1_136, %c0_137, %c0_138] : memref<2x32x32xf32, #tpu.memory_space<vmem>>, vector<1x32x32xf32>
    %261 = vector.shape_cast %260 : vector<1x32x32xf32> to vector<32x32xf32>
    %cst_139 = arith.constant dense<0.000000e+00> : vector<1x32xf32>
    %262 = tpu.matmul %259, %261, %cst_139 {dimension_numbers = #tpu.dot_dimension_numbers<[1], [0], [0], [1], [0, 0, 1, 1], [], []>} : vector<1x32xf32>, vector<32x32xf32>, vector<1x32xf32> -> vector<1x32xf32>
    %c1_140 = arith.constant 1 : index
    %c0_141 = arith.constant 0 : index
    %c0_142 = arith.constant 0 : index
    %263 = vector.load %arg17[%c1_140, %c0_141, %c0_142] : memref<2x32x32xf32, #tpu.memory_space<vmem>>, vector<1x32x32xf32>
    %264 = vector.shape_cast %263 : vector<1x32x32xf32> to vector<32x32xf32>
    %cst_143 = arith.constant dense<0.000000e+00> : vector<1x32xf32>
    %265 = tpu.matmul %211, %264, %cst_143 {dimension_numbers = #tpu.dot_dimension_numbers<[1], [0], [0], [1], [0, 0, 1, 1], [], []>} : vector<1x32xf32>, vector<32x32xf32>, vector<1x32xf32> -> vector<1x32xf32>
    %266 = arith.addf %262, %265 : vector<1x32xf32>
    %c1_144 = arith.constant 1 : index
    %c0_145 = arith.constant 0 : index
    %c0_146 = arith.constant 0 : index
    %267 = vector.load %arg18[%c1_144, %c0_145, %c0_146] : memref<2x1x32xf32, #tpu.memory_space<vmem>>, vector<1x1x32xf32>
    %268 = vector.shape_cast %267 : vector<1x1x32xf32> to vector<1x32xf32>
    %269 = arith.addf %266, %268 : vector<1x32xf32>
    %270 = math.tanh %269 : vector<1x32xf32>
    %cst_147 = arith.constant 5.000000e-01 : f32
    %271 = vector.broadcast %cst_147 : f32 to vector<1x32xf32>
    %272 = arith.mulf %271, %210 : vector<1x32xf32>
    %cst_148 = arith.constant 5.000000e-01 : f32
    %273 = vector.broadcast %cst_148 : f32 to vector<1x32xf32>
    %274 = arith.mulf %273, %270 : vector<1x32xf32>
    %275 = arith.addf %272, %274 : vector<1x32xf32>
    %276 = math.tanh %275 : vector<1x32xf32>
    %277 = vector.broadcast %276 : vector<1x32xf32> to vector<8x32xf32>
    %278 = arith.mulf %277, %8 : vector<8x32xf32>
    %cst_149 = arith.constant dense<0.000000e+00> : vector<8xf32>
    %279 = vector.multi_reduction <add>, %278, %cst_149 [1] : vector<8x32xf32> to vector<8xf32>
    %280 = vector.shape_cast %279 : vector<8xf32> to vector<8x1xf32>
    %cst_150 = arith.constant dense<0xFF800000> : vector<1xf32>
    %281 = vector.multi_reduction <maximumf>, %280, %cst_150 [0] : vector<8x1xf32> to vector<1xf32>
    %282 = vector.shape_cast %281 : vector<1xf32> to vector<1x1xf32>
    %283 = vector.broadcast %282 : vector<1x1xf32> to vector<8x1xf32>
    %284 = arith.subf %280, %283 : vector<8x1xf32>
    %285 = math.exp %284 : vector<8x1xf32>
    %cst_151 = arith.constant dense<0.000000e+00> : vector<1xf32>
    %286 = vector.multi_reduction <add>, %285, %cst_151 [0] : vector<8x1xf32> to vector<1xf32>
    %287 = vector.shape_cast %286 : vector<1xf32> to vector<1x1xf32>
    %288 = tpu.reciprocal %287 {approx = true} : vector<1x1xf32> -> vector<1x1xf32>
    %289 = vector.broadcast %288 : vector<1x1xf32> to vector<8x1xf32>
    %290 = arith.mulf %285, %289 : vector<8x1xf32>
    %291 = vector.broadcast %290 : vector<8x1xf32> to vector<8x9xf32>
    %292 = arith.mulf %291, %105 : vector<8x9xf32>
    %cst_152 = arith.constant dense<0.000000e+00> : vector<9xf32>
    %293 = vector.multi_reduction <add>, %292, %cst_152 [0] : vector<8x9xf32> to vector<9xf32>
    %294 = vector.shape_cast %293 : vector<9xf32> to vector<1x9xf32>
    %c0_153 = arith.constant 0 : index
    %c0_154 = arith.constant 0 : index
    %295 = vector.load %arg19[%c0_153, %c0_154] : memref<32x9xf32, #tpu.memory_space<vmem>>, vector<32x9xf32>
    %cst_155 = arith.constant dense<0.000000e+00> : vector<1x9xf32>
    %296 = tpu.matmul %276, %295, %cst_155 {dimension_numbers = #tpu.dot_dimension_numbers<[1], [0], [0], [1], [0, 0, 1, 1], [], []>} : vector<1x32xf32>, vector<32x9xf32>, vector<1x9xf32> -> vector<1x9xf32>
    %297 = arith.addf %296, %294 : vector<1x9xf32>
    %c0_156 = arith.constant 0 : index
    %c0_157 = arith.constant 0 : index
    %298 = vector.load %arg21[%c0_156, %c0_157] : memref<1x9xf32, #tpu.memory_space<vmem>>, vector<1x9xf32>
    %299 = arith.addf %297, %298 : vector<1x9xf32>
    %c0_158 = arith.constant 0 : index
    %c18 = arith.constant 18 : index
    %300 = vector.load %arg22[%c0_158, %c18] : memref<2x72xf32, #tpu.memory_space<vmem>>, vector<1x9xf32>
    tpu.vector_store %arg22[%c0_158, %c18], %299 {strides = array<i32>} : memref<2x72xf32, #tpu.memory_space<vmem>>, vector<1x9xf32>,
    %301 = vector.extract_strided_slice %299 {offsets = [0, 4], sizes = [1, 1], strides = [1, 1]} : vector<1x9xf32> to vector<1x1xf32>
    %302 = vector.extract_strided_slice %103 {offsets = [3, 0], sizes = [1, 32], strides = [1, 1]} : vector<8x32xf32> to vector<1x32xf32>
    %c0_159 = arith.constant 0 : index
    %c0_160 = arith.constant 0 : index
    %303 = vector.load %arg14[%c0_159, %c0_160] : memref<1x32xf32, #tpu.memory_space<vmem>>, vector<1x32xf32>
    %304 = vector.broadcast %301 : vector<1x1xf32> to vector<1x32xf32>
    %305 = arith.mulf %304, %303 : vector<1x32xf32>
    %306 = arith.addf %302, %305 : vector<1x32xf32>
    %307 = math.tanh %306 : vector<1x32xf32>
    %c0_161 = arith.constant 0 : index
    %c0_162 = arith.constant 0 : index
    %c0_163 = arith.constant 0 : index
    %308 = vector.load %arg16[%c0_161, %c0_162, %c0_163] : memref<2x32x32xf32, #tpu.memory_space<vmem>>, vector<1x32x32xf32>
    %309 = vector.shape_cast %308 : vector<1x32x32xf32> to vector<32x32xf32>
    %cst_164 = arith.constant dense<0.000000e+00> : vector<1x32xf32>
    %310 = tpu.matmul %307, %309, %cst_164 {dimension_numbers = #tpu.dot_dimension_numbers<[1], [0], [0], [1], [0, 0, 1, 1], [], []>} : vector<1x32xf32>, vector<32x32xf32>, vector<1x32xf32> -> vector<1x32xf32>
    %c0_165 = arith.constant 0 : index
    %c0_166 = arith.constant 0 : index
    %c0_167 = arith.constant 0 : index
    %311 = vector.load %arg17[%c0_165, %c0_166, %c0_167] : memref<2x32x32xf32, #tpu.memory_space<vmem>>, vector<1x32x32xf32>
    %312 = vector.shape_cast %311 : vector<1x32x32xf32> to vector<32x32xf32>
    %cst_168 = arith.constant dense<0.000000e+00> : vector<1x32xf32>
    %313 = tpu.matmul %259, %312, %cst_168 {dimension_numbers = #tpu.dot_dimension_numbers<[1], [0], [0], [1], [0, 0, 1, 1], [], []>} : vector<1x32xf32>, vector<32x32xf32>, vector<1x32xf32> -> vector<1x32xf32>
    %314 = arith.addf %310, %313 : vector<1x32xf32>
    %c0_169 = arith.constant 0 : index
    %c0_170 = arith.constant 0 : index
    %c0_171 = arith.constant 0 : index
    %315 = vector.load %arg18[%c0_169, %c0_170, %c0_171] : memref<2x1x32xf32, #tpu.memory_space<vmem>>, vector<1x1x32xf32>
    %316 = vector.shape_cast %315 : vector<1x1x32xf32> to vector<1x32xf32>
    %317 = arith.addf %314, %316 : vector<1x32xf32>
    %318 = math.tanh %317 : vector<1x32xf32>
    %cst_172 = arith.constant 5.000000e-01 : f32
    %319 = vector.broadcast %cst_172 : f32 to vector<1x32xf32>
    %320 = arith.mulf %319, %258 : vector<1x32xf32>
    %cst_173 = arith.constant 5.000000e-01 : f32
    %321 = vector.broadcast %cst_173 : f32 to vector<1x32xf32>
    %322 = arith.mulf %321, %318 : vector<1x32xf32>
    %323 = arith.addf %320, %322 : vector<1x32xf32>
    %324 = math.tanh %323 : vector<1x32xf32>
    %c1_174 = arith.constant 1 : index
    %c0_175 = arith.constant 0 : index
    %c0_176 = arith.constant 0 : index
    %325 = vector.load %arg16[%c1_174, %c0_175, %c0_176] : memref<2x32x32xf32, #tpu.memory_space<vmem>>, vector<1x32x32xf32>
    %326 = vector.shape_cast %325 : vector<1x32x32xf32> to vector<32x32xf32>
    %cst_177 = arith.constant dense<0.000000e+00> : vector<1x32xf32>
    %327 = tpu.matmul %324, %326, %cst_177 {dimension_numbers = #tpu.dot_dimension_numbers<[1], [0], [0], [1], [0, 0, 1, 1], [], []>} : vector<1x32xf32>, vector<32x32xf32>, vector<1x32xf32> -> vector<1x32xf32>
    %c1_178 = arith.constant 1 : index
    %c0_179 = arith.constant 0 : index
    %c0_180 = arith.constant 0 : index
    %328 = vector.load %arg17[%c1_178, %c0_179, %c0_180] : memref<2x32x32xf32, #tpu.memory_space<vmem>>, vector<1x32x32xf32>
    %329 = vector.shape_cast %328 : vector<1x32x32xf32> to vector<32x32xf32>
    %cst_181 = arith.constant dense<0.000000e+00> : vector<1x32xf32>
    %330 = tpu.matmul %276, %329, %cst_181 {dimension_numbers = #tpu.dot_dimension_numbers<[1], [0], [0], [1], [0, 0, 1, 1], [], []>} : vector<1x32xf32>, vector<32x32xf32>, vector<1x32xf32> -> vector<1x32xf32>
    %331 = arith.addf %327, %330 : vector<1x32xf32>
    %c1_182 = arith.constant 1 : index
    %c0_183 = arith.constant 0 : index
    %c0_184 = arith.constant 0 : index
    %332 = vector.load %arg18[%c1_182, %c0_183, %c0_184] : memref<2x1x32xf32, #tpu.memory_space<vmem>>, vector<1x1x32xf32>
    %333 = vector.shape_cast %332 : vector<1x1x32xf32> to vector<1x32xf32>
    %334 = arith.addf %331, %333 : vector<1x32xf32>
    %335 = math.tanh %334 : vector<1x32xf32>
    %cst_185 = arith.constant 5.000000e-01 : f32
    %336 = vector.broadcast %cst_185 : f32 to vector<1x32xf32>
    %337 = arith.mulf %336, %275 : vector<1x32xf32>
    %cst_186 = arith.constant 5.000000e-01 : f32
    %338 = vector.broadcast %cst_186 : f32 to vector<1x32xf32>
    %339 = arith.mulf %338, %335 : vector<1x32xf32>
    %340 = arith.addf %337, %339 : vector<1x32xf32>
    %341 = math.tanh %340 : vector<1x32xf32>
    %342 = vector.broadcast %341 : vector<1x32xf32> to vector<8x32xf32>
    %343 = arith.mulf %342, %8 : vector<8x32xf32>
    %cst_187 = arith.constant dense<0.000000e+00> : vector<8xf32>
    %344 = vector.multi_reduction <add>, %343, %cst_187 [1] : vector<8x32xf32> to vector<8xf32>
    %345 = vector.shape_cast %344 : vector<8xf32> to vector<8x1xf32>
    %cst_188 = arith.constant dense<0xFF800000> : vector<1xf32>
    %346 = vector.multi_reduction <maximumf>, %345, %cst_188 [0] : vector<8x1xf32> to vector<1xf32>
    %347 = vector.shape_cast %346 : vector<1xf32> to vector<1x1xf32>
    %348 = vector.broadcast %347 : vector<1x1xf32> to vector<8x1xf32>
    %349 = arith.subf %345, %348 : vector<8x1xf32>
    %350 = math.exp %349 : vector<8x1xf32>
    %cst_189 = arith.constant dense<0.000000e+00> : vector<1xf32>
    %351 = vector.multi_reduction <add>, %350, %cst_189 [0] : vector<8x1xf32> to vector<1xf32>
    %352 = vector.shape_cast %351 : vector<1xf32> to vector<1x1xf32>
    %353 = tpu.reciprocal %352 {approx = true} : vector<1x1xf32> -> vector<1x1xf32>
    %354 = vector.broadcast %353 : vector<1x1xf32> to vector<8x1xf32>
    %355 = arith.mulf %350, %354 : vector<8x1xf32>
    %356 = vector.broadcast %355 : vector<8x1xf32> to vector<8x9xf32>
    %357 = arith.mulf %356, %105 : vector<8x9xf32>
    %cst_190 = arith.constant dense<0.000000e+00> : vector<9xf32>
    %358 = vector.multi_reduction <add>, %357, %cst_190 [0] : vector<8x9xf32> to vector<9xf32>
    %359 = vector.shape_cast %358 : vector<9xf32> to vector<1x9xf32>
    %c0_191 = arith.constant 0 : index
    %c0_192 = arith.constant 0 : index
    %360 = vector.load %arg19[%c0_191, %c0_192] : memref<32x9xf32, #tpu.memory_space<vmem>>, vector<32x9xf32>
    %cst_193 = arith.constant dense<0.000000e+00> : vector<1x9xf32>
    %361 = tpu.matmul %341, %360, %cst_193 {dimension_numbers = #tpu.dot_dimension_numbers<[1], [0], [0], [1], [0, 0, 1, 1], [], []>} : vector<1x32xf32>, vector<32x9xf32>, vector<1x9xf32> -> vector<1x9xf32>
    %362 = arith.addf %361, %359 : vector<1x9xf32>
    %c0_194 = arith.constant 0 : index
    %c0_195 = arith.constant 0 : index
    %363 = vector.load %arg21[%c0_194, %c0_195] : memref<1x9xf32, #tpu.memory_space<vmem>>, vector<1x9xf32>
    %364 = arith.addf %362, %363 : vector<1x9xf32>
    %c0_196 = arith.constant 0 : index
    %c27 = arith.constant 27 : index
    %365 = vector.load %arg22[%c0_196, %c27] : memref<2x72xf32, #tpu.memory_space<vmem>>, vector<1x9xf32>
    tpu.vector_store %arg22[%c0_196, %c27], %364 {strides = array<i32>} : memref<2x72xf32, #tpu.memory_space<vmem>>, vector<1x9xf32>,
    %366 = vector.extract_strided_slice %364 {offsets = [0, 4], sizes = [1, 1], strides = [1, 1]} : vector<1x9xf32> to vector<1x1xf32>
    %367 = vector.extract_strided_slice %103 {offsets = [4, 0], sizes = [1, 32], strides = [1, 1]} : vector<8x32xf32> to vector<1x32xf32>
    %c0_197 = arith.constant 0 : index
    %c0_198 = arith.constant 0 : index
    %368 = vector.load %arg14[%c0_197, %c0_198] : memref<1x32xf32, #tpu.memory_space<vmem>>, vector<1x32xf32>
    %369 = vector.broadcast %366 : vector<1x1xf32> to vector<1x32xf32>
    %370 = arith.mulf %369, %368 : vector<1x32xf32>
    %371 = arith.addf %367, %370 : vector<1x32xf32>
    %372 = math.tanh %371 : vector<1x32xf32>
    %c0_199 = arith.constant 0 : index
    %c0_200 = arith.constant 0 : index
    %c0_201 = arith.constant 0 : index
    %373 = vector.load %arg16[%c0_199, %c0_200, %c0_201] : memref<2x32x32xf32, #tpu.memory_space<vmem>>, vector<1x32x32xf32>
    %374 = vector.shape_cast %373 : vector<1x32x32xf32> to vector<32x32xf32>
    %cst_202 = arith.constant dense<0.000000e+00> : vector<1x32xf32>
    %375 = tpu.matmul %372, %374, %cst_202 {dimension_numbers = #tpu.dot_dimension_numbers<[1], [0], [0], [1], [0, 0, 1, 1], [], []>} : vector<1x32xf32>, vector<32x32xf32>, vector<1x32xf32> -> vector<1x32xf32>
    %c0_203 = arith.constant 0 : index
    %c0_204 = arith.constant 0 : index
    %c0_205 = arith.constant 0 : index
    %376 = vector.load %arg17[%c0_203, %c0_204, %c0_205] : memref<2x32x32xf32, #tpu.memory_space<vmem>>, vector<1x32x32xf32>
    %377 = vector.shape_cast %376 : vector<1x32x32xf32> to vector<32x32xf32>
    %cst_206 = arith.constant dense<0.000000e+00> : vector<1x32xf32>
    %378 = tpu.matmul %324, %377, %cst_206 {dimension_numbers = #tpu.dot_dimension_numbers<[1], [0], [0], [1], [0, 0, 1, 1], [], []>} : vector<1x32xf32>, vector<32x32xf32>, vector<1x32xf32> -> vector<1x32xf32>
    %379 = arith.addf %375, %378 : vector<1x32xf32>
    %c0_207 = arith.constant 0 : index
    %c0_208 = arith.constant 0 : index
    %c0_209 = arith.constant 0 : index
    %380 = vector.load %arg18[%c0_207, %c0_208, %c0_209] : memref<2x1x32xf32, #tpu.memory_space<vmem>>, vector<1x1x32xf32>
    %381 = vector.shape_cast %380 : vector<1x1x32xf32> to vector<1x32xf32>
    %382 = arith.addf %379, %381 : vector<1x32xf32>
    %383 = math.tanh %382 : vector<1x32xf32>
    %cst_210 = arith.constant 5.000000e-01 : f32
    %384 = vector.broadcast %cst_210 : f32 to vector<1x32xf32>
    %385 = arith.mulf %384, %323 : vector<1x32xf32>
    %cst_211 = arith.constant 5.000000e-01 : f32
    %386 = vector.broadcast %cst_211 : f32 to vector<1x32xf32>
    %387 = arith.mulf %386, %383 : vector<1x32xf32>
    %388 = arith.addf %385, %387 : vector<1x32xf32>
    %389 = math.tanh %388 : vector<1x32xf32>
    %c1_212 = arith.constant 1 : index
    %c0_213 = arith.constant 0 : index
    %c0_214 = arith.constant 0 : index
    %390 = vector.load %arg16[%c1_212, %c0_213, %c0_214] : memref<2x32x32xf32, #tpu.memory_space<vmem>>, vector<1x32x32xf32>
    %391 = vector.shape_cast %390 : vector<1x32x32xf32> to vector<32x32xf32>
    %cst_215 = arith.constant dense<0.000000e+00> : vector<1x32xf32>
    %392 = tpu.matmul %389, %391, %cst_215 {dimension_numbers = #tpu.dot_dimension_numbers<[1], [0], [0], [1], [0, 0, 1, 1], [], []>} : vector<1x32xf32>, vector<32x32xf32>, vector<1x32xf32> -> vector<1x32xf32>
    %c1_216 = arith.constant 1 : index
    %c0_217 = arith.constant 0 : index
    %c0_218 = arith.constant 0 : index
    %393 = vector.load %arg17[%c1_216, %c0_217, %c0_218] : memref<2x32x32xf32, #tpu.memory_space<vmem>>, vector<1x32x32xf32>
    %394 = vector.shape_cast %393 : vector<1x32x32xf32> to vector<32x32xf32>
    %cst_219 = arith.constant dense<0.000000e+00> : vector<1x32xf32>
    %395 = tpu.matmul %341, %394, %cst_219 {dimension_numbers = #tpu.dot_dimension_numbers<[1], [0], [0], [1], [0, 0, 1, 1], [], []>} : vector<1x32xf32>, vector<32x32xf32>, vector<1x32xf32> -> vector<1x32xf32>
    %396 = arith.addf %392, %395 : vector<1x32xf32>
    %c1_220 = arith.constant 1 : index
    %c0_221 = arith.constant 0 : index
    %c0_222 = arith.constant 0 : index
    %397 = vector.load %arg18[%c1_220, %c0_221, %c0_222] : memref<2x1x32xf32, #tpu.memory_space<vmem>>, vector<1x1x32xf32>
    %398 = vector.shape_cast %397 : vector<1x1x32xf32> to vector<1x32xf32>
    %399 = arith.addf %396, %398 : vector<1x32xf32>
    %400 = math.tanh %399 : vector<1x32xf32>
    %cst_223 = arith.constant 5.000000e-01 : f32
    %401 = vector.broadcast %cst_223 : f32 to vector<1x32xf32>
    %402 = arith.mulf %401, %340 : vector<1x32xf32>
    %cst_224 = arith.constant 5.000000e-01 : f32
    %403 = vector.broadcast %cst_224 : f32 to vector<1x32xf32>
    %404 = arith.mulf %403, %400 : vector<1x32xf32>
    %405 = arith.addf %402, %404 : vector<1x32xf32>
    %406 = math.tanh %405 : vector<1x32xf32>
    %407 = vector.broadcast %406 : vector<1x32xf32> to vector<8x32xf32>
    %408 = arith.mulf %407, %8 : vector<8x32xf32>
    %cst_225 = arith.constant dense<0.000000e+00> : vector<8xf32>
    %409 = vector.multi_reduction <add>, %408, %cst_225 [1] : vector<8x32xf32> to vector<8xf32>
    %410 = vector.shape_cast %409 : vector<8xf32> to vector<8x1xf32>
    %cst_226 = arith.constant dense<0xFF800000> : vector<1xf32>
    %411 = vector.multi_reduction <maximumf>, %410, %cst_226 [0] : vector<8x1xf32> to vector<1xf32>
    %412 = vector.shape_cast %411 : vector<1xf32> to vector<1x1xf32>
    %413 = vector.broadcast %412 : vector<1x1xf32> to vector<8x1xf32>
    %414 = arith.subf %410, %413 : vector<8x1xf32>
    %415 = math.exp %414 : vector<8x1xf32>
    %cst_227 = arith.constant dense<0.000000e+00> : vector<1xf32>
    %416 = vector.multi_reduction <add>, %415, %cst_227 [0] : vector<8x1xf32> to vector<1xf32>
    %417 = vector.shape_cast %416 : vector<1xf32> to vector<1x1xf32>
    %418 = tpu.reciprocal %417 {approx = true} : vector<1x1xf32> -> vector<1x1xf32>
    %419 = vector.broadcast %418 : vector<1x1xf32> to vector<8x1xf32>
    %420 = arith.mulf %415, %419 : vector<8x1xf32>
    %421 = vector.broadcast %420 : vector<8x1xf32> to vector<8x9xf32>
    %422 = arith.mulf %421, %105 : vector<8x9xf32>
    %cst_228 = arith.constant dense<0.000000e+00> : vector<9xf32>
    %423 = vector.multi_reduction <add>, %422, %cst_228 [0] : vector<8x9xf32> to vector<9xf32>
    %424 = vector.shape_cast %423 : vector<9xf32> to vector<1x9xf32>
    %c0_229 = arith.constant 0 : index
    %c0_230 = arith.constant 0 : index
    %425 = vector.load %arg19[%c0_229, %c0_230] : memref<32x9xf32, #tpu.memory_space<vmem>>, vector<32x9xf32>
    %cst_231 = arith.constant dense<0.000000e+00> : vector<1x9xf32>
    %426 = tpu.matmul %406, %425, %cst_231 {dimension_numbers = #tpu.dot_dimension_numbers<[1], [0], [0], [1], [0, 0, 1, 1], [], []>} : vector<1x32xf32>, vector<32x9xf32>, vector<1x9xf32> -> vector<1x9xf32>
    %427 = arith.addf %426, %424 : vector<1x9xf32>
    %c0_232 = arith.constant 0 : index
    %c0_233 = arith.constant 0 : index
    %428 = vector.load %arg21[%c0_232, %c0_233] : memref<1x9xf32, #tpu.memory_space<vmem>>, vector<1x9xf32>
    %429 = arith.addf %427, %428 : vector<1x9xf32>
    %c0_234 = arith.constant 0 : index
    %c36 = arith.constant 36 : index
    %430 = vector.load %arg22[%c0_234, %c36] : memref<2x72xf32, #tpu.memory_space<vmem>>, vector<1x9xf32>
    tpu.vector_store %arg22[%c0_234, %c36], %429 {strides = array<i32>} : memref<2x72xf32, #tpu.memory_space<vmem>>, vector<1x9xf32>,
    %431 = vector.extract_strided_slice %429 {offsets = [0, 4], sizes = [1, 1], strides = [1, 1]} : vector<1x9xf32> to vector<1x1xf32>
    %432 = vector.extract_strided_slice %103 {offsets = [5, 0], sizes = [1, 32], strides = [1, 1]} : vector<8x32xf32> to vector<1x32xf32>
    %c0_235 = arith.constant 0 : index
    %c0_236 = arith.constant 0 : index
    %433 = vector.load %arg14[%c0_235, %c0_236] : memref<1x32xf32, #tpu.memory_space<vmem>>, vector<1x32xf32>
    %434 = vector.broadcast %431 : vector<1x1xf32> to vector<1x32xf32>
    %435 = arith.mulf %434, %433 : vector<1x32xf32>
    %436 = arith.addf %432, %435 : vector<1x32xf32>
    %437 = math.tanh %436 : vector<1x32xf32>
    %c0_237 = arith.constant 0 : index
    %c0_238 = arith.constant 0 : index
    %c0_239 = arith.constant 0 : index
    %438 = vector.load %arg16[%c0_237, %c0_238, %c0_239] : memref<2x32x32xf32, #tpu.memory_space<vmem>>, vector<1x32x32xf32>
    %439 = vector.shape_cast %438 : vector<1x32x32xf32> to vector<32x32xf32>
    %cst_240 = arith.constant dense<0.000000e+00> : vector<1x32xf32>
    %440 = tpu.matmul %437, %439, %cst_240 {dimension_numbers = #tpu.dot_dimension_numbers<[1], [0], [0], [1], [0, 0, 1, 1], [], []>} : vector<1x32xf32>, vector<32x32xf32>, vector<1x32xf32> -> vector<1x32xf32>
    %c0_241 = arith.constant 0 : index
    %c0_242 = arith.constant 0 : index
    %c0_243 = arith.constant 0 : index
    %441 = vector.load %arg17[%c0_241, %c0_242, %c0_243] : memref<2x32x32xf32, #tpu.memory_space<vmem>>, vector<1x32x32xf32>
    %442 = vector.shape_cast %441 : vector<1x32x32xf32> to vector<32x32xf32>
    %cst_244 = arith.constant dense<0.000000e+00> : vector<1x32xf32>
    %443 = tpu.matmul %389, %442, %cst_244 {dimension_numbers = #tpu.dot_dimension_numbers<[1], [0], [0], [1], [0, 0, 1, 1], [], []>} : vector<1x32xf32>, vector<32x32xf32>, vector<1x32xf32> -> vector<1x32xf32>
    %444 = arith.addf %440, %443 : vector<1x32xf32>
    %c0_245 = arith.constant 0 : index
    %c0_246 = arith.constant 0 : index
    %c0_247 = arith.constant 0 : index
    %445 = vector.load %arg18[%c0_245, %c0_246, %c0_247] : memref<2x1x32xf32, #tpu.memory_space<vmem>>, vector<1x1x32xf32>
    %446 = vector.shape_cast %445 : vector<1x1x32xf32> to vector<1x32xf32>
    %447 = arith.addf %444, %446 : vector<1x32xf32>
    %448 = math.tanh %447 : vector<1x32xf32>
    %cst_248 = arith.constant 5.000000e-01 : f32
    %449 = vector.broadcast %cst_248 : f32 to vector<1x32xf32>
    %450 = arith.mulf %449, %388 : vector<1x32xf32>
    %cst_249 = arith.constant 5.000000e-01 : f32
    %451 = vector.broadcast %cst_249 : f32 to vector<1x32xf32>
    %452 = arith.mulf %451, %448 : vector<1x32xf32>
    %453 = arith.addf %450, %452 : vector<1x32xf32>
    %454 = math.tanh %453 : vector<1x32xf32>
    %c1_250 = arith.constant 1 : index
    %c0_251 = arith.constant 0 : index
    %c0_252 = arith.constant 0 : index
    %455 = vector.load %arg16[%c1_250, %c0_251, %c0_252] : memref<2x32x32xf32, #tpu.memory_space<vmem>>, vector<1x32x32xf32>
    %456 = vector.shape_cast %455 : vector<1x32x32xf32> to vector<32x32xf32>
    %cst_253 = arith.constant dense<0.000000e+00> : vector<1x32xf32>
    %457 = tpu.matmul %454, %456, %cst_253 {dimension_numbers = #tpu.dot_dimension_numbers<[1], [0], [0], [1], [0, 0, 1, 1], [], []>} : vector<1x32xf32>, vector<32x32xf32>, vector<1x32xf32> -> vector<1x32xf32>
    %c1_254 = arith.constant 1 : index
    %c0_255 = arith.constant 0 : index
    %c0_256 = arith.constant 0 : index
    %458 = vector.load %arg17[%c1_254, %c0_255, %c0_256] : memref<2x32x32xf32, #tpu.memory_space<vmem>>, vector<1x32x32xf32>
    %459 = vector.shape_cast %458 : vector<1x32x32xf32> to vector<32x32xf32>
    %cst_257 = arith.constant dense<0.000000e+00> : vector<1x32xf32>
    %460 = tpu.matmul %406, %459, %cst_257 {dimension_numbers = #tpu.dot_dimension_numbers<[1], [0], [0], [1], [0, 0, 1, 1], [], []>} : vector<1x32xf32>, vector<32x32xf32>, vector<1x32xf32> -> vector<1x32xf32>
    %461 = arith.addf %457, %460 : vector<1x32xf32>
    %c1_258 = arith.constant 1 : index
    %c0_259 = arith.constant 0 : index
    %c0_260 = arith.constant 0 : index
    %462 = vector.load %arg18[%c1_258, %c0_259, %c0_260] : memref<2x1x32xf32, #tpu.memory_space<vmem>>, vector<1x1x32xf32>
    %463 = vector.shape_cast %462 : vector<1x1x32xf32> to vector<1x32xf32>
    %464 = arith.addf %461, %463 : vector<1x32xf32>
    %465 = math.tanh %464 : vector<1x32xf32>
    %cst_261 = arith.constant 5.000000e-01 : f32
    %466 = vector.broadcast %cst_261 : f32 to vector<1x32xf32>
    %467 = arith.mulf %466, %405 : vector<1x32xf32>
    %cst_262 = arith.constant 5.000000e-01 : f32
    %468 = vector.broadcast %cst_262 : f32 to vector<1x32xf32>
    %469 = arith.mulf %468, %465 : vector<1x32xf32>
    %470 = arith.addf %467, %469 : vector<1x32xf32>
    %471 = math.tanh %470 : vector<1x32xf32>
    %472 = vector.broadcast %471 : vector<1x32xf32> to vector<8x32xf32>
    %473 = arith.mulf %472, %8 : vector<8x32xf32>
    %cst_263 = arith.constant dense<0.000000e+00> : vector<8xf32>
    %474 = vector.multi_reduction <add>, %473, %cst_263 [1] : vector<8x32xf32> to vector<8xf32>
    %475 = vector.shape_cast %474 : vector<8xf32> to vector<8x1xf32>
    %cst_264 = arith.constant dense<0xFF800000> : vector<1xf32>
    %476 = vector.multi_reduction <maximumf>, %475, %cst_264 [0] : vector<8x1xf32> to vector<1xf32>
    %477 = vector.shape_cast %476 : vector<1xf32> to vector<1x1xf32>
    %478 = vector.broadcast %477 : vector<1x1xf32> to vector<8x1xf32>
    %479 = arith.subf %475, %478 : vector<8x1xf32>
    %480 = math.exp %479 : vector<8x1xf32>
    %cst_265 = arith.constant dense<0.000000e+00> : vector<1xf32>
    %481 = vector.multi_reduction <add>, %480, %cst_265 [0] : vector<8x1xf32> to vector<1xf32>
    %482 = vector.shape_cast %481 : vector<1xf32> to vector<1x1xf32>
    %483 = tpu.reciprocal %482 {approx = true} : vector<1x1xf32> -> vector<1x1xf32>
    %484 = vector.broadcast %483 : vector<1x1xf32> to vector<8x1xf32>
    %485 = arith.mulf %480, %484 : vector<8x1xf32>
    %486 = vector.broadcast %485 : vector<8x1xf32> to vector<8x9xf32>
    %487 = arith.mulf %486, %105 : vector<8x9xf32>
    %cst_266 = arith.constant dense<0.000000e+00> : vector<9xf32>
    %488 = vector.multi_reduction <add>, %487, %cst_266 [0] : vector<8x9xf32> to vector<9xf32>
    %489 = vector.shape_cast %488 : vector<9xf32> to vector<1x9xf32>
    %c0_267 = arith.constant 0 : index
    %c0_268 = arith.constant 0 : index
    %490 = vector.load %arg19[%c0_267, %c0_268] : memref<32x9xf32, #tpu.memory_space<vmem>>, vector<32x9xf32>
    %cst_269 = arith.constant dense<0.000000e+00> : vector<1x9xf32>
    %491 = tpu.matmul %471, %490, %cst_269 {dimension_numbers = #tpu.dot_dimension_numbers<[1], [0], [0], [1], [0, 0, 1, 1], [], []>} : vector<1x32xf32>, vector<32x9xf32>, vector<1x9xf32> -> vector<1x9xf32>
    %492 = arith.addf %491, %489 : vector<1x9xf32>
    %c0_270 = arith.constant 0 : index
    %c0_271 = arith.constant 0 : index
    %493 = vector.load %arg21[%c0_270, %c0_271] : memref<1x9xf32, #tpu.memory_space<vmem>>, vector<1x9xf32>
    %494 = arith.addf %492, %493 : vector<1x9xf32>
    %c0_272 = arith.constant 0 : index
    %c45 = arith.constant 45 : index
    %495 = vector.load %arg22[%c0_272, %c45] : memref<2x72xf32, #tpu.memory_space<vmem>>, vector<1x9xf32>
    tpu.vector_store %arg22[%c0_272, %c45], %494 {strides = array<i32>} : memref<2x72xf32, #tpu.memory_space<vmem>>, vector<1x9xf32>,
    %496 = vector.extract_strided_slice %494 {offsets = [0, 4], sizes = [1, 1], strides = [1, 1]} : vector<1x9xf32> to vector<1x1xf32>
    %497 = vector.extract_strided_slice %103 {offsets = [6, 0], sizes = [1, 32], strides = [1, 1]} : vector<8x32xf32> to vector<1x32xf32>
    %c0_273 = arith.constant 0 : index
    %c0_274 = arith.constant 0 : index
    %498 = vector.load %arg14[%c0_273, %c0_274] : memref<1x32xf32, #tpu.memory_space<vmem>>, vector<1x32xf32>
    %499 = vector.broadcast %496 : vector<1x1xf32> to vector<1x32xf32>
    %500 = arith.mulf %499, %498 : vector<1x32xf32>
    %501 = arith.addf %497, %500 : vector<1x32xf32>
    %502 = math.tanh %501 : vector<1x32xf32>
    %c0_275 = arith.constant 0 : index
    %c0_276 = arith.constant 0 : index
    %c0_277 = arith.constant 0 : index
    %503 = vector.load %arg16[%c0_275, %c0_276, %c0_277] : memref<2x32x32xf32, #tpu.memory_space<vmem>>, vector<1x32x32xf32>
    %504 = vector.shape_cast %503 : vector<1x32x32xf32> to vector<32x32xf32>
    %cst_278 = arith.constant dense<0.000000e+00> : vector<1x32xf32>
    %505 = tpu.matmul %502, %504, %cst_278 {dimension_numbers = #tpu.dot_dimension_numbers<[1], [0], [0], [1], [0, 0, 1, 1], [], []>} : vector<1x32xf32>, vector<32x32xf32>, vector<1x32xf32> -> vector<1x32xf32>
    %c0_279 = arith.constant 0 : index
    %c0_280 = arith.constant 0 : index
    %c0_281 = arith.constant 0 : index
    %506 = vector.load %arg17[%c0_279, %c0_280, %c0_281] : memref<2x32x32xf32, #tpu.memory_space<vmem>>, vector<1x32x32xf32>
    %507 = vector.shape_cast %506 : vector<1x32x32xf32> to vector<32x32xf32>
    %cst_282 = arith.constant dense<0.000000e+00> : vector<1x32xf32>
    %508 = tpu.matmul %454, %507, %cst_282 {dimension_numbers = #tpu.dot_dimension_numbers<[1], [0], [0], [1], [0, 0, 1, 1], [], []>} : vector<1x32xf32>, vector<32x32xf32>, vector<1x32xf32> -> vector<1x32xf32>
    %509 = arith.addf %505, %508 : vector<1x32xf32>
    %c0_283 = arith.constant 0 : index
    %c0_284 = arith.constant 0 : index
    %c0_285 = arith.constant 0 : index
    %510 = vector.load %arg18[%c0_283, %c0_284, %c0_285] : memref<2x1x32xf32, #tpu.memory_space<vmem>>, vector<1x1x32xf32>
    %511 = vector.shape_cast %510 : vector<1x1x32xf32> to vector<1x32xf32>
    %512 = arith.addf %509, %511 : vector<1x32xf32>
    %513 = math.tanh %512 : vector<1x32xf32>
    %cst_286 = arith.constant 5.000000e-01 : f32
    %514 = vector.broadcast %cst_286 : f32 to vector<1x32xf32>
    %515 = arith.mulf %514, %453 : vector<1x32xf32>
    %cst_287 = arith.constant 5.000000e-01 : f32
    %516 = vector.broadcast %cst_287 : f32 to vector<1x32xf32>
    %517 = arith.mulf %516, %513 : vector<1x32xf32>
    %518 = arith.addf %515, %517 : vector<1x32xf32>
    %519 = math.tanh %518 : vector<1x32xf32>
    %c1_288 = arith.constant 1 : index
    %c0_289 = arith.constant 0 : index
    %c0_290 = arith.constant 0 : index
    %520 = vector.load %arg16[%c1_288, %c0_289, %c0_290] : memref<2x32x32xf32, #tpu.memory_space<vmem>>, vector<1x32x32xf32>
    %521 = vector.shape_cast %520 : vector<1x32x32xf32> to vector<32x32xf32>
    %cst_291 = arith.constant dense<0.000000e+00> : vector<1x32xf32>
    %522 = tpu.matmul %519, %521, %cst_291 {dimension_numbers = #tpu.dot_dimension_numbers<[1], [0], [0], [1], [0, 0, 1, 1], [], []>} : vector<1x32xf32>, vector<32x32xf32>, vector<1x32xf32> -> vector<1x32xf32>
    %c1_292 = arith.constant 1 : index
    %c0_293 = arith.constant 0 : index
    %c0_294 = arith.constant 0 : index
    %523 = vector.load %arg17[%c1_292, %c0_293, %c0_294] : memref<2x32x32xf32, #tpu.memory_space<vmem>>, vector<1x32x32xf32>
    %524 = vector.shape_cast %523 : vector<1x32x32xf32> to vector<32x32xf32>
    %cst_295 = arith.constant dense<0.000000e+00> : vector<1x32xf32>
    %525 = tpu.matmul %471, %524, %cst_295 {dimension_numbers = #tpu.dot_dimension_numbers<[1], [0], [0], [1], [0, 0, 1, 1], [], []>} : vector<1x32xf32>, vector<32x32xf32>, vector<1x32xf32> -> vector<1x32xf32>
    %526 = arith.addf %522, %525 : vector<1x32xf32>
    %c1_296 = arith.constant 1 : index
    %c0_297 = arith.constant 0 : index
    %c0_298 = arith.constant 0 : index
    %527 = vector.load %arg18[%c1_296, %c0_297, %c0_298] : memref<2x1x32xf32, #tpu.memory_space<vmem>>, vector<1x1x32xf32>
    %528 = vector.shape_cast %527 : vector<1x1x32xf32> to vector<1x32xf32>
    %529 = arith.addf %526, %528 : vector<1x32xf32>
    %530 = math.tanh %529 : vector<1x32xf32>
    %cst_299 = arith.constant 5.000000e-01 : f32
    %531 = vector.broadcast %cst_299 : f32 to vector<1x32xf32>
    %532 = arith.mulf %531, %470 : vector<1x32xf32>
    %cst_300 = arith.constant 5.000000e-01 : f32
    %533 = vector.broadcast %cst_300 : f32 to vector<1x32xf32>
    %534 = arith.mulf %533, %530 : vector<1x32xf32>
    %535 = arith.addf %532, %534 : vector<1x32xf32>
    %536 = math.tanh %535 : vector<1x32xf32>
    %537 = vector.broadcast %536 : vector<1x32xf32> to vector<8x32xf32>
    %538 = arith.mulf %537, %8 : vector<8x32xf32>
    %cst_301 = arith.constant dense<0.000000e+00> : vector<8xf32>
    %539 = vector.multi_reduction <add>, %538, %cst_301 [1] : vector<8x32xf32> to vector<8xf32>
    %540 = vector.shape_cast %539 : vector<8xf32> to vector<8x1xf32>
    %cst_302 = arith.constant dense<0xFF800000> : vector<1xf32>
    %541 = vector.multi_reduction <maximumf>, %540, %cst_302 [0] : vector<8x1xf32> to vector<1xf32>
    %542 = vector.shape_cast %541 : vector<1xf32> to vector<1x1xf32>
    %543 = vector.broadcast %542 : vector<1x1xf32> to vector<8x1xf32>
    %544 = arith.subf %540, %543 : vector<8x1xf32>
    %545 = math.exp %544 : vector<8x1xf32>
    %cst_303 = arith.constant dense<0.000000e+00> : vector<1xf32>
    %546 = vector.multi_reduction <add>, %545, %cst_303 [0] : vector<8x1xf32> to vector<1xf32>
    %547 = vector.shape_cast %546 : vector<1xf32> to vector<1x1xf32>
    %548 = tpu.reciprocal %547 {approx = true} : vector<1x1xf32> -> vector<1x1xf32>
    %549 = vector.broadcast %548 : vector<1x1xf32> to vector<8x1xf32>
    %550 = arith.mulf %545, %549 : vector<8x1xf32>
    %551 = vector.broadcast %550 : vector<8x1xf32> to vector<8x9xf32>
    %552 = arith.mulf %551, %105 : vector<8x9xf32>
    %cst_304 = arith.constant dense<0.000000e+00> : vector<9xf32>
    %553 = vector.multi_reduction <add>, %552, %cst_304 [0] : vector<8x9xf32> to vector<9xf32>
    %554 = vector.shape_cast %553 : vector<9xf32> to vector<1x9xf32>
    %c0_305 = arith.constant 0 : index
    %c0_306 = arith.constant 0 : index
    %555 = vector.load %arg19[%c0_305, %c0_306] : memref<32x9xf32, #tpu.memory_space<vmem>>, vector<32x9xf32>
    %cst_307 = arith.constant dense<0.000000e+00> : vector<1x9xf32>
    %556 = tpu.matmul %536, %555, %cst_307 {dimension_numbers = #tpu.dot_dimension_numbers<[1], [0], [0], [1], [0, 0, 1, 1], [], []>} : vector<1x32xf32>, vector<32x9xf32>, vector<1x9xf32> -> vector<1x9xf32>
    %557 = arith.addf %556, %554 : vector<1x9xf32>
    %c0_308 = arith.constant 0 : index
    %c0_309 = arith.constant 0 : index
    %558 = vector.load %arg21[%c0_308, %c0_309] : memref<1x9xf32, #tpu.memory_space<vmem>>, vector<1x9xf32>
    %559 = arith.addf %557, %558 : vector<1x9xf32>
    %c0_310 = arith.constant 0 : index
    %c54 = arith.constant 54 : index
    %560 = vector.load %arg22[%c0_310, %c54] : memref<2x72xf32, #tpu.memory_space<vmem>>, vector<1x9xf32>
    tpu.vector_store %arg22[%c0_310, %c54], %559 {strides = array<i32>} : memref<2x72xf32, #tpu.memory_space<vmem>>, vector<1x9xf32>,
    %561 = vector.extract_strided_slice %559 {offsets = [0, 4], sizes = [1, 1], strides = [1, 1]} : vector<1x9xf32> to vector<1x1xf32>
    %562 = vector.extract_strided_slice %103 {offsets = [7, 0], sizes = [1, 32], strides = [1, 1]} : vector<8x32xf32> to vector<1x32xf32>
    %c0_311 = arith.constant 0 : index
    %c0_312 = arith.constant 0 : index
    %563 = vector.load %arg14[%c0_311, %c0_312] : memref<1x32xf32, #tpu.memory_space<vmem>>, vector<1x32xf32>
    %564 = vector.broadcast %561 : vector<1x1xf32> to vector<1x32xf32>
    %565 = arith.mulf %564, %563 : vector<1x32xf32>
    %566 = arith.addf %562, %565 : vector<1x32xf32>
    %567 = math.tanh %566 : vector<1x32xf32>
    %c0_313 = arith.constant 0 : index
    %c0_314 = arith.constant 0 : index
    %c0_315 = arith.constant 0 : index
    %568 = vector.load %arg16[%c0_313, %c0_314, %c0_315] : memref<2x32x32xf32, #tpu.memory_space<vmem>>, vector<1x32x32xf32>
    %569 = vector.shape_cast %568 : vector<1x32x32xf32> to vector<32x32xf32>
    %cst_316 = arith.constant dense<0.000000e+00> : vector<1x32xf32>
    %570 = tpu.matmul %567, %569, %cst_316 {dimension_numbers = #tpu.dot_dimension_numbers<[1], [0], [0], [1], [0, 0, 1, 1], [], []>} : vector<1x32xf32>, vector<32x32xf32>, vector<1x32xf32> -> vector<1x32xf32>
    %c0_317 = arith.constant 0 : index
    %c0_318 = arith.constant 0 : index
    %c0_319 = arith.constant 0 : index
    %571 = vector.load %arg17[%c0_317, %c0_318, %c0_319] : memref<2x32x32xf32, #tpu.memory_space<vmem>>, vector<1x32x32xf32>
    %572 = vector.shape_cast %571 : vector<1x32x32xf32> to vector<32x32xf32>
    %cst_320 = arith.constant dense<0.000000e+00> : vector<1x32xf32>
    %573 = tpu.matmul %519, %572, %cst_320 {dimension_numbers = #tpu.dot_dimension_numbers<[1], [0], [0], [1], [0, 0, 1, 1], [], []>} : vector<1x32xf32>, vector<32x32xf32>, vector<1x32xf32> -> vector<1x32xf32>
    %574 = arith.addf %570, %573 : vector<1x32xf32>
    %c0_321 = arith.constant 0 : index
    %c0_322 = arith.constant 0 : index
    %c0_323 = arith.constant 0 : index
    %575 = vector.load %arg18[%c0_321, %c0_322, %c0_323] : memref<2x1x32xf32, #tpu.memory_space<vmem>>, vector<1x1x32xf32>
    %576 = vector.shape_cast %575 : vector<1x1x32xf32> to vector<1x32xf32>
    %577 = arith.addf %574, %576 : vector<1x32xf32>
    %578 = math.tanh %577 : vector<1x32xf32>
    %cst_324 = arith.constant 5.000000e-01 : f32
    %579 = vector.broadcast %cst_324 : f32 to vector<1x32xf32>
    %580 = arith.mulf %579, %518 : vector<1x32xf32>
    %cst_325 = arith.constant 5.000000e-01 : f32
    %581 = vector.broadcast %cst_325 : f32 to vector<1x32xf32>
    %582 = arith.mulf %581, %578 : vector<1x32xf32>
    %583 = arith.addf %580, %582 : vector<1x32xf32>
    %584 = math.tanh %583 : vector<1x32xf32>
    %c1_326 = arith.constant 1 : index
    %c0_327 = arith.constant 0 : index
    %c0_328 = arith.constant 0 : index
    %585 = vector.load %arg16[%c1_326, %c0_327, %c0_328] : memref<2x32x32xf32, #tpu.memory_space<vmem>>, vector<1x32x32xf32>
    %586 = vector.shape_cast %585 : vector<1x32x32xf32> to vector<32x32xf32>
    %cst_329 = arith.constant dense<0.000000e+00> : vector<1x32xf32>
    %587 = tpu.matmul %584, %586, %cst_329 {dimension_numbers = #tpu.dot_dimension_numbers<[1], [0], [0], [1], [0, 0, 1, 1], [], []>} : vector<1x32xf32>, vector<32x32xf32>, vector<1x32xf32> -> vector<1x32xf32>
    %c1_330 = arith.constant 1 : index
    %c0_331 = arith.constant 0 : index
    %c0_332 = arith.constant 0 : index
    %588 = vector.load %arg17[%c1_330, %c0_331, %c0_332] : memref<2x32x32xf32, #tpu.memory_space<vmem>>, vector<1x32x32xf32>
    %589 = vector.shape_cast %588 : vector<1x32x32xf32> to vector<32x32xf32>
    %cst_333 = arith.constant dense<0.000000e+00> : vector<1x32xf32>
    %590 = tpu.matmul %536, %589, %cst_333 {dimension_numbers = #tpu.dot_dimension_numbers<[1], [0], [0], [1], [0, 0, 1, 1], [], []>} : vector<1x32xf32>, vector<32x32xf32>, vector<1x32xf32> -> vector<1x32xf32>
    %591 = arith.addf %587, %590 : vector<1x32xf32>
    %c1_334 = arith.constant 1 : index
    %c0_335 = arith.constant 0 : index
    %c0_336 = arith.constant 0 : index
    %592 = vector.load %arg18[%c1_334, %c0_335, %c0_336] : memref<2x1x32xf32, #tpu.memory_space<vmem>>, vector<1x1x32xf32>
    %593 = vector.shape_cast %592 : vector<1x1x32xf32> to vector<1x32xf32>
    %594 = arith.addf %591, %593 : vector<1x32xf32>
    %595 = math.tanh %594 : vector<1x32xf32>
    %cst_337 = arith.constant 5.000000e-01 : f32
    %596 = vector.broadcast %cst_337 : f32 to vector<1x32xf32>
    %597 = arith.mulf %596, %535 : vector<1x32xf32>
    %cst_338 = arith.constant 5.000000e-01 : f32
    %598 = vector.broadcast %cst_338 : f32 to vector<1x32xf32>
    %599 = arith.mulf %598, %595 : vector<1x32xf32>
    %600 = arith.addf %597, %599 : vector<1x32xf32>
    %601 = math.tanh %600 : vector<1x32xf32>
    %602 = vector.broadcast %601 : vector<1x32xf32> to vector<8x32xf32>
    %603 = arith.mulf %602, %8 : vector<8x32xf32>
    %cst_339 = arith.constant dense<0.000000e+00> : vector<8xf32>
    %604 = vector.multi_reduction <add>, %603, %cst_339 [1] : vector<8x32xf32> to vector<8xf32>
    %605 = vector.shape_cast %604 : vector<8xf32> to vector<8x1xf32>
    %cst_340 = arith.constant dense<0xFF800000> : vector<1xf32>
    %606 = vector.multi_reduction <maximumf>, %605, %cst_340 [0] : vector<8x1xf32> to vector<1xf32>
    %607 = vector.shape_cast %606 : vector<1xf32> to vector<1x1xf32>
    %608 = vector.broadcast %607 : vector<1x1xf32> to vector<8x1xf32>
    %609 = arith.subf %605, %608 : vector<8x1xf32>
    %610 = math.exp %609 : vector<8x1xf32>
    %cst_341 = arith.constant dense<0.000000e+00> : vector<1xf32>
    %611 = vector.multi_reduction <add>, %610, %cst_341 [0] : vector<8x1xf32> to vector<1xf32>
    %612 = vector.shape_cast %611 : vector<1xf32> to vector<1x1xf32>
    %613 = tpu.reciprocal %612 {approx = true} : vector<1x1xf32> -> vector<1x1xf32>
    %614 = vector.broadcast %613 : vector<1x1xf32> to vector<8x1xf32>
    %615 = arith.mulf %610, %614 : vector<8x1xf32>
    %616 = vector.broadcast %615 : vector<8x1xf32> to vector<8x9xf32>
    %617 = arith.mulf %616, %105 : vector<8x9xf32>
    %cst_342 = arith.constant dense<0.000000e+00> : vector<9xf32>
    %618 = vector.multi_reduction <add>, %617, %cst_342 [0] : vector<8x9xf32> to vector<9xf32>
    %619 = vector.shape_cast %618 : vector<9xf32> to vector<1x9xf32>
    %c0_343 = arith.constant 0 : index
    %c0_344 = arith.constant 0 : index
    %620 = vector.load %arg19[%c0_343, %c0_344] : memref<32x9xf32, #tpu.memory_space<vmem>>, vector<32x9xf32>
    %cst_345 = arith.constant dense<0.000000e+00> : vector<1x9xf32>
    %621 = tpu.matmul %601, %620, %cst_345 {dimension_numbers = #tpu.dot_dimension_numbers<[1], [0], [0], [1], [0, 0, 1, 1], [], []>} : vector<1x32xf32>, vector<32x9xf32>, vector<1x9xf32> -> vector<1x9xf32>
    %622 = arith.addf %621, %619 : vector<1x9xf32>
    %c0_346 = arith.constant 0 : index
    %c0_347 = arith.constant 0 : index
    %623 = vector.load %arg21[%c0_346, %c0_347] : memref<1x9xf32, #tpu.memory_space<vmem>>, vector<1x9xf32>
    %624 = arith.addf %622, %623 : vector<1x9xf32>
    %c0_348 = arith.constant 0 : index
    %c63 = arith.constant 63 : index
    %625 = vector.load %arg22[%c0_348, %c63] : memref<2x72xf32, #tpu.memory_space<vmem>>, vector<1x9xf32>
    tpu.vector_store %arg22[%c0_348, %c63], %624 {strides = array<i32>} : memref<2x72xf32, #tpu.memory_space<vmem>>, vector<1x9xf32>,
    %c1_349 = arith.constant 1 : index
    %c0_350 = arith.constant 0 : index
    %c0_351 = arith.constant 0 : index
    %626 = vector.load %arg4[%c1_349, %c0_350, %c0_351] : memref<2x8x10xf32, #tpu.memory_space<vmem>>, vector<1x8x10xf32>
    %627 = vector.shape_cast %626 : vector<1x8x10xf32> to vector<8x10xf32>
    %c0_352 = arith.constant 0 : index
    %c0_353 = arith.constant 0 : index
    %628 = vector.load %arg7[%c0_352, %c0_353] : memref<10x32xf32, #tpu.memory_space<vmem>>, vector<10x32xf32>
    %cst_354 = arith.constant dense<0.000000e+00> : vector<8x32xf32>
    %629 = tpu.matmul %627, %628, %cst_354 {dimension_numbers = #tpu.dot_dimension_numbers<[1], [0], [0], [1], [0, 0, 1, 1], [], []>} : vector<8x10xf32>, vector<10x32xf32>, vector<8x32xf32> -> vector<8x32xf32>
    %c0_355 = arith.constant 0 : index
    %c0_356 = arith.constant 0 : index
    %630 = vector.load %arg8[%c0_355, %c0_356] : memref<1x32xf32, #tpu.memory_space<vmem>>, vector<1x32xf32>
    %631 = vector.broadcast %630 : vector<1x32xf32> to vector<8x32xf32>
    %632 = arith.addf %629, %631 : vector<8x32xf32>
    %633 = math.tanh %632 : vector<8x32xf32>
    %c0_357 = arith.constant 0 : index
    %c0_358 = arith.constant 0 : index
    %634 = vector.load %arg9[%c0_357, %c0_358] : memref<32x32xf32, #tpu.memory_space<vmem>>, vector<32x32xf32>
    %cst_359 = arith.constant dense<0.000000e+00> : vector<8x32xf32>
    %635 = tpu.matmul %633, %634, %cst_359 {dimension_numbers = #tpu.dot_dimension_numbers<[1], [0], [0], [1], [0, 0, 1, 1], [], []>} : vector<8x32xf32>, vector<32x32xf32>, vector<8x32xf32> -> vector<8x32xf32>
    %c0_360 = arith.constant 0 : index
    %c0_361 = arith.constant 0 : index
    %636 = vector.load %arg10[%c0_360, %c0_361] : memref<1x32xf32, #tpu.memory_space<vmem>>, vector<1x32xf32>
    %637 = vector.broadcast %636 : vector<1x32xf32> to vector<8x32xf32>
    %638 = arith.addf %635, %637 : vector<8x32xf32>
    %639 = math.tanh %638 : vector<8x32xf32>
    %c0_362 = arith.constant 0 : index
    %c0_363 = arith.constant 0 : index
    %640 = vector.load %arg11[%c0_362, %c0_363] : memref<32x32xf32, #tpu.memory_space<vmem>>, vector<32x32xf32>
    %cst_364 = arith.constant dense<0.000000e+00> : vector<8x32xf32>
    %641 = tpu.matmul %633, %640, %cst_364 {dimension_numbers = #tpu.dot_dimension_numbers<[1], [0], [0], [1], [0, 0, 1, 1], [], []>} : vector<8x32xf32>, vector<32x32xf32>, vector<8x32xf32> -> vector<8x32xf32>
    %c0_365 = arith.constant 0 : index
    %c0_366 = arith.constant 0 : index
    %642 = vector.load %arg12[%c0_365, %c0_366] : memref<1x32xf32, #tpu.memory_space<vmem>>, vector<1x32xf32>
    %643 = vector.broadcast %642 : vector<1x32xf32> to vector<8x32xf32>
    %644 = arith.addf %641, %643 : vector<8x32xf32>
    %645 = math.tanh %644 : vector<8x32xf32>
    %cst_367 = arith.constant 0.000000e+00 : f32
    %646 = vector.broadcast %cst_367 : f32 to vector<1x32xf32>
    %cst_368 = arith.constant 0.000000e+00 : f32
    %647 = vector.broadcast %cst_368 : f32 to vector<1x32xf32>
    %c0_369 = arith.constant 0 : index
    %648 = memref.load %arg0[%c0_369] : memref<6xf32, #tpu.memory_space<smem>>
    %649 = vector.extract_strided_slice %639 {offsets = [7, 0], sizes = [1, 32], strides = [1, 1]} : vector<8x32xf32> to vector<1x32xf32>
    %650 = vector.broadcast %648 : f32 to vector<1x32xf32>
    %651 = arith.mulf %650, %649 : vector<1x32xf32>
    %652 = arith.addf %646, %651 : vector<1x32xf32>
    %c0_370 = arith.constant 0 : index
    %653 = memref.load %arg2[%c0_370] : memref<6xf32, #tpu.memory_space<smem>>
    %654 = vector.extract_strided_slice %645 {offsets = [7, 0], sizes = [1, 32], strides = [1, 1]} : vector<8x32xf32> to vector<1x32xf32>
    %655 = vector.broadcast %653 : f32 to vector<1x32xf32>
    %656 = arith.mulf %655, %654 : vector<1x32xf32>
    %657 = arith.addf %647, %656 : vector<1x32xf32>
    %c1_371 = arith.constant 1 : index
    %658 = memref.load %arg0[%c1_371] : memref<6xf32, #tpu.memory_space<smem>>
    %659 = vector.extract_strided_slice %639 {offsets = [6, 0], sizes = [1, 32], strides = [1, 1]} : vector<8x32xf32> to vector<1x32xf32>
    %660 = vector.broadcast %658 : f32 to vector<1x32xf32>
    %661 = arith.mulf %660, %659 : vector<1x32xf32>
    %662 = arith.addf %652, %661 : vector<1x32xf32>
    %c1_372 = arith.constant 1 : index
    %663 = memref.load %arg2[%c1_372] : memref<6xf32, #tpu.memory_space<smem>>
    %664 = vector.extract_strided_slice %645 {offsets = [6, 0], sizes = [1, 32], strides = [1, 1]} : vector<8x32xf32> to vector<1x32xf32>
    %665 = vector.broadcast %663 : f32 to vector<1x32xf32>
    %666 = arith.mulf %665, %664 : vector<1x32xf32>
    %667 = arith.addf %657, %666 : vector<1x32xf32>
    %c2_373 = arith.constant 2 : index
    %668 = memref.load %arg0[%c2_373] : memref<6xf32, #tpu.memory_space<smem>>
    %669 = vector.extract_strided_slice %639 {offsets = [7, 0], sizes = [1, 32], strides = [1, 1]} : vector<8x32xf32> to vector<1x32xf32>
    %670 = vector.broadcast %668 : f32 to vector<1x32xf32>
    %671 = arith.mulf %670, %669 : vector<1x32xf32>
    %672 = arith.addf %662, %671 : vector<1x32xf32>
    %c2_374 = arith.constant 2 : index
    %673 = memref.load %arg2[%c2_374] : memref<6xf32, #tpu.memory_space<smem>>
    %674 = vector.extract_strided_slice %645 {offsets = [7, 0], sizes = [1, 32], strides = [1, 1]} : vector<8x32xf32> to vector<1x32xf32>
    %675 = vector.broadcast %673 : f32 to vector<1x32xf32>
    %676 = arith.mulf %675, %674 : vector<1x32xf32>
    %677 = arith.addf %667, %676 : vector<1x32xf32>
    %c0_375 = arith.constant 0 : index
    %678 = memref.load %arg1[%c0_375] : memref<2xf32, #tpu.memory_space<smem>>
    %679 = vector.broadcast %678 : f32 to vector<1x32xf32>
    %680 = arith.addf %672, %679 : vector<1x32xf32>
    %c0_376 = arith.constant 0 : index
    %681 = memref.load %arg3[%c0_376] : memref<2xf32, #tpu.memory_space<smem>>
    %682 = vector.broadcast %681 : f32 to vector<1x32xf32>
    %683 = arith.addf %677, %682 : vector<1x32xf32>
    %cst_377 = arith.constant 0.000000e+00 : f32
    %684 = vector.broadcast %cst_377 : f32 to vector<1x32xf32>
    %cst_378 = arith.constant 0.000000e+00 : f32
    %685 = vector.broadcast %cst_378 : f32 to vector<1x32xf32>
    %c3_379 = arith.constant 3 : index
    %686 = memref.load %arg0[%c3_379] : memref<6xf32, #tpu.memory_space<smem>>
    %687 = vector.extract_strided_slice %639 {offsets = [7, 0], sizes = [1, 32], strides = [1, 1]} : vector<8x32xf32> to vector<1x32xf32>
    %688 = vector.broadcast %686 : f32 to vector<1x32xf32>
    %689 = arith.mulf %688, %687 : vector<1x32xf32>
    %690 = arith.addf %684, %689 : vector<1x32xf32>
    %c3_380 = arith.constant 3 : index
    %691 = memref.load %arg2[%c3_380] : memref<6xf32, #tpu.memory_space<smem>>
    %692 = vector.extract_strided_slice %645 {offsets = [7, 0], sizes = [1, 32], strides = [1, 1]} : vector<8x32xf32> to vector<1x32xf32>
    %693 = vector.broadcast %691 : f32 to vector<1x32xf32>
    %694 = arith.mulf %693, %692 : vector<1x32xf32>
    %695 = arith.addf %685, %694 : vector<1x32xf32>
    %c4_381 = arith.constant 4 : index
    %696 = memref.load %arg0[%c4_381] : memref<6xf32, #tpu.memory_space<smem>>
    %697 = vector.extract_strided_slice %639 {offsets = [6, 0], sizes = [1, 32], strides = [1, 1]} : vector<8x32xf32> to vector<1x32xf32>
    %698 = vector.broadcast %696 : f32 to vector<1x32xf32>
    %699 = arith.mulf %698, %697 : vector<1x32xf32>
    %700 = arith.addf %690, %699 : vector<1x32xf32>
    %c4_382 = arith.constant 4 : index
    %701 = memref.load %arg2[%c4_382] : memref<6xf32, #tpu.memory_space<smem>>
    %702 = vector.extract_strided_slice %645 {offsets = [6, 0], sizes = [1, 32], strides = [1, 1]} : vector<8x32xf32> to vector<1x32xf32>
    %703 = vector.broadcast %701 : f32 to vector<1x32xf32>
    %704 = arith.mulf %703, %702 : vector<1x32xf32>
    %705 = arith.addf %695, %704 : vector<1x32xf32>
    %c5_383 = arith.constant 5 : index
    %706 = memref.load %arg0[%c5_383] : memref<6xf32, #tpu.memory_space<smem>>
    %707 = vector.extract_strided_slice %639 {offsets = [7, 0], sizes = [1, 32], strides = [1, 1]} : vector<8x32xf32> to vector<1x32xf32>
    %708 = vector.broadcast %706 : f32 to vector<1x32xf32>
    %709 = arith.mulf %708, %707 : vector<1x32xf32>
    %710 = arith.addf %700, %709 : vector<1x32xf32>
    %c5_384 = arith.constant 5 : index
    %711 = memref.load %arg2[%c5_384] : memref<6xf32, #tpu.memory_space<smem>>
    %712 = vector.extract_strided_slice %645 {offsets = [7, 0], sizes = [1, 32], strides = [1, 1]} : vector<8x32xf32> to vector<1x32xf32>
    %713 = vector.broadcast %711 : f32 to vector<1x32xf32>
    %714 = arith.mulf %713, %712 : vector<1x32xf32>
    %715 = arith.addf %705, %714 : vector<1x32xf32>
    %c1_385 = arith.constant 1 : index
    %716 = memref.load %arg1[%c1_385] : memref<2xf32, #tpu.memory_space<smem>>
    %717 = vector.broadcast %716 : f32 to vector<1x32xf32>
    %718 = arith.addf %710, %717 : vector<1x32xf32>
    %c1_386 = arith.constant 1 : index
    %719 = memref.load %arg3[%c1_386] : memref<2xf32, #tpu.memory_space<smem>>
    %720 = vector.broadcast %719 : f32 to vector<1x32xf32>
    %721 = arith.addf %715, %720 : vector<1x32xf32>
    %c1_387 = arith.constant 1 : index
    %c0_388 = arith.constant 0 : index
    %c0_389 = arith.constant 0 : index
    %722 = vector.load %arg5[%c1_387, %c0_388, %c0_389] : memref<2x8x10xf32, #tpu.memory_space<vmem>>, vector<1x8x10xf32>
    %723 = vector.shape_cast %722 : vector<1x8x10xf32> to vector<8x10xf32>
    %c0_390 = arith.constant 0 : index
    %c0_391 = arith.constant 0 : index
    %724 = vector.load %arg13[%c0_390, %c0_391] : memref<10x32xf32, #tpu.memory_space<vmem>>, vector<10x32xf32>
    %cst_392 = arith.constant dense<0.000000e+00> : vector<8x32xf32>
    %725 = tpu.matmul %723, %724, %cst_392 {dimension_numbers = #tpu.dot_dimension_numbers<[1], [0], [0], [1], [0, 0, 1, 1], [], []>} : vector<8x10xf32>, vector<10x32xf32>, vector<8x32xf32> -> vector<8x32xf32>
    %c0_393 = arith.constant 0 : index
    %c0_394 = arith.constant 0 : index
    %726 = vector.load %arg15[%c0_393, %c0_394] : memref<1x32xf32, #tpu.memory_space<vmem>>, vector<1x32xf32>
    %727 = vector.broadcast %726 : vector<1x32xf32> to vector<8x32xf32>
    %728 = arith.addf %725, %727 : vector<8x32xf32>
    %c0_395 = arith.constant 0 : index
    %c0_396 = arith.constant 0 : index
    %729 = vector.load %arg20[%c0_395, %c0_396] : memref<32x9xf32, #tpu.memory_space<vmem>>, vector<32x9xf32>
    %cst_397 = arith.constant dense<0.000000e+00> : vector<8x9xf32>
    %730 = tpu.matmul %633, %729, %cst_397 {dimension_numbers = #tpu.dot_dimension_numbers<[1], [0], [0], [1], [0, 0, 1, 1], [], []>} : vector<8x32xf32>, vector<32x9xf32>, vector<8x9xf32> -> vector<8x9xf32>
    %731 = vector.extract_strided_slice %0 {offsets = [1, 0], sizes = [1, 1], strides = [1, 1]} : vector<2x1xf32> to vector<1x1xf32>
    %732 = vector.extract_strided_slice %728 {offsets = [0, 0], sizes = [1, 32], strides = [1, 1]} : vector<8x32xf32> to vector<1x32xf32>
    %c0_398 = arith.constant 0 : index
    %c0_399 = arith.constant 0 : index
    %733 = vector.load %arg14[%c0_398, %c0_399] : memref<1x32xf32, #tpu.memory_space<vmem>>, vector<1x32xf32>
    %734 = vector.broadcast %731 : vector<1x1xf32> to vector<1x32xf32>
    %735 = arith.mulf %734, %733 : vector<1x32xf32>
    %736 = arith.addf %732, %735 : vector<1x32xf32>
    %737 = math.tanh %736 : vector<1x32xf32>
    %c0_400 = arith.constant 0 : index
    %c0_401 = arith.constant 0 : index
    %c0_402 = arith.constant 0 : index
    %738 = vector.load %arg16[%c0_400, %c0_401, %c0_402] : memref<2x32x32xf32, #tpu.memory_space<vmem>>, vector<1x32x32xf32>
    %739 = vector.shape_cast %738 : vector<1x32x32xf32> to vector<32x32xf32>
    %cst_403 = arith.constant dense<0.000000e+00> : vector<1x32xf32>
    %740 = tpu.matmul %737, %739, %cst_403 {dimension_numbers = #tpu.dot_dimension_numbers<[1], [0], [0], [1], [0, 0, 1, 1], [], []>} : vector<1x32xf32>, vector<32x32xf32>, vector<1x32xf32> -> vector<1x32xf32>
    %c0_404 = arith.constant 0 : index
    %c0_405 = arith.constant 0 : index
    %c0_406 = arith.constant 0 : index
    %741 = vector.load %arg17[%c0_404, %c0_405, %c0_406] : memref<2x32x32xf32, #tpu.memory_space<vmem>>, vector<1x32x32xf32>
    %742 = vector.shape_cast %741 : vector<1x32x32xf32> to vector<32x32xf32>
    %cst_407 = arith.constant dense<0.000000e+00> : vector<1x32xf32>
    %743 = tpu.matmul %680, %742, %cst_407 {dimension_numbers = #tpu.dot_dimension_numbers<[1], [0], [0], [1], [0, 0, 1, 1], [], []>} : vector<1x32xf32>, vector<32x32xf32>, vector<1x32xf32> -> vector<1x32xf32>
    %744 = arith.addf %740, %743 : vector<1x32xf32>
    %c0_408 = arith.constant 0 : index
    %c0_409 = arith.constant 0 : index
    %c0_410 = arith.constant 0 : index
    %745 = vector.load %arg18[%c0_408, %c0_409, %c0_410] : memref<2x1x32xf32, #tpu.memory_space<vmem>>, vector<1x1x32xf32>
    %746 = vector.shape_cast %745 : vector<1x1x32xf32> to vector<1x32xf32>
    %747 = arith.addf %744, %746 : vector<1x32xf32>
    %748 = math.tanh %747 : vector<1x32xf32>
    %cst_411 = arith.constant 5.000000e-01 : f32
    %749 = vector.broadcast %cst_411 : f32 to vector<1x32xf32>
    %750 = arith.mulf %749, %683 : vector<1x32xf32>
    %cst_412 = arith.constant 5.000000e-01 : f32
    %751 = vector.broadcast %cst_412 : f32 to vector<1x32xf32>
    %752 = arith.mulf %751, %748 : vector<1x32xf32>
    %753 = arith.addf %750, %752 : vector<1x32xf32>
    %754 = math.tanh %753 : vector<1x32xf32>
    %c1_413 = arith.constant 1 : index
    %c0_414 = arith.constant 0 : index
    %c0_415 = arith.constant 0 : index
    %755 = vector.load %arg16[%c1_413, %c0_414, %c0_415] : memref<2x32x32xf32, #tpu.memory_space<vmem>>, vector<1x32x32xf32>
    %756 = vector.shape_cast %755 : vector<1x32x32xf32> to vector<32x32xf32>
    %cst_416 = arith.constant dense<0.000000e+00> : vector<1x32xf32>
    %757 = tpu.matmul %754, %756, %cst_416 {dimension_numbers = #tpu.dot_dimension_numbers<[1], [0], [0], [1], [0, 0, 1, 1], [], []>} : vector<1x32xf32>, vector<32x32xf32>, vector<1x32xf32> -> vector<1x32xf32>
    %c1_417 = arith.constant 1 : index
    %c0_418 = arith.constant 0 : index
    %c0_419 = arith.constant 0 : index
    %758 = vector.load %arg17[%c1_417, %c0_418, %c0_419] : memref<2x32x32xf32, #tpu.memory_space<vmem>>, vector<1x32x32xf32>
    %759 = vector.shape_cast %758 : vector<1x32x32xf32> to vector<32x32xf32>
    %cst_420 = arith.constant dense<0.000000e+00> : vector<1x32xf32>
    %760 = tpu.matmul %718, %759, %cst_420 {dimension_numbers = #tpu.dot_dimension_numbers<[1], [0], [0], [1], [0, 0, 1, 1], [], []>} : vector<1x32xf32>, vector<32x32xf32>, vector<1x32xf32> -> vector<1x32xf32>
    %761 = arith.addf %757, %760 : vector<1x32xf32>
    %c1_421 = arith.constant 1 : index
    %c0_422 = arith.constant 0 : index
    %c0_423 = arith.constant 0 : index
    %762 = vector.load %arg18[%c1_421, %c0_422, %c0_423] : memref<2x1x32xf32, #tpu.memory_space<vmem>>, vector<1x1x32xf32>
    %763 = vector.shape_cast %762 : vector<1x1x32xf32> to vector<1x32xf32>
    %764 = arith.addf %761, %763 : vector<1x32xf32>
    %765 = math.tanh %764 : vector<1x32xf32>
    %cst_424 = arith.constant 5.000000e-01 : f32
    %766 = vector.broadcast %cst_424 : f32 to vector<1x32xf32>
    %767 = arith.mulf %766, %721 : vector<1x32xf32>
    %cst_425 = arith.constant 5.000000e-01 : f32
    %768 = vector.broadcast %cst_425 : f32 to vector<1x32xf32>
    %769 = arith.mulf %768, %765 : vector<1x32xf32>
    %770 = arith.addf %767, %769 : vector<1x32xf32>
    %771 = math.tanh %770 : vector<1x32xf32>
    %772 = vector.broadcast %771 : vector<1x32xf32> to vector<8x32xf32>
    %773 = arith.mulf %772, %633 : vector<8x32xf32>
    %cst_426 = arith.constant dense<0.000000e+00> : vector<8xf32>
    %774 = vector.multi_reduction <add>, %773, %cst_426 [1] : vector<8x32xf32> to vector<8xf32>
    %775 = vector.shape_cast %774 : vector<8xf32> to vector<8x1xf32>
    %cst_427 = arith.constant dense<0xFF800000> : vector<1xf32>
    %776 = vector.multi_reduction <maximumf>, %775, %cst_427 [0] : vector<8x1xf32> to vector<1xf32>
    %777 = vector.shape_cast %776 : vector<1xf32> to vector<1x1xf32>
    %778 = vector.broadcast %777 : vector<1x1xf32> to vector<8x1xf32>
    %779 = arith.subf %775, %778 : vector<8x1xf32>
    %780 = math.exp %779 : vector<8x1xf32>
    %cst_428 = arith.constant dense<0.000000e+00> : vector<1xf32>
    %781 = vector.multi_reduction <add>, %780, %cst_428 [0] : vector<8x1xf32> to vector<1xf32>
    %782 = vector.shape_cast %781 : vector<1xf32> to vector<1x1xf32>
    %783 = tpu.reciprocal %782 {approx = true} : vector<1x1xf32> -> vector<1x1xf32>
    %784 = vector.broadcast %783 : vector<1x1xf32> to vector<8x1xf32>
    %785 = arith.mulf %780, %784 : vector<8x1xf32>
    %786 = vector.broadcast %785 : vector<8x1xf32> to vector<8x9xf32>
    %787 = arith.mulf %786, %730 : vector<8x9xf32>
    %cst_429 = arith.constant dense<0.000000e+00> : vector<9xf32>
    %788 = vector.multi_reduction <add>, %787, %cst_429 [0] : vector<8x9xf32> to vector<9xf32>
    %789 = vector.shape_cast %788 : vector<9xf32> to vector<1x9xf32>
    %c0_430 = arith.constant 0 : index
    %c0_431 = arith.constant 0 : index
    %790 = vector.load %arg19[%c0_430, %c0_431] : memref<32x9xf32, #tpu.memory_space<vmem>>, vector<32x9xf32>
    %cst_432 = arith.constant dense<0.000000e+00> : vector<1x9xf32>
    %791 = tpu.matmul %771, %790, %cst_432 {dimension_numbers = #tpu.dot_dimension_numbers<[1], [0], [0], [1], [0, 0, 1, 1], [], []>} : vector<1x32xf32>, vector<32x9xf32>, vector<1x9xf32> -> vector<1x9xf32>
    %792 = arith.addf %791, %789 : vector<1x9xf32>
    %c0_433 = arith.constant 0 : index
    %c0_434 = arith.constant 0 : index
    %793 = vector.load %arg21[%c0_433, %c0_434] : memref<1x9xf32, #tpu.memory_space<vmem>>, vector<1x9xf32>
    %794 = arith.addf %792, %793 : vector<1x9xf32>
    %c1_435 = arith.constant 1 : index
    %c0_436 = arith.constant 0 : index
    %795 = vector.load %arg22[%c1_435, %c0_436] : memref<2x72xf32, #tpu.memory_space<vmem>>, vector<1x9xf32>
    tpu.vector_store %arg22[%c1_435, %c0_436], %794 {strides = array<i32>} : memref<2x72xf32, #tpu.memory_space<vmem>>, vector<1x9xf32>,
    %796 = vector.extract_strided_slice %794 {offsets = [0, 4], sizes = [1, 1], strides = [1, 1]} : vector<1x9xf32> to vector<1x1xf32>
    %797 = vector.extract_strided_slice %728 {offsets = [1, 0], sizes = [1, 32], strides = [1, 1]} : vector<8x32xf32> to vector<1x32xf32>
    %c0_437 = arith.constant 0 : index
    %c0_438 = arith.constant 0 : index
    %798 = vector.load %arg14[%c0_437, %c0_438] : memref<1x32xf32, #tpu.memory_space<vmem>>, vector<1x32xf32>
    %799 = vector.broadcast %796 : vector<1x1xf32> to vector<1x32xf32>
    %800 = arith.mulf %799, %798 : vector<1x32xf32>
    %801 = arith.addf %797, %800 : vector<1x32xf32>
    %802 = math.tanh %801 : vector<1x32xf32>
    %c0_439 = arith.constant 0 : index
    %c0_440 = arith.constant 0 : index
    %c0_441 = arith.constant 0 : index
    %803 = vector.load %arg16[%c0_439, %c0_440, %c0_441] : memref<2x32x32xf32, #tpu.memory_space<vmem>>, vector<1x32x32xf32>
    %804 = vector.shape_cast %803 : vector<1x32x32xf32> to vector<32x32xf32>
    %cst_442 = arith.constant dense<0.000000e+00> : vector<1x32xf32>
    %805 = tpu.matmul %802, %804, %cst_442 {dimension_numbers = #tpu.dot_dimension_numbers<[1], [0], [0], [1], [0, 0, 1, 1], [], []>} : vector<1x32xf32>, vector<32x32xf32>, vector<1x32xf32> -> vector<1x32xf32>
    %c0_443 = arith.constant 0 : index
    %c0_444 = arith.constant 0 : index
    %c0_445 = arith.constant 0 : index
    %806 = vector.load %arg17[%c0_443, %c0_444, %c0_445] : memref<2x32x32xf32, #tpu.memory_space<vmem>>, vector<1x32x32xf32>
    %807 = vector.shape_cast %806 : vector<1x32x32xf32> to vector<32x32xf32>
    %cst_446 = arith.constant dense<0.000000e+00> : vector<1x32xf32>
    %808 = tpu.matmul %754, %807, %cst_446 {dimension_numbers = #tpu.dot_dimension_numbers<[1], [0], [0], [1], [0, 0, 1, 1], [], []>} : vector<1x32xf32>, vector<32x32xf32>, vector<1x32xf32> -> vector<1x32xf32>
    %809 = arith.addf %805, %808 : vector<1x32xf32>
    %c0_447 = arith.constant 0 : index
    %c0_448 = arith.constant 0 : index
    %c0_449 = arith.constant 0 : index
    %810 = vector.load %arg18[%c0_447, %c0_448, %c0_449] : memref<2x1x32xf32, #tpu.memory_space<vmem>>, vector<1x1x32xf32>
    %811 = vector.shape_cast %810 : vector<1x1x32xf32> to vector<1x32xf32>
    %812 = arith.addf %809, %811 : vector<1x32xf32>
    %813 = math.tanh %812 : vector<1x32xf32>
    %cst_450 = arith.constant 5.000000e-01 : f32
    %814 = vector.broadcast %cst_450 : f32 to vector<1x32xf32>
    %815 = arith.mulf %814, %753 : vector<1x32xf32>
    %cst_451 = arith.constant 5.000000e-01 : f32
    %816 = vector.broadcast %cst_451 : f32 to vector<1x32xf32>
    %817 = arith.mulf %816, %813 : vector<1x32xf32>
    %818 = arith.addf %815, %817 : vector<1x32xf32>
    %819 = math.tanh %818 : vector<1x32xf32>
    %c1_452 = arith.constant 1 : index
    %c0_453 = arith.constant 0 : index
    %c0_454 = arith.constant 0 : index
    %820 = vector.load %arg16[%c1_452, %c0_453, %c0_454] : memref<2x32x32xf32, #tpu.memory_space<vmem>>, vector<1x32x32xf32>
    %821 = vector.shape_cast %820 : vector<1x32x32xf32> to vector<32x32xf32>
    %cst_455 = arith.constant dense<0.000000e+00> : vector<1x32xf32>
    %822 = tpu.matmul %819, %821, %cst_455 {dimension_numbers = #tpu.dot_dimension_numbers<[1], [0], [0], [1], [0, 0, 1, 1], [], []>} : vector<1x32xf32>, vector<32x32xf32>, vector<1x32xf32> -> vector<1x32xf32>
    %c1_456 = arith.constant 1 : index
    %c0_457 = arith.constant 0 : index
    %c0_458 = arith.constant 0 : index
    %823 = vector.load %arg17[%c1_456, %c0_457, %c0_458] : memref<2x32x32xf32, #tpu.memory_space<vmem>>, vector<1x32x32xf32>
    %824 = vector.shape_cast %823 : vector<1x32x32xf32> to vector<32x32xf32>
    %cst_459 = arith.constant dense<0.000000e+00> : vector<1x32xf32>
    %825 = tpu.matmul %771, %824, %cst_459 {dimension_numbers = #tpu.dot_dimension_numbers<[1], [0], [0], [1], [0, 0, 1, 1], [], []>} : vector<1x32xf32>, vector<32x32xf32>, vector<1x32xf32> -> vector<1x32xf32>
    %826 = arith.addf %822, %825 : vector<1x32xf32>
    %c1_460 = arith.constant 1 : index
    %c0_461 = arith.constant 0 : index
    %c0_462 = arith.constant 0 : index
    %827 = vector.load %arg18[%c1_460, %c0_461, %c0_462] : memref<2x1x32xf32, #tpu.memory_space<vmem>>, vector<1x1x32xf32>
    %828 = vector.shape_cast %827 : vector<1x1x32xf32> to vector<1x32xf32>
    %829 = arith.addf %826, %828 : vector<1x32xf32>
    %830 = math.tanh %829 : vector<1x32xf32>
    %cst_463 = arith.constant 5.000000e-01 : f32
    %831 = vector.broadcast %cst_463 : f32 to vector<1x32xf32>
    %832 = arith.mulf %831, %770 : vector<1x32xf32>
    %cst_464 = arith.constant 5.000000e-01 : f32
    %833 = vector.broadcast %cst_464 : f32 to vector<1x32xf32>
    %834 = arith.mulf %833, %830 : vector<1x32xf32>
    %835 = arith.addf %832, %834 : vector<1x32xf32>
    %836 = math.tanh %835 : vector<1x32xf32>
    %837 = vector.broadcast %836 : vector<1x32xf32> to vector<8x32xf32>
    %838 = arith.mulf %837, %633 : vector<8x32xf32>
    %cst_465 = arith.constant dense<0.000000e+00> : vector<8xf32>
    %839 = vector.multi_reduction <add>, %838, %cst_465 [1] : vector<8x32xf32> to vector<8xf32>
    %840 = vector.shape_cast %839 : vector<8xf32> to vector<8x1xf32>
    %cst_466 = arith.constant dense<0xFF800000> : vector<1xf32>
    %841 = vector.multi_reduction <maximumf>, %840, %cst_466 [0] : vector<8x1xf32> to vector<1xf32>
    %842 = vector.shape_cast %841 : vector<1xf32> to vector<1x1xf32>
    %843 = vector.broadcast %842 : vector<1x1xf32> to vector<8x1xf32>
    %844 = arith.subf %840, %843 : vector<8x1xf32>
    %845 = math.exp %844 : vector<8x1xf32>
    %cst_467 = arith.constant dense<0.000000e+00> : vector<1xf32>
    %846 = vector.multi_reduction <add>, %845, %cst_467 [0] : vector<8x1xf32> to vector<1xf32>
    %847 = vector.shape_cast %846 : vector<1xf32> to vector<1x1xf32>
    %848 = tpu.reciprocal %847 {approx = true} : vector<1x1xf32> -> vector<1x1xf32>
    %849 = vector.broadcast %848 : vector<1x1xf32> to vector<8x1xf32>
    %850 = arith.mulf %845, %849 : vector<8x1xf32>
    %851 = vector.broadcast %850 : vector<8x1xf32> to vector<8x9xf32>
    %852 = arith.mulf %851, %730 : vector<8x9xf32>
    %cst_468 = arith.constant dense<0.000000e+00> : vector<9xf32>
    %853 = vector.multi_reduction <add>, %852, %cst_468 [0] : vector<8x9xf32> to vector<9xf32>
    %854 = vector.shape_cast %853 : vector<9xf32> to vector<1x9xf32>
    %c0_469 = arith.constant 0 : index
    %c0_470 = arith.constant 0 : index
    %855 = vector.load %arg19[%c0_469, %c0_470] : memref<32x9xf32, #tpu.memory_space<vmem>>, vector<32x9xf32>
    %cst_471 = arith.constant dense<0.000000e+00> : vector<1x9xf32>
    %856 = tpu.matmul %836, %855, %cst_471 {dimension_numbers = #tpu.dot_dimension_numbers<[1], [0], [0], [1], [0, 0, 1, 1], [], []>} : vector<1x32xf32>, vector<32x9xf32>, vector<1x9xf32> -> vector<1x9xf32>
    %857 = arith.addf %856, %854 : vector<1x9xf32>
    %c0_472 = arith.constant 0 : index
    %c0_473 = arith.constant 0 : index
    %858 = vector.load %arg21[%c0_472, %c0_473] : memref<1x9xf32, #tpu.memory_space<vmem>>, vector<1x9xf32>
    %859 = arith.addf %857, %858 : vector<1x9xf32>
    %c1_474 = arith.constant 1 : index
    %c9_475 = arith.constant 9 : index
    %860 = vector.load %arg22[%c1_474, %c9_475] : memref<2x72xf32, #tpu.memory_space<vmem>>, vector<1x9xf32>
    tpu.vector_store %arg22[%c1_474, %c9_475], %859 {strides = array<i32>} : memref<2x72xf32, #tpu.memory_space<vmem>>, vector<1x9xf32>,
    %861 = vector.extract_strided_slice %859 {offsets = [0, 4], sizes = [1, 1], strides = [1, 1]} : vector<1x9xf32> to vector<1x1xf32>
    %862 = vector.extract_strided_slice %728 {offsets = [2, 0], sizes = [1, 32], strides = [1, 1]} : vector<8x32xf32> to vector<1x32xf32>
    %c0_476 = arith.constant 0 : index
    %c0_477 = arith.constant 0 : index
    %863 = vector.load %arg14[%c0_476, %c0_477] : memref<1x32xf32, #tpu.memory_space<vmem>>, vector<1x32xf32>
    %864 = vector.broadcast %861 : vector<1x1xf32> to vector<1x32xf32>
    %865 = arith.mulf %864, %863 : vector<1x32xf32>
    %866 = arith.addf %862, %865 : vector<1x32xf32>
    %867 = math.tanh %866 : vector<1x32xf32>
    %c0_478 = arith.constant 0 : index
    %c0_479 = arith.constant 0 : index
    %c0_480 = arith.constant 0 : index
    %868 = vector.load %arg16[%c0_478, %c0_479, %c0_480] : memref<2x32x32xf32, #tpu.memory_space<vmem>>, vector<1x32x32xf32>
    %869 = vector.shape_cast %868 : vector<1x32x32xf32> to vector<32x32xf32>
    %cst_481 = arith.constant dense<0.000000e+00> : vector<1x32xf32>
    %870 = tpu.matmul %867, %869, %cst_481 {dimension_numbers = #tpu.dot_dimension_numbers<[1], [0], [0], [1], [0, 0, 1, 1], [], []>} : vector<1x32xf32>, vector<32x32xf32>, vector<1x32xf32> -> vector<1x32xf32>
    %c0_482 = arith.constant 0 : index
    %c0_483 = arith.constant 0 : index
    %c0_484 = arith.constant 0 : index
    %871 = vector.load %arg17[%c0_482, %c0_483, %c0_484] : memref<2x32x32xf32, #tpu.memory_space<vmem>>, vector<1x32x32xf32>
    %872 = vector.shape_cast %871 : vector<1x32x32xf32> to vector<32x32xf32>
    %cst_485 = arith.constant dense<0.000000e+00> : vector<1x32xf32>
    %873 = tpu.matmul %819, %872, %cst_485 {dimension_numbers = #tpu.dot_dimension_numbers<[1], [0], [0], [1], [0, 0, 1, 1], [], []>} : vector<1x32xf32>, vector<32x32xf32>, vector<1x32xf32> -> vector<1x32xf32>
    %874 = arith.addf %870, %873 : vector<1x32xf32>
    %c0_486 = arith.constant 0 : index
    %c0_487 = arith.constant 0 : index
    %c0_488 = arith.constant 0 : index
    %875 = vector.load %arg18[%c0_486, %c0_487, %c0_488] : memref<2x1x32xf32, #tpu.memory_space<vmem>>, vector<1x1x32xf32>
    %876 = vector.shape_cast %875 : vector<1x1x32xf32> to vector<1x32xf32>
    %877 = arith.addf %874, %876 : vector<1x32xf32>
    %878 = math.tanh %877 : vector<1x32xf32>
    %cst_489 = arith.constant 5.000000e-01 : f32
    %879 = vector.broadcast %cst_489 : f32 to vector<1x32xf32>
    %880 = arith.mulf %879, %818 : vector<1x32xf32>
    %cst_490 = arith.constant 5.000000e-01 : f32
    %881 = vector.broadcast %cst_490 : f32 to vector<1x32xf32>
    %882 = arith.mulf %881, %878 : vector<1x32xf32>
    %883 = arith.addf %880, %882 : vector<1x32xf32>
    %884 = math.tanh %883 : vector<1x32xf32>
    %c1_491 = arith.constant 1 : index
    %c0_492 = arith.constant 0 : index
    %c0_493 = arith.constant 0 : index
    %885 = vector.load %arg16[%c1_491, %c0_492, %c0_493] : memref<2x32x32xf32, #tpu.memory_space<vmem>>, vector<1x32x32xf32>
    %886 = vector.shape_cast %885 : vector<1x32x32xf32> to vector<32x32xf32>
    %cst_494 = arith.constant dense<0.000000e+00> : vector<1x32xf32>
    %887 = tpu.matmul %884, %886, %cst_494 {dimension_numbers = #tpu.dot_dimension_numbers<[1], [0], [0], [1], [0, 0, 1, 1], [], []>} : vector<1x32xf32>, vector<32x32xf32>, vector<1x32xf32> -> vector<1x32xf32>
    %c1_495 = arith.constant 1 : index
    %c0_496 = arith.constant 0 : index
    %c0_497 = arith.constant 0 : index
    %888 = vector.load %arg17[%c1_495, %c0_496, %c0_497] : memref<2x32x32xf32, #tpu.memory_space<vmem>>, vector<1x32x32xf32>
    %889 = vector.shape_cast %888 : vector<1x32x32xf32> to vector<32x32xf32>
    %cst_498 = arith.constant dense<0.000000e+00> : vector<1x32xf32>
    %890 = tpu.matmul %836, %889, %cst_498 {dimension_numbers = #tpu.dot_dimension_numbers<[1], [0], [0], [1], [0, 0, 1, 1], [], []>} : vector<1x32xf32>, vector<32x32xf32>, vector<1x32xf32> -> vector<1x32xf32>
    %891 = arith.addf %887, %890 : vector<1x32xf32>
    %c1_499 = arith.constant 1 : index
    %c0_500 = arith.constant 0 : index
    %c0_501 = arith.constant 0 : index
    %892 = vector.load %arg18[%c1_499, %c0_500, %c0_501] : memref<2x1x32xf32, #tpu.memory_space<vmem>>, vector<1x1x32xf32>
    %893 = vector.shape_cast %892 : vector<1x1x32xf32> to vector<1x32xf32>
    %894 = arith.addf %891, %893 : vector<1x32xf32>
    %895 = math.tanh %894 : vector<1x32xf32>
    %cst_502 = arith.constant 5.000000e-01 : f32
    %896 = vector.broadcast %cst_502 : f32 to vector<1x32xf32>
    %897 = arith.mulf %896, %835 : vector<1x32xf32>
    %cst_503 = arith.constant 5.000000e-01 : f32
    %898 = vector.broadcast %cst_503 : f32 to vector<1x32xf32>
    %899 = arith.mulf %898, %895 : vector<1x32xf32>
    %900 = arith.addf %897, %899 : vector<1x32xf32>
    %901 = math.tanh %900 : vector<1x32xf32>
    %902 = vector.broadcast %901 : vector<1x32xf32> to vector<8x32xf32>
    %903 = arith.mulf %902, %633 : vector<8x32xf32>
    %cst_504 = arith.constant dense<0.000000e+00> : vector<8xf32>
    %904 = vector.multi_reduction <add>, %903, %cst_504 [1] : vector<8x32xf32> to vector<8xf32>
    %905 = vector.shape_cast %904 : vector<8xf32> to vector<8x1xf32>
    %cst_505 = arith.constant dense<0xFF800000> : vector<1xf32>
    %906 = vector.multi_reduction <maximumf>, %905, %cst_505 [0] : vector<8x1xf32> to vector<1xf32>
    %907 = vector.shape_cast %906 : vector<1xf32> to vector<1x1xf32>
    %908 = vector.broadcast %907 : vector<1x1xf32> to vector<8x1xf32>
    %909 = arith.subf %905, %908 : vector<8x1xf32>
    %910 = math.exp %909 : vector<8x1xf32>
    %cst_506 = arith.constant dense<0.000000e+00> : vector<1xf32>
    %911 = vector.multi_reduction <add>, %910, %cst_506 [0] : vector<8x1xf32> to vector<1xf32>
    %912 = vector.shape_cast %911 : vector<1xf32> to vector<1x1xf32>
    %913 = tpu.reciprocal %912 {approx = true} : vector<1x1xf32> -> vector<1x1xf32>
    %914 = vector.broadcast %913 : vector<1x1xf32> to vector<8x1xf32>
    %915 = arith.mulf %910, %914 : vector<8x1xf32>
    %916 = vector.broadcast %915 : vector<8x1xf32> to vector<8x9xf32>
    %917 = arith.mulf %916, %730 : vector<8x9xf32>
    %cst_507 = arith.constant dense<0.000000e+00> : vector<9xf32>
    %918 = vector.multi_reduction <add>, %917, %cst_507 [0] : vector<8x9xf32> to vector<9xf32>
    %919 = vector.shape_cast %918 : vector<9xf32> to vector<1x9xf32>
    %c0_508 = arith.constant 0 : index
    %c0_509 = arith.constant 0 : index
    %920 = vector.load %arg19[%c0_508, %c0_509] : memref<32x9xf32, #tpu.memory_space<vmem>>, vector<32x9xf32>
    %cst_510 = arith.constant dense<0.000000e+00> : vector<1x9xf32>
    %921 = tpu.matmul %901, %920, %cst_510 {dimension_numbers = #tpu.dot_dimension_numbers<[1], [0], [0], [1], [0, 0, 1, 1], [], []>} : vector<1x32xf32>, vector<32x9xf32>, vector<1x9xf32> -> vector<1x9xf32>
    %922 = arith.addf %921, %919 : vector<1x9xf32>
    %c0_511 = arith.constant 0 : index
    %c0_512 = arith.constant 0 : index
    %923 = vector.load %arg21[%c0_511, %c0_512] : memref<1x9xf32, #tpu.memory_space<vmem>>, vector<1x9xf32>
    %924 = arith.addf %922, %923 : vector<1x9xf32>
    %c1_513 = arith.constant 1 : index
    %c18_514 = arith.constant 18 : index
    %925 = vector.load %arg22[%c1_513, %c18_514] : memref<2x72xf32, #tpu.memory_space<vmem>>, vector<1x9xf32>
    tpu.vector_store %arg22[%c1_513, %c18_514], %924 {strides = array<i32>} : memref<2x72xf32, #tpu.memory_space<vmem>>, vector<1x9xf32>,
    %926 = vector.extract_strided_slice %924 {offsets = [0, 4], sizes = [1, 1], strides = [1, 1]} : vector<1x9xf32> to vector<1x1xf32>
    %927 = vector.extract_strided_slice %728 {offsets = [3, 0], sizes = [1, 32], strides = [1, 1]} : vector<8x32xf32> to vector<1x32xf32>
    %c0_515 = arith.constant 0 : index
    %c0_516 = arith.constant 0 : index
    %928 = vector.load %arg14[%c0_515, %c0_516] : memref<1x32xf32, #tpu.memory_space<vmem>>, vector<1x32xf32>
    %929 = vector.broadcast %926 : vector<1x1xf32> to vector<1x32xf32>
    %930 = arith.mulf %929, %928 : vector<1x32xf32>
    %931 = arith.addf %927, %930 : vector<1x32xf32>
    %932 = math.tanh %931 : vector<1x32xf32>
    %c0_517 = arith.constant 0 : index
    %c0_518 = arith.constant 0 : index
    %c0_519 = arith.constant 0 : index
    %933 = vector.load %arg16[%c0_517, %c0_518, %c0_519] : memref<2x32x32xf32, #tpu.memory_space<vmem>>, vector<1x32x32xf32>
    %934 = vector.shape_cast %933 : vector<1x32x32xf32> to vector<32x32xf32>
    %cst_520 = arith.constant dense<0.000000e+00> : vector<1x32xf32>
    %935 = tpu.matmul %932, %934, %cst_520 {dimension_numbers = #tpu.dot_dimension_numbers<[1], [0], [0], [1], [0, 0, 1, 1], [], []>} : vector<1x32xf32>, vector<32x32xf32>, vector<1x32xf32> -> vector<1x32xf32>
    %c0_521 = arith.constant 0 : index
    %c0_522 = arith.constant 0 : index
    %c0_523 = arith.constant 0 : index
    %936 = vector.load %arg17[%c0_521, %c0_522, %c0_523] : memref<2x32x32xf32, #tpu.memory_space<vmem>>, vector<1x32x32xf32>
    %937 = vector.shape_cast %936 : vector<1x32x32xf32> to vector<32x32xf32>
    %cst_524 = arith.constant dense<0.000000e+00> : vector<1x32xf32>
    %938 = tpu.matmul %884, %937, %cst_524 {dimension_numbers = #tpu.dot_dimension_numbers<[1], [0], [0], [1], [0, 0, 1, 1], [], []>} : vector<1x32xf32>, vector<32x32xf32>, vector<1x32xf32> -> vector<1x32xf32>
    %939 = arith.addf %935, %938 : vector<1x32xf32>
    %c0_525 = arith.constant 0 : index
    %c0_526 = arith.constant 0 : index
    %c0_527 = arith.constant 0 : index
    %940 = vector.load %arg18[%c0_525, %c0_526, %c0_527] : memref<2x1x32xf32, #tpu.memory_space<vmem>>, vector<1x1x32xf32>
    %941 = vector.shape_cast %940 : vector<1x1x32xf32> to vector<1x32xf32>
    %942 = arith.addf %939, %941 : vector<1x32xf32>
    %943 = math.tanh %942 : vector<1x32xf32>
    %cst_528 = arith.constant 5.000000e-01 : f32
    %944 = vector.broadcast %cst_528 : f32 to vector<1x32xf32>
    %945 = arith.mulf %944, %883 : vector<1x32xf32>
    %cst_529 = arith.constant 5.000000e-01 : f32
    %946 = vector.broadcast %cst_529 : f32 to vector<1x32xf32>
    %947 = arith.mulf %946, %943 : vector<1x32xf32>
    %948 = arith.addf %945, %947 : vector<1x32xf32>
    %949 = math.tanh %948 : vector<1x32xf32>
    %c1_530 = arith.constant 1 : index
    %c0_531 = arith.constant 0 : index
    %c0_532 = arith.constant 0 : index
    %950 = vector.load %arg16[%c1_530, %c0_531, %c0_532] : memref<2x32x32xf32, #tpu.memory_space<vmem>>, vector<1x32x32xf32>
    %951 = vector.shape_cast %950 : vector<1x32x32xf32> to vector<32x32xf32>
    %cst_533 = arith.constant dense<0.000000e+00> : vector<1x32xf32>
    %952 = tpu.matmul %949, %951, %cst_533 {dimension_numbers = #tpu.dot_dimension_numbers<[1], [0], [0], [1], [0, 0, 1, 1], [], []>} : vector<1x32xf32>, vector<32x32xf32>, vector<1x32xf32> -> vector<1x32xf32>
    %c1_534 = arith.constant 1 : index
    %c0_535 = arith.constant 0 : index
    %c0_536 = arith.constant 0 : index
    %953 = vector.load %arg17[%c1_534, %c0_535, %c0_536] : memref<2x32x32xf32, #tpu.memory_space<vmem>>, vector<1x32x32xf32>
    %954 = vector.shape_cast %953 : vector<1x32x32xf32> to vector<32x32xf32>
    %cst_537 = arith.constant dense<0.000000e+00> : vector<1x32xf32>
    %955 = tpu.matmul %901, %954, %cst_537 {dimension_numbers = #tpu.dot_dimension_numbers<[1], [0], [0], [1], [0, 0, 1, 1], [], []>} : vector<1x32xf32>, vector<32x32xf32>, vector<1x32xf32> -> vector<1x32xf32>
    %956 = arith.addf %952, %955 : vector<1x32xf32>
    %c1_538 = arith.constant 1 : index
    %c0_539 = arith.constant 0 : index
    %c0_540 = arith.constant 0 : index
    %957 = vector.load %arg18[%c1_538, %c0_539, %c0_540] : memref<2x1x32xf32, #tpu.memory_space<vmem>>, vector<1x1x32xf32>
    %958 = vector.shape_cast %957 : vector<1x1x32xf32> to vector<1x32xf32>
    %959 = arith.addf %956, %958 : vector<1x32xf32>
    %960 = math.tanh %959 : vector<1x32xf32>
    %cst_541 = arith.constant 5.000000e-01 : f32
    %961 = vector.broadcast %cst_541 : f32 to vector<1x32xf32>
    %962 = arith.mulf %961, %900 : vector<1x32xf32>
    %cst_542 = arith.constant 5.000000e-01 : f32
    %963 = vector.broadcast %cst_542 : f32 to vector<1x32xf32>
    %964 = arith.mulf %963, %960 : vector<1x32xf32>
    %965 = arith.addf %962, %964 : vector<1x32xf32>
    %966 = math.tanh %965 : vector<1x32xf32>
    %967 = vector.broadcast %966 : vector<1x32xf32> to vector<8x32xf32>
    %968 = arith.mulf %967, %633 : vector<8x32xf32>
    %cst_543 = arith.constant dense<0.000000e+00> : vector<8xf32>
    %969 = vector.multi_reduction <add>, %968, %cst_543 [1] : vector<8x32xf32> to vector<8xf32>
    %970 = vector.shape_cast %969 : vector<8xf32> to vector<8x1xf32>
    %cst_544 = arith.constant dense<0xFF800000> : vector<1xf32>
    %971 = vector.multi_reduction <maximumf>, %970, %cst_544 [0] : vector<8x1xf32> to vector<1xf32>
    %972 = vector.shape_cast %971 : vector<1xf32> to vector<1x1xf32>
    %973 = vector.broadcast %972 : vector<1x1xf32> to vector<8x1xf32>
    %974 = arith.subf %970, %973 : vector<8x1xf32>
    %975 = math.exp %974 : vector<8x1xf32>
    %cst_545 = arith.constant dense<0.000000e+00> : vector<1xf32>
    %976 = vector.multi_reduction <add>, %975, %cst_545 [0] : vector<8x1xf32> to vector<1xf32>
    %977 = vector.shape_cast %976 : vector<1xf32> to vector<1x1xf32>
    %978 = tpu.reciprocal %977 {approx = true} : vector<1x1xf32> -> vector<1x1xf32>
    %979 = vector.broadcast %978 : vector<1x1xf32> to vector<8x1xf32>
    %980 = arith.mulf %975, %979 : vector<8x1xf32>
    %981 = vector.broadcast %980 : vector<8x1xf32> to vector<8x9xf32>
    %982 = arith.mulf %981, %730 : vector<8x9xf32>
    %cst_546 = arith.constant dense<0.000000e+00> : vector<9xf32>
    %983 = vector.multi_reduction <add>, %982, %cst_546 [0] : vector<8x9xf32> to vector<9xf32>
    %984 = vector.shape_cast %983 : vector<9xf32> to vector<1x9xf32>
    %c0_547 = arith.constant 0 : index
    %c0_548 = arith.constant 0 : index
    %985 = vector.load %arg19[%c0_547, %c0_548] : memref<32x9xf32, #tpu.memory_space<vmem>>, vector<32x9xf32>
    %cst_549 = arith.constant dense<0.000000e+00> : vector<1x9xf32>
    %986 = tpu.matmul %966, %985, %cst_549 {dimension_numbers = #tpu.dot_dimension_numbers<[1], [0], [0], [1], [0, 0, 1, 1], [], []>} : vector<1x32xf32>, vector<32x9xf32>, vector<1x9xf32> -> vector<1x9xf32>
    %987 = arith.addf %986, %984 : vector<1x9xf32>
    %c0_550 = arith.constant 0 : index
    %c0_551 = arith.constant 0 : index
    %988 = vector.load %arg21[%c0_550, %c0_551] : memref<1x9xf32, #tpu.memory_space<vmem>>, vector<1x9xf32>
    %989 = arith.addf %987, %988 : vector<1x9xf32>
    %c1_552 = arith.constant 1 : index
    %c27_553 = arith.constant 27 : index
    %990 = vector.load %arg22[%c1_552, %c27_553] : memref<2x72xf32, #tpu.memory_space<vmem>>, vector<1x9xf32>
    tpu.vector_store %arg22[%c1_552, %c27_553], %989 {strides = array<i32>} : memref<2x72xf32, #tpu.memory_space<vmem>>, vector<1x9xf32>,
    %991 = vector.extract_strided_slice %989 {offsets = [0, 4], sizes = [1, 1], strides = [1, 1]} : vector<1x9xf32> to vector<1x1xf32>
    %992 = vector.extract_strided_slice %728 {offsets = [4, 0], sizes = [1, 32], strides = [1, 1]} : vector<8x32xf32> to vector<1x32xf32>
    %c0_554 = arith.constant 0 : index
    %c0_555 = arith.constant 0 : index
    %993 = vector.load %arg14[%c0_554, %c0_555] : memref<1x32xf32, #tpu.memory_space<vmem>>, vector<1x32xf32>
    %994 = vector.broadcast %991 : vector<1x1xf32> to vector<1x32xf32>
    %995 = arith.mulf %994, %993 : vector<1x32xf32>
    %996 = arith.addf %992, %995 : vector<1x32xf32>
    %997 = math.tanh %996 : vector<1x32xf32>
    %c0_556 = arith.constant 0 : index
    %c0_557 = arith.constant 0 : index
    %c0_558 = arith.constant 0 : index
    %998 = vector.load %arg16[%c0_556, %c0_557, %c0_558] : memref<2x32x32xf32, #tpu.memory_space<vmem>>, vector<1x32x32xf32>
    %999 = vector.shape_cast %998 : vector<1x32x32xf32> to vector<32x32xf32>
    %cst_559 = arith.constant dense<0.000000e+00> : vector<1x32xf32>
    %1000 = tpu.matmul %997, %999, %cst_559 {dimension_numbers = #tpu.dot_dimension_numbers<[1], [0], [0], [1], [0, 0, 1, 1], [], []>} : vector<1x32xf32>, vector<32x32xf32>, vector<1x32xf32> -> vector<1x32xf32>
    %c0_560 = arith.constant 0 : index
    %c0_561 = arith.constant 0 : index
    %c0_562 = arith.constant 0 : index
    %1001 = vector.load %arg17[%c0_560, %c0_561, %c0_562] : memref<2x32x32xf32, #tpu.memory_space<vmem>>, vector<1x32x32xf32>
    %1002 = vector.shape_cast %1001 : vector<1x32x32xf32> to vector<32x32xf32>
    %cst_563 = arith.constant dense<0.000000e+00> : vector<1x32xf32>
    %1003 = tpu.matmul %949, %1002, %cst_563 {dimension_numbers = #tpu.dot_dimension_numbers<[1], [0], [0], [1], [0, 0, 1, 1], [], []>} : vector<1x32xf32>, vector<32x32xf32>, vector<1x32xf32> -> vector<1x32xf32>
    %1004 = arith.addf %1000, %1003 : vector<1x32xf32>
    %c0_564 = arith.constant 0 : index
    %c0_565 = arith.constant 0 : index
    %c0_566 = arith.constant 0 : index
    %1005 = vector.load %arg18[%c0_564, %c0_565, %c0_566] : memref<2x1x32xf32, #tpu.memory_space<vmem>>, vector<1x1x32xf32>
    %1006 = vector.shape_cast %1005 : vector<1x1x32xf32> to vector<1x32xf32>
    %1007 = arith.addf %1004, %1006 : vector<1x32xf32>
    %1008 = math.tanh %1007 : vector<1x32xf32>
    %cst_567 = arith.constant 5.000000e-01 : f32
    %1009 = vector.broadcast %cst_567 : f32 to vector<1x32xf32>
    %1010 = arith.mulf %1009, %948 : vector<1x32xf32>
    %cst_568 = arith.constant 5.000000e-01 : f32
    %1011 = vector.broadcast %cst_568 : f32 to vector<1x32xf32>
    %1012 = arith.mulf %1011, %1008 : vector<1x32xf32>
    %1013 = arith.addf %1010, %1012 : vector<1x32xf32>
    %1014 = math.tanh %1013 : vector<1x32xf32>
    %c1_569 = arith.constant 1 : index
    %c0_570 = arith.constant 0 : index
    %c0_571 = arith.constant 0 : index
    %1015 = vector.load %arg16[%c1_569, %c0_570, %c0_571] : memref<2x32x32xf32, #tpu.memory_space<vmem>>, vector<1x32x32xf32>
    %1016 = vector.shape_cast %1015 : vector<1x32x32xf32> to vector<32x32xf32>
    %cst_572 = arith.constant dense<0.000000e+00> : vector<1x32xf32>
    %1017 = tpu.matmul %1014, %1016, %cst_572 {dimension_numbers = #tpu.dot_dimension_numbers<[1], [0], [0], [1], [0, 0, 1, 1], [], []>} : vector<1x32xf32>, vector<32x32xf32>, vector<1x32xf32> -> vector<1x32xf32>
    %c1_573 = arith.constant 1 : index
    %c0_574 = arith.constant 0 : index
    %c0_575 = arith.constant 0 : index
    %1018 = vector.load %arg17[%c1_573, %c0_574, %c0_575] : memref<2x32x32xf32, #tpu.memory_space<vmem>>, vector<1x32x32xf32>
    %1019 = vector.shape_cast %1018 : vector<1x32x32xf32> to vector<32x32xf32>
    %cst_576 = arith.constant dense<0.000000e+00> : vector<1x32xf32>
    %1020 = tpu.matmul %966, %1019, %cst_576 {dimension_numbers = #tpu.dot_dimension_numbers<[1], [0], [0], [1], [0, 0, 1, 1], [], []>} : vector<1x32xf32>, vector<32x32xf32>, vector<1x32xf32> -> vector<1x32xf32>
    %1021 = arith.addf %1017, %1020 : vector<1x32xf32>
    %c1_577 = arith.constant 1 : index
    %c0_578 = arith.constant 0 : index
    %c0_579 = arith.constant 0 : index
    %1022 = vector.load %arg18[%c1_577, %c0_578, %c0_579] : memref<2x1x32xf32, #tpu.memory_space<vmem>>, vector<1x1x32xf32>
    %1023 = vector.shape_cast %1022 : vector<1x1x32xf32> to vector<1x32xf32>
    %1024 = arith.addf %1021, %1023 : vector<1x32xf32>
    %1025 = math.tanh %1024 : vector<1x32xf32>
    %cst_580 = arith.constant 5.000000e-01 : f32
    %1026 = vector.broadcast %cst_580 : f32 to vector<1x32xf32>
    %1027 = arith.mulf %1026, %965 : vector<1x32xf32>
    %cst_581 = arith.constant 5.000000e-01 : f32
    %1028 = vector.broadcast %cst_581 : f32 to vector<1x32xf32>
    %1029 = arith.mulf %1028, %1025 : vector<1x32xf32>
    %1030 = arith.addf %1027, %1029 : vector<1x32xf32>
    %1031 = math.tanh %1030 : vector<1x32xf32>
    %1032 = vector.broadcast %1031 : vector<1x32xf32> to vector<8x32xf32>
    %1033 = arith.mulf %1032, %633 : vector<8x32xf32>
    %cst_582 = arith.constant dense<0.000000e+00> : vector<8xf32>
    %1034 = vector.multi_reduction <add>, %1033, %cst_582 [1] : vector<8x32xf32> to vector<8xf32>
    %1035 = vector.shape_cast %1034 : vector<8xf32> to vector<8x1xf32>
    %cst_583 = arith.constant dense<0xFF800000> : vector<1xf32>
    %1036 = vector.multi_reduction <maximumf>, %1035, %cst_583 [0] : vector<8x1xf32> to vector<1xf32>
    %1037 = vector.shape_cast %1036 : vector<1xf32> to vector<1x1xf32>
    %1038 = vector.broadcast %1037 : vector<1x1xf32> to vector<8x1xf32>
    %1039 = arith.subf %1035, %1038 : vector<8x1xf32>
    %1040 = math.exp %1039 : vector<8x1xf32>
    %cst_584 = arith.constant dense<0.000000e+00> : vector<1xf32>
    %1041 = vector.multi_reduction <add>, %1040, %cst_584 [0] : vector<8x1xf32> to vector<1xf32>
    %1042 = vector.shape_cast %1041 : vector<1xf32> to vector<1x1xf32>
    %1043 = tpu.reciprocal %1042 {approx = true} : vector<1x1xf32> -> vector<1x1xf32>
    %1044 = vector.broadcast %1043 : vector<1x1xf32> to vector<8x1xf32>
    %1045 = arith.mulf %1040, %1044 : vector<8x1xf32>
    %1046 = vector.broadcast %1045 : vector<8x1xf32> to vector<8x9xf32>
    %1047 = arith.mulf %1046, %730 : vector<8x9xf32>
    %cst_585 = arith.constant dense<0.000000e+00> : vector<9xf32>
    %1048 = vector.multi_reduction <add>, %1047, %cst_585 [0] : vector<8x9xf32> to vector<9xf32>
    %1049 = vector.shape_cast %1048 : vector<9xf32> to vector<1x9xf32>
    %c0_586 = arith.constant 0 : index
    %c0_587 = arith.constant 0 : index
    %1050 = vector.load %arg19[%c0_586, %c0_587] : memref<32x9xf32, #tpu.memory_space<vmem>>, vector<32x9xf32>
    %cst_588 = arith.constant dense<0.000000e+00> : vector<1x9xf32>
    %1051 = tpu.matmul %1031, %1050, %cst_588 {dimension_numbers = #tpu.dot_dimension_numbers<[1], [0], [0], [1], [0, 0, 1, 1], [], []>} : vector<1x32xf32>, vector<32x9xf32>, vector<1x9xf32> -> vector<1x9xf32>
    %1052 = arith.addf %1051, %1049 : vector<1x9xf32>
    %c0_589 = arith.constant 0 : index
    %c0_590 = arith.constant 0 : index
    %1053 = vector.load %arg21[%c0_589, %c0_590] : memref<1x9xf32, #tpu.memory_space<vmem>>, vector<1x9xf32>
    %1054 = arith.addf %1052, %1053 : vector<1x9xf32>
    %c1_591 = arith.constant 1 : index
    %c36_592 = arith.constant 36 : index
    %1055 = vector.load %arg22[%c1_591, %c36_592] : memref<2x72xf32, #tpu.memory_space<vmem>>, vector<1x9xf32>
    tpu.vector_store %arg22[%c1_591, %c36_592], %1054 {strides = array<i32>} : memref<2x72xf32, #tpu.memory_space<vmem>>, vector<1x9xf32>,
    %1056 = vector.extract_strided_slice %1054 {offsets = [0, 4], sizes = [1, 1], strides = [1, 1]} : vector<1x9xf32> to vector<1x1xf32>
    %1057 = vector.extract_strided_slice %728 {offsets = [5, 0], sizes = [1, 32], strides = [1, 1]} : vector<8x32xf32> to vector<1x32xf32>
    %c0_593 = arith.constant 0 : index
    %c0_594 = arith.constant 0 : index
    %1058 = vector.load %arg14[%c0_593, %c0_594] : memref<1x32xf32, #tpu.memory_space<vmem>>, vector<1x32xf32>
    %1059 = vector.broadcast %1056 : vector<1x1xf32> to vector<1x32xf32>
    %1060 = arith.mulf %1059, %1058 : vector<1x32xf32>
    %1061 = arith.addf %1057, %1060 : vector<1x32xf32>
    %1062 = math.tanh %1061 : vector<1x32xf32>
    %c0_595 = arith.constant 0 : index
    %c0_596 = arith.constant 0 : index
    %c0_597 = arith.constant 0 : index
    %1063 = vector.load %arg16[%c0_595, %c0_596, %c0_597] : memref<2x32x32xf32, #tpu.memory_space<vmem>>, vector<1x32x32xf32>
    %1064 = vector.shape_cast %1063 : vector<1x32x32xf32> to vector<32x32xf32>
    %cst_598 = arith.constant dense<0.000000e+00> : vector<1x32xf32>
    %1065 = tpu.matmul %1062, %1064, %cst_598 {dimension_numbers = #tpu.dot_dimension_numbers<[1], [0], [0], [1], [0, 0, 1, 1], [], []>} : vector<1x32xf32>, vector<32x32xf32>, vector<1x32xf32> -> vector<1x32xf32>
    %c0_599 = arith.constant 0 : index
    %c0_600 = arith.constant 0 : index
    %c0_601 = arith.constant 0 : index
    %1066 = vector.load %arg17[%c0_599, %c0_600, %c0_601] : memref<2x32x32xf32, #tpu.memory_space<vmem>>, vector<1x32x32xf32>
    %1067 = vector.shape_cast %1066 : vector<1x32x32xf32> to vector<32x32xf32>
    %cst_602 = arith.constant dense<0.000000e+00> : vector<1x32xf32>
    %1068 = tpu.matmul %1014, %1067, %cst_602 {dimension_numbers = #tpu.dot_dimension_numbers<[1], [0], [0], [1], [0, 0, 1, 1], [], []>} : vector<1x32xf32>, vector<32x32xf32>, vector<1x32xf32> -> vector<1x32xf32>
    %1069 = arith.addf %1065, %1068 : vector<1x32xf32>
    %c0_603 = arith.constant 0 : index
    %c0_604 = arith.constant 0 : index
    %c0_605 = arith.constant 0 : index
    %1070 = vector.load %arg18[%c0_603, %c0_604, %c0_605] : memref<2x1x32xf32, #tpu.memory_space<vmem>>, vector<1x1x32xf32>
    %1071 = vector.shape_cast %1070 : vector<1x1x32xf32> to vector<1x32xf32>
    %1072 = arith.addf %1069, %1071 : vector<1x32xf32>
    %1073 = math.tanh %1072 : vector<1x32xf32>
    %cst_606 = arith.constant 5.000000e-01 : f32
    %1074 = vector.broadcast %cst_606 : f32 to vector<1x32xf32>
    %1075 = arith.mulf %1074, %1013 : vector<1x32xf32>
    %cst_607 = arith.constant 5.000000e-01 : f32
    %1076 = vector.broadcast %cst_607 : f32 to vector<1x32xf32>
    %1077 = arith.mulf %1076, %1073 : vector<1x32xf32>
    %1078 = arith.addf %1075, %1077 : vector<1x32xf32>
    %1079 = math.tanh %1078 : vector<1x32xf32>
    %c1_608 = arith.constant 1 : index
    %c0_609 = arith.constant 0 : index
    %c0_610 = arith.constant 0 : index
    %1080 = vector.load %arg16[%c1_608, %c0_609, %c0_610] : memref<2x32x32xf32, #tpu.memory_space<vmem>>, vector<1x32x32xf32>
    %1081 = vector.shape_cast %1080 : vector<1x32x32xf32> to vector<32x32xf32>
    %cst_611 = arith.constant dense<0.000000e+00> : vector<1x32xf32>
    %1082 = tpu.matmul %1079, %1081, %cst_611 {dimension_numbers = #tpu.dot_dimension_numbers<[1], [0], [0], [1], [0, 0, 1, 1], [], []>} : vector<1x32xf32>, vector<32x32xf32>, vector<1x32xf32> -> vector<1x32xf32>
    %c1_612 = arith.constant 1 : index
    %c0_613 = arith.constant 0 : index
    %c0_614 = arith.constant 0 : index
    %1083 = vector.load %arg17[%c1_612, %c0_613, %c0_614] : memref<2x32x32xf32, #tpu.memory_space<vmem>>, vector<1x32x32xf32>
    %1084 = vector.shape_cast %1083 : vector<1x32x32xf32> to vector<32x32xf32>
    %cst_615 = arith.constant dense<0.000000e+00> : vector<1x32xf32>
    %1085 = tpu.matmul %1031, %1084, %cst_615 {dimension_numbers = #tpu.dot_dimension_numbers<[1], [0], [0], [1], [0, 0, 1, 1], [], []>} : vector<1x32xf32>, vector<32x32xf32>, vector<1x32xf32> -> vector<1x32xf32>
    %1086 = arith.addf %1082, %1085 : vector<1x32xf32>
    %c1_616 = arith.constant 1 : index
    %c0_617 = arith.constant 0 : index
    %c0_618 = arith.constant 0 : index
    %1087 = vector.load %arg18[%c1_616, %c0_617, %c0_618] : memref<2x1x32xf32, #tpu.memory_space<vmem>>, vector<1x1x32xf32>
    %1088 = vector.shape_cast %1087 : vector<1x1x32xf32> to vector<1x32xf32>
    %1089 = arith.addf %1086, %1088 : vector<1x32xf32>
    %1090 = math.tanh %1089 : vector<1x32xf32>
    %cst_619 = arith.constant 5.000000e-01 : f32
    %1091 = vector.broadcast %cst_619 : f32 to vector<1x32xf32>
    %1092 = arith.mulf %1091, %1030 : vector<1x32xf32>
    %cst_620 = arith.constant 5.000000e-01 : f32
    %1093 = vector.broadcast %cst_620 : f32 to vector<1x32xf32>
    %1094 = arith.mulf %1093, %1090 : vector<1x32xf32>
    %1095 = arith.addf %1092, %1094 : vector<1x32xf32>
    %1096 = math.tanh %1095 : vector<1x32xf32>
    %1097 = vector.broadcast %1096 : vector<1x32xf32> to vector<8x32xf32>
    %1098 = arith.mulf %1097, %633 : vector<8x32xf32>
    %cst_621 = arith.constant dense<0.000000e+00> : vector<8xf32>
    %1099 = vector.multi_reduction <add>, %1098, %cst_621 [1] : vector<8x32xf32> to vector<8xf32>
    %1100 = vector.shape_cast %1099 : vector<8xf32> to vector<8x1xf32>
    %cst_622 = arith.constant dense<0xFF800000> : vector<1xf32>
    %1101 = vector.multi_reduction <maximumf>, %1100, %cst_622 [0] : vector<8x1xf32> to vector<1xf32>
    %1102 = vector.shape_cast %1101 : vector<1xf32> to vector<1x1xf32>
    %1103 = vector.broadcast %1102 : vector<1x1xf32> to vector<8x1xf32>
    %1104 = arith.subf %1100, %1103 : vector<8x1xf32>
    %1105 = math.exp %1104 : vector<8x1xf32>
    %cst_623 = arith.constant dense<0.000000e+00> : vector<1xf32>
    %1106 = vector.multi_reduction <add>, %1105, %cst_623 [0] : vector<8x1xf32> to vector<1xf32>
    %1107 = vector.shape_cast %1106 : vector<1xf32> to vector<1x1xf32>
    %1108 = tpu.reciprocal %1107 {approx = true} : vector<1x1xf32> -> vector<1x1xf32>
    %1109 = vector.broadcast %1108 : vector<1x1xf32> to vector<8x1xf32>
    %1110 = arith.mulf %1105, %1109 : vector<8x1xf32>
    %1111 = vector.broadcast %1110 : vector<8x1xf32> to vector<8x9xf32>
    %1112 = arith.mulf %1111, %730 : vector<8x9xf32>
    %cst_624 = arith.constant dense<0.000000e+00> : vector<9xf32>
    %1113 = vector.multi_reduction <add>, %1112, %cst_624 [0] : vector<8x9xf32> to vector<9xf32>
    %1114 = vector.shape_cast %1113 : vector<9xf32> to vector<1x9xf32>
    %c0_625 = arith.constant 0 : index
    %c0_626 = arith.constant 0 : index
    %1115 = vector.load %arg19[%c0_625, %c0_626] : memref<32x9xf32, #tpu.memory_space<vmem>>, vector<32x9xf32>
    %cst_627 = arith.constant dense<0.000000e+00> : vector<1x9xf32>
    %1116 = tpu.matmul %1096, %1115, %cst_627 {dimension_numbers = #tpu.dot_dimension_numbers<[1], [0], [0], [1], [0, 0, 1, 1], [], []>} : vector<1x32xf32>, vector<32x9xf32>, vector<1x9xf32> -> vector<1x9xf32>
    %1117 = arith.addf %1116, %1114 : vector<1x9xf32>
    %c0_628 = arith.constant 0 : index
    %c0_629 = arith.constant 0 : index
    %1118 = vector.load %arg21[%c0_628, %c0_629] : memref<1x9xf32, #tpu.memory_space<vmem>>, vector<1x9xf32>
    %1119 = arith.addf %1117, %1118 : vector<1x9xf32>
    %c1_630 = arith.constant 1 : index
    %c45_631 = arith.constant 45 : index
    %1120 = vector.load %arg22[%c1_630, %c45_631] : memref<2x72xf32, #tpu.memory_space<vmem>>, vector<1x9xf32>
    tpu.vector_store %arg22[%c1_630, %c45_631], %1119 {strides = array<i32>} : memref<2x72xf32, #tpu.memory_space<vmem>>, vector<1x9xf32>,
    %1121 = vector.extract_strided_slice %1119 {offsets = [0, 4], sizes = [1, 1], strides = [1, 1]} : vector<1x9xf32> to vector<1x1xf32>
    %1122 = vector.extract_strided_slice %728 {offsets = [6, 0], sizes = [1, 32], strides = [1, 1]} : vector<8x32xf32> to vector<1x32xf32>
    %c0_632 = arith.constant 0 : index
    %c0_633 = arith.constant 0 : index
    %1123 = vector.load %arg14[%c0_632, %c0_633] : memref<1x32xf32, #tpu.memory_space<vmem>>, vector<1x32xf32>
    %1124 = vector.broadcast %1121 : vector<1x1xf32> to vector<1x32xf32>
    %1125 = arith.mulf %1124, %1123 : vector<1x32xf32>
    %1126 = arith.addf %1122, %1125 : vector<1x32xf32>
    %1127 = math.tanh %1126 : vector<1x32xf32>
    %c0_634 = arith.constant 0 : index
    %c0_635 = arith.constant 0 : index
    %c0_636 = arith.constant 0 : index
    %1128 = vector.load %arg16[%c0_634, %c0_635, %c0_636] : memref<2x32x32xf32, #tpu.memory_space<vmem>>, vector<1x32x32xf32>
    %1129 = vector.shape_cast %1128 : vector<1x32x32xf32> to vector<32x32xf32>
    %cst_637 = arith.constant dense<0.000000e+00> : vector<1x32xf32>
    %1130 = tpu.matmul %1127, %1129, %cst_637 {dimension_numbers = #tpu.dot_dimension_numbers<[1], [0], [0], [1], [0, 0, 1, 1], [], []>} : vector<1x32xf32>, vector<32x32xf32>, vector<1x32xf32> -> vector<1x32xf32>
    %c0_638 = arith.constant 0 : index
    %c0_639 = arith.constant 0 : index
    %c0_640 = arith.constant 0 : index
    %1131 = vector.load %arg17[%c0_638, %c0_639, %c0_640] : memref<2x32x32xf32, #tpu.memory_space<vmem>>, vector<1x32x32xf32>
    %1132 = vector.shape_cast %1131 : vector<1x32x32xf32> to vector<32x32xf32>
    %cst_641 = arith.constant dense<0.000000e+00> : vector<1x32xf32>
    %1133 = tpu.matmul %1079, %1132, %cst_641 {dimension_numbers = #tpu.dot_dimension_numbers<[1], [0], [0], [1], [0, 0, 1, 1], [], []>} : vector<1x32xf32>, vector<32x32xf32>, vector<1x32xf32> -> vector<1x32xf32>
    %1134 = arith.addf %1130, %1133 : vector<1x32xf32>
    %c0_642 = arith.constant 0 : index
    %c0_643 = arith.constant 0 : index
    %c0_644 = arith.constant 0 : index
    %1135 = vector.load %arg18[%c0_642, %c0_643, %c0_644] : memref<2x1x32xf32, #tpu.memory_space<vmem>>, vector<1x1x32xf32>
    %1136 = vector.shape_cast %1135 : vector<1x1x32xf32> to vector<1x32xf32>
    %1137 = arith.addf %1134, %1136 : vector<1x32xf32>
    %1138 = math.tanh %1137 : vector<1x32xf32>
    %cst_645 = arith.constant 5.000000e-01 : f32
    %1139 = vector.broadcast %cst_645 : f32 to vector<1x32xf32>
    %1140 = arith.mulf %1139, %1078 : vector<1x32xf32>
    %cst_646 = arith.constant 5.000000e-01 : f32
    %1141 = vector.broadcast %cst_646 : f32 to vector<1x32xf32>
    %1142 = arith.mulf %1141, %1138 : vector<1x32xf32>
    %1143 = arith.addf %1140, %1142 : vector<1x32xf32>
    %1144 = math.tanh %1143 : vector<1x32xf32>
    %c1_647 = arith.constant 1 : index
    %c0_648 = arith.constant 0 : index
    %c0_649 = arith.constant 0 : index
    %1145 = vector.load %arg16[%c1_647, %c0_648, %c0_649] : memref<2x32x32xf32, #tpu.memory_space<vmem>>, vector<1x32x32xf32>
    %1146 = vector.shape_cast %1145 : vector<1x32x32xf32> to vector<32x32xf32>
    %cst_650 = arith.constant dense<0.000000e+00> : vector<1x32xf32>
    %1147 = tpu.matmul %1144, %1146, %cst_650 {dimension_numbers = #tpu.dot_dimension_numbers<[1], [0], [0], [1], [0, 0, 1, 1], [], []>} : vector<1x32xf32>, vector<32x32xf32>, vector<1x32xf32> -> vector<1x32xf32>
    %c1_651 = arith.constant 1 : index
    %c0_652 = arith.constant 0 : index
    %c0_653 = arith.constant 0 : index
    %1148 = vector.load %arg17[%c1_651, %c0_652, %c0_653] : memref<2x32x32xf32, #tpu.memory_space<vmem>>, vector<1x32x32xf32>
    %1149 = vector.shape_cast %1148 : vector<1x32x32xf32> to vector<32x32xf32>
    %cst_654 = arith.constant dense<0.000000e+00> : vector<1x32xf32>
    %1150 = tpu.matmul %1096, %1149, %cst_654 {dimension_numbers = #tpu.dot_dimension_numbers<[1], [0], [0], [1], [0, 0, 1, 1], [], []>} : vector<1x32xf32>, vector<32x32xf32>, vector<1x32xf32> -> vector<1x32xf32>
    %1151 = arith.addf %1147, %1150 : vector<1x32xf32>
    %c1_655 = arith.constant 1 : index
    %c0_656 = arith.constant 0 : index
    %c0_657 = arith.constant 0 : index
    %1152 = vector.load %arg18[%c1_655, %c0_656, %c0_657] : memref<2x1x32xf32, #tpu.memory_space<vmem>>, vector<1x1x32xf32>
    %1153 = vector.shape_cast %1152 : vector<1x1x32xf32> to vector<1x32xf32>
    %1154 = arith.addf %1151, %1153 : vector<1x32xf32>
    %1155 = math.tanh %1154 : vector<1x32xf32>
    %cst_658 = arith.constant 5.000000e-01 : f32
    %1156 = vector.broadcast %cst_658 : f32 to vector<1x32xf32>
    %1157 = arith.mulf %1156, %1095 : vector<1x32xf32>
    %cst_659 = arith.constant 5.000000e-01 : f32
    %1158 = vector.broadcast %cst_659 : f32 to vector<1x32xf32>
    %1159 = arith.mulf %1158, %1155 : vector<1x32xf32>
    %1160 = arith.addf %1157, %1159 : vector<1x32xf32>
    %1161 = math.tanh %1160 : vector<1x32xf32>
    %1162 = vector.broadcast %1161 : vector<1x32xf32> to vector<8x32xf32>
    %1163 = arith.mulf %1162, %633 : vector<8x32xf32>
    %cst_660 = arith.constant dense<0.000000e+00> : vector<8xf32>
    %1164 = vector.multi_reduction <add>, %1163, %cst_660 [1] : vector<8x32xf32> to vector<8xf32>
    %1165 = vector.shape_cast %1164 : vector<8xf32> to vector<8x1xf32>
    %cst_661 = arith.constant dense<0xFF800000> : vector<1xf32>
    %1166 = vector.multi_reduction <maximumf>, %1165, %cst_661 [0] : vector<8x1xf32> to vector<1xf32>
    %1167 = vector.shape_cast %1166 : vector<1xf32> to vector<1x1xf32>
    %1168 = vector.broadcast %1167 : vector<1x1xf32> to vector<8x1xf32>
    %1169 = arith.subf %1165, %1168 : vector<8x1xf32>
    %1170 = math.exp %1169 : vector<8x1xf32>
    %cst_662 = arith.constant dense<0.000000e+00> : vector<1xf32>
    %1171 = vector.multi_reduction <add>, %1170, %cst_662 [0] : vector<8x1xf32> to vector<1xf32>
    %1172 = vector.shape_cast %1171 : vector<1xf32> to vector<1x1xf32>
    %1173 = tpu.reciprocal %1172 {approx = true} : vector<1x1xf32> -> vector<1x1xf32>
    %1174 = vector.broadcast %1173 : vector<1x1xf32> to vector<8x1xf32>
    %1175 = arith.mulf %1170, %1174 : vector<8x1xf32>
    %1176 = vector.broadcast %1175 : vector<8x1xf32> to vector<8x9xf32>
    %1177 = arith.mulf %1176, %730 : vector<8x9xf32>
    %cst_663 = arith.constant dense<0.000000e+00> : vector<9xf32>
    %1178 = vector.multi_reduction <add>, %1177, %cst_663 [0] : vector<8x9xf32> to vector<9xf32>
    %1179 = vector.shape_cast %1178 : vector<9xf32> to vector<1x9xf32>
    %c0_664 = arith.constant 0 : index
    %c0_665 = arith.constant 0 : index
    %1180 = vector.load %arg19[%c0_664, %c0_665] : memref<32x9xf32, #tpu.memory_space<vmem>>, vector<32x9xf32>
    %cst_666 = arith.constant dense<0.000000e+00> : vector<1x9xf32>
    %1181 = tpu.matmul %1161, %1180, %cst_666 {dimension_numbers = #tpu.dot_dimension_numbers<[1], [0], [0], [1], [0, 0, 1, 1], [], []>} : vector<1x32xf32>, vector<32x9xf32>, vector<1x9xf32> -> vector<1x9xf32>
    %1182 = arith.addf %1181, %1179 : vector<1x9xf32>
    %c0_667 = arith.constant 0 : index
    %c0_668 = arith.constant 0 : index
    %1183 = vector.load %arg21[%c0_667, %c0_668] : memref<1x9xf32, #tpu.memory_space<vmem>>, vector<1x9xf32>
    %1184 = arith.addf %1182, %1183 : vector<1x9xf32>
    %c1_669 = arith.constant 1 : index
    %c54_670 = arith.constant 54 : index
    %1185 = vector.load %arg22[%c1_669, %c54_670] : memref<2x72xf32, #tpu.memory_space<vmem>>, vector<1x9xf32>
    tpu.vector_store %arg22[%c1_669, %c54_670], %1184 {strides = array<i32>} : memref<2x72xf32, #tpu.memory_space<vmem>>, vector<1x9xf32>,
    %1186 = vector.extract_strided_slice %1184 {offsets = [0, 4], sizes = [1, 1], strides = [1, 1]} : vector<1x9xf32> to vector<1x1xf32>
    %1187 = vector.extract_strided_slice %728 {offsets = [7, 0], sizes = [1, 32], strides = [1, 1]} : vector<8x32xf32> to vector<1x32xf32>
    %c0_671 = arith.constant 0 : index
    %c0_672 = arith.constant 0 : index
    %1188 = vector.load %arg14[%c0_671, %c0_672] : memref<1x32xf32, #tpu.memory_space<vmem>>, vector<1x32xf32>
    %1189 = vector.broadcast %1186 : vector<1x1xf32> to vector<1x32xf32>
    %1190 = arith.mulf %1189, %1188 : vector<1x32xf32>
    %1191 = arith.addf %1187, %1190 : vector<1x32xf32>
    %1192 = math.tanh %1191 : vector<1x32xf32>
    %c0_673 = arith.constant 0 : index
    %c0_674 = arith.constant 0 : index
    %c0_675 = arith.constant 0 : index
    %1193 = vector.load %arg16[%c0_673, %c0_674, %c0_675] : memref<2x32x32xf32, #tpu.memory_space<vmem>>, vector<1x32x32xf32>
    %1194 = vector.shape_cast %1193 : vector<1x32x32xf32> to vector<32x32xf32>
    %cst_676 = arith.constant dense<0.000000e+00> : vector<1x32xf32>
    %1195 = tpu.matmul %1192, %1194, %cst_676 {dimension_numbers = #tpu.dot_dimension_numbers<[1], [0], [0], [1], [0, 0, 1, 1], [], []>} : vector<1x32xf32>, vector<32x32xf32>, vector<1x32xf32> -> vector<1x32xf32>
    %c0_677 = arith.constant 0 : index
    %c0_678 = arith.constant 0 : index
    %c0_679 = arith.constant 0 : index
    %1196 = vector.load %arg17[%c0_677, %c0_678, %c0_679] : memref<2x32x32xf32, #tpu.memory_space<vmem>>, vector<1x32x32xf32>
    %1197 = vector.shape_cast %1196 : vector<1x32x32xf32> to vector<32x32xf32>
    %cst_680 = arith.constant dense<0.000000e+00> : vector<1x32xf32>
    %1198 = tpu.matmul %1144, %1197, %cst_680 {dimension_numbers = #tpu.dot_dimension_numbers<[1], [0], [0], [1], [0, 0, 1, 1], [], []>} : vector<1x32xf32>, vector<32x32xf32>, vector<1x32xf32> -> vector<1x32xf32>
    %1199 = arith.addf %1195, %1198 : vector<1x32xf32>
    %c0_681 = arith.constant 0 : index
    %c0_682 = arith.constant 0 : index
    %c0_683 = arith.constant 0 : index
    %1200 = vector.load %arg18[%c0_681, %c0_682, %c0_683] : memref<2x1x32xf32, #tpu.memory_space<vmem>>, vector<1x1x32xf32>
    %1201 = vector.shape_cast %1200 : vector<1x1x32xf32> to vector<1x32xf32>
    %1202 = arith.addf %1199, %1201 : vector<1x32xf32>
    %1203 = math.tanh %1202 : vector<1x32xf32>
    %cst_684 = arith.constant 5.000000e-01 : f32
    %1204 = vector.broadcast %cst_684 : f32 to vector<1x32xf32>
    %1205 = arith.mulf %1204, %1143 : vector<1x32xf32>
    %cst_685 = arith.constant 5.000000e-01 : f32
    %1206 = vector.broadcast %cst_685 : f32 to vector<1x32xf32>
    %1207 = arith.mulf %1206, %1203 : vector<1x32xf32>
    %1208 = arith.addf %1205, %1207 : vector<1x32xf32>
    %1209 = math.tanh %1208 : vector<1x32xf32>
    %c1_686 = arith.constant 1 : index
    %c0_687 = arith.constant 0 : index
    %c0_688 = arith.constant 0 : index
    %1210 = vector.load %arg16[%c1_686, %c0_687, %c0_688] : memref<2x32x32xf32, #tpu.memory_space<vmem>>, vector<1x32x32xf32>
    %1211 = vector.shape_cast %1210 : vector<1x32x32xf32> to vector<32x32xf32>
    %cst_689 = arith.constant dense<0.000000e+00> : vector<1x32xf32>
    %1212 = tpu.matmul %1209, %1211, %cst_689 {dimension_numbers = #tpu.dot_dimension_numbers<[1], [0], [0], [1], [0, 0, 1, 1], [], []>} : vector<1x32xf32>, vector<32x32xf32>, vector<1x32xf32> -> vector<1x32xf32>
    %c1_690 = arith.constant 1 : index
    %c0_691 = arith.constant 0 : index
    %c0_692 = arith.constant 0 : index
    %1213 = vector.load %arg17[%c1_690, %c0_691, %c0_692] : memref<2x32x32xf32, #tpu.memory_space<vmem>>, vector<1x32x32xf32>
    %1214 = vector.shape_cast %1213 : vector<1x32x32xf32> to vector<32x32xf32>
    %cst_693 = arith.constant dense<0.000000e+00> : vector<1x32xf32>
    %1215 = tpu.matmul %1161, %1214, %cst_693 {dimension_numbers = #tpu.dot_dimension_numbers<[1], [0], [0], [1], [0, 0, 1, 1], [], []>} : vector<1x32xf32>, vector<32x32xf32>, vector<1x32xf32> -> vector<1x32xf32>
    %1216 = arith.addf %1212, %1215 : vector<1x32xf32>
    %c1_694 = arith.constant 1 : index
    %c0_695 = arith.constant 0 : index
    %c0_696 = arith.constant 0 : index
    %1217 = vector.load %arg18[%c1_694, %c0_695, %c0_696] : memref<2x1x32xf32, #tpu.memory_space<vmem>>, vector<1x1x32xf32>
    %1218 = vector.shape_cast %1217 : vector<1x1x32xf32> to vector<1x32xf32>
    %1219 = arith.addf %1216, %1218 : vector<1x32xf32>
    %1220 = math.tanh %1219 : vector<1x32xf32>
    %cst_697 = arith.constant 5.000000e-01 : f32
    %1221 = vector.broadcast %cst_697 : f32 to vector<1x32xf32>
    %1222 = arith.mulf %1221, %1160 : vector<1x32xf32>
    %cst_698 = arith.constant 5.000000e-01 : f32
    %1223 = vector.broadcast %cst_698 : f32 to vector<1x32xf32>
    %1224 = arith.mulf %1223, %1220 : vector<1x32xf32>
    %1225 = arith.addf %1222, %1224 : vector<1x32xf32>
    %1226 = math.tanh %1225 : vector<1x32xf32>
    %1227 = vector.broadcast %1226 : vector<1x32xf32> to vector<8x32xf32>
    %1228 = arith.mulf %1227, %633 : vector<8x32xf32>
    %cst_699 = arith.constant dense<0.000000e+00> : vector<8xf32>
    %1229 = vector.multi_reduction <add>, %1228, %cst_699 [1] : vector<8x32xf32> to vector<8xf32>
    %1230 = vector.shape_cast %1229 : vector<8xf32> to vector<8x1xf32>
    %cst_700 = arith.constant dense<0xFF800000> : vector<1xf32>
    %1231 = vector.multi_reduction <maximumf>, %1230, %cst_700 [0] : vector<8x1xf32> to vector<1xf32>
    %1232 = vector.shape_cast %1231 : vector<1xf32> to vector<1x1xf32>
    %1233 = vector.broadcast %1232 : vector<1x1xf32> to vector<8x1xf32>
    %1234 = arith.subf %1230, %1233 : vector<8x1xf32>
    %1235 = math.exp %1234 : vector<8x1xf32>
    %cst_701 = arith.constant dense<0.000000e+00> : vector<1xf32>
    %1236 = vector.multi_reduction <add>, %1235, %cst_701 [0] : vector<8x1xf32> to vector<1xf32>
    %1237 = vector.shape_cast %1236 : vector<1xf32> to vector<1x1xf32>
    %1238 = tpu.reciprocal %1237 {approx = true} : vector<1x1xf32> -> vector<1x1xf32>
    %1239 = vector.broadcast %1238 : vector<1x1xf32> to vector<8x1xf32>
    %1240 = arith.mulf %1235, %1239 : vector<8x1xf32>
    %1241 = vector.broadcast %1240 : vector<8x1xf32> to vector<8x9xf32>
    %1242 = arith.mulf %1241, %730 : vector<8x9xf32>
    %cst_702 = arith.constant dense<0.000000e+00> : vector<9xf32>
    %1243 = vector.multi_reduction <add>, %1242, %cst_702 [0] : vector<8x9xf32> to vector<9xf32>
    %1244 = vector.shape_cast %1243 : vector<9xf32> to vector<1x9xf32>
    %c0_703 = arith.constant 0 : index
    %c0_704 = arith.constant 0 : index
    %1245 = vector.load %arg19[%c0_703, %c0_704] : memref<32x9xf32, #tpu.memory_space<vmem>>, vector<32x9xf32>
    %cst_705 = arith.constant dense<0.000000e+00> : vector<1x9xf32>
    %1246 = tpu.matmul %1226, %1245, %cst_705 {dimension_numbers = #tpu.dot_dimension_numbers<[1], [0], [0], [1], [0, 0, 1, 1], [], []>} : vector<1x32xf32>, vector<32x9xf32>, vector<1x9xf32> -> vector<1x9xf32>
    %1247 = arith.addf %1246, %1244 : vector<1x9xf32>
    %c0_706 = arith.constant 0 : index
    %c0_707 = arith.constant 0 : index
    %1248 = vector.load %arg21[%c0_706, %c0_707] : memref<1x9xf32, #tpu.memory_space<vmem>>, vector<1x9xf32>
    %1249 = arith.addf %1247, %1248 : vector<1x9xf32>
    %c1_708 = arith.constant 1 : index
    %c63_709 = arith.constant 63 : index
    %1250 = vector.load %arg22[%c1_708, %c63_709] : memref<2x72xf32, #tpu.memory_space<vmem>>, vector<1x9xf32>
    tpu.vector_store %arg22[%c1_708, %c63_709], %1249 {strides = array<i32>} : memref<2x72xf32, #tpu.memory_space<vmem>>, vector<1x9xf32>,
    return
  }
}

</mosaic_0001>

<bundles_post_ra>
// kernel: seq2seq_forward.1
= control target key start
LH: loop header
LB: loop body
LE: loop exit
PB: predicated region body
PF: predicated region fallthrough
CT: control target
= control target key end

     0   :  { %s12729_s0 = inlined_call_operand.vmem [shape: f32[6], index: 0, kind: input, shape index: {}]   ;;  %s12730_s1 = inlined_call_operand.vmem [shape: f32[2], index: 1, kind: input, shape index: {}]   ;;  %s12731_s2 = inlined_call_operand.vmem [shape: f32[6], index: 2, kind: input, shape index: {}]   ;;  %s12732_s3 = inlined_call_operand.vmem [shape: f32[2], index: 3, kind: input, shape index: {}]   ;;  %s12733_s4 = inlined_call_operand.vmem [shape: f32[2,8,10], index: 4, kind: input, shape index: {}]   ;;  %s12734_s5 = inlined_call_operand.vmem [shape: f32[2,8,10], index: 5, kind: input, shape index: {}]   ;;  %s12735_s6 = inlined_call_operand.vmem [shape: f32[2,1], index: 6, kind: input, shape index: {}]   ;;  %s12736_s7 = inlined_call_operand.vmem [shape: f32[10,32], index: 7, kind: input, shape index: {}]   ;;  %s12737_s8 = inlined_call_operand.vmem [shape: f32[1,32], index: 8, kind: input, shape index: {}]   ;;  %s12738_s9 = inlined_call_operand.vmem [shape: f32[32,32], index: 9, kind: input, shape index: {}]   ;;  %s12739_s10 = inlined_call_operand.vmem [shape: f32[1,32], index: 10, kind: input, shape index: {}]   ;;  %s12740_s11 = inlined_call_operand.vmem [shape: f32[32,32], index: 11, kind: input, shape index: {}]   ;;  %s12741_s12 = inlined_call_operand.vmem [shape: f32[1,32], index: 12, kind: input, shape index: {}]   ;;  %s12742_s13 = inlined_call_operand.vmem [shape: f32[10,32], index: 13, kind: input, shape index: {}]   ;;  %s12743_s14 = inlined_call_operand.vmem [shape: f32[1,32], index: 14, kind: input, shape index: {}]   ;;  %s12744_s15 = inlined_call_operand.vmem [shape: f32[1,32], index: 15, kind: input, shape index: {}]   ;;  %s12745_s16 = inlined_call_operand.vmem [shape: f32[2,32,32], index: 16, kind: input, shape index: {}]   ;;  %s12746_s17 = inlined_call_operand.vmem [shape: f32[2,32,32], index: 17, kind: input, shape index: {}]   ;;  %s12747_s18 = inlined_call_operand.vmem [shape: f32[2,1,32], index: 18, kind: input, shape index: {}]   ;;  %s12748_s19 = inlined_call_operand.vmem [shape: f32[32,9], index: 19, kind: input, shape index: {}]   ;;  %s12749_s20 = inlined_call_operand.vmem [shape: f32[32,9], index: 20, kind: input, shape index: {}]   ;;  %s12750_s21 = inlined_call_operand.vmem [shape: f32[1,9], index: 21, kind: input, shape index: {}]   ;;  %s12751_s22 = inlined_call_operand.vmem [shape: f32[2,72], index: 22, kind: output, shape index: {}]  }
   0x1   :  { %12754 = sst [smem:[#allocation12_spill]] %s12729_s0 }
   0x2   :  { %12755 = sst [smem:[#allocation13_spill]] %s12730_s1 }
   0x3   :  { %12756 = sst [smem:[#allocation14_spill]] %s12731_s2 }
   0x4   :  { %12757 = sst [smem:[#allocation15_spill]] %s12732_s3 }
   0x5   :  { %12758 = sst [smem:[#allocation16_spill]] %s12733_s4 }
   0x6   :  { %12759 = sst [smem:[#allocation17_spill]] %s12734_s5 }
   0x7   :  { %12760 = sst [smem:[#allocation18_spill]] %s12735_s6 }
   0x8   :  { %27 = vsyncpa [#allocation3], 0 }
   0x9   :  { %28 = vsyncpa [#allocation5], 0  ;;  %s12761_s29 = sld [smem:[#allocation13_spill]] }
   0xf   :  { %s46_s30 = sshll.u32 %s12761_s29, 4  ;;  %s47_s30 = int_to_ptr.vmem [resolvable:$true] %s46_s30 }
  0x10   :  { %29 = vsyncpa [#allocation8], 0  ;;  %s12762_s23 = sld [smem:[#allocation12_spill]]  ;;  %s10849_s5 = scalar_lea.vmem %s47_s30, 16 }
  0x11   :  { %p10850_p0 = scmp.ne.s32.totalorder %s47_s30, %s10849_s5  ;;  %p10854_p1 = scmp.lt.s32.totalorder %s47_s30, %s47_s30 }
  0x12   :  { %p10855_p2 = scmp.lt.s32.totalorder %s10849_s5, %s10849_s5 }
  0x14   :  { %p10856_p3 = por %p10855_p2, %p10854_p1 }
  0x16   :  { %s36_s1 = sshll.u32 %s12762_s23, 4  ;;  %p10857_p4 = pnand %p10856_p3, %p10850_p0  ;;  %s37_s1 = int_to_ptr.vmem [resolvable:$true] %s36_s1 }
  0x18   :  { %10860 = shalt.err (!%p10857_p4)
}
  0x19   :  { %s10903_s24 = smov [#allocation4]   ;;  %s10861_s6 = scalar_lea.vmem %s37_s1, 16 }
  0x1a   :  { %49 = dma.vmem_to_smem %s47_s30, 16, %s10903_s24, [#allocation5]  }
  0x1b   :  { %p10862_p5 = scmp.ne.s32.totalorder %s37_s1, %s10861_s6  ;;  %p10866_p6 = scmp.lt.s32.totalorder %s37_s1, %s37_s1 }
  0x1c   :  { %p10867_p7 = scmp.lt.s32.totalorder %s10861_s6, %s10861_s6 }
  0x1e   :  { %p10868_p8 = por %p10867_p7, %p10866_p6 }
  0x20   :  { %p10869_p9 = pnand %p10868_p8, %p10862_p5 }
  0x22   :  { %10872 = shalt.err (!%p10869_p9)
}
  0x23   :  { %s10904_s25 = smov [#allocation2]   ;;  %s12763_s27 = sld [smem:[#allocation14_spill]] }
  0x24   :  { %39 = dma.vmem_to_smem %s37_s1, 16, %s10904_s25, [#allocation3]  }
  0x25   :  { %s12764_s4 = sld [smem:[#allocation15_spill]] }
  0x29   :  { %s56_s3 = sshll.u32 %s12763_s27, 4  ;;  %s57_s3 = int_to_ptr.vmem [resolvable:$true] %s56_s3 }
  0x2a   :  { %s10873_s30 = scalar_lea.vmem %s57_s3, 16  ;;  %p10878_p11 = scmp.lt.s32.totalorder %s57_s3, %s57_s3 }
  0x2b   :  { %s66_s0 = sshll.u32 %s12764_s4, 4  ;;  %p10874_p10 = scmp.ne.s32.totalorder %s57_s3, %s10873_s30  ;;  %s67_s0 = int_to_ptr.vmem [resolvable:$true] %s66_s0 }
  0x2c   :  { %p10879_p12 = scmp.lt.s32.totalorder %s10873_s30, %s10873_s30 }
  0x2e   :  { %p10880_p13 = por %p10879_p12, %p10878_p11 }
  0x30   :  { %p10881_p0 = pnand %p10880_p13, %p10874_p10 }
  0x32   :  { %10884 = shalt.err (!%p10881_p0)
}
  0x33   :  { %s10905_s23 = smov [#allocation6]   ;;  %s10885_s1 = scalar_lea.vmem %s67_s0, 16 }
  0x34   :  { %59 = dma.vmem_to_smem %s57_s3, 16, %s10905_s23, [#allocation5]  }
  0x35   :  { %p10886_p1 = scmp.ne.s32.totalorder %s67_s0, %s10885_s1  ;;  %p10890_p2 = scmp.lt.s32.totalorder %s67_s0, %s67_s0 }
  0x36   :  { %p10891_p3 = scmp.lt.s32.totalorder %s10885_s1, %s10885_s1 }
  0x38   :  { %p10892_p4 = por %p10891_p3, %p10890_p2 }
  0x3a   :  { %p10893_p5 = pnand %p10892_p4, %p10886_p1 }
  0x3c   :  { %10896 = shalt.err (!%p10893_p5)
}
  0x3d   :  { %s10906_s5 = smov [#allocation7]  }
  0x3e   :  { %69 = dma.vmem_to_smem %s67_s0, 16, %s10906_s5, [#allocation8]  }
  0x3f   :  { %10897 = dma.done.wait [#allocation3], 16  }
  0x40   :  { %10898 = vsyncadd [#allocation3], 4294967280 }
  0x41   :  { %10899 = dma.done.wait [#allocation5], 32  }
  0x42   :  { %10900 = vsyncadd [#allocation5], 4294967264 }
  0x43   :  { %10901 = dma.done.wait [#allocation8], 16  }
  0x44   :  { %10902 = vsyncadd [#allocation8], 4294967280 }
  0x45   :  { %118 = sfence }
  0x46   :  { %v121_v0 = vld [vmem:[%s12736_s7] sm:$0xff]  ;;  %v122_v1 = vld [vmem:[%s12736_s7 + $0x8] sm:$0x3]  ;;  %vm134_vm0 = vcmask 1041408   ;;  %v10907_v2 = vmov 0.0|0.0   ;;  %vm10908_vm1 = vmmov 1  }
  0x47   :  { %10061 = vmatprep.subr.bf16.mxu1 %v10907_v2  ;;  %v10062_v3 = vpack.c.bf16 %v122_v1, %v121_v0  ;;  %vm11054_vm2 = vmpackc.low %vm134_vm0, %vm10908_vm1  ;;  %10071 = vmatprep.subr.bf16.mxu0 %v10907_v2  ;;  %vm10909_vm3 = vmmov 0   ;;  %v10910_v5 = vmov 0.0   ;;  %s12767_s3 = sld [smem:[#allocation16_spill]]  ;;  %vm130_vm4 = vcmask 80896   ;;  %v295_v7 = vld [vmem:[%s12740_s11] sm:$0xff]  ;;  %v296_v8 = vld [vmem:[%s12740_s11 + $0x8] sm:$0xff] }
  0x48   :  { %9091 = vmatprep.mubr.msk.f32.mxu1 %vm10909_vm3, %v10910_v5  ;;  %9113 = vmatprep.mubr.msk.f32.mxu0 %vm10909_vm3, %v10910_v5  ;;  %v209_v9 = vld [vmem:[%s12738_s9] sm:$0xff]  ;;  %v10072_v10 = vpack.c.bf16 %v296_v8, %v295_v7  ;;  %v210_v11 = vld [vmem:[%s12738_s9 + $0x8] sm:$0xff]  ;;  %v297_v12 = vld [vmem:[%s12740_s11 + $0x10] sm:$0xff]  ;;  %s12768_s30 = sld [smem:[#allocation18_spill]]  ;;  %v10911_v20 = vmov 0   ;;  %vm220_vm5 = vcmask 261120  }
  0x49   :  { %10064 = vmatpush3.bf16.msk.msra.mxu1 %vm11054_vm2, %v10062_v3  ;;  %v298_v13 = vld [vmem:[%s12740_s11 + $0x18] sm:$0xff]  ;;  %v10066_v14 = vpack.c.bf16 %v210_v11, %v209_v9  ;;  %v211_v15 = vld [vmem:[%s12738_s9 + $0x10] sm:$0xff]  ;;  %10610 = vset.pattern.permute.xlu0 %v10911_v20  ;;  %v8372_v21 = vld [vmem:[%s12737_s8] ss:$0 sm:$0xff]  ;;  %s12769_s5 = sld [smem:[#allocation17_spill]]  ;;  %s8379_s0 = sld [smem:[#allocation2 + $0x1]] }
  0x4a   :  { %10065 = vmatprep.subr.bf16.mxu1 %v10907_v2  ;;  %v212_v16 = vld [vmem:[%s12738_s9 + $0x18] sm:$0xff]  ;;  %10073 = vmatpush3.bf16.msra.mxu0 %v10072_v10  ;;  %v10075_v17 = vpack.c.bf16 %v298_v13, %v297_v12  ;;  %v535_v25 = vld [vmem:[%s12749_s20] sm:$0xff]  ;;  %v536_v26 = vld [vmem:[%s12749_s20 + $0x8] sm:$0xff]  ;;  %s377_s23 = sld [smem:[#allocation2]]  ;;  %s8381_s1 = sld [smem:[#allocation2 + $0x2]]  ;;  %vm978_vm6 = vcmask 72704  }
  0x4b   :  { %10074 = vmatprep.subr.bf16.mxu0 %v10907_v2  ;;  %v10069_v18 = vpack.c.bf16 %v212_v16, %v211_v15  ;;  %v450_v27 = vld [vmem:[%s12742_s13] sm:$0xff]  ;;  %v451_v28 = vld [vmem:[%s12742_s13 + $0x8] sm:$0x3]  ;;  %v10082_v29 = vpack.c.bf16 %v536_v26, %v535_v25  ;;  %v537_v31 = vld [vmem:[%s12749_s20 + $0x10] sm:$0xff]  ;;  %s8383_s24 = sld [smem:[#allocation2 + $0x3]]  ;;  %s407_s6 = sld [smem:[#allocation4]] }
  0x4c   :  { %v10078_v30 = vpack.c.bf16 %v451_v28, %v450_v27  ;;  %v538_v32 = vld [vmem:[%s12749_s20 + $0x18] sm:$0xff]  ;;  %v622_v36 = vld [vmem:[%s12746_s17] sm:$0xff]  ;;  %v623_v37 = vld [vmem:[%s12746_s17 + $0x8] sm:$0xff]  ;;  %s8387_s25 = sld [smem:[#allocation2 + $0x5]]  ;;  %s8389_s26 = sld [smem:[#allocation4 + $0x1]]  ;;  %vm1066_vm7 = vcmask 65536  }
  0x4d   :  { %v120_v6 = vld [vmem:[%s12767_s3] sm:$0xff]  ;;  %v10085_v34 = vpack.c.bf16 %v538_v32, %v537_v31  ;;  %v11158_v39 = vpack.c.bf16 %v623_v37, %v622_v36  ;;  %v619_v40 = vld [vmem:[%s12745_s16 + $0x8] sm:$0xff]  ;;  %v624_v41 = vld [vmem:[%s12746_s17 + $0x10] sm:$0xff]  ;;  %s8522_s4 = sld [smem:[#allocation6 + $0x4]]  ;;  %s10913_s2 = smov 9   ;;  %vm1521_vm8 = vcmask 139336  }
  0x4e   :  { %9092 = vmatmul.mubr.msk.f32.vlgmr.msra.gmra.mrb[0].mxu1 %vm130_vm4, %v120_v6  ;;  %10076 = vmatpush3.bf16.msra.mxu0 %v10075_v17  ;;  %v119_v19 = vld [vmem:[%s12768_s30] sm:$0x3]  ;;  %v625_v42 = vld [vmem:[%s12746_s17 + $0x18] sm:$0xff]  ;;  %v620_v44 = vld [vmem:[%s12745_s16 + $0x10] sm:$0xff]  ;;  %s8385_s30 = sld [smem:[#allocation2 + $0x4]]  ;;  %s10914_s27 = smov 18  }
  0x4f   :  { %9102 = vmatprep.mubr.msk.f32.mxu1 %vm10909_vm3, %v10910_v5  ;;  %10067 = vmatpush3.bf16.msra.mxu1 %v10066_v14  ;;  %v449_v35 = vld [vmem:[%s12769_s5] sm:$0xff]  ;;  %v621_v45 = vld [vmem:[%s12745_s16 + $0x18] sm:$0xff]  ;;  %v11178_v46 = vpack.c.bf16 %v625_v42, %v624_v41  ;;  %v386_v0 = vstv %s8379_s0  ;;  %v8403_v28 = vld [vmem:[%s12746_s17 + $0x30] sm:$0xff]  ;;  %s8380_s0 = sld [smem:[#allocation6 + $0x1]]  ;;  %s10915_s28 = smov 27   ;;  %vm1975_vm9 = vcmask 213136  }
  0x50   :  { %10068 = vmatprep.subr.bf16.mxu1 %v10907_v2  ;;  %10081 = vmatprep.subr.bf16.mxu0 %v10907_v2  ;;  %v618_v38 = vld [vmem:[%s12745_s16] sm:$0xff]  ;;  %v11182_v47 = vpack.c.bf16 %v621_v45, %v620_v44  ;;  %v378_v6 = vstv %s377_s23  ;;  %v400_v8 = vstv %s8381_s1  ;;  %v8398_v37 = vld [vmem:[%s12745_s16 + $0x28] sm:$0xff]  ;;  %s8382_s23 = sld [smem:[#allocation6 + $0x2]]  ;;  %s8388_s1 = sld [smem:[#allocation6 + $0x5]]  ;;  %vm2429_vm10 = vcmask 286936  }
  0x51   :  { %612 = vperm.xlu0 %10610, %v119_v19   ;;  %v11169_v43 = vpack.c.bf16 %v619_v40, %v618_v38  ;;  %v8375_v48 = vld [vmem:[%s12739_s10] ss:$0 sm:$0xff]  ;;  %v414_v9 = vstv %s8383_s24  ;;  %v8399_v38 = vld [vmem:[%s12745_s16 + $0x30] sm:$0xff]  ;;  %v8400_v41 = vld [vmem:[%s12745_s16 + $0x38] sm:$0xff]  ;;  %s8521_s24 = sld [smem:[#allocation2 + $0x4]]  ;;  %s10916_s29 = smov 36  }
  0x52   :  { %v609_v52 = vld [vmem:[%s12743_s14] sm:$0x1]  ;;  %v436_v19 = vstv %s8387_s25  ;;  %v444_v31 = vstv %s8389_s26  ;;  %v11252_v42 = vpack.c.bf16 %v8400_v41, %v8399_v38  ;;  %s8390_s25 = sld [smem:[#allocation7 + $0x1]]  ;;  %vm2883_vm11 = vcmask 360736  }
  0x53   :  { %10070 = vmatpush3.bf16.msra.mxu1 %v10069_v18  ;;  %v8391_v56 = vld [vmem:[%s12744_s15] ss:$0 sm:$0xff]  ;;  %v408_v18 = vstv %s407_s6  ;;  %s410_s6 = sld [smem:[#allocation7]]  ;;  %vm3337_vm12 = vcmask 434536   ;;  %vm3791_vm13 = vcmask 508336   ;;  %vm4245_vm14 = vcmask 582136  }
  0x54   :  { %10077 = vmatprep.subr.bf16.mxu1 %v10907_v2  ;;  %v422_v1 = vstv %s8385_s30  ;;  %v8397_v36 = vld [vmem:[%s12745_s16 + $0x20] sm:$0xff]  ;;  %s381_s30 = sld [smem:[#allocation6]] }
  0x55   :  { %v11246_v40 = vpack.c.bf16 %v8398_v37, %v8397_v36  ;;  %v8377_v44 = vld [vmem:[%s12741_s12] ss:$0 sm:$0xff] }
  0x56   :  { %v440_v37 = vstv %s8388_s1  ;;  %v4420_v4 = vld [vmem:[%s12740_s11] sm:$0xff]  ;;  %s8515_s1 = sld [smem:[#allocation2 + $0x1]] }
  0xd0   :  { %v11192_v49 = vpop.permute.xlu0 %612 }
  0xd1   :  { %v615_v57 = vmul.f32 %v11192_v49, %v609_v52  ;;  %v393_v52 = vstv %s8380_s0  ;;  %s8520_s0 = sld [smem:[#allocation6 + $0x3]] }
 0x121   :  { %v204_v22 = vpop.f32.mrb[0].mxu1 }
 0x122   :  { %v205_v23 = vadd.f32 %v8372_v21, %v204_v22  ;;  %v9093_v24 = vpop.f32.mrb[1].mxu1  ;;  %v8401_v21 = vld [vmem:[%s12746_s17 + $0x20] sm:$0xff]  ;;  %v8402_v22 = vld [vmem:[%s12746_s17 + $0x28] sm:$0xff] }
 0x123   :  { %v11217_v26 = vpack.c.bf16 %v8402_v22, %v8401_v21  ;;  %v989_v22 = vld [vmem:[%s12748_s19 + $0x18] sm:$0xff] }
 0x124   :  { %10613 = vtanh.f32 %v205_v23 }
 0x12e   :  { %v11124_v33 = vpop.eup %10613 }
 0x12f   :  { %9103 = vmatmul.mubr.msk.f32.vlgmr.msra.gmra.mrb[2].mxu1 %vm220_vm5, %v11124_v33  ;;  %9114 = vmatmul.mubr.msk.f32.vlgmr.msra.gmra.mrb[0].mxu0 %vm220_vm5, %v11124_v33 }
 0x130   :  { %10083 = vmatpush3.bf16.msra.mxu0 %v10082_v29  ;;  %10080 = vmatpush3.bf16.msk.msra.mxu1 %vm11054_vm2, %v10078_v30  ;;  %v8404_v29 = vld [vmem:[%s12746_s17 + $0x38] sm:$0xff] }
 0x131   :  { %10084 = vmatprep.subr.bf16.mxu0 %v10907_v2  ;;  %9131 = vmatprep.mubr.msk.f32.mxu0 %vm10909_vm3, %v10910_v5  ;;  %v11227_v32 = vpack.c.bf16 %v8404_v29, %v8403_v28  ;;  %v8407_v28 = vld [vmem:[%s12747_s18 + $0x1] sm:$0x1] }
 0x132   :  { %9120 = vmatprep.mubr.msk.f32.mxu1 %vm10909_vm3, %v10910_v5  ;;  %10087 = vmatprep.subr.bf16.mxu1 %v10907_v2 }
 0x133   :  { %9121 = vmatmul.mubr.msk.f32.vlgmr.msra.gmra.mrb[4].mxu1 %vm130_vm4, %v449_v35 }
 0x134   :  { %10086 = vmatpush3.bf16.msra.mxu0 %v10085_v34  ;;  %9142 = vmatprep.mubr.msk.f32.mxu1 %vm10909_vm3, %v10910_v5 }
 0x135   :  { %10093 = vmatprep.subr.bf16.mxu0 %v10907_v2  ;;  %10089 = vmatpush3.bf16.msra.mxu1 %v11158_v39 }
 0x136   :  { %10090 = vmatprep.subr.bf16.mxu1 %v10907_v2 }
 0x137   :  { %9132 = vmatmul.mubr.msk.f32.vlgmr.msra.gmra.mrb[2].mxu0 %vm220_vm5, %v11124_v33 }
 0x138   :  { %9153 = vmatprep.mubr.msk.f32.mxu0 %vm10909_vm3, %v10910_v5  ;;  %10095 = vmatpush3.bf16.msra.mxu0 %v11169_v43 }
 0x139   :  { %10096 = vmatprep.subr.bf16.mxu0 %v10907_v2  ;;  %10092 = vmatpush3.bf16.msra.mxu1 %v11178_v46 }
 0x13a   :  { %10099 = vmatprep.subr.bf16.mxu1 %v10907_v2 }
 0x13c   :  { %10098 = vmatpush3.bf16.msra.mxu0 %v11182_v47 }
 0x13d   :  { %10105 = vmatprep.subr.bf16.mxu0 %v10907_v2 }
 0x202   :  { %v290_v50 = vpop.f32.mrb[2].mxu1  ;;  %v11194_v51 = vpop.f32.mrb[0].mxu0 }
 0x203   :  { %v291_v53 = vadd.f32 %v8375_v48, %v290_v50  ;;  %v9104_v54 = vpop.f32.mrb[3].mxu1  ;;  %v9115_v55 = vpop.f32.mrb[1].mxu0  ;;  %v373_v45 = vadd.f32 %v8377_v44, %v11194_v51 }
 0x205   :  { %10615 = vtanh.f32 %v291_v53 }
 0x206   :  { %v531_v58 = vpop.f32.mrb[4].mxu1 }
 0x207   :  { %v11203_v59 = vadd.f32 %v8391_v56, %v531_v58  ;;  %v9122_v60 = vpop.f32.mrb[5].mxu1  ;;  %v773_v56 = vld [vmem:[%s12747_s18] sm:$0x1] }
 0x209   :  { %v616_v61 = vadd.f32 %v615_v57, %v11203_v59  ;;  %v382_v57 = vstv %s381_s30  ;;  %s8386_s30 = sld [smem:[#allocation6 + $0x4]] }
 0x20a   :  { %v11206_v62 = vpop.f32.mrb[2].mxu0 }
 0x20b   :  { %v9133_v63 = vpop.f32.mrb[3].mxu0  ;;  %10617 = vtanh.f32 %v616_v61 }
 0x20c   :  { %10619 = vtanh.f32 %v373_v45 }
 0x20f   :  { %v10616_v3 = vpop.eup %10615 }
 0x210   :  { %v387_v7 = vmul.f32 %v10616_v3, %v386_v0  ;;  %v423_v10 = vmul.f32 %v10616_v3, %v422_v1  ;;  %v379_v11 = vmul.f32 %v10616_v3, %v378_v6  ;;  %v401_v15 = vmul.f32 %v10616_v3, %v400_v8 }
 0x211   :  { %v415_v16 = vmul.f32 %v10616_v3, %v414_v9  ;;  %v437_v25 = vmul.f32 %v10616_v3, %v436_v19  ;;  %v404_v0 = vstv %s8382_s23  ;;  %v411_v9 = vstv %s410_s6  ;;  %v987_v19 = vld [vmem:[%s12748_s19 + $0x8] sm:$0xff]  ;;  %s8384_s23 = sld [smem:[#allocation6 + $0x3]]  ;;  %s8523_s6 = sld [smem:[#allocation2 + $0x5]] }
 0x212   :  { %v389_v12 = vrot.slane %v387_v7, 7  ;;  %v425_v13 = vrot.slane %v423_v10, 7 }
 0x214   :  { %v391_v14 = vadd.f32 %v389_v12, %v379_v11  ;;  %v427_v23 = vadd.f32 %v425_v13, %v415_v16 }
 0x215   :  { %v10618_v17 = vpop.eup %10617 }
 0x216   :  { %9154 = vmatmul.mubr.msk.f32.vlgmr.msra.gmra.mrb[4].mxu0 %vm220_vm5, %v10618_v17  ;;  %v402_v20 = vadd.f32 %v401_v15, %v391_v14  ;;  %v438_v30 = vadd.f32 %v437_v25, %v427_v23  ;;  %v11261_v50 = vpop.eup %10619 }
 0x217   :  { %9175 = vmatprep.mubr.msk.f32.mxu0 %vm10909_vm3, %v10910_v5  ;;  %10107 = vmatpush3.bf16.msra.mxu0 %v11246_v40  ;;  %v394_v54 = vmul.f32 %v11261_v50, %v393_v52  ;;  %v383_v63 = vmul.f32 %v11261_v50, %v382_v57  ;;  %v405_v3 = vmul.f32 %v11261_v50, %v404_v0  ;;  %v418_v29 = vstv %s8384_s23  ;;  %s8526_s23 = sld [smem:[#allocation7 + $0x1]] }
 0x218   :  { %v409_v24 = vadd.f32 %v408_v18, %v402_v20  ;;  %v445_v34 = vadd.f32 %v444_v31, %v438_v30  ;;  %10108 = vmatprep.subr.bf16.mxu0 %v10907_v2  ;;  %v986_v18 = vld [vmem:[%s12748_s19] sm:$0xff]  ;;  %v988_v20 = vld [vmem:[%s12748_s19 + $0x10] sm:$0xff]  ;;  %v419_v36 = vmul.f32 %v11261_v50, %v418_v29  ;;  %v441_v41 = vmul.f32 %v11261_v50, %v440_v37 }
 0x219   :  { %v396_v51 = vrot.slane %v394_v54, 7  ;;  %v11295_v21 = vpack.c.bf16 %v987_v19, %v986_v18  ;;  %v11301_v23 = vpack.c.bf16 %v989_v22, %v988_v20  ;;  %v447_v52 = vstv %s8390_s25  ;;  %s10919_s25 = smov 63  }
 0x21a   :  { %v627_v27 = vrot.slane %v409_v24, 7  ;;  %v794_v35 = vrot.slane %v445_v34, 7  ;;  %v429_v24 = vstv %s8386_s30 }
 0x21b   :  { %10110 = vmatpush3.bf16.msra.mxu0 %v11252_v42  ;;  %v398_v1 = vadd.f32 %v396_v51, %v383_v63  ;;  %v430_v25 = vmul.f32 %v11261_v50, %v429_v24 }
 0x21c   :  { %9143 = vmatmul.mubr.msk.f32.vlgmr.msra.gmra.mrb[6].mxu1 %vm220_vm5, %v627_v27  ;;  %10117 = vmatprep.subr.bf16.mxu0 %v10907_v2 }
 0x21d   :  { %10101 = vmatpush3.bf16.msra.mxu1 %v11217_v26  ;;  %9164 = vmatprep.mubr.msk.f32.mxu1 %vm10909_vm3, %v10910_v5  ;;  %v406_v8 = vadd.f32 %v405_v3, %v398_v1  ;;  %v432_v34 = vrot.slane %v430_v25, 7 }
 0x21e   :  { %10102 = vmatprep.subr.bf16.mxu1 %v10907_v2 }
 0x21f   :  { %v412_v10 = vadd.f32 %v411_v9, %v406_v8  ;;  %v434_v38 = vadd.f32 %v432_v34, %v419_v36 }
 0x221   :  { %10104 = vmatpush3.bf16.msra.mxu1 %v11227_v32  ;;  %v776_v13 = vmul.f32 0.5, %v412_v10 }
 0x222   :  { %10111 = vmatprep.subr.bf16.mxu1 %v10907_v2 }
 0x224   :  { %9165 = vmatmul.mubr.msk.f32.vlgmr.msra.gmra.mrb[8].mxu1 %vm220_vm5, %v794_v35 }
 0x225   :  { %9186 = vmatprep.mubr.msk.f32.mxu1 %vm10909_vm3, %v10910_v5  ;;  %10113 = vmatpush3.bf16.msra.mxu1 %v11295_v21 }
 0x226   :  { %10114 = vmatprep.subr.bf16.mxu1 %v10907_v2 }
 0x229   :  { %10116 = vmatpush3.bf16.msra.mxu1 %v11301_v23 }
 0x22a   :  { %10123 = vmatprep.subr.bf16.mxu1 %v10907_v2 }
 0x2e9   :  { %v769_v48 = vpop.f32.mrb[4].mxu0 }
 0x2ea   :  { %v9155_v53 = vpop.f32.mrb[5].mxu0 }
 0x2ef   :  { %v696_v55 = vpop.f32.mrb[6].mxu1 }
 0x2f0   :  { %v770_v58 = vadd.f32 %v769_v48, %v696_v55  ;;  %v9144_v60 = vpop.f32.mrb[7].mxu1  ;;  %v442_v48 = vadd.f32 %v441_v41, %v434_v38 }
 0x2f1   :  { %v952_v60 = vlaneseq }
 0x2f2   :  { %v774_v61 = vadd.f32 %v773_v56, %v770_v58  ;;  %v448_v53 = vadd.f32 %v447_v52, %v442_v48  ;;  %v1064_v48 = vld [vmem:[%s12750_s21] sm:$0x1] }
 0x2f3   :  { %v953_v51 = vshrl.u32 %v952_v60, 7 }
 0x2f4   :  { %10621 = vtanh.f32 %v774_v61  ;;  %v945_v56 = vmul.f32 0.5, %v448_v53 }
 0x2f5   :  { %v11317_v61 = vsub.s32 7, %v953_v51 }
 0x2f7   :  { %v863_v6 = vpop.f32.mrb[8].mxu1 }
 0x2f8   :  { %v9166_v7 = vpop.f32.mrb[9].mxu1 }
 0x2fe   :  { %v10622_v11 = vpop.eup %10621 }
 0x2ff   :  { %v777_v12 = vmul.f32 0.5, %v10622_v11 }
 0x301   :  { %v779_v14 = vrot.slane %v777_v12, 1 }
 0x303   :  { %v11269_v15 = vadd.f32 %v779_v14, %v776_v13 }
 0x305   :  { %10623 = vtanh.f32 %v11269_v15 }
 0x30f   :  { %v10624_v16 = vpop.eup %10623 }
 0x310   :  { %v868_v17 = vrot.slane %v10624_v16, 7 }
 0x312   :  { %9176 = vmatmul.mubr.msk.f32.vlgmr.msra.gmra.mrb[6].mxu0 %vm220_vm5, %v868_v17 }
 0x313   :  { %10119 = vmatpush3.bf16.msra.mxu0 %v11158_v39  ;;  %9197 = vmatprep.mubr.msk.f32.mxu0 %vm10909_vm3, %v10910_v5 }
 0x314   :  { %10120 = vmatprep.subr.bf16.mxu0 %v10907_v2 }
 0x317   :  { %10122 = vmatpush3.bf16.msra.mxu0 %v11178_v46 }
 0x318   :  { %10129 = vmatprep.subr.bf16.mxu0 %v10907_v2 }
 0x31a   :  { %9198 = vmatmul.mubr.msk.f32.vlgmr.msra.gmra.mrb[8].mxu0 %vm220_vm5, %v868_v17 }
 0x31b   :  { %10131 = vmatpush3.bf16.msra.mxu0 %v11217_v26  ;;  %9219 = vmatprep.mubr.msk.f32.mxu0 %vm10909_vm3, %v10910_v5 }
 0x31c   :  { %10132 = vmatprep.subr.bf16.mxu0 %v10907_v2 }
 0x31f   :  { %10134 = vmatpush3.bf16.msra.mxu0 %v11227_v32 }
 0x320   :  { %10141 = vmatprep.subr.bf16.mxu0 %v10907_v2 }
 0x3e5   :  { %v937_v27 = vpop.f32.mrb[6].mxu0 }
 0x3e6   :  { %v938_v30 = vadd.f32 %v937_v27, %v863_v6  ;;  %v9177_v31 = vpop.f32.mrb[7].mxu0  ;;  %v10912_v6 = vmov 4  }
 0x3e7   :  { %10611 = vset.pattern.permute.xlu1 %v10912_v6  ;;  %10612 = vset.pattern.permute.xlu0 %v10912_v6 }
 0x3e8   :  { %v943_v35 = vadd.f32 %v8407_v28, %v938_v30 }
 0x3ea   :  { %10625 = vtanh.f32 %v943_v35 }
 0x3ed   :  { %v11312_v44 = vpop.f32.mrb[8].mxu0 }
 0x3ee   :  { %v9199_v45 = vpop.f32.mrb[9].mxu0 }
 0x3f4   :  { %v10626_v54 = vpop.eup %10625 }
 0x3f5   :  { %v946_v55 = vmul.f32 0.5, %v10626_v54 }
 0x3f7   :  { %v948_v57 = vrot.slane %v946_v55, 1 }
 0x3f9   :  { %v11314_v58 = vadd.f32 %v948_v57, %v945_v56  ;;  %v1068_v56 = vld [vmem:[%s12743_s14] sm:$0x1] }
 0x3fb   :  { %10627 = vtanh.f32 %v11314_v58 }
 0x405   :  { %v10628_v63 = vpop.eup %10627 }
 0x406   :  { %v991_v50 = vrot.slane %v10628_v63, 7  ;;  %v955_v0 = vrot.slane %v10628_v63, %v11317_v61 }
 0x408   :  { %9187 = vmatmul.mubr.msk.f32.vlgmr.msra.gmra.mrb[10].mxu1 %vm220_vm5, %v991_v50  ;;  %9220 = vmatmul.mubr.msk.f32.vlgmr.msra.gmra.mrb[10].mxu0 %vm220_vm5, %v991_v50  ;;  %v956_v1 = vmul.f32 %v11124_v33, %v955_v0 }
 0x409   :  { %10125 = vmatpush3.bf16.msra.mxu1 %v11169_v43  ;;  %9208 = vmatprep.mubr.msk.f32.mxu1 %vm10909_vm3, %v10910_v5 }
 0x40a   :  { %v957_v3 = vsel %vm220_vm5, %v956_v1, 0.0  ;;  %10126 = vmatprep.subr.bf16.mxu1 %v10907_v2  ;;  %10143 = vmatpush3.bf16.msra.mxu0 %v11295_v21 }
 0x40b   :  { %958 = vadd.xlane.f32.xlu0 %v957_v3  ;;  %10144 = vmatprep.subr.bf16.mxu0 %v10907_v2  ;;  %v1232_v3 = vld [vmem:[%s12747_s18] sm:$0x1] }
 0x40c   :  { %9241 = vmatprep.mubr.msk.f32.mxu0 %vm10909_vm3, %v10910_v5 }
 0x40d   :  { %10128 = vmatpush3.bf16.msra.mxu1 %v11182_v47 }
 0x40e   :  { %10135 = vmatprep.subr.bf16.mxu1 %v10907_v2  ;;  %10146 = vmatpush3.bf16.msra.mxu0 %v11301_v23 }
 0x40f   :  { %10153 = vmatprep.subr.bf16.mxu0 %v10907_v2 }
 0x498   :  { %v959_v7 = vpop.xlane.xlu0 %958 }
 0x499   :  { %v960_v8 = vrot.slane %v959_v7, 4 }
 0x49b   :  { %v961_v9 = vmax.f32 %v959_v7, %v960_v8 }
 0x49d   :  { %v962_v10 = vrot.slane %v961_v9, 2 }
 0x49f   :  { %v963_v11 = vmax.f32 %v961_v9, %v962_v10 }
 0x4a1   :  { %v964_v12 = vrot.slane %v963_v11, 1 }
 0x4a3   :  { %v965_v13 = vmax.f32 %v963_v11, %v964_v12  ;;  %v1235_v11 = vmul.f32 0.5, %v11269_v15 }
 0x4a5   :  { %v966_v14 = vsub.f32 %v959_v7, %v965_v13 }
 0x4a7   :  { %v967_v16 = vmul.f32 1.442695, %v966_v14 }
 0x4a9   :  { %10629 = vpow2.f32 %v967_v16 }
 0x4b3   :  { %v10630_v17 = vpop.eup %10629 }
 0x4b4   :  { %v969_v18 = vrot.slane %v10630_v17, 4 }
 0x4b6   :  { %v970_v19 = vadd.f32 %v10630_v17, %v969_v18 }
 0x4b8   :  { %v971_v20 = vrot.slane %v970_v19, 2 }
 0x4ba   :  { %v972_v22 = vadd.f32 %v971_v20, %v970_v19 }
 0x4bc   :  { %v973_v24 = vrot.slane %v972_v22, 1 }
 0x4be   :  { %v974_v25 = vadd.f32 %v973_v24, %v972_v22 }
 0x4c0   :  { %10631 = vrcp.f32 %v974_v25 }
 0x4ca   :  { %v10632_v27 = vpop.eup %10631 }
 0x4cb   :  { %v976_v28 = vmul.f32 %v10632_v27, %v10630_v17  ;;  %v1397_v27 = vmul.f32 0.5, %v11314_v58 }
 0x4cd   :  { %v977_v29 = vmul.f32 %v976_v28, %v11206_v62 }
 0x4cf   :  { %v979_v30 = vsel %vm978_vm6, %v977_v29, 0.0 }
 0x4d0   :  { %v980_v31 = vrot.slane %v979_v30, 4 }
 0x4d2   :  { %v981_v34 = vadd.f32 %v980_v31, %v979_v30 }
 0x4d4   :  { %v982_v35 = vrot.slane %v981_v34, 2 }
 0x4d6   :  { %v983_v36 = vadd.f32 %v982_v35, %v981_v34 }
 0x4d8   :  { %v984_v37 = vrot.slane %v983_v36, 1 }
 0x4da   :  { %v985_v38 = vadd.f32 %v984_v37, %v983_v36 }
 0x4db   :  { %v1060_v41 = vpop.f32.mrb[10].mxu1  ;;  %v1316_v45 = vpop.f32.mrb[10].mxu0 }
 0x4dc   :  { %v1061_v52 = vadd.f32 %v1060_v41, %v985_v38  ;;  %v9188_v53 = vpop.f32.mrb[11].mxu1  ;;  %v9221_v54 = vpop.f32.mrb[11].mxu0 }
 0x4de   :  { %v1065_v55 = vadd.f32 %v1064_v48, %v1061_v52 }
 0x4e0   :  { %1071 = vperm.xlu1 %10611, %v1065_v55   ;;  %1067 = vst.msk [vmem:[%s12751_s22] sm:$0x1] %vm1066_vm7, %v1065_v55 }
 0x55f   :  { %v1072_v57 = vpop.permute.xlu1 %1071 }
 0x560   :  { %v1074_v60 = vmul.f32 %v1072_v57, %v1068_v56 }
 0x562   :  { %v1076_v51 = vrot.slane %v1074_v60, 7 }
 0x564   :  { %v1078_v63 = vadd.f32 %v1076_v51, %v11203_v59 }
 0x566   :  { %10633 = vtanh.f32 %v1078_v63 }
 0x570   :  { %v10634_v50 = vpop.eup %10633 }
 0x571   :  { %v1159_v0 = vrot.slane %v10634_v50, 1 }
 0x573   :  { %9209 = vmatmul.mubr.msk.f32.vlgmr.msra.gmra.mrb[12].mxu1 %vm220_vm5, %v1159_v0 }
 0x574   :  { %10137 = vmatpush3.bf16.msra.mxu1 %v11246_v40  ;;  %9230 = vmatprep.mubr.msk.f32.mxu1 %vm10909_vm3, %v10910_v5 }
 0x575   :  { %10138 = vmatprep.subr.bf16.mxu1 %v10907_v2 }
 0x578   :  { %10140 = vmatpush3.bf16.msra.mxu1 %v11252_v42 }
 0x579   :  { %10147 = vmatprep.subr.bf16.mxu1 %v10907_v2 }
 0x646   :  { %v1228_v1 = vpop.f32.mrb[12].mxu1 }
 0x647   :  { %v1229_v6 = vadd.f32 %v1228_v1, %v11312_v44  ;;  %v9210_v7 = vpop.f32.mrb[13].mxu1  ;;  %v8421_v44 = vld [vmem:[%s12747_s18 + $0x1] sm:$0x1] }
 0x649   :  { %v1233_v8 = vadd.f32 %v1232_v3, %v1229_v6 }
 0x64b   :  { %10635 = vtanh.f32 %v1233_v8 }
 0x655   :  { %v10636_v9 = vpop.eup %10635 }
 0x656   :  { %v1236_v10 = vmul.f32 0.5, %v10636_v9 }
 0x658   :  { %v1238_v12 = vrot.slane %v1236_v10, 1 }
 0x65a   :  { %v11361_v13 = vadd.f32 %v1238_v12, %v1235_v11 }
 0x65c   :  { %10637 = vtanh.f32 %v11361_v13 }
 0x666   :  { %v10638_v14 = vpop.eup %10637 }
 0x667   :  { %v1321_v16 = vrot.slane %v10638_v14, 7 }
 0x669   :  { %9231 = vmatmul.mubr.msk.f32.vlgmr.msra.gmra.mrb[14].mxu1 %vm220_vm5, %v1321_v16 }
 0x66a   :  { %10149 = vmatpush3.bf16.msra.mxu1 %v11158_v39  ;;  %9252 = vmatprep.mubr.msk.f32.mxu1 %vm10909_vm3, %v10910_v5 }
 0x66b   :  { %10150 = vmatprep.subr.bf16.mxu1 %v10907_v2 }
 0x66e   :  { %10152 = vmatpush3.bf16.msra.mxu1 %v11178_v46 }
 0x66f   :  { %10159 = vmatprep.subr.bf16.mxu1 %v10907_v2 }
 0x671   :  { %9253 = vmatmul.mubr.msk.f32.vlgmr.msra.gmra.mrb[16].mxu1 %vm220_vm5, %v1321_v16  ;;  %v1515_v16 = vld [vmem:[%s12750_s21] sm:$0x1] }
 0x672   :  { %10161 = vmatpush3.bf16.msra.mxu1 %v11217_v26  ;;  %9274 = vmatprep.mubr.msk.f32.mxu1 %vm10909_vm3, %v10910_v5 }
 0x673   :  { %10162 = vmatprep.subr.bf16.mxu1 %v10907_v2 }
 0x676   :  { %10164 = vmatpush3.bf16.msra.mxu1 %v11227_v32 }
 0x677   :  { %10171 = vmatprep.subr.bf16.mxu1 %v10907_v2 }
 0x73c   :  { %v1390_v15 = vpop.f32.mrb[14].mxu1 }
 0x73d   :  { %v1391_v17 = vadd.f32 %v1390_v15, %v1316_v45  ;;  %v9232_v18 = vpop.f32.mrb[15].mxu1 }
 0x73f   :  { %v1395_v19 = vadd.f32 %v8421_v44, %v1391_v17 }
 0x741   :  { %10639 = vtanh.f32 %v1395_v19 }
 0x744   :  { %v11381_v20 = vpop.f32.mrb[16].mxu1 }
 0x745   :  { %v9254_v22 = vpop.f32.mrb[17].mxu1 }
 0x746   :  { %v1523_v22 = vld [vmem:[%s12743_s14] sm:$0x1] }
 0x74b   :  { %v10640_v24 = vpop.eup %10639 }
 0x74c   :  { %v1398_v25 = vmul.f32 0.5, %v10640_v24 }
 0x74e   :  { %v1400_v28 = vrot.slane %v1398_v25, 1 }
 0x750   :  { %v11384_v29 = vadd.f32 %v1400_v28, %v1397_v27 }
 0x752   :  { %10641 = vtanh.f32 %v11384_v29 }
 0x75c   :  { %v10642_v30 = vpop.eup %10641 }
 0x75d   :  { %v1442_v31 = vrot.slane %v10642_v30, 7  ;;  %v1407_v34 = vrot.slane %v10642_v30, %v11317_v61 }
 0x75f   :  { %9242 = vmatmul.mubr.msk.f32.vlgmr.msra.gmra.mrb[12].mxu0 %vm220_vm5, %v1442_v31  ;;  %9275 = vmatmul.mubr.msk.f32.vlgmr.msra.gmra.mrb[18].mxu1 %vm220_vm5, %v1442_v31  ;;  %v1408_v35 = vmul.f32 %v11124_v33, %v1407_v34 }
 0x760   :  { %10155 = vmatpush3.bf16.msra.mxu0 %v11169_v43  ;;  %9263 = vmatprep.mubr.msk.f32.mxu0 %vm10909_vm3, %v10910_v5 }
 0x761   :  { %v1409_v58 = vsel %vm220_vm5, %v1408_v35, 0.0  ;;  %10156 = vmatprep.subr.bf16.mxu0 %v10907_v2  ;;  %10173 = vmatpush3.bf16.msra.mxu1 %v11295_v21  ;;  %v1686_v35 = vld [vmem:[%s12747_s18] sm:$0x1] }
 0x762   :  { %1410 = vadd.xlane.f32.xlu1 %v1409_v58  ;;  %10174 = vmatprep.subr.bf16.mxu1 %v10907_v2 }
 0x763   :  { %9296 = vmatprep.mubr.msk.f32.mxu1 %vm10909_vm3, %v10910_v5 }
 0x764   :  { %10158 = vmatpush3.bf16.msra.mxu0 %v11182_v47 }
 0x765   :  { %10165 = vmatprep.subr.bf16.mxu0 %v10907_v2  ;;  %10176 = vmatpush3.bf16.msra.mxu1 %v11301_v23 }
 0x766   :  { %10183 = vmatprep.subr.bf16.mxu1 %v10907_v2 }
 0x7ef   :  { %v1411_v36 = vpop.xlane.xlu1 %1410 }
 0x7f0   :  { %v1412_v37 = vrot.slane %v1411_v36, 4 }
 0x7f2   :  { %v1413_v38 = vmax.f32 %v1411_v36, %v1412_v37 }
 0x7f4   :  { %v1414_v41 = vrot.slane %v1413_v38, 2 }
 0x7f6   :  { %v1415_v45 = vmax.f32 %v1413_v38, %v1414_v41 }
 0x7f8   :  { %v1416_v48 = vrot.slane %v1415_v45, 1 }
 0x7fa   :  { %v1417_v52 = vmax.f32 %v1415_v45, %v1416_v48  ;;  %v1689_v45 = vmul.f32 0.5, %v11361_v13 }
 0x7fc   :  { %v1418_v53 = vsub.f32 %v1411_v36, %v1417_v52 }
 0x7fe   :  { %v1419_v54 = vmul.f32 1.442695, %v1418_v53 }
 0x800   :  { %10643 = vpow2.f32 %v1419_v54 }
 0x80a   :  { %v10644_v55 = vpop.eup %10643 }
 0x80b   :  { %v1421_v56 = vrot.slane %v10644_v55, 4 }
 0x80d   :  { %v1422_v57 = vadd.f32 %v10644_v55, %v1421_v56 }
 0x80f   :  { %v1423_v60 = vrot.slane %v1422_v57, 2 }
 0x811   :  { %v1424_v51 = vadd.f32 %v1423_v60, %v1422_v57 }
 0x813   :  { %v1425_v63 = vrot.slane %v1424_v51, 1 }
 0x815   :  { %v1426_v50 = vadd.f32 %v1425_v63, %v1424_v51  ;;  %v1851_v51 = vmul.f32 0.5, %v11384_v29 }
 0x817   :  { %10645 = vrcp.f32 %v1426_v50 }
 0x821   :  { %v10646_v0 = vpop.eup %10645 }
 0x822   :  { %v1428_v1 = vmul.f32 %v10646_v0, %v10644_v55 }
 0x824   :  { %v1429_v3 = vmul.f32 %v1428_v1, %v11206_v62 }
 0x826   :  { %v1430_v6 = vsel %vm978_vm6, %v1429_v3, 0.0 }
 0x827   :  { %v1431_v7 = vrot.slane %v1430_v6, 4 }
 0x829   :  { %v1432_v8 = vadd.f32 %v1431_v7, %v1430_v6 }
 0x82b   :  { %v1433_v9 = vrot.slane %v1432_v8, 2 }
 0x82d   :  { %v1434_v10 = vadd.f32 %v1433_v9, %v1432_v8 }
 0x82f   :  { %v1435_v11 = vrot.slane %v1434_v10, 1 }
 0x831   :  { %v1436_v12 = vadd.f32 %v1435_v11, %v1434_v10 }
 0x832   :  { %v1511_v14 = vpop.f32.mrb[12].mxu0  ;;  %v1770_v15 = vpop.f32.mrb[18].mxu1 }
 0x833   :  { %v1512_v44 = vadd.f32 %v1511_v14, %v1436_v12  ;;  %v9243_v17 = vpop.f32.mrb[13].mxu0  ;;  %v9276_v18 = vpop.f32.mrb[19].mxu1 }
 0x835   :  { %v11409_v19 = vadd.f32 %v1515_v16, %v1512_v44 }
 0x837   :  { %1525 = vperm.xlu0 %10612, %v11409_v19  }
 0x8b6   :  { %v1526_v24 = vpop.permute.xlu0 %1525 }
 0x8b7   :  { %v1528_v25 = vmul.f32 %v1526_v24, %v1523_v22 }
 0x8b9   :  { %v1530_v27 = vrot.slane %v1528_v25, 6 }
 0x8bb   :  { %v1532_v28 = vadd.f32 %v1530_v27, %v11203_v59 }
 0x8bd   :  { %10647 = vtanh.f32 %v1532_v28 }
 0x8c7   :  { %v10648_v30 = vpop.eup %10647 }
 0x8c8   :  { %v1613_v31 = vrot.slane %v10648_v30, 2 }
 0x8ca   :  { %9264 = vmatmul.mubr.msk.f32.vlgmr.msra.gmra.mrb[14].mxu0 %vm220_vm5, %v1613_v31 }
 0x8cb   :  { %10167 = vmatpush3.bf16.msra.mxu0 %v11246_v40  ;;  %9285 = vmatprep.mubr.msk.f32.mxu0 %vm10909_vm3, %v10910_v5 }
 0x8cc   :  { %10168 = vmatprep.subr.bf16.mxu0 %v10907_v2 }
 0x8cf   :  { %10170 = vmatpush3.bf16.msra.mxu0 %v11252_v42 }
 0x8d0   :  { %10177 = vmatprep.subr.bf16.mxu0 %v10907_v2 }
 0x99d   :  { %v1682_v34 = vpop.f32.mrb[14].mxu0 }
 0x99e   :  { %v1683_v58 = vadd.f32 %v1682_v34, %v11381_v20  ;;  %v9265_v36 = vpop.f32.mrb[15].mxu0 }
 0x99f   :  { %v1969_v36 = vld [vmem:[%s12750_s21] sm:$0x1] }
 0x9a0   :  { %v1687_v37 = vadd.f32 %v1686_v35, %v1683_v58 }
 0x9a2   :  { %10649 = vtanh.f32 %v1687_v37 }
 0x9ac   :  { %v10650_v38 = vpop.eup %10649 }
 0x9ad   :  { %v1690_v41 = vmul.f32 0.5, %v10650_v38 }
 0x9af   :  { %v1692_v48 = vrot.slane %v1690_v41, 1 }
 0x9b1   :  { %v11428_v52 = vadd.f32 %v1692_v48, %v1689_v45 }
 0x9b3   :  { %10651 = vtanh.f32 %v11428_v52 }
 0x9bd   :  { %v10652_v53 = vpop.eup %10651 }
 0x9be   :  { %v1775_v54 = vrot.slane %v10652_v53, 7  ;;  %v1977_v53 = vld [vmem:[%s12743_s14] sm:$0x1] }
 0x9c0   :  { %9286 = vmatmul.mubr.msk.f32.vlgmr.msra.gmra.mrb[16].mxu0 %vm220_vm5, %v1775_v54 }
 0x9c1   :  { %10179 = vmatpush3.bf16.msra.mxu0 %v11158_v39  ;;  %9307 = vmatprep.mubr.msk.f32.mxu0 %vm10909_vm3, %v10910_v5 }
 0x9c2   :  { %10180 = vmatprep.subr.bf16.mxu0 %v10907_v2 }
 0x9c5   :  { %10182 = vmatpush3.bf16.msra.mxu0 %v11178_v46  ;;  %v8435_v46 = vld [vmem:[%s12747_s18 + $0x1] sm:$0x1] }
 0x9c6   :  { %10189 = vmatprep.subr.bf16.mxu0 %v10907_v2 }
 0x9c8   :  { %9308 = vmatmul.mubr.msk.f32.vlgmr.msra.gmra.mrb[18].mxu0 %vm220_vm5, %v1775_v54 }
 0x9c9   :  { %10191 = vmatpush3.bf16.msra.mxu0 %v11217_v26  ;;  %9329 = vmatprep.mubr.msk.f32.mxu0 %vm10909_vm3, %v10910_v5 }
 0x9ca   :  { %10192 = vmatprep.subr.bf16.mxu0 %v10907_v2 }
 0x9cd   :  { %10194 = vmatpush3.bf16.msra.mxu0 %v11227_v32 }
 0x9ce   :  { %10201 = vmatprep.subr.bf16.mxu0 %v10907_v2 }
 0xa93   :  { %v1844_v39 = vpop.f32.mrb[16].mxu0 }
 0xa94   :  { %v1845_v13 = vadd.f32 %v1844_v39, %v1770_v15  ;;  %v9287_v20 = vpop.f32.mrb[17].mxu0 }
 0xa96   :  { %v1849_v55 = vadd.f32 %v8435_v46, %v1845_v13 }
 0xa98   :  { %10653 = vtanh.f32 %v1849_v55 }
 0xa9b   :  { %v11448_v56 = vpop.f32.mrb[18].mxu0 }
 0xa9c   :  { %v9309_v26 = vpop.f32.mrb[19].mxu0 }
 0xaa2   :  { %v10654_v57 = vpop.eup %10653 }
 0xaa3   :  { %v1852_v60 = vmul.f32 0.5, %v10654_v57  ;;  %v2140_v57 = vld [vmem:[%s12747_s18] sm:$0x1] }
 0xaa5   :  { %v1854_v63 = vrot.slane %v1852_v60, 1 }
 0xaa7   :  { %v11451_v32 = vadd.f32 %v1854_v63, %v1851_v51 }
 0xaa9   :  { %10655 = vtanh.f32 %v11451_v32 }
 0xab3   :  { %v10656_v50 = vpop.eup %10655 }
 0xab4   :  { %v1896_v0 = vrot.slane %v10656_v50, 7  ;;  %v1861_v1 = vrot.slane %v10656_v50, %v11317_v61 }
 0xab6   :  { %9297 = vmatmul.mubr.msk.f32.vlgmr.msra.gmra.mrb[20].mxu1 %vm220_vm5, %v1896_v0  ;;  %9330 = vmatmul.mubr.msk.f32.vlgmr.msra.gmra.mrb[20].mxu0 %vm220_vm5, %v1896_v0  ;;  %v1862_v3 = vmul.f32 %v11124_v33, %v1861_v1  ;;  %v2143_v0 = vmul.f32 0.5, %v11428_v52  ;;  %v2448_v52 = vld [vmem:[%s12746_s17 + $0x10] sm:$0xff] }
 0xab7   :  { %10185 = vmatpush3.bf16.msra.mxu1 %v11169_v43  ;;  %9318 = vmatprep.mubr.msk.f32.mxu1 %vm10909_vm3, %v10910_v5 }
 0xab8   :  { %v1863_v29 = vsel %vm220_vm5, %v1862_v3, 0.0  ;;  %10186 = vmatprep.subr.bf16.mxu1 %v10907_v2  ;;  %10203 = vmatpush3.bf16.msra.mxu0 %v11295_v21 }
 0xab9   :  { %1864 = vadd.xlane.f32.xlu1 %v1863_v29  ;;  %10204 = vmatprep.subr.bf16.mxu0 %v10907_v2 }
 0xaba   :  { %9351 = vmatprep.mubr.msk.f32.mxu0 %vm10909_vm3, %v10910_v5 }
 0xabb   :  { %10188 = vmatpush3.bf16.msra.mxu1 %v11182_v47 }
 0xabc   :  { %10195 = vmatprep.subr.bf16.mxu1 %v10907_v2  ;;  %10206 = vmatpush3.bf16.msra.mxu0 %v11301_v23 }
 0xabd   :  { %10213 = vmatprep.subr.bf16.mxu0 %v10907_v2 }
 0xb46   :  { %v1865_v43 = vpop.xlane.xlu1 %1864 }
 0xb47   :  { %v1866_v6 = vrot.slane %v1865_v43, 4 }
 0xb49   :  { %v1867_v7 = vmax.f32 %v1865_v43, %v1866_v6 }
 0xb4b   :  { %v1868_v8 = vrot.slane %v1867_v7, 2 }
 0xb4d   :  { %v1869_v9 = vmax.f32 %v1867_v7, %v1868_v8  ;;  %v2449_v7 = vld [vmem:[%s12746_s17 + $0x18] sm:$0xff] }
 0xb4e   :  { %v11514_v8 = vpack.c.bf16 %v2449_v7, %v2448_v52  ;;  %v2423_v7 = vld [vmem:[%s12750_s21] sm:$0x1] }
 0xb4f   :  { %v1870_v21 = vrot.slane %v1869_v9, 1 }
 0xb51   :  { %v1871_v10 = vmax.f32 %v1869_v9, %v1870_v21  ;;  %v8457_v9 = vld [vmem:[%s12746_s17 + $0x20] sm:$0xff]  ;;  %v8458_v21 = vld [vmem:[%s12746_s17 + $0x28] sm:$0xff] }
 0xb53   :  { %v1872_v11 = vsub.f32 %v1865_v43, %v1871_v10  ;;  %v8459_v10 = vld [vmem:[%s12746_s17 + $0x30] sm:$0xff] }
 0xb55   :  { %v1873_v12 = vmul.f32 1.442695, %v1872_v11  ;;  %v11533_v11 = vpack.c.bf16 %v8458_v21, %v8457_v9 }
 0xb57   :  { %10657 = vpow2.f32 %v1873_v12  ;;  %v8460_v12 = vld [vmem:[%s12746_s17 + $0x38] sm:$0xff] }
 0xb61   :  { %v10658_v14 = vpop.eup %10657 }
 0xb62   :  { %v1875_v16 = vrot.slane %v10658_v14, 4 }
 0xb64   :  { %v1876_v15 = vadd.f32 %v10658_v14, %v1875_v16 }
 0xb66   :  { %v1877_v47 = vrot.slane %v1876_v15, 2 }
 0xb68   :  { %v1878_v44 = vadd.f32 %v1877_v47, %v1876_v15  ;;  %v8449_v15 = vld [vmem:[%s12747_s18 + $0x1] sm:$0x1] }
 0xb6a   :  { %v1879_v17 = vrot.slane %v1878_v44, 1 }
 0xb6c   :  { %v1880_v18 = vadd.f32 %v1879_v17, %v1878_v44 }
 0xb6e   :  { %10659 = vrcp.f32 %v1880_v18 }
 0xb78   :  { %v10660_v23 = vpop.eup %10659 }
 0xb79   :  { %v1882_v22 = vmul.f32 %v10660_v23, %v10658_v14  ;;  %v11539_v14 = vpack.c.bf16 %v8460_v12, %v8459_v10 }
 0xb7b   :  { %v1883_v24 = vmul.f32 %v1882_v22, %v11206_v62 }
 0xb7d   :  { %v1884_v25 = vsel %vm978_vm6, %v1883_v24, 0.0 }
 0xb7e   :  { %v1885_v27 = vrot.slane %v1884_v25, 4 }
 0xb80   :  { %v1886_v28 = vadd.f32 %v1885_v27, %v1884_v25  ;;  %v2305_v25 = vmul.f32 0.5, %v11451_v32 }
 0xb82   :  { %v1887_v30 = vrot.slane %v1886_v28, 2 }
 0xb84   :  { %v1888_v31 = vadd.f32 %v1887_v30, %v1886_v28 }
 0xb86   :  { %v1889_v34 = vrot.slane %v1888_v31, 1 }
 0xb88   :  { %v1890_v35 = vadd.f32 %v1889_v34, %v1888_v31 }
 0xb89   :  { %v1965_v58 = vpop.f32.mrb[20].mxu1  ;;  %v2224_v37 = vpop.f32.mrb[20].mxu0 }
 0xb8a   :  { %v1966_v38 = vadd.f32 %v1965_v58, %v1890_v35  ;;  %v9298_v41 = vpop.f32.mrb[21].mxu1  ;;  %v9331_v45 = vpop.f32.mrb[21].mxu0 }
 0xb8c   :  { %v11476_v48 = vadd.f32 %v1969_v36, %v1966_v38 }
 0xb8e   :  { %1979 = vperm.xlu1 %10611, %v11476_v48  }
 0xc0d   :  { %v1980_v54 = vpop.permute.xlu1 %1979 }
 0xc0e   :  { %v1982_v39 = vmul.f32 %v1980_v54, %v1977_v53 }
 0xc10   :  { %v1984_v46 = vrot.slane %v1982_v39, 5 }
 0xc12   :  { %v1986_v13 = vadd.f32 %v1984_v46, %v11203_v59 }
 0xc14   :  { %10661 = vtanh.f32 %v1986_v13 }
 0xc1e   :  { %v10662_v20 = vpop.eup %10661 }
 0xc1f   :  { %v2067_v55 = vrot.slane %v10662_v20, 3 }
 0xc21   :  { %9319 = vmatmul.mubr.msk.f32.vlgmr.msra.gmra.mrb[22].mxu1 %vm220_vm5, %v2067_v55 }
 0xc22   :  { %10197 = vmatpush3.bf16.msra.mxu1 %v11246_v40  ;;  %9340 = vmatprep.mubr.msk.f32.mxu1 %vm10909_vm3, %v10910_v5 }
 0xc23   :  { %10198 = vmatprep.subr.bf16.mxu1 %v10907_v2 }
 0xc26   :  { %10200 = vmatpush3.bf16.msra.mxu1 %v11252_v42  ;;  %v2446_v42 = vld [vmem:[%s12746_s17] sm:$0xff] }
 0xc27   :  { %10207 = vmatprep.subr.bf16.mxu1 %v10907_v2 }
 0xcf4   :  { %v2136_v26 = vpop.f32.mrb[22].mxu1 }
 0xcf5   :  { %v2137_v60 = vadd.f32 %v2136_v26, %v11448_v56  ;;  %v9320_v51 = vpop.f32.mrb[23].mxu1  ;;  %v2447_v56 = vld [vmem:[%s12746_s17 + $0x8] sm:$0xff] }
 0xcf6   :  { %v11504_v43 = vpack.c.bf16 %v2447_v56, %v2446_v42 }
 0xcf7   :  { %v2141_v63 = vadd.f32 %v2140_v57, %v2137_v60 }
 0xcf9   :  { %10663 = vtanh.f32 %v2141_v63 }
 0xd03   :  { %v10664_v40 = vpop.eup %10663 }
 0xd04   :  { %v2144_v50 = vmul.f32 0.5, %v10664_v40 }
 0xd06   :  { %v2146_v1 = vrot.slane %v2144_v50, 1 }
 0xd08   :  { %v11495_v3 = vadd.f32 %v2146_v1, %v2143_v0 }
 0xd0a   :  { %10665 = vtanh.f32 %v11495_v3 }
 0xd14   :  { %v10666_v29 = vpop.eup %10665 }
 0xd15   :  { %v2229_v6 = vrot.slane %v10666_v29, 7 }
 0xd17   :  { %9341 = vmatmul.mubr.msk.f32.vlgmr.msra.gmra.mrb[24].mxu1 %vm220_vm5, %v2229_v6 }
 0xd18   :  { %10209 = vmatpush3.bf16.msra.mxu1 %v11504_v43  ;;  %9362 = vmatprep.mubr.msk.f32.mxu1 %vm10909_vm3, %v10910_v5 }
 0xd19   :  { %10210 = vmatprep.subr.bf16.mxu1 %v10907_v2 }
 0xd1c   :  { %10212 = vmatpush3.bf16.msra.mxu1 %v11514_v8 }
 0xd1d   :  { %10219 = vmatprep.subr.bf16.mxu1 %v10907_v2 }
 0xd1f   :  { %9363 = vmatmul.mubr.msk.f32.vlgmr.msra.gmra.mrb[26].mxu1 %vm220_vm5, %v2229_v6 }
 0xd20   :  { %9384 = vmatprep.mubr.msk.f32.mxu1 %vm10909_vm3, %v10910_v5  ;;  %10221 = vmatpush3.bf16.msra.mxu1 %v11533_v11 }
 0xd21   :  { %10222 = vmatprep.subr.bf16.mxu1 %v10907_v2 }
 0xd24   :  { %10224 = vmatpush3.bf16.msra.mxu1 %v11539_v14 }
 0xd25   :  { %10231 = vmatprep.subr.bf16.mxu1 %v10907_v2 }
 0xdea   :  { %v2298_v16 = vpop.f32.mrb[24].mxu1 }
 0xdeb   :  { %v2299_v47 = vadd.f32 %v2298_v16, %v2224_v37  ;;  %v9342_v44 = vpop.f32.mrb[25].mxu1 }
 0xded   :  { %v2303_v17 = vadd.f32 %v8449_v15, %v2299_v47  ;;  %v2442_v15 = vld [vmem:[%s12745_s16] sm:$0xff]  ;;  %v2443_v47 = vld [vmem:[%s12745_s16 + $0x8] sm:$0xff] }
 0xdee   :  { %v11578_v44 = vpack.c.bf16 %v2443_v47, %v2442_v15 }
 0xdef   :  { %10667 = vtanh.f32 %v2303_v17  ;;  %v2444_v17 = vld [vmem:[%s12745_s16 + $0x10] sm:$0xff] }
 0xdf2   :  { %v11547_v18 = vpop.f32.mrb[26].mxu1 }
 0xdf3   :  { %v9364_v23 = vpop.f32.mrb[27].mxu1 }
 0xdf4   :  { %v2445_v23 = vld [vmem:[%s12745_s16 + $0x18] sm:$0xff] }
 0xdf9   :  { %v10668_v22 = vpop.eup %10667 }
 0xdfa   :  { %v2306_v24 = vmul.f32 0.5, %v10668_v22  ;;  %v11588_v22 = vpack.c.bf16 %v2445_v23, %v2444_v17 }
 0xdfc   :  { %v2308_v27 = vrot.slane %v2306_v24, 1  ;;  %v2431_v24 = vld [vmem:[%s12743_s14] sm:$0x1] }
 0xdfe   :  { %v11550_v28 = vadd.f32 %v2308_v27, %v2305_v25 }
 0xe00   :  { %10669 = vtanh.f32 %v11550_v28 }
 0xe0a   :  { %v10670_v30 = vpop.eup %10669 }
 0xe0b   :  { %v2350_v31 = vrot.slane %v10670_v30, 7  ;;  %v2315_v34 = vrot.slane %v10670_v30, %v11317_v61 }
 0xe0d   :  { %9352 = vmatmul.mubr.msk.f32.vlgmr.msra.gmra.mrb[22].mxu0 %vm220_vm5, %v2350_v31  ;;  %9385 = vmatmul.mubr.msk.f32.vlgmr.msra.gmra.mrb[28].mxu1 %vm220_vm5, %v2350_v31  ;;  %v2316_v35 = vmul.f32 %v11124_v33, %v2315_v34 }
 0xe0e   :  { %9373 = vmatprep.mubr.msk.f32.mxu0 %vm10909_vm3, %v10910_v5  ;;  %9406 = vmatprep.mubr.msk.f32.mxu1 %vm10909_vm3, %v10910_v5 }
 0xe0f   :  { %v2317_v32 = vsel %vm220_vm5, %v2316_v35, 0.0  ;;  %10215 = vmatpush3.bf16.msra.mxu0 %v11578_v44 }
 0xe10   :  { %2318 = vadd.xlane.f32.xlu1 %v2317_v32  ;;  %10216 = vmatprep.subr.bf16.mxu0 %v10907_v2  ;;  %v8453_v32 = vld [vmem:[%s12745_s16 + $0x20] sm:$0xff] }
 0xe13   :  { %10218 = vmatpush3.bf16.msra.mxu0 %v11588_v22 }
 0xe14   :  { %10225 = vmatprep.subr.bf16.mxu0 %v10907_v2 }
 0xe9d   :  { %v2319_v58 = vpop.xlane.xlu1 %2318 }
 0xe9e   :  { %v2320_v36 = vrot.slane %v2319_v58, 4 }
 0xea0   :  { %v2321_v37 = vmax.f32 %v2319_v58, %v2320_v36  ;;  %v8455_v36 = vld [vmem:[%s12745_s16 + $0x30] sm:$0xff] }
 0xea2   :  { %v2322_v38 = vrot.slane %v2321_v37, 2 }
 0xea4   :  { %v2323_v41 = vmax.f32 %v2321_v37, %v2322_v38  ;;  %v8456_v38 = vld [vmem:[%s12745_s16 + $0x38] sm:$0xff] }
 0xea6   :  { %v2324_v45 = vrot.slane %v2323_v41, 1 }
 0xea8   :  { %v2325_v53 = vmax.f32 %v2323_v41, %v2324_v45  ;;  %v11614_v41 = vpack.c.bf16 %v8456_v38, %v8455_v36 }
 0xeaa   :  { %v2326_v54 = vsub.f32 %v2319_v58, %v2325_v53  ;;  %v8454_v58 = vld [vmem:[%s12745_s16 + $0x28] sm:$0xff]  ;;  %v2594_v53 = vld [vmem:[%s12747_s18] sm:$0x1] }
 0xeab   :  { %v11608_v37 = vpack.c.bf16 %v8454_v58, %v8453_v32 }
 0xeac   :  { %v2327_v39 = vmul.f32 1.442695, %v2326_v54 }
 0xeae   :  { %10671 = vpow2.f32 %v2327_v39 }
 0xeb8   :  { %v10672_v46 = vpop.eup %10671 }
 0xeb9   :  { %v2329_v13 = vrot.slane %v10672_v46, 4 }
 0xebb   :  { %v2330_v20 = vadd.f32 %v10672_v46, %v2329_v13 }
 0xebd   :  { %v2331_v55 = vrot.slane %v2330_v20, 2 }
 0xebf   :  { %v2332_v26 = vadd.f32 %v2331_v55, %v2330_v20  ;;  %v2597_v55 = vmul.f32 0.5, %v11495_v3  ;;  %v2799_v3 = vld [vmem:[%s12748_s19] sm:$0xff] }
 0xec1   :  { %v2333_v57 = vrot.slane %v2332_v26, 1 }
 0xec3   :  { %v2334_v60 = vadd.f32 %v2333_v57, %v2332_v26 }
 0xec5   :  { %10673 = vrcp.f32 %v2334_v60 }
 0xecf   :  { %v10674_v51 = vpop.eup %10673 }
 0xed0   :  { %v2336_v63 = vmul.f32 %v10674_v51, %v10672_v46 }
 0xed2   :  { %v2337_v40 = vmul.f32 %v2336_v63, %v11206_v62  ;;  %v2801_v63 = vld [vmem:[%s12748_s19 + $0x10] sm:$0xff] }
 0xed4   :  { %v2338_v50 = vsel %vm978_vm6, %v2337_v40, 0.0 }
 0xed5   :  { %v2339_v0 = vrot.slane %v2338_v50, 4 }
 0xed7   :  { %v2340_v1 = vadd.f32 %v2339_v0, %v2338_v50  ;;  %v2802_v50 = vld [vmem:[%s12748_s19 + $0x18] sm:$0xff] }
 0xed8   :  { %v11656_v0 = vpack.c.bf16 %v2802_v50, %v2801_v63 }
 0xed9   :  { %v2341_v42 = vrot.slane %v2340_v1, 2 }
 0xedb   :  { %v2342_v56 = vadd.f32 %v2341_v42, %v2340_v1  ;;  %v8463_v42 = vld [vmem:[%s12747_s18 + $0x1] sm:$0x1] }
 0xedd   :  { %v2343_v29 = vrot.slane %v2342_v56, 1 }
 0xedf   :  { %v2344_v6 = vadd.f32 %v2343_v29, %v2342_v56 }
 0xee0   :  { %v2419_v52 = vpop.f32.mrb[22].mxu0  ;;  %v11567_v9 = vpop.f32.mrb[28].mxu1 }
 0xee1   :  { %v2420_v21 = vadd.f32 %v2419_v52, %v2344_v6  ;;  %v9353_v10 = vpop.f32.mrb[23].mxu0  ;;  %v9386_v12 = vpop.f32.mrb[29].mxu1 }
 0xee2   :  { %v2759_v12 = vmul.f32 0.5, %v11550_v28 }
 0xee3   :  { %v11569_v16 = vadd.f32 %v2423_v7, %v2420_v21 }
 0xee5   :  { %2433 = vperm.xlu0 %10612, %v11569_v16  }
 0xf64   :  { %v2434_v25 = vpop.permute.xlu0 %2433 }
 0xf65   :  { %v2436_v27 = vmul.f32 %v2434_v25, %v2431_v24 }
 0xf67   :  { %v2438_v30 = vrot.slane %v2436_v27, 4 }
 0xf69   :  { %v2440_v31 = vadd.f32 %v2438_v30, %v11203_v59 }
 0xf6b   :  { %10675 = vtanh.f32 %v2440_v31 }
 0xf75   :  { %v10676_v34 = vpop.eup %10675 }
 0xf76   :  { %v2521_v35 = vrot.slane %v10676_v34, 4 }
 0xf78   :  { %9374 = vmatmul.mubr.msk.f32.vlgmr.msra.gmra.mrb[24].mxu0 %vm220_vm5, %v2521_v35 }
 0xf79   :  { %9395 = vmatprep.mubr.msk.f32.mxu0 %vm10909_vm3, %v10910_v5  ;;  %10227 = vmatpush3.bf16.msra.mxu0 %v11608_v37 }
 0xf7a   :  { %10228 = vmatprep.subr.bf16.mxu0 %v10907_v2 }
 0xf7d   :  { %10230 = vmatpush3.bf16.msra.mxu0 %v11614_v41 }
 0xf7e   :  { %10237 = vmatprep.subr.bf16.mxu0 %v10907_v2 }
0x104b   :  { %v2590_v45 = vpop.f32.mrb[24].mxu0 }
0x104c   :  { %v2591_v54 = vadd.f32 %v2590_v45, %v11547_v18  ;;  %v9375_v39 = vpop.f32.mrb[25].mxu0  ;;  %v2800_v18 = vld [vmem:[%s12748_s19 + $0x8] sm:$0xff] }
0x104d   :  { %v11650_v40 = vpack.c.bf16 %v2800_v18, %v2799_v3 }
0x104e   :  { %v2595_v46 = vadd.f32 %v2594_v53, %v2591_v54 }
0x104f   :  { %10233 = vmatpush3.bf16.msra.mxu1 %v11650_v40 }
0x1050   :  { %10677 = vtanh.f32 %v2595_v46  ;;  %10234 = vmatprep.subr.bf16.mxu1 %v10907_v2 }
0x1053   :  { %10236 = vmatpush3.bf16.msra.mxu1 %v11656_v0 }
0x1054   :  { %10243 = vmatprep.subr.bf16.mxu1 %v10907_v2 }
0x105a   :  { %v10678_v13 = vpop.eup %10677 }
0x105b   :  { %v2598_v20 = vmul.f32 0.5, %v10678_v13 }
0x105d   :  { %v2600_v26 = vrot.slane %v2598_v20, 1 }
0x105f   :  { %v11624_v57 = vadd.f32 %v2600_v26, %v2597_v55 }
0x1061   :  { %10679 = vtanh.f32 %v11624_v57 }
0x106b   :  { %v10680_v60 = vpop.eup %10679 }
0x106c   :  { %v2683_v51 = vrot.slane %v10680_v60, 7 }
0x106e   :  { %9396 = vmatmul.mubr.msk.f32.vlgmr.msra.gmra.mrb[26].mxu0 %vm220_vm5, %v2683_v51 }
0x106f   :  { %10239 = vmatpush3.bf16.msra.mxu0 %v11504_v43  ;;  %9417 = vmatprep.mubr.msk.f32.mxu0 %vm10909_vm3, %v10910_v5 }
0x1070   :  { %10240 = vmatprep.subr.bf16.mxu0 %v10907_v2 }
0x1073   :  { %10242 = vmatpush3.bf16.msra.mxu0 %v11514_v8 }
0x1074   :  { %10249 = vmatprep.subr.bf16.mxu0 %v10907_v2 }
0x1076   :  { %9418 = vmatmul.mubr.msk.f32.vlgmr.msra.gmra.mrb[28].mxu0 %vm220_vm5, %v2683_v51 }
0x1077   :  { %10251 = vmatpush3.bf16.msra.mxu0 %v11533_v11  ;;  %9439 = vmatprep.mubr.msk.f32.mxu0 %vm10909_vm3, %v10910_v5 }
0x1078   :  { %10252 = vmatprep.subr.bf16.mxu0 %v10907_v2 }
0x107b   :  { %10254 = vmatpush3.bf16.msra.mxu0 %v11539_v14 }
0x107c   :  { %10261 = vmatprep.subr.bf16.mxu0 %v10907_v2 }
0x1141   :  { %v2752_v1 = vpop.f32.mrb[26].mxu0 }
0x1142   :  { %v2753_v56 = vadd.f32 %v2752_v1, %v11567_v9  ;;  %v9397_v29 = vpop.f32.mrb[27].mxu0 }
0x1144   :  { %v2757_v6 = vadd.f32 %v8463_v42, %v2753_v56  ;;  %v2877_v56 = vld [vmem:[%s12750_s21] sm:$0x1] }
0x1146   :  { %10681 = vtanh.f32 %v2757_v6 }
0x1149   :  { %v11665_v52 = vpop.f32.mrb[28].mxu0 }
0x114a   :  { %v9419_v7 = vpop.f32.mrb[29].mxu0 }
0x1150   :  { %v10682_v21 = vpop.eup %10681 }
0x1151   :  { %v2760_v10 = vmul.f32 0.5, %v10682_v21 }
0x1153   :  { %v2762_v15 = vrot.slane %v2760_v10, 1 }
0x1155   :  { %v11668_v47 = vadd.f32 %v2762_v15, %v2759_v12  ;;  %v2885_v12 = vld [vmem:[%s12743_s14] sm:$0x1] }
0x1157   :  { %10683 = vtanh.f32 %v11668_v47 }
0x1161   :  { %v10684_v17 = vpop.eup %10683 }
0x1162   :  { %v2804_v23 = vrot.slane %v10684_v17, 7  ;;  %v2769_v24 = vrot.slane %v10684_v17, %v11317_v61 }
0x1164   :  { %9407 = vmatmul.mubr.msk.f32.vlgmr.msra.gmra.mrb[30].mxu1 %vm220_vm5, %v2804_v23  ;;  %9440 = vmatmul.mubr.msk.f32.vlgmr.msra.gmra.mrb[30].mxu0 %vm220_vm5, %v2804_v23  ;;  %v2770_v9 = vmul.f32 %v11124_v33, %v2769_v24 }
0x1165   :  { %10245 = vmatpush3.bf16.msra.mxu1 %v11578_v44  ;;  %9428 = vmatprep.mubr.msk.f32.mxu1 %vm10909_vm3, %v10910_v5 }
0x1166   :  { %v2771_v28 = vsel %vm220_vm5, %v2770_v9, 0.0  ;;  %10246 = vmatprep.subr.bf16.mxu1 %v10907_v2  ;;  %10263 = vmatpush3.bf16.msra.mxu0 %v11650_v40 }
0x1167   :  { %2772 = vadd.xlane.f32.xlu0 %v2771_v28  ;;  %10264 = vmatprep.subr.bf16.mxu0 %v10907_v2 }
0x1168   :  { %9461 = vmatprep.mubr.msk.f32.mxu0 %vm10909_vm3, %v10910_v5 }
0x1169   :  { %10248 = vmatpush3.bf16.msra.mxu1 %v11588_v22 }
0x116a   :  { %10255 = vmatprep.subr.bf16.mxu1 %v10907_v2  ;;  %10266 = vmatpush3.bf16.msra.mxu0 %v11656_v0 }
0x116b   :  { %10273 = vmatprep.subr.bf16.mxu0 %v10907_v2 }
0x11f4   :  { %v2773_v25 = vpop.xlane.xlu0 %2772 }
0x11f5   :  { %v2774_v27 = vrot.slane %v2773_v25, 4 }
0x11f7   :  { %v2775_v30 = vmax.f32 %v2773_v25, %v2774_v27  ;;  %v3048_v27 = vld [vmem:[%s12747_s18] sm:$0x1] }
0x11f9   :  { %v2776_v31 = vrot.slane %v2775_v30, 2 }
0x11fb   :  { %v2777_v34 = vmax.f32 %v2775_v30, %v2776_v31 }
0x11fd   :  { %v2778_v35 = vrot.slane %v2777_v34, 1 }
0x11ff   :  { %v2779_v32 = vmax.f32 %v2777_v34, %v2778_v35 }
0x1201   :  { %v2780_v58 = vsub.f32 %v2773_v25, %v2779_v32 }
0x1203   :  { %v2781_v36 = vmul.f32 1.442695, %v2780_v58  ;;  %v3051_v58 = vmul.f32 0.5, %v11624_v57 }
0x1205   :  { %10685 = vpow2.f32 %v2781_v36 }
0x120f   :  { %v10686_v38 = vpop.eup %10685 }
0x1210   :  { %v2783_v45 = vrot.slane %v10686_v38, 4 }
0x1212   :  { %v2784_v53 = vadd.f32 %v10686_v38, %v2783_v45 }
0x1214   :  { %v2785_v54 = vrot.slane %v2784_v53, 2 }
0x1216   :  { %v2786_v39 = vadd.f32 %v2785_v54, %v2784_v53 }
0x1218   :  { %v2787_v46 = vrot.slane %v2786_v39, 1 }
0x121a   :  { %v2788_v13 = vadd.f32 %v2787_v46, %v2786_v39 }
0x121c   :  { %10687 = vrcp.f32 %v2788_v13 }
0x1226   :  { %v10688_v20 = vpop.eup %10687 }
0x1227   :  { %v2790_v55 = vmul.f32 %v10688_v20, %v10686_v38 }
0x1229   :  { %v2791_v26 = vmul.f32 %v2790_v55, %v11206_v62 }
0x122b   :  { %v2792_v60 = vsel %vm978_vm6, %v2791_v26, 0.0 }
0x122c   :  { %v2793_v51 = vrot.slane %v2792_v60, 4 }
0x122e   :  { %v2794_v3 = vadd.f32 %v2793_v51, %v2792_v60  ;;  %v3213_v60 = vmul.f32 0.5, %v11668_v47 }
0x1230   :  { %v2795_v18 = vrot.slane %v2794_v3, 2 }
0x1232   :  { %v2796_v63 = vadd.f32 %v2795_v18, %v2794_v3 }
0x1234   :  { %v2797_v50 = vrot.slane %v2796_v63, 1 }
0x1236   :  { %v2798_v1 = vadd.f32 %v2797_v50, %v2796_v63 }
0x1237   :  { %v2873_v42 = vpop.f32.mrb[30].mxu1  ;;  %v3132_v29 = vpop.f32.mrb[30].mxu0 }
0x1238   :  { %v2874_v6 = vadd.f32 %v2873_v42, %v2798_v1  ;;  %v9408_v7 = vpop.f32.mrb[31].mxu1  ;;  %v9441_v21 = vpop.f32.mrb[31].mxu0 }
0x123a   :  { %v11693_v10 = vadd.f32 %v2877_v56, %v2874_v6 }
0x123c   :  { %2887 = vperm.xlu1 %10611, %v11693_v10  }
0x12bb   :  { %v2888_v15 = vpop.permute.xlu1 %2887 }
0x12bc   :  { %v2890_v17 = vmul.f32 %v2888_v15, %v2885_v12 }
0x12be   :  { %v2892_v23 = vrot.slane %v2890_v17, 3 }
0x12c0   :  { %v2894_v24 = vadd.f32 %v2892_v23, %v11203_v59 }
0x12c2   :  { %10689 = vtanh.f32 %v2894_v24 }
0x12cc   :  { %v10690_v9 = vpop.eup %10689 }
0x12cd   :  { %v2975_v28 = vrot.slane %v10690_v9, 5 }
0x12cf   :  { %9429 = vmatmul.mubr.msk.f32.vlgmr.msra.gmra.mrb[32].mxu1 %vm220_vm5, %v2975_v28 }
0x12d0   :  { %10257 = vmatpush3.bf16.msra.mxu1 %v11608_v37  ;;  %9450 = vmatprep.mubr.msk.f32.mxu1 %vm10909_vm3, %v10910_v5 }
0x12d1   :  { %10258 = vmatprep.subr.bf16.mxu1 %v10907_v2 }
0x12d4   :  { %10260 = vmatpush3.bf16.msra.mxu1 %v11614_v41 }
0x12d5   :  { %10267 = vmatprep.subr.bf16.mxu1 %v10907_v2 }
0x13a2   :  { %v3044_v25 = vpop.f32.mrb[32].mxu1 }
0x13a3   :  { %v3045_v30 = vadd.f32 %v3044_v25, %v11665_v52  ;;  %v9430_v31 = vpop.f32.mrb[33].mxu1  ;;  %v8477_v52 = vld [vmem:[%s12747_s18 + $0x1] sm:$0x1] }
0x13a5   :  { %v3049_v34 = vadd.f32 %v3048_v27, %v3045_v30 }
0x13a7   :  { %10691 = vtanh.f32 %v3049_v34 }
0x13b1   :  { %v10692_v35 = vpop.eup %10691 }
0x13b2   :  { %v3052_v32 = vmul.f32 0.5, %v10692_v35 }
0x13b4   :  { %v3054_v36 = vrot.slane %v3052_v32, 1 }
0x13b6   :  { %v11712_v38 = vadd.f32 %v3054_v36, %v3051_v58 }
0x13b8   :  { %10693 = vtanh.f32 %v11712_v38 }
0x13c2   :  { %v10694_v45 = vpop.eup %10693 }
0x13c3   :  { %v3137_v53 = vrot.slane %v10694_v45, 7 }
0x13c5   :  { %9451 = vmatmul.mubr.msk.f32.vlgmr.msra.gmra.mrb[34].mxu1 %vm220_vm5, %v3137_v53 }
0x13c6   :  { %10269 = vmatpush3.bf16.msra.mxu1 %v11504_v43  ;;  %9472 = vmatprep.mubr.msk.f32.mxu1 %vm10909_vm3, %v10910_v5 }
0x13c7   :  { %10270 = vmatprep.subr.bf16.mxu1 %v10907_v2 }
0x13ca   :  { %10272 = vmatpush3.bf16.msra.mxu1 %v11514_v8 }
0x13cb   :  { %10279 = vmatprep.subr.bf16.mxu1 %v10907_v2 }
0x13cd   :  { %9473 = vmatmul.mubr.msk.f32.vlgmr.msra.gmra.mrb[36].mxu1 %vm220_vm5, %v3137_v53 }
0x13ce   :  { %10281 = vmatpush3.bf16.msra.mxu1 %v11533_v11  ;;  %9494 = vmatprep.mubr.msk.f32.mxu1 %vm10909_vm3, %v10910_v5 }
0x13cf   :  { %10282 = vmatprep.subr.bf16.mxu1 %v10907_v2 }
0x13d2   :  { %10284 = vmatpush3.bf16.msra.mxu1 %v11539_v14 }
0x13d3   :  { %10291 = vmatprep.subr.bf16.mxu1 %v10907_v2 }
0x1498   :  { %v3206_v57 = vpop.f32.mrb[34].mxu1 }
0x1499   :  { %v3207_v54 = vadd.f32 %v3206_v57, %v3132_v29  ;;  %v9452_v39 = vpop.f32.mrb[35].mxu1 }
0x149a   :  { %v3331_v39 = vld [vmem:[%s12750_s21] sm:$0x1] }
0x149b   :  { %v3211_v46 = vadd.f32 %v8477_v52, %v3207_v54 }
0x149d   :  { %10695 = vtanh.f32 %v3211_v46 }
0x14a0   :  { %v11732_v13 = vpop.f32.mrb[36].mxu1 }
0x14a1   :  { %v9474_v20 = vpop.f32.mrb[37].mxu1 }
0x14a7   :  { %v10696_v55 = vpop.eup %10695 }
0x14a8   :  { %v3214_v26 = vmul.f32 0.5, %v10696_v55 }
0x14aa   :  { %v3216_v51 = vrot.slane %v3214_v26, 1 }
0x14ac   :  { %v11735_v3 = vadd.f32 %v3216_v51, %v3213_v60  ;;  %v3339_v51 = vld [vmem:[%s12743_s14] sm:$0x1] }
0x14ae   :  { %10697 = vtanh.f32 %v11735_v3 }
0x14b8   :  { %v10698_v18 = vpop.eup %10697 }
0x14b9   :  { %v3258_v63 = vrot.slane %v10698_v18, 7  ;;  %v3223_v50 = vrot.slane %v10698_v18, %v11317_v61 }
0x14bb   :  { %9462 = vmatmul.mubr.msk.f32.vlgmr.msra.gmra.mrb[32].mxu0 %vm220_vm5, %v3258_v63  ;;  %9495 = vmatmul.mubr.msk.f32.vlgmr.msra.gmra.mrb[38].mxu1 %vm220_vm5, %v3258_v63  ;;  %v3224_v1 = vmul.f32 %v11124_v33, %v3223_v50 }
0x14bc   :  { %10275 = vmatpush3.bf16.msra.mxu0 %v11578_v44  ;;  %9483 = vmatprep.mubr.msk.f32.mxu0 %vm10909_vm3, %v10910_v5 }
0x14bd   :  { %v3225_v47 = vsel %vm220_vm5, %v3224_v1, 0.0  ;;  %10276 = vmatprep.subr.bf16.mxu0 %v10907_v2  ;;  %10293 = vmatpush3.bf16.msra.mxu1 %v11650_v40 }
0x14be   :  { %3226 = vadd.xlane.f32.xlu0 %v3225_v47  ;;  %10294 = vmatprep.subr.bf16.mxu1 %v10907_v2 }
0x14bf   :  { %9516 = vmatprep.mubr.msk.f32.mxu1 %vm10909_vm3, %v10910_v5 }
0x14c0   :  { %10278 = vmatpush3.bf16.msra.mxu0 %v11588_v22 }
0x14c1   :  { %10285 = vmatprep.subr.bf16.mxu0 %v10907_v2  ;;  %10296 = vmatpush3.bf16.msra.mxu1 %v11656_v0 }
0x14c2   :  { %10303 = vmatprep.subr.bf16.mxu1 %v10907_v2 }
0x154b   :  { %v3227_v42 = vpop.xlane.xlu0 %3226 }
0x154c   :  { %v3228_v56 = vrot.slane %v3227_v42, 4 }
0x154e   :  { %v3229_v29 = vmax.f32 %v3227_v42, %v3228_v56 }
0x1550   :  { %v3230_v6 = vrot.slane %v3229_v29, 2 }
0x1552   :  { %v3231_v7 = vmax.f32 %v3229_v29, %v3230_v6  ;;  %v3502_v29 = vld [vmem:[%s12747_s18] sm:$0x1] }
0x1554   :  { %v3232_v21 = vrot.slane %v3231_v7, 1 }
0x1556   :  { %v3233_v12 = vmax.f32 %v3231_v7, %v3232_v21 }
0x1558   :  { %v3234_v15 = vsub.f32 %v3227_v42, %v3233_v12 }
0x155a   :  { %v3235_v17 = vmul.f32 1.442695, %v3234_v15 }
0x155c   :  { %10699 = vpow2.f32 %v3235_v17  ;;  %v3505_v17 = vmul.f32 0.5, %v11712_v38 }
0x1566   :  { %v10700_v23 = vpop.eup %10699 }
0x1567   :  { %v3237_v24 = vrot.slane %v10700_v23, 4 }
0x1569   :  { %v3238_v9 = vadd.f32 %v10700_v23, %v3237_v24 }
0x156b   :  { %v3239_v28 = vrot.slane %v3238_v9, 2 }
0x156d   :  { %v3240_v25 = vadd.f32 %v3239_v28, %v3238_v9 }
0x156f   :  { %v3241_v27 = vrot.slane %v3240_v25, 1 }
0x1571   :  { %v3242_v30 = vadd.f32 %v3241_v27, %v3240_v25 }
0x1573   :  { %10701 = vrcp.f32 %v3242_v30 }
0x157d   :  { %v10702_v31 = vpop.eup %10701 }
0x157e   :  { %v3244_v34 = vmul.f32 %v10702_v31, %v10700_v23 }
0x1580   :  { %v3245_v35 = vmul.f32 %v3244_v34, %v11206_v62  ;;  %v3667_v34 = vmul.f32 0.5, %v11735_v3 }
0x1582   :  { %v3246_v32 = vsel %vm978_vm6, %v3245_v35, 0.0 }
0x1583   :  { %v3247_v58 = vrot.slane %v3246_v32, 4 }
0x1585   :  { %v3248_v36 = vadd.f32 %v3247_v58, %v3246_v32 }
0x1587   :  { %v3249_v45 = vrot.slane %v3248_v36, 2 }
0x1589   :  { %v3250_v53 = vadd.f32 %v3249_v45, %v3248_v36 }
0x158b   :  { %v3251_v57 = vrot.slane %v3250_v53, 1 }
0x158d   :  { %v3252_v52 = vadd.f32 %v3251_v57, %v3250_v53 }
0x158e   :  { %v3327_v54 = vpop.f32.mrb[32].mxu0  ;;  %v3586_v46 = vpop.f32.mrb[38].mxu1 }
0x158f   :  { %v3328_v20 = vadd.f32 %v3327_v54, %v3252_v52  ;;  %v9463_v55 = vpop.f32.mrb[33].mxu0  ;;  %v9496_v26 = vpop.f32.mrb[39].mxu1 }
0x1591   :  { %v11760_v60 = vadd.f32 %v3331_v39, %v3328_v20 }
0x1593   :  { %3341 = vperm.xlu1 %10611, %v11760_v60  }
0x1612   :  { %v3342_v18 = vpop.permute.xlu1 %3341 }
0x1613   :  { %v3344_v63 = vmul.f32 %v3342_v18, %v3339_v51 }
0x1615   :  { %v3346_v50 = vrot.slane %v3344_v63, 2 }
0x1617   :  { %v3348_v1 = vadd.f32 %v3346_v50, %v11203_v59 }
0x1619   :  { %10703 = vtanh.f32 %v3348_v1 }
0x1623   :  { %v10704_v47 = vpop.eup %10703 }
0x1624   :  { %v3429_v42 = vrot.slane %v10704_v47, 6 }
0x1626   :  { %9484 = vmatmul.mubr.msk.f32.vlgmr.msra.gmra.mrb[34].mxu0 %vm220_vm5, %v3429_v42 }
0x1627   :  { %10287 = vmatpush3.bf16.msra.mxu0 %v11608_v37  ;;  %9505 = vmatprep.mubr.msk.f32.mxu0 %vm10909_vm3, %v10910_v5 }
0x1628   :  { %10288 = vmatprep.subr.bf16.mxu0 %v10907_v2 }
0x162b   :  { %10290 = vmatpush3.bf16.msra.mxu0 %v11614_v41 }
0x162c   :  { %10297 = vmatprep.subr.bf16.mxu0 %v10907_v2 }
0x16f9   :  { %v3498_v56 = vpop.f32.mrb[34].mxu0 }
0x16fa   :  { %v3499_v6 = vadd.f32 %v3498_v56, %v11732_v13  ;;  %v9485_v7 = vpop.f32.mrb[35].mxu0 }
0x16fc   :  { %v3503_v21 = vadd.f32 %v3502_v29, %v3499_v6 }
0x16fe   :  { %10705 = vtanh.f32 %v3503_v21 }
0x1708   :  { %v10706_v12 = vpop.eup %10705 }
0x1709   :  { %v3506_v15 = vmul.f32 0.5, %v10706_v12 }
0x170b   :  { %v3508_v23 = vrot.slane %v3506_v15, 1 }
0x170d   :  { %v11779_v24 = vadd.f32 %v3508_v23, %v3505_v17  ;;  %v3785_v17 = vld [vmem:[%s12750_s21] sm:$0x1] }
0x170f   :  { %10707 = vtanh.f32 %v11779_v24 }
0x1719   :  { %v10708_v9 = vpop.eup %10707 }
0x171a   :  { %v3591_v28 = vrot.slane %v10708_v9, 7 }
0x171c   :  { %9506 = vmatmul.mubr.msk.f32.vlgmr.msra.gmra.mrb[36].mxu0 %vm220_vm5, %v3591_v28 }
0x171d   :  { %10299 = vmatpush3.bf16.msra.mxu0 %v11504_v43  ;;  %9527 = vmatprep.mubr.msk.f32.mxu0 %vm10909_vm3, %v10910_v5 }
0x171e   :  { %10300 = vmatprep.subr.bf16.mxu0 %v10907_v2 }
0x1721   :  { %10302 = vmatpush3.bf16.msra.mxu0 %v11514_v8  ;;  %v8491_v8 = vld [vmem:[%s12747_s18 + $0x1] sm:$0x1] }
0x1722   :  { %10309 = vmatprep.subr.bf16.mxu0 %v10907_v2 }
0x1724   :  { %9528 = vmatmul.mubr.msk.f32.vlgmr.msra.gmra.mrb[38].mxu0 %vm220_vm5, %v3591_v28 }
0x1725   :  { %10311 = vmatpush3.bf16.msra.mxu0 %v11533_v11  ;;  %9549 = vmatprep.mubr.msk.f32.mxu0 %vm10909_vm3, %v10910_v5 }
0x1726   :  { %10312 = vmatprep.subr.bf16.mxu0 %v10907_v2 }
0x1729   :  { %10314 = vmatpush3.bf16.msra.mxu0 %v11539_v14 }
0x172a   :  { %10321 = vmatprep.subr.bf16.mxu0 %v10907_v2 }
0x17ef   :  { %v3660_v43 = vpop.f32.mrb[36].mxu0 }
0x17f0   :  { %v3661_v38 = vadd.f32 %v3660_v43, %v3586_v46  ;;  %v9507_v13 = vpop.f32.mrb[37].mxu0 }
0x17f2   :  { %v3665_v25 = vadd.f32 %v8491_v8, %v3661_v38  ;;  %v3793_v38 = vld [vmem:[%s12743_s14] sm:$0x1] }
0x17f4   :  { %10709 = vtanh.f32 %v3665_v25 }
0x17f7   :  { %v11799_v27 = vpop.f32.mrb[38].mxu0 }
0x17f8   :  { %v9529_v11 = vpop.f32.mrb[39].mxu0 }
0x17fe   :  { %v10710_v30 = vpop.eup %10709 }
0x17ff   :  { %v3668_v31 = vmul.f32 0.5, %v10710_v30 }
0x1801   :  { %v3670_v35 = vrot.slane %v3668_v31, 1 }
0x1803   :  { %v11802_v14 = vadd.f32 %v3670_v35, %v3667_v34 }
0x1805   :  { %10711 = vtanh.f32 %v11802_v14 }
0x180f   :  { %v10712_v32 = vpop.eup %10711 }
0x1810   :  { %v3712_v58 = vrot.slane %v10712_v32, 7  ;;  %v3677_v36 = vrot.slane %v10712_v32, %v11317_v61 }
0x1812   :  { %9517 = vmatmul.mubr.msk.f32.vlgmr.msra.gmra.mrb[40].mxu1 %vm220_vm5, %v3712_v58  ;;  %9550 = vmatmul.mubr.msk.f32.vlgmr.msra.gmra.mrb[40].mxu0 %vm220_vm5, %v3712_v58  ;;  %v3678_v45 = vmul.f32 %v11124_v33, %v3677_v36 }
0x1813   :  { %10305 = vmatpush3.bf16.msra.mxu1 %v11578_v44  ;;  %9538 = vmatprep.mubr.msk.f32.mxu1 %vm10909_vm3, %v10910_v5 }
0x1814   :  { %v3679_v3 = vsel %vm220_vm5, %v3678_v45, 0.0  ;;  %10306 = vmatprep.subr.bf16.mxu1 %v10907_v2  ;;  %10323 = vmatpush3.bf16.msra.mxu0 %v11650_v40 }
0x1815   :  { %3680 = vadd.xlane.f32.xlu0 %v3679_v3  ;;  %10324 = vmatprep.subr.bf16.mxu0 %v10907_v2  ;;  %v3959_v3 = vmul.f32 0.5, %v11779_v24  ;;  %v8507_v24 = vld [vmem:[%s12767_s3 + $0x8] sm:$0xff] }
0x1816   :  { %9571 = vmatprep.mubr.msk.f32.mxu0 %vm10909_vm3, %v10910_v5 }
0x1817   :  { %10308 = vmatpush3.bf16.msra.mxu1 %v11588_v22 }
0x1818   :  { %10315 = vmatprep.subr.bf16.mxu1 %v10907_v2  ;;  %10326 = vmatpush3.bf16.msra.mxu0 %v11656_v0 }
0x1819   :  { %10337 = vmatprep.subr.bf16.mxu0 %v10907_v2 }
0x18a2   :  { %v3681_v44 = vpop.xlane.xlu0 %3680 }
0x18a3   :  { %v3682_v53 = vrot.slane %v3681_v44, 4 }
0x18a5   :  { %v3683_v57 = vmax.f32 %v3681_v44, %v3682_v53 }
0x18a7   :  { %v3684_v52 = vrot.slane %v3683_v57, 2 }
0x18a9   :  { %v3685_v54 = vmax.f32 %v3683_v57, %v3684_v52  ;;  %v4250_v57 = vld [vmem:[%s12736_s7 + $0x8] sm:$0x3] }
0x18ab   :  { %v3686_v40 = vrot.slane %v3685_v54, 1 }
0x18ad   :  { %v3687_v39 = vmax.f32 %v3685_v54, %v3686_v40  ;;  %v4335_v40 = vld [vmem:[%s12738_s9] sm:$0xff] }
0x18af   :  { %v3688_v46 = vsub.f32 %v3681_v44, %v3687_v39  ;;  %v4336_v39 = vld [vmem:[%s12738_s9 + $0x8] sm:$0xff] }
0x18b1   :  { %v3689_v20 = vmul.f32 1.442695, %v3688_v46  ;;  %v10332_v46 = vpack.c.bf16 %v4336_v39, %v4335_v40  ;;  %v8511_v40 = vld [vmem:[%s12739_s10] ss:$0 sm:$0xff]  ;;  %s8517_s10 = sld [smem:[#allocation2 + $0x2]] }
0x18b3   :  { %10713 = vpow2.f32 %v3689_v20  ;;  %v4337_v20 = vld [vmem:[%s12738_s9 + $0x10] sm:$0xff] }
0x18bd   :  { %v10714_v55 = vpop.eup %10713 }
0x18be   :  { %v3691_v26 = vrot.slane %v10714_v55, 4 }
0x18c0   :  { %v3692_v51 = vadd.f32 %v10714_v55, %v3691_v26 }
0x18c2   :  { %v3693_v22 = vrot.slane %v3692_v51, 2 }
0x18c4   :  { %v3694_v18 = vadd.f32 %v3693_v22, %v3692_v51  ;;  %v8505_v22 = vld [vmem:[%s12747_s18 + $0x1] sm:$0x1] }
0x18c6   :  { %v3695_v63 = vrot.slane %v3694_v18, 1 }
0x18c8   :  { %v3696_v50 = vadd.f32 %v3695_v63, %v3694_v18 }
0x18ca   :  { %10715 = vrcp.f32 %v3696_v50  ;;  %v8508_v50 = vld [vmem:[%s12737_s8] ss:$0 sm:$0xff]  ;;  %s4502_s8 = sld [smem:[#allocation2]] }
0x18d4   :  { %v10716_v0 = vpop.eup %10715 }
0x18d5   :  { %v3698_v1 = vmul.f32 %v10716_v0, %v10714_v55  ;;  %v4338_v55 = vld [vmem:[%s12738_s9 + $0x18] sm:$0xff] }
0x18d6   :  { %v10335_v26 = vpack.c.bf16 %v4338_v55, %v4337_v20 }
0x18d7   :  { %v3699_v47 = vmul.f32 %v3698_v1, %v11206_v62 }
0x18d9   :  { %v3700_v42 = vsel %vm978_vm6, %v3699_v47, 0.0 }
0x18da   :  { %v3701_v56 = vrot.slane %v3700_v42, 4 }
0x18dc   :  { %v3702_v29 = vadd.f32 %v3701_v56, %v3700_v42  ;;  %v4576_v56 = vld [vmem:[%s12742_s13] sm:$0xff] }
0x18de   :  { %v3703_v6 = vrot.slane %v3702_v29, 2 }
0x18e0   :  { %v3704_v7 = vadd.f32 %v3703_v6, %v3702_v29  ;;  %v4577_v29 = vld [vmem:[%s12742_s13 + $0x8] sm:$0x3]  ;;  %s4532_s13 = sld [smem:[#allocation4]] }
0x18e2   :  { %v3705_v21 = vrot.slane %v3704_v7, 1 }
0x18e4   :  { %v3706_v12 = vadd.f32 %v3705_v21, %v3704_v7  ;;  %v10344_v7 = vpack.c.bf16 %v4577_v29, %v4576_v56  ;;  %v4525_v56 = vstv %s8517_s10  ;;  %s8516_s10 = sld [smem:[#allocation6 + $0x1]] }
0x18e5   :  { %v3781_v15 = vpop.f32.mrb[40].mxu1  ;;  %v4040_v23 = vpop.f32.mrb[40].mxu0 }
0x18e6   :  { %v3782_v9 = vadd.f32 %v3781_v15, %v3706_v12  ;;  %v9518_v28 = vpop.f32.mrb[41].mxu1  ;;  %v9551_v43 = vpop.f32.mrb[41].mxu0  ;;  %v4121_v15 = vmul.f32 0.5, %v11802_v14  ;;  %v4421_v14 = vld [vmem:[%s12740_s11 + $0x8] sm:$0xff] }
0x18e7   :  { %v10338_v43 = vpack.c.bf16 %v4421_v14, %v4420_v4 }
0x18e8   :  { %v11827_v8 = vadd.f32 %v3785_v17, %v3782_v9 }
0x18ea   :  { %3795 = vperm.xlu1 %10611, %v11827_v8  }
0x1969   :  { %v3796_v13 = vpop.permute.xlu1 %3795 }
0x196a   :  { %v3798_v25 = vmul.f32 %v3796_v13, %v3793_v38  ;;  %v4422_v13 = vld [vmem:[%s12740_s11 + $0x10] sm:$0xff] }
0x196c   :  { %v3800_v11 = vrot.slane %v3798_v25, 1  ;;  %v4423_v25 = vld [vmem:[%s12740_s11 + $0x18] sm:$0xff]  ;;  %s8524_s11 = sld [smem:[#allocation6 + $0x5]] }
0x196e   :  { %v3802_v30 = vadd.f32 %v3800_v11, %v11203_v59  ;;  %v3956_v59 = vld [vmem:[%s12747_s18] sm:$0x1]  ;;  %v10341_v11 = vpack.c.bf16 %v4423_v25, %v4422_v13  ;;  %v4561_v13 = vstv %s8523_s6 }
0x1970   :  { %10717 = vtanh.f32 %v3802_v30  ;;  %v4661_v30 = vld [vmem:[%s12749_s20] sm:$0xff] }
0x197a   :  { %v10718_v31 = vpop.eup %10717 }
0x197b   :  { %v3883_v34 = vrot.slane %v10718_v31, 7  ;;  %v4662_v31 = vld [vmem:[%s12749_s20 + $0x8] sm:$0xff] }
0x197d   :  { %9539 = vmatmul.mubr.msk.f32.vlgmr.msra.gmra.mrb[42].mxu1 %vm220_vm5, %v3883_v34  ;;  %v10348_v34 = vpack.c.bf16 %v4662_v31, %v4661_v30  ;;  %v8540_v30 = vld [vmem:[%s12746_s17 + $0x28] sm:$0xff] }
0x197e   :  { %10317 = vmatpush3.bf16.msra.mxu1 %v11608_v37  ;;  %9560 = vmatprep.mubr.msk.f32.mxu1 %vm10909_vm3, %v10910_v5 }
0x197f   :  { %10318 = vmatprep.subr.bf16.mxu1 %v10907_v2 }
0x1982   :  { %10320 = vmatpush3.bf16.msra.mxu1 %v11614_v41  ;;  %v4249_v41 = vld [vmem:[%s12736_s7] sm:$0xff]  ;;  %s8519_s7 = sld [smem:[#allocation2 + $0x3]] }
0x1983   :  { %10327 = vmatprep.subr.bf16.mxu1 %v10907_v2 }
0x1988   :  { %v4539_v29 = vstv %s8519_s7  ;;  %s4506_s7 = sld [smem:[#allocation6]] }
0x1a50   :  { %v3952_v35 = vpop.f32.mrb[42].mxu1 }
0x1a51   :  { %v3953_v32 = vadd.f32 %v3952_v35, %v11799_v27  ;;  %v9540_v58 = vpop.f32.mrb[43].mxu1  ;;  %v10328_v27 = vpack.c.bf16 %v4250_v57, %v4249_v41  ;;  %v4663_v35 = vld [vmem:[%s12749_s20 + $0x10] sm:$0xff]  ;;  %v4753_v41 = vld [vmem:[%s12746_s17 + $0x8] sm:$0xff] }
0x1a52   :  { %v4748_v58 = vld [vmem:[%s12745_s16] sm:$0xff] }
0x1a53   :  { %v3957_v36 = vadd.f32 %v3956_v59, %v3953_v32  ;;  %v4664_v59 = vld [vmem:[%s12749_s20 + $0x18] sm:$0xff] }
0x1a54   :  { %v10351_v32 = vpack.c.bf16 %v4664_v59, %v4663_v35 }
0x1a55   :  { %10719 = vtanh.f32 %v3957_v36  ;;  %v4749_v36 = vld [vmem:[%s12745_s16 + $0x8] sm:$0xff] }
0x1a5f   :  { %v10720_v37 = vpop.eup %10719 }
0x1a60   :  { %v3960_v45 = vmul.f32 0.5, %v10720_v37  ;;  %v11954_v37 = vpack.c.bf16 %v4749_v36, %v4748_v58  ;;  %v8541_v58 = vld [vmem:[%s12746_s17 + $0x30] sm:$0xff]  ;;  %v8542_v36 = vld [vmem:[%s12746_s17 + $0x38] sm:$0xff] }
0x1a62   :  { %v3962_v44 = vrot.slane %v3960_v45, 1  ;;  %v4750_v45 = vld [vmem:[%s12745_s16 + $0x10] sm:$0xff] }
0x1a64   :  { %v3964_v53 = vadd.f32 %v3962_v44, %v3959_v3  ;;  %v4751_v3 = vld [vmem:[%s12745_s16 + $0x18] sm:$0xff] }
0x1a65   :  { %v11964_v44 = vpack.c.bf16 %v4751_v3, %v4750_v45 }
0x1a66   :  { %10721 = vtanh.f32 %v3964_v53  ;;  %v4752_v53 = vld [vmem:[%s12746_s17] sm:$0xff] }
0x1a67   :  { %v11972_v57 = vpack.c.bf16 %v4753_v41, %v4752_v53 }
0x1a70   :  { %v10722_v52 = vpop.eup %10721 }
0x1a71   :  { %v4045_v54 = vrot.slane %v10722_v52, 7  ;;  %v4754_v52 = vld [vmem:[%s12746_s17 + $0x10] sm:$0xff] }
0x1a73   :  { %9561 = vmatmul.mubr.msk.f32.vlgmr.msra.gmra.mrb[44].mxu1 %vm220_vm5, %v4045_v54 }
0x1a74   :  { %10330 = vmatpush3.bf16.msk.msra.mxu1 %vm11054_vm2, %v10328_v27  ;;  %9578 = vmatprep.mubr.msk.f32.mxu1 %vm10909_vm3, %v10910_v5  ;;  %v4755_v27 = vld [vmem:[%s12746_s17 + $0x18] sm:$0xff] }
0x1a75   :  { %10331 = vmatprep.subr.bf16.mxu1 %v10907_v2  ;;  %v11982_v54 = vpack.c.bf16 %v4755_v27, %v4754_v52  ;;  %v12022_v52 = vpack.c.bf16 %v8542_v36, %v8541_v58 }
0x1a77   :  { %9579 = vmatmul.mubr.msk.f32.vlgmr.msra.gmra.mrb[46].mxu1 %vm130_vm4, %v8507_v24  ;;  %v8532_v24 = vld [vmem:[%s12743_s14] ss:$0 sm:$0xff] }
0x1a78   :  { %9589 = vmatprep.mubr.msk.f32.mxu1 %vm10909_vm3, %v10910_v5  ;;  %10333 = vmatpush3.bf16.msra.mxu1 %v10332_v46  ;;  %v4742_v46 = vmul.f32 %v8532_v24, %v11192_v49  ;;  %v4511_v49 = vstv %s8515_s1 }
0x1a79   :  { %10334 = vmatprep.subr.bf16.mxu1 %v10907_v2 }
0x1a7c   :  { %10336 = vmatpush3.bf16.msra.mxu1 %v10335_v26  ;;  %v8528_v26 = vld [vmem:[%s12744_s15] ss:$0 sm:$0xff]  ;;  %s8525_s15 = sld [smem:[#allocation4 + $0x1]] }
0x1a7d   :  { %10343 = vmatprep.subr.bf16.mxu1 %v10907_v2 }
0x1a82   :  { %v4569_v53 = vstv %s8525_s15 }
0x1b46   :  { %v4114_v51 = vpop.f32.mrb[44].mxu1 }
0x1b47   :  { %v4115_v18 = vadd.f32 %v4114_v51, %v4040_v23  ;;  %v9562_v63 = vpop.f32.mrb[45].mxu1  ;;  %v8527_v23 = vld [vmem:[%s12769_s5 + $0x8] sm:$0xff] }
0x1b49   :  { %v4119_v0 = vadd.f32 %v8505_v22, %v4115_v18  ;;  %v4744_v22 = vrot.slane %v4742_v46, 1  ;;  %v8535_v46 = vld [vmem:[%s12745_s16 + $0x20] sm:$0xff] }
0x1b4a   :  { %v4330_v1 = vpop.f32.mrb[46].mxu1 }
0x1b4b   :  { %10723 = vtanh.f32 %v4119_v0  ;;  %v4331_v47 = vadd.f32 %v8508_v50, %v4330_v1  ;;  %v9580_v42 = vpop.f32.mrb[47].mxu1  ;;  %v4547_v0 = vstv %s8521_s24 }
0x1b4d   :  { %10725 = vtanh.f32 %v4331_v47  ;;  %v4503_v47 = vstv %s4502_s8 }
0x1b55   :  { %v10724_v6 = vpop.eup %10723 }
0x1b56   :  { %v4122_v21 = vmul.f32 0.5, %v10724_v6 }
0x1b57   :  { %v11890_v12 = vpop.eup %10725 }
0x1b58   :  { %v4124_v17 = vrot.slane %v4122_v21, 1  ;;  %9590 = vmatmul.mubr.msk.f32.vlgmr.msra.gmra.mrb[48].mxu1 %vm220_vm5, %v11890_v12 }
0x1b59   :  { %10346 = vmatpush3.bf16.msk.msra.mxu1 %vm11054_vm2, %v10344_v7  ;;  %9607 = vmatprep.mubr.msk.f32.mxu1 %vm10909_vm3, %v10910_v5 }
0x1b5a   :  { %v4126_v9 = vadd.f32 %v4124_v17, %v4121_v15  ;;  %10353 = vmatprep.subr.bf16.mxu1 %v10907_v2 }
0x1b5c   :  { %10727 = vtanh.f32 %v4126_v9  ;;  %9608 = vmatmul.mubr.msk.f32.vlgmr.msra.gmra.mrb[50].mxu1 %vm130_vm4, %v8527_v23 }
0x1b5d   :  { %9629 = vmatprep.mubr.msk.f32.mxu1 %vm10909_vm3, %v10910_v5  ;;  %10355 = vmatpush3.bf16.msra.mxu1 %v11972_v57 }
0x1b5e   :  { %10356 = vmatprep.subr.bf16.mxu1 %v10907_v2 }
0x1b61   :  { %10358 = vmatpush3.bf16.msra.mxu1 %v11982_v54 }
0x1b62   :  { %10365 = vmatprep.subr.bf16.mxu1 %v10907_v2 }
0x1b66   :  { %v11912_v28 = vpop.eup %10727 }
0x1b67   :  { %v4166_v38 = vrot.slane %v11912_v28, 7 }
0x1b69   :  { %9572 = vmatmul.mubr.msk.f32.vlgmr.msra.gmra.mrb[42].mxu0 %vm220_vm5, %v4166_v38  ;;  %v4533_v38 = vstv %s4532_s13  ;;  %s8518_s13 = sld [smem:[#allocation6 + $0x2]] }
0x1b6a   :  { %10339 = vmatpush3.bf16.msra.mxu0 %v10338_v43  ;;  %9600 = vmatprep.mubr.msk.f32.mxu0 %vm10909_vm3, %v10910_v5 }
0x1b6b   :  { %10340 = vmatprep.subr.bf16.mxu0 %v10907_v2 }
0x1b6e   :  { %10342 = vmatpush3.bf16.msra.mxu0 %v10341_v11  ;;  %v8539_v11 = vld [vmem:[%s12746_s17 + $0x20] sm:$0xff] }
0x1b6f   :  { %10347 = vmatprep.subr.bf16.mxu0 %v10907_v2  ;;  %v12012_v59 = vpack.c.bf16 %v8540_v30, %v8539_v11 }
0x1b71   :  { %9601 = vmatmul.mubr.msk.f32.vlgmr.msra.gmra.mrb[44].mxu0 %vm220_vm5, %v11890_v12 }
0x1b72   :  { %10349 = vmatpush3.bf16.msra.mxu0 %v10348_v34  ;;  %9618 = vmatprep.mubr.msk.f32.mxu0 %vm10909_vm3, %v10910_v5 }
0x1b73   :  { %10350 = vmatprep.subr.bf16.mxu0 %v10907_v2 }
0x1b76   :  { %10352 = vmatpush3.bf16.msra.mxu0 %v10351_v32 }
0x1b77   :  { %10359 = vmatprep.subr.bf16.mxu0 %v10907_v2 }
0x1b79   :  { %9619 = vmatmul.mubr.msk.f32.vlgmr.msra.gmra.mrb[46].mxu0 %vm220_vm5, %v11890_v12 }
0x1b7a   :  { %9640 = vmatprep.mubr.msk.f32.mxu0 %vm10909_vm3, %v10910_v5  ;;  %10361 = vmatpush3.bf16.msra.mxu0 %v11954_v37 }
0x1b7b   :  { %10362 = vmatprep.subr.bf16.mxu0 %v10907_v2 }
0x1b7e   :  { %10364 = vmatpush3.bf16.msra.mxu0 %v11964_v44 }
0x1b7f   :  { %10371 = vmatprep.subr.bf16.mxu0 %v10907_v2 }
0x1c2b   :  { %v4415_v39 = vpop.f32.mrb[48].mxu1 }
0x1c2c   :  { %v4416_v20 = vadd.f32 %v8511_v40, %v4415_v39  ;;  %v9591_v55 = vpop.f32.mrb[49].mxu1 }
0x1c2d   :  { %v8537_v55 = vld [vmem:[%s12745_s16 + $0x30] sm:$0xff] }
0x1c2e   :  { %10729 = vtanh.f32 %v4416_v20  ;;  %v8536_v20 = vld [vmem:[%s12745_s16 + $0x28] sm:$0xff] }
0x1c2f   :  { %v4657_v51 = vpop.f32.mrb[50].mxu1 }
0x1c30   :  { %v11998_v18 = vadd.f32 %v8528_v26, %v4657_v51  ;;  %v9609_v63 = vpop.f32.mrb[51].mxu1  ;;  %v12043_v26 = vpack.c.bf16 %v8536_v20, %v8535_v46  ;;  %v8538_v51 = vld [vmem:[%s12745_s16 + $0x38] sm:$0xff]  ;;  %v4554_v46 = vstv %s8522_s4  ;;  %s10917_s4 = smov 45  }
0x1c31   :  { %v8513_v63 = vld [vmem:[%s12741_s12] ss:$0 sm:$0xff]  ;;  %s4535_s12 = sld [smem:[#allocation7]] }
0x1c32   :  { %v4746_v50 = vadd.f32 %v4744_v22, %v11998_v18  ;;  %v12049_v22 = vpack.c.bf16 %v8538_v51, %v8537_v55  ;;  %v8545_v51 = vld [vmem:[%s12747_s18 + $0x1] sm:$0x1] }
0x1c34   :  { %10731 = vtanh.f32 %v4746_v50 }
0x1c37   :  { %v4536_v11 = vstv %s4535_s12 }
0x1c38   :  { %v10730_v1 = vpop.eup %10729 }
0x1c39   :  { %v4512_v42 = vmul.f32 %v10730_v1, %v4511_v49  ;;  %v4548_v6 = vmul.f32 %v10730_v1, %v4547_v0  ;;  %v4504_v7 = vmul.f32 %v10730_v1, %v4503_v47  ;;  %v4526_v4 = vmul.f32 %v10730_v1, %v4525_v56 }
0x1c3a   :  { %v4540_v14 = vmul.f32 %v10730_v1, %v4539_v29  ;;  %v4562_v35 = vmul.f32 %v10730_v1, %v4561_v13  ;;  %v4518_v47 = vstv %s8516_s10  ;;  %v4903_v29 = vld [vmem:[%s12747_s18] sm:$0x1] }
0x1c3b   :  { %v4514_v21 = vrot.slane %v4512_v42, 7  ;;  %v4550_v17 = vrot.slane %v4548_v6, 7  ;;  %v4507_v6 = vstv %s4506_s7 }
0x1c3c   :  { %v12001_v15 = vpop.f32.mrb[42].mxu0 }
0x1c3d   :  { %v9573_v23 = vpop.f32.mrb[43].mxu0  ;;  %v4516_v9 = vadd.f32 %v4514_v21, %v4504_v7  ;;  %v4552_v31 = vadd.f32 %v4550_v17, %v4540_v14 }
0x1c3e   :  { %v10732_v43 = vpop.eup %10731 }
0x1c3f   :  { %9641 = vmatmul.mubr.msk.f32.vlgmr.msra.gmra.mrb[48].mxu0 %vm220_vm5, %v10732_v43  ;;  %v4527_v25 = vadd.f32 %v4526_v4, %v4516_v9  ;;  %v4563_v45 = vadd.f32 %v4562_v35, %v4552_v31  ;;  %v4529_v4 = vstv %s8518_s13 }
0x1c40   :  { %9662 = vmatprep.mubr.msk.f32.mxu0 %vm10909_vm3, %v10910_v5  ;;  %10373 = vmatpush3.bf16.msra.mxu0 %v12043_v26 }
0x1c41   :  { %v4534_v34 = vadd.f32 %v4533_v38, %v4527_v25  ;;  %v4570_v27 = vadd.f32 %v4569_v53, %v4563_v45  ;;  %10374 = vmatprep.subr.bf16.mxu0 %v10907_v2  ;;  %v5113_v53 = vld [vmem:[%s12748_s19 + $0x8] sm:$0xff] }
0x1c43   :  { %v4757_v32 = vrot.slane %v4534_v34, 7  ;;  %v4922_v24 = vrot.slane %v4570_v27, 7 }
0x1c44   :  { %v4497_v3 = vpop.f32.mrb[44].mxu0  ;;  %10376 = vmatpush3.bf16.msra.mxu0 %v12049_v22 }
0x1c45   :  { %v9602_v41 = vpop.f32.mrb[45].mxu0  ;;  %9630 = vmatmul.mubr.msk.f32.vlgmr.msra.gmra.mrb[52].mxu1 %vm220_vm5, %v4757_v32  ;;  %10383 = vmatprep.subr.bf16.mxu0 %v10907_v2  ;;  %v4498_v50 = vadd.f32 %v8513_v63, %v4497_v3  ;;  %v5112_v3 = vld [vmem:[%s12748_s19] sm:$0xff]  ;;  %v4543_v63 = vstv %s8520_s0  ;;  %s10918_s0 = smov 54  }
0x1c46   :  { %10367 = vmatpush3.bf16.msra.mxu1 %v12012_v59  ;;  %9651 = vmatprep.mubr.msk.f32.mxu1 %vm10909_vm3, %v10910_v5  ;;  %v5114_v41 = vld [vmem:[%s12748_s19 + $0x10] sm:$0xff]  ;;  %v12091_v27 = vpack.c.bf16 %v5113_v53, %v5112_v3 }
0x1c47   :  { %10368 = vmatprep.subr.bf16.mxu1 %v10907_v2  ;;  %10733 = vtanh.f32 %v4498_v50 }
0x1c4a   :  { %10370 = vmatpush3.bf16.msra.mxu1 %v12022_v52 }
0x1c4b   :  { %10377 = vmatprep.subr.bf16.mxu1 %v10907_v2 }
0x1c4c   :  { %v12029_v40 = vpop.f32.mrb[46].mxu0 }
0x1c4d   :  { %v9620_v39 = vpop.f32.mrb[47].mxu0  ;;  %9652 = vmatmul.mubr.msk.f32.vlgmr.msra.gmra.mrb[54].mxu1 %vm220_vm5, %v4922_v24  ;;  %v5115_v24 = vld [vmem:[%s12748_s19 + $0x18] sm:$0xff] }
0x1c4e   :  { %9673 = vmatprep.mubr.msk.f32.mxu1 %vm10909_vm3, %v10910_v5  ;;  %10379 = vmatpush3.bf16.msra.mxu1 %v12091_v27  ;;  %v12097_v39 = vpack.c.bf16 %v5115_v24, %v5114_v41 }
0x1c4f   :  { %10380 = vmatprep.subr.bf16.mxu1 %v10907_v2 }
0x1c51   :  { %v12057_v0 = vpop.eup %10733 }
0x1c52   :  { %v4519_v42 = vmul.f32 %v12057_v0, %v4518_v47  ;;  %v4508_v9 = vmul.f32 %v12057_v0, %v4507_v6  ;;  %v4530_v43 = vmul.f32 %v12057_v0, %v4529_v4  ;;  %10382 = vmatpush3.bf16.msra.mxu1 %v12097_v39  ;;  %v4555_v20 = vmul.f32 %v12057_v0, %v4554_v46 }
0x1c53   :  { %10389 = vmatprep.subr.bf16.mxu1 %v10907_v2 }
0x1c54   :  { %v4521_v17 = vrot.slane %v4519_v42, 7  ;;  %v4544_v42 = vmul.f32 %v12057_v0, %v4543_v63 }
0x1c56   :  { %v4523_v14 = vadd.f32 %v4521_v17, %v4508_v9 }
0x1c58   :  { %v4531_v25 = vadd.f32 %v4530_v43, %v4523_v14 }
0x1c5a   :  { %v4537_v30 = vadd.f32 %v4536_v11, %v4531_v25 }
0x1c5c   :  { %v4906_v35 = vmul.f32 0.5, %v4537_v30 }
0x1d12   :  { %v4899_v49 = vpop.f32.mrb[48].mxu0 }
0x1d13   :  { %v9642_v1 = vpop.f32.mrb[49].mxu0 }
0x1d14   :  { %v4557_v1 = vrot.slane %v4555_v20, 7 }
0x1d18   :  { %v4826_v56 = vpop.f32.mrb[52].mxu1 }
0x1d19   :  { %v4900_v7 = vadd.f32 %v4899_v49, %v4826_v56  ;;  %v9631_v21 = vpop.f32.mrb[53].mxu1  ;;  %v4565_v56 = vstv %s8524_s11 }
0x1d1a   :  { %v4566_v6 = vmul.f32 %v12057_v0, %v4565_v56 }
0x1d1b   :  { %v4904_v23 = vadd.f32 %v4903_v29, %v4900_v7  ;;  %v4559_v29 = vadd.f32 %v4557_v1, %v4544_v42 }
0x1d1d   :  { %10735 = vtanh.f32 %v4904_v23  ;;  %v4567_v17 = vadd.f32 %v4566_v6, %v4559_v29  ;;  %v4572_v23 = vstv %s8526_s23 }
0x1d1f   :  { %v4573_v9 = vadd.f32 %v4572_v23, %v4567_v17 }
0x1d20   :  { %v4991_v38 = vpop.f32.mrb[54].mxu1 }
0x1d21   :  { %v9653_v13 = vpop.f32.mrb[55].mxu1  ;;  %v5072_v43 = vmul.f32 0.5, %v4573_v9 }
0x1d27   :  { %v10736_v31 = vpop.eup %10735 }
0x1d28   :  { %v4907_v34 = vmul.f32 0.5, %v10736_v31 }
0x1d2a   :  { %v4909_v32 = vrot.slane %v4907_v34, 1 }
0x1d2c   :  { %v12065_v58 = vadd.f32 %v4909_v32, %v4906_v35 }
0x1d2e   :  { %10737 = vtanh.f32 %v12065_v58 }
0x1d38   :  { %v10738_v36 = vpop.eup %10737 }
0x1d39   :  { %v4996_v45 = vrot.slane %v10738_v36, 7 }
0x1d3b   :  { %9663 = vmatmul.mubr.msk.f32.vlgmr.msra.gmra.mrb[50].mxu0 %vm220_vm5, %v4996_v45 }
0x1d3c   :  { %10385 = vmatpush3.bf16.msra.mxu0 %v11972_v57  ;;  %9684 = vmatprep.mubr.msk.f32.mxu0 %vm10909_vm3, %v10910_v5 }
0x1d3d   :  { %10386 = vmatprep.subr.bf16.mxu0 %v10907_v2 }
0x1d40   :  { %10388 = vmatpush3.bf16.msra.mxu0 %v11982_v54 }
0x1d41   :  { %10395 = vmatprep.subr.bf16.mxu0 %v10907_v2 }
0x1d43   :  { %9685 = vmatmul.mubr.msk.f32.vlgmr.msra.gmra.mrb[52].mxu0 %vm220_vm5, %v4996_v45 }
0x1d44   :  { %10397 = vmatpush3.bf16.msra.mxu0 %v12012_v59  ;;  %9706 = vmatprep.mubr.msk.f32.mxu0 %vm10909_vm3, %v10910_v5 }
0x1d45   :  { %10398 = vmatprep.subr.bf16.mxu0 %v10907_v2 }
0x1d48   :  { %10400 = vmatpush3.bf16.msra.mxu0 %v12022_v52 }
0x1d49   :  { %10407 = vmatprep.subr.bf16.mxu0 %v10907_v2 }
0x1e0e   :  { %v5065_v55 = vpop.f32.mrb[50].mxu0 }
0x1e0f   :  { %v5066_v50 = vadd.f32 %v5065_v55, %v4991_v38  ;;  %v9664_v49 = vpop.f32.mrb[51].mxu0 }
0x1e11   :  { %v5070_v47 = vadd.f32 %v8545_v51, %v5066_v50 }
0x1e13   :  { %10739 = vtanh.f32 %v5070_v47 }
0x1e16   :  { %v12108_v7 = vpop.f32.mrb[52].mxu0 }
0x1e17   :  { %v9686_v21 = vpop.f32.mrb[53].mxu0 }
0x1e1d   :  { %v10740_v4 = vpop.eup %10739 }
0x1e1e   :  { %v5073_v14 = vmul.f32 0.5, %v10740_v4 }
0x1e20   :  { %v5075_v38 = vrot.slane %v5073_v14, 1  ;;  %v5190_v14 = vld [vmem:[%s12750_s21] sm:$0x1] }
0x1e22   :  { %v12110_v13 = vadd.f32 %v5075_v38, %v5072_v43 }
0x1e24   :  { %10741 = vtanh.f32 %v12110_v13 }
0x1e2e   :  { %v10742_v25 = vpop.eup %10741 }
0x1e2f   :  { %v5117_v11 = vrot.slane %v10742_v25, 7  ;;  %v5082_v30 = vrot.slane %v10742_v25, %v11317_v61 }
0x1e31   :  { %9674 = vmatmul.mubr.msk.f32.vlgmr.msra.gmra.mrb[56].mxu1 %vm220_vm5, %v5117_v11  ;;  %9707 = vmatmul.mubr.msk.f32.vlgmr.msra.gmra.mrb[54].mxu0 %vm220_vm5, %v5117_v11  ;;  %v5083_v0 = vmul.f32 %v11890_v12, %v5082_v30 }
0x1e32   :  { %10391 = vmatpush3.bf16.msra.mxu1 %v11954_v37  ;;  %9695 = vmatprep.mubr.msk.f32.mxu1 %vm10909_vm3, %v10910_v5 }
0x1e33   :  { %v5084_v31 = vsel %vm220_vm5, %v5083_v0, 0.0  ;;  %10392 = vmatprep.subr.bf16.mxu1 %v10907_v2  ;;  %10409 = vmatpush3.bf16.msra.mxu0 %v12091_v27  ;;  %v5193_v0 = vld [vmem:[%s12743_s14] sm:$0x1] }
0x1e34   :  { %5085 = vadd.xlane.f32.xlu0 %v5084_v31  ;;  %10410 = vmatprep.subr.bf16.mxu0 %v10907_v2 }
0x1e35   :  { %9728 = vmatprep.mubr.msk.f32.mxu0 %vm10909_vm3, %v10910_v5 }
0x1e36   :  { %10394 = vmatpush3.bf16.msra.mxu1 %v11964_v44 }
0x1e37   :  { %10401 = vmatprep.subr.bf16.mxu1 %v10907_v2  ;;  %10412 = vmatpush3.bf16.msra.mxu0 %v12097_v39 }
0x1e38   :  { %10419 = vmatprep.subr.bf16.mxu0 %v10907_v2 }
0x1ec1   :  { %v5086_v34 = vpop.xlane.xlu0 %5085 }
0x1ec2   :  { %v5087_v35 = vrot.slane %v5086_v34, 4 }
0x1ec4   :  { %v5088_v32 = vmax.f32 %v5086_v34, %v5087_v35 }
0x1ec6   :  { %v5089_v36 = vrot.slane %v5088_v32, 2 }
0x1ec8   :  { %v5090_v45 = vmax.f32 %v5088_v32, %v5089_v36 }
0x1eca   :  { %v5091_v3 = vrot.slane %v5090_v45, 1 }
0x1ecc   :  { %v5092_v53 = vmax.f32 %v5090_v45, %v5091_v3 }
0x1ece   :  { %v5093_v41 = vsub.f32 %v5086_v34, %v5092_v53  ;;  %v5357_v53 = vld [vmem:[%s12747_s18] sm:$0x1] }
0x1ed0   :  { %v5094_v24 = vmul.f32 1.442695, %v5093_v41 }
0x1ed2   :  { %10743 = vpow2.f32 %v5094_v24 }
0x1edc   :  { %v10744_v46 = vpop.eup %10743 }
0x1edd   :  { %v5096_v20 = vrot.slane %v10744_v46, 4 }
0x1edf   :  { %v5097_v55 = vadd.f32 %v10744_v46, %v5096_v20 }
0x1ee1   :  { %v5098_v51 = vrot.slane %v5097_v55, 2 }
0x1ee3   :  { %v5099_v63 = vadd.f32 %v5098_v51, %v5097_v55  ;;  %v5360_v51 = vmul.f32 0.5, %v12065_v58 }
0x1ee5   :  { %v5100_v50 = vrot.slane %v5099_v63, 1 }
0x1ee7   :  { %v5101_v49 = vadd.f32 %v5100_v50, %v5099_v63 }
0x1ee9   :  { %10745 = vrcp.f32 %v5101_v49 }
0x1ef3   :  { %v10746_v1 = vpop.eup %10745 }
0x1ef4   :  { %v5103_v47 = vmul.f32 %v10746_v1, %v10744_v46 }
0x1ef6   :  { %v5104_v42 = vmul.f32 %v5103_v47, %v12029_v40 }
0x1ef8   :  { %v5105_v56 = vsel %vm978_vm6, %v5104_v42, 0.0 }
0x1ef9   :  { %v5106_v29 = vrot.slane %v5105_v56, 4 }
0x1efb   :  { %v5107_v6 = vadd.f32 %v5106_v29, %v5105_v56 }
0x1efd   :  { %v5108_v21 = vrot.slane %v5107_v6, 2 }
0x1eff   :  { %v5109_v17 = vadd.f32 %v5108_v21, %v5107_v6 }
0x1f01   :  { %v5110_v23 = vrot.slane %v5109_v17, 1 }
0x1f03   :  { %v5111_v9 = vadd.f32 %v5110_v23, %v5109_v17  ;;  %v5522_v23 = vmul.f32 0.5, %v12110_v13 }
0x1f04   :  { %v5186_v4 = vpop.f32.mrb[56].mxu1  ;;  %v5441_v43 = vpop.f32.mrb[54].mxu0 }
0x1f05   :  { %v5187_v38 = vadd.f32 %v5186_v4, %v5111_v9  ;;  %v9675_v25 = vpop.f32.mrb[57].mxu1  ;;  %v9708_v11 = vpop.f32.mrb[55].mxu0 }
0x1f07   :  { %v5191_v30 = vadd.f32 %v5190_v14, %v5187_v38 }
0x1f09   :  { %5192 = vst.msk [vmem:[%s12751_s22 + $0x1] sm:$0x1] %vm1066_vm7, %v5191_v30  ;;  %5196 = vperm.xlu1 %10611, %v5191_v30  }
0x1f88   :  { %v5197_v31 = vpop.permute.xlu1 %5196 }
0x1f89   :  { %v5199_v34 = vmul.f32 %v5197_v31, %v5193_v0 }
0x1f8b   :  { %v5201_v35 = vrot.slane %v5199_v34, 7 }
0x1f8d   :  { %v5203_v32 = vadd.f32 %v5201_v35, %v11998_v18 }
0x1f8f   :  { %10747 = vtanh.f32 %v5203_v32 }
0x1f99   :  { %v10748_v36 = vpop.eup %10747 }
0x1f9a   :  { %v5284_v45 = vrot.slane %v10748_v36, 1 }
0x1f9c   :  { %9696 = vmatmul.mubr.msk.f32.vlgmr.msra.gmra.mrb[58].mxu1 %vm220_vm5, %v5284_v45 }
0x1f9d   :  { %10403 = vmatpush3.bf16.msra.mxu1 %v12043_v26  ;;  %9717 = vmatprep.mubr.msk.f32.mxu1 %vm10909_vm3, %v10910_v5 }
0x1f9e   :  { %10404 = vmatprep.subr.bf16.mxu1 %v10907_v2 }
0x1fa1   :  { %10406 = vmatpush3.bf16.msra.mxu1 %v12049_v22 }
0x1fa2   :  { %10413 = vmatprep.subr.bf16.mxu1 %v10907_v2 }
0x206f   :  { %v5353_v3 = vpop.f32.mrb[58].mxu1 }
0x2070   :  { %v5354_v41 = vadd.f32 %v5353_v3, %v12108_v7  ;;  %v9697_v24 = vpop.f32.mrb[59].mxu1  ;;  %v8559_v7 = vld [vmem:[%s12747_s18 + $0x1] sm:$0x1] }
0x2072   :  { %v5358_v46 = vadd.f32 %v5357_v53, %v5354_v41 }
0x2074   :  { %10749 = vtanh.f32 %v5358_v46 }
0x207e   :  { %v10750_v20 = vpop.eup %10749 }
0x207f   :  { %v5361_v55 = vmul.f32 0.5, %v10750_v20 }
0x2081   :  { %v5363_v63 = vrot.slane %v5361_v55, 1 }
0x2083   :  { %v12155_v50 = vadd.f32 %v5363_v63, %v5360_v51 }
0x2085   :  { %10751 = vtanh.f32 %v12155_v50 }
0x208f   :  { %v10752_v49 = vpop.eup %10751 }
0x2090   :  { %v5446_v1 = vrot.slane %v10752_v49, 7 }
0x2092   :  { %9718 = vmatmul.mubr.msk.f32.vlgmr.msra.gmra.mrb[60].mxu1 %vm220_vm5, %v5446_v1 }
0x2093   :  { %10415 = vmatpush3.bf16.msra.mxu1 %v11972_v57  ;;  %9739 = vmatprep.mubr.msk.f32.mxu1 %vm10909_vm3, %v10910_v5 }
0x2094   :  { %10416 = vmatprep.subr.bf16.mxu1 %v10907_v2 }
0x2097   :  { %10418 = vmatpush3.bf16.msra.mxu1 %v11982_v54 }
0x2098   :  { %10425 = vmatprep.subr.bf16.mxu1 %v10907_v2 }
0x209a   :  { %9740 = vmatmul.mubr.msk.f32.vlgmr.msra.gmra.mrb[62].mxu1 %vm220_vm5, %v5446_v1 }
0x209b   :  { %10427 = vmatpush3.bf16.msra.mxu1 %v12012_v59  ;;  %9761 = vmatprep.mubr.msk.f32.mxu1 %vm10909_vm3, %v10910_v5 }
0x209c   :  { %10428 = vmatprep.subr.bf16.mxu1 %v10907_v2 }
0x209f   :  { %10430 = vmatpush3.bf16.msra.mxu1 %v12022_v52 }
0x20a0   :  { %10437 = vmatprep.subr.bf16.mxu1 %v10907_v2 }
0x2165   :  { %v5515_v58 = vpop.f32.mrb[60].mxu1 }
0x2166   :  { %v5516_v47 = vadd.f32 %v5515_v58, %v5441_v43  ;;  %v9719_v42 = vpop.f32.mrb[61].mxu1 }
0x2168   :  { %v5520_v56 = vadd.f32 %v8559_v7, %v5516_v47 }
0x216a   :  { %10753 = vtanh.f32 %v5520_v56 }
0x216d   :  { %v12175_v29 = vpop.f32.mrb[62].mxu1 }
0x216e   :  { %v9741_v6 = vpop.f32.mrb[63].mxu1 }
0x2174   :  { %v10754_v21 = vpop.eup %10753 }
0x2175   :  { %v5523_v17 = vmul.f32 0.5, %v10754_v21 }
0x2177   :  { %v5525_v9 = vrot.slane %v5523_v17, 1  ;;  %v5640_v17 = vld [vmem:[%s12750_s21] sm:$0x1] }
0x2179   :  { %v12178_v4 = vadd.f32 %v5525_v9, %v5522_v23 }
0x217b   :  { %10755 = vtanh.f32 %v12178_v4 }
0x2185   :  { %v10756_v14 = vpop.eup %10755 }
0x2186   :  { %v5567_v38 = vrot.slane %v10756_v14, 7  ;;  %v5532_v25 = vrot.slane %v10756_v14, %v11317_v61 }
0x2188   :  { %9729 = vmatmul.mubr.msk.f32.vlgmr.msra.gmra.mrb[56].mxu0 %vm220_vm5, %v5567_v38  ;;  %9762 = vmatmul.mubr.msk.f32.vlgmr.msra.gmra.mrb[64].mxu1 %vm220_vm5, %v5567_v38  ;;  %v5533_v43 = vmul.f32 %v11890_v12, %v5532_v25 }
0x2189   :  { %10421 = vmatpush3.bf16.msra.mxu0 %v11954_v37  ;;  %9750 = vmatprep.mubr.msk.f32.mxu0 %vm10909_vm3, %v10910_v5 }
0x218a   :  { %v5534_v13 = vsel %vm220_vm5, %v5533_v43, 0.0  ;;  %10422 = vmatprep.subr.bf16.mxu0 %v10907_v2  ;;  %10439 = vmatpush3.bf16.msra.mxu1 %v12091_v27  ;;  %v5647_v43 = vld [vmem:[%s12743_s14] sm:$0x1] }
0x218b   :  { %5535 = vadd.xlane.f32.xlu0 %v5534_v13  ;;  %10440 = vmatprep.subr.bf16.mxu1 %v10907_v2 }
0x218c   :  { %9783 = vmatprep.mubr.msk.f32.mxu1 %vm10909_vm3, %v10910_v5 }
0x218d   :  { %10424 = vmatpush3.bf16.msra.mxu0 %v11964_v44 }
0x218e   :  { %10431 = vmatprep.subr.bf16.mxu0 %v10907_v2  ;;  %10442 = vmatpush3.bf16.msra.mxu1 %v12097_v39 }
0x218f   :  { %10449 = vmatprep.subr.bf16.mxu1 %v10907_v2 }
0x2218   :  { %v5536_v11 = vpop.xlane.xlu0 %5535 }
0x2219   :  { %v5537_v30 = vrot.slane %v5536_v11, 4 }
0x221b   :  { %v5538_v0 = vmax.f32 %v5536_v11, %v5537_v30 }
0x221d   :  { %v5539_v31 = vrot.slane %v5538_v0, 2 }
0x221f   :  { %v5540_v34 = vmax.f32 %v5538_v0, %v5539_v31 }
0x2221   :  { %v5541_v35 = vrot.slane %v5540_v34, 1 }
0x2223   :  { %v5542_v32 = vmax.f32 %v5540_v34, %v5541_v35 }
0x2225   :  { %v5543_v36 = vsub.f32 %v5536_v11, %v5542_v32  ;;  %v5810_v32 = vld [vmem:[%s12747_s18] sm:$0x1] }
0x2227   :  { %v5544_v45 = vmul.f32 1.442695, %v5543_v36 }
0x2229   :  { %10757 = vpow2.f32 %v5544_v45 }
0x2233   :  { %v10758_v3 = vpop.eup %10757 }
0x2234   :  { %v5546_v53 = vrot.slane %v10758_v3, 4 }
0x2236   :  { %v5547_v41 = vadd.f32 %v10758_v3, %v5546_v53 }
0x2238   :  { %v5548_v24 = vrot.slane %v5547_v41, 2 }
0x223a   :  { %v5549_v46 = vadd.f32 %v5548_v24, %v5547_v41  ;;  %v5813_v24 = vmul.f32 0.5, %v12155_v50 }
0x223c   :  { %v5550_v20 = vrot.slane %v5549_v46, 1 }
0x223e   :  { %v5551_v55 = vadd.f32 %v5550_v20, %v5549_v46 }
0x2240   :  { %10759 = vrcp.f32 %v5551_v55 }
0x224a   :  { %v10760_v51 = vpop.eup %10759 }
0x224b   :  { %v5553_v63 = vmul.f32 %v10760_v51, %v10758_v3 }
0x224d   :  { %v5554_v49 = vmul.f32 %v5553_v63, %v12029_v40 }
0x224f   :  { %v5555_v1 = vsel %vm978_vm6, %v5554_v49, 0.0 }
0x2250   :  { %v5556_v58 = vrot.slane %v5555_v1, 4 }
0x2252   :  { %v5557_v7 = vadd.f32 %v5556_v58, %v5555_v1 }
0x2254   :  { %v5558_v47 = vrot.slane %v5557_v7, 2 }
0x2256   :  { %v5559_v42 = vadd.f32 %v5558_v47, %v5557_v7  ;;  %v5975_v47 = vmul.f32 0.5, %v12178_v4 }
0x2258   :  { %v5560_v56 = vrot.slane %v5559_v42, 1 }
0x225a   :  { %v5561_v6 = vadd.f32 %v5560_v56, %v5559_v42 }
0x225b   :  { %v5636_v21 = vpop.f32.mrb[56].mxu0  ;;  %v5894_v23 = vpop.f32.mrb[64].mxu1 }
0x225c   :  { %v5637_v9 = vadd.f32 %v5636_v21, %v5561_v6  ;;  %v9730_v14 = vpop.f32.mrb[57].mxu0  ;;  %v9763_v38 = vpop.f32.mrb[65].mxu1 }
0x225e   :  { %v12203_v25 = vadd.f32 %v5640_v17, %v5637_v9 }
0x2260   :  { %5649 = vperm.xlu1 %10611, %v12203_v25  }
0x22df   :  { %v5650_v13 = vpop.permute.xlu1 %5649 }
0x22e0   :  { %v5652_v11 = vmul.f32 %v5650_v13, %v5647_v43 }
0x22e2   :  { %v5654_v30 = vrot.slane %v5652_v11, 6 }
0x22e4   :  { %v5656_v0 = vadd.f32 %v5654_v30, %v11998_v18 }
0x22e6   :  { %10761 = vtanh.f32 %v5656_v0 }
0x22f0   :  { %v10762_v31 = vpop.eup %10761 }
0x22f1   :  { %v5737_v34 = vrot.slane %v10762_v31, 2 }
0x22f3   :  { %9751 = vmatmul.mubr.msk.f32.vlgmr.msra.gmra.mrb[58].mxu0 %vm220_vm5, %v5737_v34 }
0x22f4   :  { %10433 = vmatpush3.bf16.msra.mxu0 %v12043_v26  ;;  %9772 = vmatprep.mubr.msk.f32.mxu0 %vm10909_vm3, %v10910_v5 }
0x22f5   :  { %10434 = vmatprep.subr.bf16.mxu0 %v10907_v2 }
0x22f8   :  { %10436 = vmatpush3.bf16.msra.mxu0 %v12049_v22 }
0x22f9   :  { %10443 = vmatprep.subr.bf16.mxu0 %v10907_v2 }
0x23c6   :  { %v5806_v35 = vpop.f32.mrb[58].mxu0 }
0x23c7   :  { %v5807_v36 = vadd.f32 %v5806_v35, %v12175_v29  ;;  %v9752_v45 = vpop.f32.mrb[59].mxu0 }
0x23c9   :  { %v5811_v3 = vadd.f32 %v5810_v32, %v5807_v36 }
0x23cb   :  { %10763 = vtanh.f32 %v5811_v3 }
0x23d5   :  { %v10764_v53 = vpop.eup %10763 }
0x23d6   :  { %v5814_v41 = vmul.f32 0.5, %v10764_v53 }
0x23d8   :  { %v5816_v46 = vrot.slane %v5814_v41, 1 }
0x23da   :  { %v12222_v20 = vadd.f32 %v5816_v46, %v5813_v24 }
0x23dc   :  { %10765 = vtanh.f32 %v12222_v20 }
0x23e6   :  { %v10766_v55 = vpop.eup %10765 }
0x23e7   :  { %v5899_v51 = vrot.slane %v10766_v55, 7 }
0x23e9   :  { %9773 = vmatmul.mubr.msk.f32.vlgmr.msra.gmra.mrb[60].mxu0 %vm220_vm5, %v5899_v51 }
0x23ea   :  { %10445 = vmatpush3.bf16.msra.mxu0 %v11972_v57  ;;  %9794 = vmatprep.mubr.msk.f32.mxu0 %vm10909_vm3, %v10910_v5 }
0x23eb   :  { %10446 = vmatprep.subr.bf16.mxu0 %v10907_v2 }
0x23ee   :  { %10448 = vmatpush3.bf16.msra.mxu0 %v11982_v54  ;;  %v8573_v54 = vld [vmem:[%s12747_s18 + $0x1] sm:$0x1] }
0x23ef   :  { %10455 = vmatprep.subr.bf16.mxu0 %v10907_v2 }
0x23f1   :  { %9795 = vmatmul.mubr.msk.f32.vlgmr.msra.gmra.mrb[62].mxu0 %vm220_vm5, %v5899_v51 }
0x23f2   :  { %10457 = vmatpush3.bf16.msra.mxu0 %v12012_v59  ;;  %9816 = vmatprep.mubr.msk.f32.mxu0 %vm10909_vm3, %v10910_v5 }
0x23f3   :  { %10458 = vmatprep.subr.bf16.mxu0 %v10907_v2 }
0x23f6   :  { %10460 = vmatpush3.bf16.msra.mxu0 %v12022_v52 }
0x23f7   :  { %10467 = vmatprep.subr.bf16.mxu0 %v10907_v2 }
0x24bc   :  { %v5968_v57 = vpop.f32.mrb[60].mxu0 }
0x24bd   :  { %v5969_v50 = vadd.f32 %v5968_v57, %v5894_v23  ;;  %v9774_v29 = vpop.f32.mrb[61].mxu0 }
0x24bf   :  { %v5973_v63 = vadd.f32 %v8573_v54, %v5969_v50  ;;  %v6093_v54 = vld [vmem:[%s12750_s21] sm:$0x1] }
0x24c1   :  { %10767 = vtanh.f32 %v5973_v63 }
0x24c4   :  { %v12242_v49 = vpop.f32.mrb[62].mxu0 }
0x24c5   :  { %v9796_v1 = vpop.f32.mrb[63].mxu0 }
0x24cb   :  { %v10768_v58 = vpop.eup %10767 }
0x24cc   :  { %v5976_v7 = vmul.f32 0.5, %v10768_v58 }
0x24ce   :  { %v5978_v42 = vrot.slane %v5976_v7, 1  ;;  %v6100_v7 = vld [vmem:[%s12743_s14] sm:$0x1] }
0x24d0   :  { %v12245_v52 = vadd.f32 %v5978_v42, %v5975_v47 }
0x24d2   :  { %10769 = vtanh.f32 %v12245_v52 }
0x24dc   :  { %v10770_v56 = vpop.eup %10769 }
0x24dd   :  { %v6020_v6 = vrot.slane %v10770_v56, 7  ;;  %v5985_v21 = vrot.slane %v10770_v56, %v11317_v61 }
0x24df   :  { %9784 = vmatmul.mubr.msk.f32.vlgmr.msra.gmra.mrb[66].mxu1 %vm220_vm5, %v6020_v6  ;;  %9817 = vmatmul.mubr.msk.f32.vlgmr.msra.gmra.mrb[64].mxu0 %vm220_vm5, %v6020_v6  ;;  %v5986_v17 = vmul.f32 %v11890_v12, %v5985_v21 }
0x24e0   :  { %10451 = vmatpush3.bf16.msra.mxu1 %v11954_v37  ;;  %9805 = vmatprep.mubr.msk.f32.mxu1 %vm10909_vm3, %v10910_v5 }
0x24e1   :  { %v5987_v4 = vsel %vm220_vm5, %v5986_v17, 0.0  ;;  %10452 = vmatprep.subr.bf16.mxu1 %v10907_v2  ;;  %10469 = vmatpush3.bf16.msra.mxu0 %v12091_v27 }
0x24e2   :  { %5988 = vadd.xlane.f32.xlu0 %v5987_v4  ;;  %10470 = vmatprep.subr.bf16.mxu0 %v10907_v2 }
0x24e3   :  { %9838 = vmatprep.mubr.msk.f32.mxu0 %vm10909_vm3, %v10910_v5 }
0x24e4   :  { %10454 = vmatpush3.bf16.msra.mxu1 %v11964_v44 }
0x24e5   :  { %10461 = vmatprep.subr.bf16.mxu1 %v10907_v2  ;;  %10472 = vmatpush3.bf16.msra.mxu0 %v12097_v39 }
0x24e6   :  { %10479 = vmatprep.subr.bf16.mxu0 %v10907_v2 }
0x256f   :  { %v5989_v37 = vpop.xlane.xlu0 %5988 }
0x2570   :  { %v5990_v23 = vrot.slane %v5989_v37, 4 }
0x2572   :  { %v5991_v9 = vmax.f32 %v5989_v37, %v5990_v23 }
0x2574   :  { %v5992_v14 = vrot.slane %v5991_v9, 2 }
0x2576   :  { %v5993_v38 = vmax.f32 %v5991_v9, %v5992_v14 }
0x2578   :  { %v5994_v27 = vrot.slane %v5993_v38, 1 }
0x257a   :  { %v5995_v43 = vmax.f32 %v5993_v38, %v5994_v27  ;;  %v6266_v27 = vmul.f32 0.5, %v12222_v20  ;;  %v6570_v20 = vld [vmem:[%s12746_s17 + $0x10] sm:$0xff] }
0x257c   :  { %v5996_v13 = vsub.f32 %v5989_v37, %v5995_v43  ;;  %v6263_v37 = vld [vmem:[%s12747_s18] sm:$0x1] }
0x257e   :  { %v5997_v11 = vmul.f32 1.442695, %v5996_v13 }
0x2580   :  { %10771 = vpow2.f32 %v5997_v11 }
0x258a   :  { %v10772_v30 = vpop.eup %10771 }
0x258b   :  { %v5999_v0 = vrot.slane %v10772_v30, 4 }
0x258d   :  { %v6000_v31 = vadd.f32 %v10772_v30, %v5999_v0 }
0x258f   :  { %v6001_v44 = vrot.slane %v6000_v31, 2 }
0x2591   :  { %v6002_v34 = vadd.f32 %v6001_v44, %v6000_v31  ;;  %v6571_v31 = vld [vmem:[%s12746_s17 + $0x18] sm:$0xff] }
0x2592   :  { %v12308_v44 = vpack.c.bf16 %v6571_v31, %v6570_v20 }
0x2593   :  { %v6003_v35 = vrot.slane %v6002_v34, 1 }
0x2595   :  { %v6004_v32 = vadd.f32 %v6003_v35, %v6002_v34  ;;  %v8597_v34 = vld [vmem:[%s12746_s17 + $0x30] sm:$0xff]  ;;  %v8598_v35 = vld [vmem:[%s12746_s17 + $0x38] sm:$0xff] }
0x2597   :  { %10773 = vrcp.f32 %v6004_v32  ;;  %v12326_v32 = vpack.c.bf16 %v8598_v35, %v8597_v34 }
0x25a1   :  { %v10774_v39 = vpop.eup %10773 }
0x25a2   :  { %v6006_v36 = vmul.f32 %v10774_v39, %v10772_v30  ;;  %v8587_v39 = vld [vmem:[%s12747_s18 + $0x1] sm:$0x1] }
0x25a4   :  { %v6007_v45 = vmul.f32 %v6006_v36, %v12029_v40 }
0x25a6   :  { %v6008_v3 = vsel %vm978_vm6, %v6007_v45, 0.0 }
0x25a7   :  { %v6009_v53 = vrot.slane %v6008_v3, 4 }
0x25a9   :  { %v6010_v41 = vadd.f32 %v6009_v53, %v6008_v3 }
0x25ab   :  { %v6011_v24 = vrot.slane %v6010_v41, 2 }
0x25ad   :  { %v6012_v46 = vadd.f32 %v6011_v24, %v6010_v41 }
0x25af   :  { %v6013_v55 = vrot.slane %v6012_v46, 1 }
0x25b1   :  { %v6014_v51 = vadd.f32 %v6013_v55, %v6012_v46  ;;  %v6428_v55 = vmul.f32 0.5, %v12245_v52 }
0x25b2   :  { %v6089_v57 = vpop.f32.mrb[66].mxu1  ;;  %v6347_v50 = vpop.f32.mrb[64].mxu0 }
0x25b3   :  { %v6090_v29 = vadd.f32 %v6089_v57, %v6014_v51  ;;  %v9785_v63 = vpop.f32.mrb[67].mxu1  ;;  %v9818_v1 = vpop.f32.mrb[65].mxu0 }
0x25b5   :  { %v12270_v58 = vadd.f32 %v6093_v54, %v6090_v29 }
0x25b7   :  { %6102 = vperm.xlu1 %10611, %v12270_v58  }
0x2636   :  { %v6103_v47 = vpop.permute.xlu1 %6102 }
0x2637   :  { %v6105_v42 = vmul.f32 %v6103_v47, %v6100_v7 }
0x2639   :  { %v6107_v56 = vrot.slane %v6105_v42, 5 }
0x263b   :  { %v6109_v6 = vadd.f32 %v6107_v56, %v11998_v18 }
0x263d   :  { %10775 = vtanh.f32 %v6109_v6 }
0x2647   :  { %v10776_v21 = vpop.eup %10775 }
0x2648   :  { %v6190_v17 = vrot.slane %v10776_v21, 3 }
0x264a   :  { %9806 = vmatmul.mubr.msk.f32.vlgmr.msra.gmra.mrb[68].mxu1 %vm220_vm5, %v6190_v17 }
0x264b   :  { %10463 = vmatpush3.bf16.msra.mxu1 %v12043_v26  ;;  %9827 = vmatprep.mubr.msk.f32.mxu1 %vm10909_vm3, %v10910_v5 }
0x264c   :  { %10464 = vmatprep.subr.bf16.mxu1 %v10907_v2 }
0x264f   :  { %10466 = vmatpush3.bf16.msra.mxu1 %v12049_v22  ;;  %v6568_v22 = vld [vmem:[%s12746_s17] sm:$0xff] }
0x2650   :  { %10473 = vmatprep.subr.bf16.mxu1 %v10907_v2 }
0x271d   :  { %v6259_v4 = vpop.f32.mrb[68].mxu1 }
0x271e   :  { %v6260_v23 = vadd.f32 %v6259_v4, %v12242_v49  ;;  %v9807_v9 = vpop.f32.mrb[69].mxu1  ;;  %v6569_v49 = vld [vmem:[%s12746_s17 + $0x8] sm:$0xff] }
0x271f   :  { %v12298_v30 = vpack.c.bf16 %v6569_v49, %v6568_v22 }
0x2720   :  { %v6264_v14 = vadd.f32 %v6263_v37, %v6260_v23 }
0x2722   :  { %10777 = vtanh.f32 %v6264_v14 }
0x272c   :  { %v10778_v26 = vpop.eup %10777 }
0x272d   :  { %v6267_v38 = vmul.f32 0.5, %v10778_v26 }
0x272f   :  { %v6269_v43 = vrot.slane %v6267_v38, 1 }
0x2731   :  { %v12289_v13 = vadd.f32 %v6269_v43, %v6266_v27 }
0x2733   :  { %10779 = vtanh.f32 %v12289_v13 }
0x273d   :  { %v10780_v11 = vpop.eup %10779 }
0x273e   :  { %v6352_v0 = vrot.slane %v10780_v11, 7 }
0x2740   :  { %9828 = vmatmul.mubr.msk.f32.vlgmr.msra.gmra.mrb[70].mxu1 %vm220_vm5, %v6352_v0 }
0x2741   :  { %10475 = vmatpush3.bf16.msra.mxu1 %v12298_v30  ;;  %9849 = vmatprep.mubr.msk.f32.mxu1 %vm10909_vm3, %v10910_v5 }
0x2742   :  { %10476 = vmatprep.subr.bf16.mxu1 %v10907_v2 }
0x2745   :  { %10478 = vmatpush3.bf16.msra.mxu1 %v12308_v44 }
0x2746   :  { %10485 = vmatprep.subr.bf16.mxu1 %v10907_v2 }
0x2748   :  { %9850 = vmatmul.mubr.msk.f32.vlgmr.msra.gmra.mrb[72].mxu1 %vm220_vm5, %v6352_v0 }
0x2749   :  { %10487 = vmatpush3.bf16.msra.mxu1 %v12012_v59  ;;  %9871 = vmatprep.mubr.msk.f32.mxu1 %vm10909_vm3, %v10910_v5 }
0x274a   :  { %10488 = vmatprep.subr.bf16.mxu1 %v10907_v2 }
0x274d   :  { %10490 = vmatpush3.bf16.msra.mxu1 %v12326_v32 }
0x274e   :  { %10497 = vmatprep.subr.bf16.mxu1 %v10907_v2 }
0x2813   :  { %v6421_v59 = vpop.f32.mrb[70].mxu1 }
0x2814   :  { %v6422_v36 = vadd.f32 %v6421_v59, %v6347_v50  ;;  %v9829_v45 = vpop.f32.mrb[71].mxu1 }
0x2816   :  { %v6426_v3 = vadd.f32 %v8587_v39, %v6422_v36  ;;  %v6546_v36 = vld [vmem:[%s12750_s21] sm:$0x1] }
0x2818   :  { %10781 = vtanh.f32 %v6426_v3 }
0x281b   :  { %v12333_v53 = vpop.f32.mrb[72].mxu1 }
0x281c   :  { %v9851_v41 = vpop.f32.mrb[73].mxu1 }
0x2822   :  { %v10782_v24 = vpop.eup %10781 }
0x2823   :  { %v6429_v46 = vmul.f32 0.5, %v10782_v24 }
0x2825   :  { %v6431_v51 = vrot.slane %v6429_v46, 1 }
0x2827   :  { %v12336_v57 = vadd.f32 %v6431_v51, %v6428_v55  ;;  %v6564_v55 = vld [vmem:[%s12745_s16] sm:$0xff]  ;;  %v6565_v51 = vld [vmem:[%s12745_s16 + $0x8] sm:$0xff] }
0x2829   :  { %10783 = vtanh.f32 %v12336_v57 }
0x2833   :  { %v10784_v54 = vpop.eup %10783 }
0x2834   :  { %v6473_v29 = vrot.slane %v10784_v54, 7  ;;  %v6438_v63 = vrot.slane %v10784_v54, %v11317_v61  ;;  %v12364_v54 = vpack.c.bf16 %v6565_v51, %v6564_v55  ;;  %v8601_v51 = vld [vmem:[%s12747_s18 + $0x1] sm:$0x1] }
0x2836   :  { %9839 = vmatmul.mubr.msk.f32.vlgmr.msra.gmra.mrb[66].mxu0 %vm220_vm5, %v6473_v29  ;;  %9872 = vmatmul.mubr.msk.f32.vlgmr.msra.gmra.mrb[74].mxu1 %vm220_vm5, %v6473_v29  ;;  %v6439_v50 = vmul.f32 %v11890_v12, %v6438_v63  ;;  %v6566_v29 = vld [vmem:[%s12745_s16 + $0x10] sm:$0xff]  ;;  %v6567_v63 = vld [vmem:[%s12745_s16 + $0x18] sm:$0xff] }
0x2837   :  { %9860 = vmatprep.mubr.msk.f32.mxu0 %vm10909_vm3, %v10910_v5  ;;  %9893 = vmatprep.mubr.msk.f32.mxu1 %vm10909_vm3, %v10910_v5 }
0x2838   :  { %v6440_v52 = vsel %vm220_vm5, %v6439_v50, 0.0  ;;  %10481 = vmatpush3.bf16.msra.mxu0 %v12364_v54  ;;  %v12374_v50 = vpack.c.bf16 %v6567_v63, %v6566_v29 }
0x2839   :  { %6441 = vadd.xlane.f32.xlu0 %v6440_v52  ;;  %10482 = vmatprep.subr.bf16.mxu0 %v10907_v2  ;;  %v6553_v52 = vld [vmem:[%s12743_s14] sm:$0x1] }
0x283c   :  { %10484 = vmatpush3.bf16.msra.mxu0 %v12374_v50 }
0x283d   :  { %10491 = vmatprep.subr.bf16.mxu0 %v10907_v2 }
0x28c6   :  { %v6442_v1 = vpop.xlane.xlu0 %6441 }
0x28c7   :  { %v6443_v7 = vrot.slane %v6442_v1, 4 }
0x28c9   :  { %v6444_v47 = vmax.f32 %v6442_v1, %v6443_v7 }
0x28cb   :  { %v6445_v42 = vrot.slane %v6444_v47, 2 }
0x28cd   :  { %v6446_v56 = vmax.f32 %v6444_v47, %v6445_v42 }
0x28cf   :  { %v6447_v6 = vrot.slane %v6446_v56, 1 }
0x28d1   :  { %v6448_v21 = vmax.f32 %v6446_v56, %v6447_v6 }
0x28d3   :  { %v6449_v17 = vsub.f32 %v6442_v1, %v6448_v21  ;;  %v8591_v21 = vld [vmem:[%s12745_s16 + $0x20] sm:$0xff] }
0x28d5   :  { %v6450_v4 = vmul.f32 1.442695, %v6449_v17  ;;  %v8592_v17 = vld [vmem:[%s12745_s16 + $0x28] sm:$0xff] }
0x28d7   :  { %10785 = vpow2.f32 %v6450_v4  ;;  %v8593_v4 = vld [vmem:[%s12745_s16 + $0x30] sm:$0xff] }
0x28e1   :  { %v10786_v37 = vpop.eup %10785 }
0x28e2   :  { %v6452_v23 = vrot.slane %v10786_v37, 4 }
0x28e4   :  { %v6453_v9 = vadd.f32 %v10786_v37, %v6452_v23  ;;  %v8594_v23 = vld [vmem:[%s12745_s16 + $0x38] sm:$0xff] }
0x28e6   :  { %v6454_v14 = vrot.slane %v6453_v9, 2 }
0x28e8   :  { %v6455_v26 = vadd.f32 %v6454_v14, %v6453_v9  ;;  %v12400_v9 = vpack.c.bf16 %v8594_v23, %v8593_v4 }
0x28ea   :  { %v6456_v38 = vrot.slane %v6455_v26, 1 }
0x28ec   :  { %v6457_v27 = vadd.f32 %v6456_v38, %v6455_v26  ;;  %v6716_v26 = vld [vmem:[%s12747_s18] sm:$0x1] }
0x28ee   :  { %10787 = vrcp.f32 %v6457_v27 }
0x28f8   :  { %v10788_v43 = vpop.eup %10787 }
0x28f9   :  { %v6459_v22 = vmul.f32 %v10788_v43, %v10786_v37  ;;  %v12394_v37 = vpack.c.bf16 %v8592_v17, %v8591_v21 }
0x28fb   :  { %v6460_v49 = vmul.f32 %v6459_v22, %v12029_v40 }
0x28fd   :  { %v6461_v11 = vsel %vm978_vm6, %v6460_v49, 0.0 }
0x28fe   :  { %v6462_v0 = vrot.slane %v6461_v11, 4 }
0x2900   :  { %v6463_v20 = vadd.f32 %v6462_v0, %v6461_v11  ;;  %v6719_v11 = vmul.f32 0.5, %v12289_v13  ;;  %v6921_v13 = vld [vmem:[%s12748_s19] sm:$0xff] }
0x2902   :  { %v6464_v31 = vrot.slane %v6463_v20, 2 }
0x2904   :  { %v6465_v34 = vadd.f32 %v6464_v31, %v6463_v20 }
0x2906   :  { %v6466_v35 = vrot.slane %v6465_v34, 1 }
0x2908   :  { %v6467_v59 = vadd.f32 %v6466_v35, %v6465_v34  ;;  %v8609_v35 = vld [vmem:[%s12746_s17 + $0x20] sm:$0xff] }
0x2909   :  { %v6542_v39 = vpop.f32.mrb[66].mxu0  ;;  %v12353_v45 = vpop.f32.mrb[74].mxu1 }
0x290a   :  { %v6543_v3 = vadd.f32 %v6542_v39, %v6467_v59  ;;  %v9840_v41 = vpop.f32.mrb[67].mxu0  ;;  %v9873_v24 = vpop.f32.mrb[75].mxu1  ;;  %v8610_v39 = vld [vmem:[%s12746_s17 + $0x28] sm:$0xff] }
0x290b   :  { %v12443_v41 = vpack.c.bf16 %v8610_v39, %v8609_v35 }
0x290c   :  { %v12355_v46 = vadd.f32 %v6546_v36, %v6543_v3  ;;  %v6923_v36 = vld [vmem:[%s12748_s19 + $0x10] sm:$0xff]  ;;  %v6924_v3 = vld [vmem:[%s12748_s19 + $0x18] sm:$0xff] }
0x290d   :  { %v12446_v24 = vpack.c.bf16 %v6924_v3, %v6923_v36 }
0x290e   :  { %6555 = vperm.xlu1 %10611, %v12355_v46  }
0x298d   :  { %v6556_v1 = vpop.permute.xlu1 %6555 }
0x298e   :  { %v6558_v7 = vmul.f32 %v6556_v1, %v6553_v52 }
0x2990   :  { %v6560_v47 = vrot.slane %v6558_v7, 4 }
0x2992   :  { %v6562_v42 = vadd.f32 %v6560_v47, %v11998_v18 }
0x2994   :  { %10789 = vtanh.f32 %v6562_v42 }
0x299e   :  { %v10790_v56 = vpop.eup %10789 }
0x299f   :  { %v6643_v6 = vrot.slane %v10790_v56, 4  ;;  %v6881_v56 = vmul.f32 0.5, %v12336_v57 }
0x29a1   :  { %9861 = vmatmul.mubr.msk.f32.vlgmr.msra.gmra.mrb[68].mxu0 %vm220_vm5, %v6643_v6 }
0x29a2   :  { %9882 = vmatprep.mubr.msk.f32.mxu0 %vm10909_vm3, %v10910_v5  ;;  %10493 = vmatpush3.bf16.msra.mxu0 %v12394_v37 }
0x29a3   :  { %10494 = vmatprep.subr.bf16.mxu0 %v10907_v2 }
0x29a6   :  { %10496 = vmatpush3.bf16.msra.mxu0 %v12400_v9 }
0x29a7   :  { %10503 = vmatprep.subr.bf16.mxu0 %v10907_v2 }
0x2a74   :  { %v6712_v14 = vpop.f32.mrb[68].mxu0 }
0x2a75   :  { %v6713_v38 = vadd.f32 %v6712_v14, %v12333_v53  ;;  %v9862_v27 = vpop.f32.mrb[69].mxu0  ;;  %v6922_v53 = vld [vmem:[%s12748_s19 + $0x8] sm:$0xff] }
0x2a76   :  { %v12432_v59 = vpack.c.bf16 %v6922_v53, %v6921_v13 }
0x2a77   :  { %v6717_v43 = vadd.f32 %v6716_v26, %v6713_v38 }
0x2a78   :  { %10499 = vmatpush3.bf16.msra.mxu1 %v12432_v59 }
0x2a79   :  { %10791 = vtanh.f32 %v6717_v43  ;;  %10500 = vmatprep.subr.bf16.mxu1 %v10907_v2 }
0x2a7c   :  { %10502 = vmatpush3.bf16.msra.mxu1 %v12446_v24 }
0x2a7d   :  { %10509 = vmatprep.subr.bf16.mxu1 %v10907_v2 }
0x2a83   :  { %v10792_v22 = vpop.eup %10791 }
0x2a84   :  { %v6720_v49 = vmul.f32 0.5, %v10792_v22 }
0x2a86   :  { %v6722_v0 = vrot.slane %v6720_v49, 1 }
0x2a88   :  { %v12410_v20 = vadd.f32 %v6722_v0, %v6719_v11 }
0x2a8a   :  { %10793 = vtanh.f32 %v12410_v20 }
0x2a94   :  { %v10794_v31 = vpop.eup %10793 }
0x2a95   :  { %v6805_v34 = vrot.slane %v10794_v31, 7 }
0x2a97   :  { %9883 = vmatmul.mubr.msk.f32.vlgmr.msra.gmra.mrb[70].mxu0 %vm220_vm5, %v6805_v34 }
0x2a98   :  { %10505 = vmatpush3.bf16.msra.mxu0 %v12298_v30  ;;  %9904 = vmatprep.mubr.msk.f32.mxu0 %vm10909_vm3, %v10910_v5 }
0x2a99   :  { %10506 = vmatprep.subr.bf16.mxu0 %v10907_v2 }
0x2a9c   :  { %10508 = vmatpush3.bf16.msra.mxu0 %v12308_v44 }
0x2a9d   :  { %10515 = vmatprep.subr.bf16.mxu0 %v10907_v2 }
0x2a9f   :  { %9905 = vmatmul.mubr.msk.f32.vlgmr.msra.gmra.mrb[72].mxu0 %vm220_vm5, %v6805_v34 }
0x2aa0   :  { %9926 = vmatprep.mubr.msk.f32.mxu0 %vm10909_vm3, %v10910_v5  ;;  %10517 = vmatpush3.bf16.msra.mxu0 %v12443_v41 }
0x2aa1   :  { %10518 = vmatprep.subr.bf16.mxu0 %v10907_v2 }
0x2aa4   :  { %10520 = vmatpush3.bf16.msra.mxu0 %v12326_v32 }
0x2aa5   :  { %10527 = vmatprep.subr.bf16.mxu0 %v10907_v2 }
0x2b6a   :  { %v6874_v55 = vpop.f32.mrb[70].mxu0 }
0x2b6b   :  { %v6875_v29 = vadd.f32 %v6874_v55, %v12353_v45  ;;  %v9884_v63 = vpop.f32.mrb[71].mxu0 }
0x2b6d   :  { %v6879_v52 = vadd.f32 %v8601_v51, %v6875_v29 }
0x2b6f   :  { %10795 = vtanh.f32 %v6879_v52 }
0x2b72   :  { %v12459_v1 = vpop.f32.mrb[72].mxu0 }
0x2b73   :  { %v9906_v7 = vpop.f32.mrb[73].mxu0 }
0x2b79   :  { %v10796_v47 = vpop.eup %10795 }
0x2b7a   :  { %v6882_v42 = vmul.f32 0.5, %v10796_v47 }
0x2b7c   :  { %v6884_v6 = vrot.slane %v6882_v42, 1 }
0x2b7e   :  { %v12462_v21 = vadd.f32 %v6884_v6, %v6881_v56 }
0x2b80   :  { %10797 = vtanh.f32 %v12462_v21 }
0x2b8a   :  { %v10798_v17 = vpop.eup %10797 }
0x2b8b   :  { %v6926_v4 = vrot.slane %v10798_v17, 7  ;;  %v6891_v23 = vrot.slane %v10798_v17, %v11317_v61  ;;  %v6999_v17 = vld [vmem:[%s12750_s21] sm:$0x1] }
0x2b8d   :  { %9894 = vmatmul.mubr.msk.f32.vlgmr.msra.gmra.mrb[76].mxu1 %vm220_vm5, %v6926_v4  ;;  %9927 = vmatmul.mubr.msk.f32.vlgmr.msra.gmra.mrb[74].mxu0 %vm220_vm5, %v6926_v4  ;;  %v6892_v45 = vmul.f32 %v11890_v12, %v6891_v23 }
0x2b8e   :  { %10511 = vmatpush3.bf16.msra.mxu1 %v12364_v54  ;;  %9915 = vmatprep.mubr.msk.f32.mxu1 %vm10909_vm3, %v10910_v5 }
0x2b8f   :  { %v6893_v57 = vsel %vm220_vm5, %v6892_v45, 0.0  ;;  %10512 = vmatprep.subr.bf16.mxu1 %v10907_v2  ;;  %10529 = vmatpush3.bf16.msra.mxu0 %v12432_v59 }
0x2b90   :  { %6894 = vadd.xlane.f32.xlu0 %v6893_v57  ;;  %10530 = vmatprep.subr.bf16.mxu0 %v10907_v2 }
0x2b91   :  { %9948 = vmatprep.mubr.msk.f32.mxu0 %vm10909_vm3, %v10910_v5 }
0x2b92   :  { %10514 = vmatpush3.bf16.msra.mxu1 %v12374_v50 }
0x2b93   :  { %10521 = vmatprep.subr.bf16.mxu1 %v10907_v2  ;;  %10532 = vmatpush3.bf16.msra.mxu0 %v12446_v24 }
0x2b94   :  { %10539 = vmatprep.subr.bf16.mxu0 %v10907_v2 }
0x2c1d   :  { %v6895_v14 = vpop.xlane.xlu0 %6894 }
0x2c1e   :  { %v6896_v26 = vrot.slane %v6895_v14, 4 }
0x2c20   :  { %v6897_v38 = vmax.f32 %v6895_v14, %v6896_v26  ;;  %v7006_v26 = vld [vmem:[%s12743_s14] sm:$0x1] }
0x2c22   :  { %v6898_v27 = vrot.slane %v6897_v38, 2 }
0x2c24   :  { %v6899_v43 = vmax.f32 %v6897_v38, %v6898_v27 }
0x2c26   :  { %v6900_v22 = vrot.slane %v6899_v43, 1 }
0x2c28   :  { %v6901_v49 = vmax.f32 %v6899_v43, %v6900_v22 }
0x2c2a   :  { %v6902_v11 = vsub.f32 %v6895_v14, %v6901_v49 }
0x2c2c   :  { %v6903_v0 = vmul.f32 1.442695, %v6902_v11 }
0x2c2e   :  { %10799 = vpow2.f32 %v6903_v0 }
0x2c38   :  { %v10800_v31 = vpop.eup %10799 }
0x2c39   :  { %v6905_v34 = vrot.slane %v10800_v31, 4 }
0x2c3b   :  { %v6906_v13 = vadd.f32 %v10800_v31, %v6905_v34 }
0x2c3d   :  { %v6907_v53 = vrot.slane %v6906_v13, 2 }
0x2c3f   :  { %v6908_v35 = vadd.f32 %v6907_v53, %v6906_v13 }
0x2c41   :  { %v6909_v39 = vrot.slane %v6908_v35, 1 }
0x2c43   :  { %v6910_v36 = vadd.f32 %v6909_v39, %v6908_v35 }
0x2c45   :  { %10801 = vrcp.f32 %v6910_v36  ;;  %v7172_v36 = vmul.f32 0.5, %v12410_v20 }
0x2c4f   :  { %v10802_v3 = vpop.eup %10801 }
0x2c50   :  { %v6912_v55 = vmul.f32 %v10802_v3, %v10800_v31  ;;  %v7169_v31 = vld [vmem:[%s12747_s18] sm:$0x1] }
0x2c52   :  { %v6913_v51 = vmul.f32 %v6912_v55, %v12029_v40 }
0x2c54   :  { %v6914_v29 = vsel %vm978_vm6, %v6913_v51, 0.0 }
0x2c55   :  { %v6915_v63 = vrot.slane %v6914_v29, 4 }
0x2c57   :  { %v6916_v52 = vadd.f32 %v6915_v63, %v6914_v29 }
0x2c59   :  { %v6917_v7 = vrot.slane %v6916_v52, 2 }
0x2c5b   :  { %v6918_v47 = vadd.f32 %v6917_v7, %v6916_v52 }
0x2c5d   :  { %v6919_v42 = vrot.slane %v6918_v47, 1 }
0x2c5f   :  { %v6920_v56 = vadd.f32 %v6919_v42, %v6918_v47 }
0x2c60   :  { %v6995_v6 = vpop.f32.mrb[76].mxu1  ;;  %v7253_v4 = vpop.f32.mrb[74].mxu0 }
0x2c61   :  { %v6996_v23 = vadd.f32 %v6995_v6, %v6920_v56  ;;  %v9895_v45 = vpop.f32.mrb[77].mxu1  ;;  %v9928_v57 = vpop.f32.mrb[75].mxu0 }
0x2c63   :  { %v12487_v14 = vadd.f32 %v6999_v17, %v6996_v23  ;;  %v7334_v17 = vmul.f32 0.5, %v12462_v21 }
0x2c65   :  { %7008 = vperm.xlu1 %10611, %v12487_v14  }
0x2ce4   :  { %v7009_v38 = vpop.permute.xlu1 %7008 }
0x2ce5   :  { %v7011_v27 = vmul.f32 %v7009_v38, %v7006_v26 }
0x2ce7   :  { %v7013_v43 = vrot.slane %v7011_v27, 3 }
0x2ce9   :  { %v7015_v22 = vadd.f32 %v7013_v43, %v11998_v18 }
0x2ceb   :  { %10803 = vtanh.f32 %v7015_v22 }
0x2cf5   :  { %v10804_v49 = vpop.eup %10803 }
0x2cf6   :  { %v7096_v11 = vrot.slane %v10804_v49, 5 }
0x2cf8   :  { %9916 = vmatmul.mubr.msk.f32.vlgmr.msra.gmra.mrb[78].mxu1 %vm220_vm5, %v7096_v11 }
0x2cf9   :  { %10523 = vmatpush3.bf16.msra.mxu1 %v12394_v37  ;;  %9937 = vmatprep.mubr.msk.f32.mxu1 %vm10909_vm3, %v10910_v5 }
0x2cfa   :  { %10524 = vmatprep.subr.bf16.mxu1 %v10907_v2 }
0x2cfd   :  { %10526 = vmatpush3.bf16.msra.mxu1 %v12400_v9 }
0x2cfe   :  { %10533 = vmatprep.subr.bf16.mxu1 %v10907_v2 }
0x2dcb   :  { %v7165_v0 = vpop.f32.mrb[78].mxu1 }
0x2dcc   :  { %v7166_v34 = vadd.f32 %v7165_v0, %v12459_v1  ;;  %v9917_v13 = vpop.f32.mrb[79].mxu1  ;;  %v8615_v1 = vld [vmem:[%s12747_s18 + $0x1] sm:$0x1] }
0x2dce   :  { %v7170_v53 = vadd.f32 %v7169_v31, %v7166_v34 }
0x2dd0   :  { %10805 = vtanh.f32 %v7170_v53 }
0x2dda   :  { %v10806_v35 = vpop.eup %10805 }
0x2ddb   :  { %v7173_v39 = vmul.f32 0.5, %v10806_v35 }
0x2ddd   :  { %v7175_v3 = vrot.slane %v7173_v39, 1 }
0x2ddf   :  { %v12506_v55 = vadd.f32 %v7175_v3, %v7172_v36 }
0x2de1   :  { %10807 = vtanh.f32 %v12506_v55 }
0x2deb   :  { %v10808_v51 = vpop.eup %10807 }
0x2dec   :  { %v7258_v29 = vrot.slane %v10808_v51, 7 }
0x2dee   :  { %9938 = vmatmul.mubr.msk.f32.vlgmr.msra.gmra.mrb[80].mxu1 %vm220_vm5, %v7258_v29 }
0x2def   :  { %10535 = vmatpush3.bf16.msra.mxu1 %v12298_v30  ;;  %9959 = vmatprep.mubr.msk.f32.mxu1 %vm10909_vm3, %v10910_v5 }
0x2df0   :  { %10536 = vmatprep.subr.bf16.mxu1 %v10907_v2 }
0x2df3   :  { %10538 = vmatpush3.bf16.msra.mxu1 %v12308_v44 }
0x2df4   :  { %10545 = vmatprep.subr.bf16.mxu1 %v10907_v2 }
0x2df6   :  { %9960 = vmatmul.mubr.msk.f32.vlgmr.msra.gmra.mrb[82].mxu1 %vm220_vm5, %v7258_v29 }
0x2df7   :  { %10547 = vmatpush3.bf16.msra.mxu1 %v12443_v41  ;;  %9981 = vmatprep.mubr.msk.f32.mxu1 %vm10909_vm3, %v10910_v5 }
0x2df8   :  { %10548 = vmatprep.subr.bf16.mxu1 %v10907_v2 }
0x2dfb   :  { %10550 = vmatpush3.bf16.msra.mxu1 %v12326_v32 }
0x2dfc   :  { %10557 = vmatprep.subr.bf16.mxu1 %v10907_v2 }
0x2ec1   :  { %v7327_v20 = vpop.f32.mrb[80].mxu1 }
0x2ec2   :  { %v7328_v63 = vadd.f32 %v7327_v20, %v7253_v4  ;;  %v9939_v52 = vpop.f32.mrb[81].mxu1 }
0x2ec4   :  { %v7332_v7 = vadd.f32 %v8615_v1, %v7328_v63 }
0x2ec6   :  { %10809 = vtanh.f32 %v7332_v7 }
0x2ec9   :  { %v12526_v47 = vpop.f32.mrb[82].mxu1 }
0x2eca   :  { %v9961_v42 = vpop.f32.mrb[83].mxu1 }
0x2ed0   :  { %v10810_v56 = vpop.eup %10809 }
0x2ed1   :  { %v7335_v6 = vmul.f32 0.5, %v10810_v56 }
0x2ed3   :  { %v7337_v23 = vrot.slane %v7335_v6, 1 }
0x2ed5   :  { %v12529_v45 = vadd.f32 %v7337_v23, %v7334_v17 }
0x2ed7   :  { %10811 = vtanh.f32 %v12529_v45 }
0x2ee1   :  { %v10812_v57 = vpop.eup %10811 }
0x2ee2   :  { %v7379_v26 = vrot.slane %v10812_v57, 7  ;;  %v7344_v38 = vrot.slane %v10812_v57, %v11317_v61 }
0x2ee4   :  { %9949 = vmatmul.mubr.msk.f32.vlgmr.msra.gmra.mrb[76].mxu0 %vm220_vm5, %v7379_v26  ;;  %9982 = vmatmul.mubr.msk.f32.vlgmr.msra.gmra.mrb[84].mxu1 %vm220_vm5, %v7379_v26  ;;  %v7345_v4 = vmul.f32 %v11890_v12, %v7344_v38  ;;  %v7452_v26 = vld [vmem:[%s12750_s21] sm:$0x1] }
0x2ee5   :  { %10541 = vmatpush3.bf16.msra.mxu0 %v12364_v54  ;;  %9970 = vmatprep.mubr.msk.f32.mxu0 %vm10909_vm3, %v10910_v5 }
0x2ee6   :  { %v7346_v21 = vsel %vm220_vm5, %v7345_v4, 0.0  ;;  %10542 = vmatprep.subr.bf16.mxu0 %v10907_v2  ;;  %10559 = vmatpush3.bf16.msra.mxu1 %v12432_v59 }
0x2ee7   :  { %7347 = vadd.xlane.f32.xlu0 %v7346_v21  ;;  %10560 = vmatprep.subr.bf16.mxu1 %v10907_v2 }
0x2ee8   :  { %10003 = vmatprep.mubr.msk.f32.mxu1 %vm10909_vm3, %v10910_v5 }
0x2ee9   :  { %10544 = vmatpush3.bf16.msra.mxu0 %v12374_v50 }
0x2eea   :  { %10551 = vmatprep.subr.bf16.mxu0 %v10907_v2  ;;  %10562 = vmatpush3.bf16.msra.mxu1 %v12446_v24 }
0x2eeb   :  { %10569 = vmatprep.subr.bf16.mxu1 %v10907_v2 }
0x2f74   :  { %v7348_v27 = vpop.xlane.xlu0 %7347 }
0x2f75   :  { %v7349_v43 = vrot.slane %v7348_v27, 4 }
0x2f77   :  { %v7350_v22 = vmax.f32 %v7348_v27, %v7349_v43 }
0x2f79   :  { %v7351_v49 = vrot.slane %v7350_v22, 2 }
0x2f7b   :  { %v7352_v11 = vmax.f32 %v7350_v22, %v7351_v49  ;;  %v7459_v22 = vld [vmem:[%s12743_s14] sm:$0x1] }
0x2f7d   :  { %v7353_v0 = vrot.slane %v7352_v11, 1 }
0x2f7f   :  { %v7354_v31 = vmax.f32 %v7352_v11, %v7353_v0 }
0x2f81   :  { %v7355_v34 = vsub.f32 %v7348_v27, %v7354_v31 }
0x2f83   :  { %v7356_v13 = vmul.f32 1.442695, %v7355_v34 }
0x2f85   :  { %10813 = vpow2.f32 %v7356_v13 }
0x2f8f   :  { %v10814_v53 = vpop.eup %10813 }
0x2f90   :  { %v7358_v35 = vrot.slane %v10814_v53, 4 }
0x2f92   :  { %v7359_v39 = vadd.f32 %v10814_v53, %v7358_v35  ;;  %v7622_v35 = vld [vmem:[%s12747_s18] sm:$0x1] }
0x2f94   :  { %v7360_v36 = vrot.slane %v7359_v39, 2 }
0x2f96   :  { %v7361_v3 = vadd.f32 %v7360_v36, %v7359_v39 }
0x2f98   :  { %v7362_v51 = vrot.slane %v7361_v3, 1 }
0x2f9a   :  { %v7363_v29 = vadd.f32 %v7362_v51, %v7361_v3 }
0x2f9c   :  { %10815 = vrcp.f32 %v7363_v29 }
0x2fa6   :  { %v10816_v20 = vpop.eup %10815 }
0x2fa7   :  { %v7365_v1 = vmul.f32 %v10816_v20, %v10814_v53  ;;  %v7625_v20 = vmul.f32 0.5, %v12506_v55 }
0x2fa9   :  { %v7366_v63 = vmul.f32 %v7365_v1, %v12029_v40 }
0x2fab   :  { %v7367_v52 = vsel %vm978_vm6, %v7366_v63, 0.0 }
0x2fac   :  { %v7368_v7 = vrot.slane %v7367_v52, 4 }
0x2fae   :  { %v7369_v42 = vadd.f32 %v7368_v7, %v7367_v52 }
0x2fb0   :  { %v7370_v56 = vrot.slane %v7369_v42, 2 }
0x2fb2   :  { %v7371_v6 = vadd.f32 %v7370_v56, %v7369_v42 }
0x2fb4   :  { %v7372_v17 = vrot.slane %v7371_v6, 1 }
0x2fb6   :  { %v7373_v23 = vadd.f32 %v7372_v17, %v7371_v6 }
0x2fb7   :  { %v7448_v57 = vpop.f32.mrb[76].mxu0  ;;  %v7706_v38 = vpop.f32.mrb[84].mxu1 }
0x2fb8   :  { %v7449_v4 = vadd.f32 %v7448_v57, %v7373_v23  ;;  %v9950_v21 = vpop.f32.mrb[77].mxu0  ;;  %v9983_v27 = vpop.f32.mrb[85].mxu1  ;;  %v7787_v23 = vmul.f32 0.5, %v12529_v45 }
0x2fba   :  { %v12554_v43 = vadd.f32 %v7452_v26, %v7449_v4 }
0x2fbc   :  { %7461 = vperm.xlu1 %10611, %v12554_v43  }
0x303b   :  { %v7462_v49 = vpop.permute.xlu1 %7461 }
0x303c   :  { %v7464_v11 = vmul.f32 %v7462_v49, %v7459_v22 }
0x303e   :  { %v7466_v0 = vrot.slane %v7464_v11, 2 }
0x3040   :  { %v7468_v31 = vadd.f32 %v7466_v0, %v11998_v18 }
0x3042   :  { %10817 = vtanh.f32 %v7468_v31 }
0x304c   :  { %v10818_v34 = vpop.eup %10817 }
0x304d   :  { %v7549_v13 = vrot.slane %v10818_v34, 6 }
0x304f   :  { %9971 = vmatmul.mubr.msk.f32.vlgmr.msra.gmra.mrb[78].mxu0 %vm220_vm5, %v7549_v13 }
0x3050   :  { %10553 = vmatpush3.bf16.msra.mxu0 %v12394_v37  ;;  %9992 = vmatprep.mubr.msk.f32.mxu0 %vm10909_vm3, %v10910_v5 }
0x3051   :  { %10554 = vmatprep.subr.bf16.mxu0 %v10907_v2 }
0x3054   :  { %10556 = vmatpush3.bf16.msra.mxu0 %v12400_v9 }
0x3055   :  { %10563 = vmatprep.subr.bf16.mxu0 %v10907_v2 }
0x3122   :  { %v7618_v53 = vpop.f32.mrb[78].mxu0 }
0x3123   :  { %v7619_v39 = vadd.f32 %v7618_v53, %v12526_v47  ;;  %v9972_v36 = vpop.f32.mrb[79].mxu0 }
0x3125   :  { %v7623_v3 = vadd.f32 %v7622_v35, %v7619_v39 }
0x3127   :  { %10819 = vtanh.f32 %v7623_v3 }
0x3131   :  { %v10820_v51 = vpop.eup %10819 }
0x3132   :  { %v7626_v29 = vmul.f32 0.5, %v10820_v51 }
0x3134   :  { %v7628_v1 = vrot.slane %v7626_v29, 1 }
0x3136   :  { %v12573_v63 = vadd.f32 %v7628_v1, %v7625_v20 }
0x3138   :  { %10821 = vtanh.f32 %v12573_v63 }
0x3142   :  { %v10822_v52 = vpop.eup %10821 }
0x3143   :  { %v7711_v7 = vrot.slane %v10822_v52, 7 }
0x3145   :  { %9993 = vmatmul.mubr.msk.f32.vlgmr.msra.gmra.mrb[80].mxu0 %vm220_vm5, %v7711_v7 }
0x3146   :  { %10565 = vmatpush3.bf16.msra.mxu0 %v12298_v30  ;;  %10014 = vmatprep.mubr.msk.f32.mxu0 %vm10909_vm3, %v10910_v5 }
0x3147   :  { %10566 = vmatprep.subr.bf16.mxu0 %v10907_v2 }
0x314a   :  { %10568 = vmatpush3.bf16.msra.mxu0 %v12308_v44  ;;  %v8629_v44 = vld [vmem:[%s12747_s18 + $0x1] sm:$0x1] }
0x314b   :  { %10575 = vmatprep.subr.bf16.mxu0 %v10907_v2 }
0x314d   :  { %10015 = vmatmul.mubr.msk.f32.vlgmr.msra.gmra.mrb[82].mxu0 %vm220_vm5, %v7711_v7 }
0x314e   :  { %10577 = vmatpush3.bf16.msra.mxu0 %v12443_v41  ;;  %10036 = vmatprep.mubr.msk.f32.mxu0 %vm10909_vm3, %v10910_v5 }
0x314f   :  { %10578 = vmatprep.subr.bf16.mxu0 %v10907_v2 }
0x3152   :  { %10580 = vmatpush3.bf16.msra.mxu0 %v12326_v32 }
0x3153   :  { %10587 = vmatprep.subr.bf16.mxu0 %v10907_v2 }
0x3218   :  { %v7780_v30 = vpop.f32.mrb[80].mxu0 }
0x3219   :  { %v7781_v55 = vadd.f32 %v7780_v30, %v7706_v38  ;;  %v9994_v47 = vpop.f32.mrb[81].mxu0  ;;  %v4131_v38 = vrot.slane %v11912_v28, %v11317_v61 }
0x321b   :  { %v7785_v42 = vadd.f32 %v8629_v44, %v7781_v55  ;;  %v4132_v22 = vmul.f32 %v11124_v33, %v4131_v38 }
0x321d   :  { %10823 = vtanh.f32 %v7785_v42  ;;  %v4133_v28 = vsel %vm220_vm5, %v4132_v22, 0.0 }
0x3220   :  { %v12593_v56 = vpop.f32.mrb[82].mxu0 }
0x3221   :  { %v10016_v41 = vpop.f32.mrb[83].mxu0 }
0x3227   :  { %v10824_v6 = vpop.eup %10823 }
0x3228   :  { %v7788_v17 = vmul.f32 0.5, %v10824_v6 }
0x322a   :  { %v7790_v57 = vrot.slane %v7788_v17, 1 }
0x322c   :  { %v12596_v32 = vadd.f32 %v7790_v57, %v7787_v23 }
0x322e   :  { %10825 = vtanh.f32 %v12596_v32 }
0x3238   :  { %v10826_v26 = vpop.eup %10825 }
0x3239   :  { %v7832_v4 = vrot.slane %v10826_v26, 7  ;;  %v7797_v21 = vrot.slane %v10826_v26, %v11317_v61 }
0x323b   :  { %10004 = vmatmul.mubr.msk.f32.vlgmr.msra.gmra.mrb[86].mxu1 %vm220_vm5, %v7832_v4  ;;  %10037 = vmatmul.mubr.msk.f32.vlgmr.msra.gmra.mrb[84].mxu0 %vm220_vm5, %v7832_v4  ;;  %v7798_v27 = vmul.f32 %v11890_v12, %v7797_v21 }
0x323c   :  { %10571 = vmatpush3.bf16.msra.mxu1 %v12364_v54  ;;  %10025 = vmatprep.mubr.msk.f32.mxu1 %vm10909_vm3, %v10910_v5 }
0x323d   :  { %v7799_v45 = vsel %vm220_vm5, %v7798_v27, 0.0  ;;  %10572 = vmatprep.subr.bf16.mxu1 %v10907_v2  ;;  %10589 = vmatpush3.bf16.msra.mxu0 %v12432_v59 }
0x323e   :  { %7800 = vadd.xlane.f32.xlu0 %v7799_v45  ;;  %10590 = vmatprep.subr.bf16.mxu0 %v10907_v2 }
0x323f   :  { %10058 = vmatprep.mubr.msk.f32.mxu0 %vm10909_vm3, %v10910_v5 }
0x3240   :  { %10574 = vmatpush3.bf16.msra.mxu1 %v12374_v50 }
0x3241   :  { %10581 = vmatprep.subr.bf16.mxu1 %v10907_v2  ;;  %10592 = vmatpush3.bf16.msra.mxu0 %v12446_v24 }
0x3242   :  { %4134 = vadd.xlane.f32.xlu0 %v4133_v28 }
0x3258   :  { %1518 = vrot.lane.b32.xlu0 %v11409_v19, %s10913_s2 }
0x325c   :  { %5643 = vrot.lane.b32.xlu0 %v12203_v25, %s10913_s2 }
0x3260   :  { %1972 = vrot.lane.b32.xlu0 %v11476_v48, %s10914_s27 }
0x3264   :  { %6096 = vrot.lane.b32.xlu0 %v12270_v58, %s10914_s27 }
0x3268   :  { %6549 = vrot.lane.b32.xlu0 %v12355_v46, %s10915_s28 }
0x326c   :  { %2880 = vrot.lane.b32.xlu0 %v11693_v10, %s10916_s29 }
0x3270   :  { %7002 = vrot.lane.b32.xlu0 %v12487_v14, %s10916_s29 }
0x3274   :  { %3334 = vrot.lane.b32.xlu0 %v11760_v60, %s10917_s4 }
0x3278   :  { %3788 = vrot.lane.b32.xlu0 %v11827_v8, %s10918_s0 }
0x32cb   :  { %v7801_v33 = vpop.xlane.xlu0 %7800 }
0x32cc   :  { %v7802_v19 = vrot.slane %v7801_v33, 4 }
0x32ce   :  { %v7803_v48 = vmax.f32 %v7801_v33, %v7802_v19 }
0x32cf   :  { %v4135_v25 = vpop.xlane.xlu0 %4134 }
0x32d0   :  { %v7804_v58 = vrot.slane %v7803_v48, 2  ;;  %v4136_v54 = vrot.slane %v4135_v25, 4 }
0x32d2   :  { %v7805_v46 = vmax.f32 %v7803_v48, %v7804_v58  ;;  %v4137_v50 = vmax.f32 %v4135_v25, %v4136_v54 }
0x32d3   :  { %v1519_v10 = vpop.permute.xlu0 %1518 }
0x32d4   :  { %v7806_v59 = vrot.slane %v7805_v46, 1  ;;  %v4138_v24 = vrot.slane %v4137_v50, 2  ;;  %1522 = vst.msk [vmem:[%s12751_s22] sm:$0x1] %vm1521_vm8, %v1519_v10 }
0x32d6   :  { %v7807_v60 = vmax.f32 %v7805_v46, %v7806_v59  ;;  %v4139_v14 = vmax.f32 %v4137_v50, %v4138_v24  ;;  %v7905_v59 = vld [vmem:[%s12750_s21] sm:$0x1] }
0x32d7   :  { %v5644_v49 = vpop.permute.xlu0 %5643 }
0x32d8   :  { %v7808_v8 = vsub.f32 %v7801_v33, %v7807_v60  ;;  %v4140_v11 = vrot.slane %v4139_v14, 1  ;;  %5646 = vst.msk [vmem:[%s12751_s22 + $0x1] sm:$0x1] %vm1521_vm8, %v5644_v49 }
0x32da   :  { %v7809_v0 = vmul.f32 1.442695, %v7808_v8  ;;  %v4141_v31 = vmax.f32 %v4139_v14, %v4140_v11 }
0x32db   :  { %v1973_v34 = vpop.permute.xlu0 %1972 }
0x32dc   :  { %10827 = vpow2.f32 %v7809_v0  ;;  %v4142_v13 = vsub.f32 %v4135_v25, %v4141_v31  ;;  %1976 = vst.msk [vmem:[%s12751_s22] sm:$0x1] %vm1975_vm9, %v1973_v34  ;;  %v4239_v0 = vld [vmem:[%s12750_s21] sm:$0x1] }
0x32de   :  { %v4143_v53 = vmul.f32 1.442695, %v4142_v13  ;;  %v7912_v13 = vld [vmem:[%s12743_s14] sm:$0x1] }
0x32df   :  { %v6097_v35 = vpop.permute.xlu0 %6096 }
0x32e0   :  { %10829 = vpow2.f32 %v4143_v53  ;;  %6099 = vst.msk [vmem:[%s12751_s22 + $0x1] sm:$0x1] %vm1975_vm9, %v6097_v35 }
0x32e3   :  { %v6550_v39 = vpop.permute.xlu0 %6549 }
0x32e4   :  { %6552 = vst.msk [vmem:[%s12751_s22 + $0x1] sm:$0x1] %vm2429_vm10, %v6550_v39 }
0x32e6   :  { %v10828_v36 = vpop.eup %10827 }
0x32e7   :  { %v12647_v3 = vpop.permute.xlu0 %2880  ;;  %v7811_v51 = vrot.slane %v10828_v36, 4 }
0x32e9   :  { %v7812_v29 = vadd.f32 %v10828_v36, %v7811_v51 }
0x32ea   :  { %v10830_v20 = vpop.eup %10829 }
0x32eb   :  { %v4145_v1 = vrot.slane %v10830_v20, 4  ;;  %v7003_v52 = vpop.permute.xlu0 %7002  ;;  %v7813_v7 = vrot.slane %v7812_v29, 2 }
0x32ec   :  { %7005 = vst.msk [vmem:[%s12751_s22 + $0x1] sm:$0x1] %vm2883_vm11, %v7003_v52 }
0x32ed   :  { %v4146_v30 = vadd.f32 %v10830_v20, %v4145_v1  ;;  %v7814_v44 = vadd.f32 %v7813_v7, %v7812_v29 }
0x32ef   :  { %v4147_v55 = vrot.slane %v4146_v30, 2  ;;  %v7815_v47 = vrot.slane %v7814_v44, 1 }
0x32f1   :  { %v7816_v42 = vadd.f32 %v7815_v47, %v7814_v44  ;;  %v4148_v41 = vadd.f32 %v4147_v55, %v4146_v30  ;;  %v8643_v47 = vld [vmem:[%s12747_s18 + $0x1] sm:$0x1] }
0x32f3   :  { %10831 = vrcp.f32 %v7816_v42  ;;  %v4149_v6 = vrot.slane %v4148_v41, 1 }
0x32f5   :  { %v4150_v17 = vadd.f32 %v4149_v6, %v4148_v41 }
0x32f7   :  { %10833 = vrcp.f32 %v4150_v17 }
0x32fd   :  { %v10832_v23 = vpop.eup %10831 }
0x32fe   :  { %v7818_v57 = vmul.f32 %v10832_v23, %v10828_v36 }
0x3300   :  { %v7819_v26 = vmul.f32 %v7818_v57, %v12029_v40 }
0x3301   :  { %v10834_v4 = vpop.eup %10833 }
0x3302   :  { %v7820_v21 = vsel %vm978_vm6, %v7819_v26, 0.0  ;;  %v4152_v38 = vmul.f32 %v10834_v4, %v10830_v20  ;;  %v8075_v20 = vld [vmem:[%s12747_s18] sm:$0x1] }
0x3303   :  { %v7821_v27 = vrot.slane %v7820_v21, 4 }
0x3304   :  { %v4153_v45 = vmul.f32 %v4152_v38, %v11206_v62 }
0x3305   :  { %v7822_v22 = vadd.f32 %v7821_v27, %v7820_v21 }
0x3306   :  { %v4154_v28 = vsel %vm978_vm6, %v4153_v45, 0.0 }
0x3307   :  { %v7823_v33 = vrot.slane %v7822_v22, 2  ;;  %v4155_v19 = vrot.slane %v4154_v28, 4 }
0x3309   :  { %v7824_v48 = vadd.f32 %v7823_v33, %v7822_v22  ;;  %v4156_v25 = vadd.f32 %v4155_v19, %v4154_v28 }
0x330b   :  { %v7825_v58 = vrot.slane %v7824_v48, 1  ;;  %v4157_v54 = vrot.slane %v4156_v25, 2 }
0x330d   :  { %v7826_v46 = vadd.f32 %v7825_v58, %v7824_v48  ;;  %v4158_v50 = vadd.f32 %v4157_v54, %v4156_v25 }
0x330e   :  { %v7901_v10 = vpop.f32.mrb[86].mxu1  ;;  %v8159_v24 = vpop.f32.mrb[84].mxu0 }
0x330f   :  { %v7902_v60 = vadd.f32 %v7901_v10, %v7826_v46  ;;  %v10005_v14 = vpop.f32.mrb[87].mxu1  ;;  %v10038_v62 = vpop.f32.mrb[85].mxu0  ;;  %v4159_v49 = vrot.slane %v4158_v50, 1 }
0x3311   :  { %v7906_v8 = vadd.f32 %v7905_v59, %v7902_v60  ;;  %v4160_v11 = vadd.f32 %v4159_v49, %v4158_v50 }
0x3313   :  { %7914 = vperm.xlu1 %10611, %v7906_v8   ;;  %v4236_v31 = vadd.f32 %v12001_v15, %v4160_v11 }
0x3315   :  { %v4240_v34 = vadd.f32 %v4239_v0, %v4236_v31 }
0x3317   :  { %4242 = vrot.lane.b32.xlu0 %v4240_v34, %s10919_s25 }
0x3392   :  { %v7915_v53 = vpop.permute.xlu1 %7914 }
0x3393   :  { %v7917_v35 = vmul.f32 %v7915_v53, %v7912_v13 }
0x3395   :  { %v7919_v39 = vrot.slane %v7917_v35, 1 }
0x3397   :  { %v7921_v36 = vadd.f32 %v7919_v39, %v11998_v18 }
0x3399   :  { %10835 = vtanh.f32 %v7921_v36  ;;  %v8358_v36 = vld [vmem:[%s12750_s21] sm:$0x1] }
0x33a3   :  { %v10836_v51 = vpop.eup %10835 }
0x33a4   :  { %v8002_v29 = vrot.slane %v10836_v51, 7 }
0x33a6   :  { %10026 = vmatmul.mubr.msk.f32.vlgmr.msra.gmra.mrb[88].mxu1 %vm220_vm5, %v8002_v29 }
0x33a7   :  { %10583 = vmatpush3.bf16.msra.mxu1 %v12394_v37  ;;  %10047 = vmatprep.mubr.msk.f32.mxu1 %vm10909_vm3, %v10910_v5  ;;  %v8078_v37 = vmul.f32 0.5, %v12573_v63  ;;  %v8240_v63 = vmul.f32 0.5, %v12596_v32  ;;  %v3335_v32 = vpop.permute.xlu0 %3334 }
0x33a8   :  { %10584 = vmatprep.subr.bf16.mxu1 %v10907_v2 }
0x33ab   :  { %10586 = vmatpush3.bf16.msra.mxu1 %v12400_v9 }
0x3479   :  { %v8071_v15 = vpop.f32.mrb[88].mxu1 }
0x347a   :  { %v8072_v18 = vadd.f32 %v8071_v15, %v12593_v56  ;;  %v10027_v1 = vpop.f32.mrb[89].mxu1 }
0x347c   :  { %v8076_v52 = vadd.f32 %v8075_v20, %v8072_v18 }
0x347e   :  { %10837 = vtanh.f32 %v8076_v52 }
0x3488   :  { %v10838_v7 = vpop.eup %10837 }
0x3489   :  { %v8079_v30 = vmul.f32 0.5, %v10838_v7 }
0x348b   :  { %v8081_v44 = vrot.slane %v8079_v30, 1 }
0x348d   :  { %v8083_v5 = vadd.f32 %v8081_v44, %v8078_v37 }
0x348f   :  { %10839 = vtanh.f32 %v8083_v5 }
0x3499   :  { %v10840_v2 = vpop.eup %10839 }
0x349a   :  { %v8164_v55 = vrot.slane %v10840_v2, 7 }
0x349c   :  { %10048 = vmatmul.mubr.msk.f32.vlgmr.msra.gmra.mrb[90].mxu1 %vm220_vm5, %v8164_v55 }
0x356f   :  { %v8233_v9 = vpop.f32.mrb[90].mxu1 }
0x3570   :  { %v8234_v56 = vadd.f32 %v8233_v9, %v8159_v24  ;;  %v10049_v42 = vpop.f32.mrb[91].mxu1 }
0x3572   :  { %v8238_v41 = vadd.f32 %v8643_v47, %v8234_v56 }
0x3574   :  { %10841 = vtanh.f32 %v8238_v41 }
0x357e   :  { %v10842_v6 = vpop.eup %10841 }
0x357f   :  { %v8241_v17 = vmul.f32 0.5, %v10842_v6 }
0x3581   :  { %v8243_v23 = vrot.slane %v8241_v17, 1 }
0x3583   :  { %v8245_v57 = vadd.f32 %v8243_v23, %v8240_v63 }
0x3585   :  { %10843 = vtanh.f32 %v8245_v57 }
0x358f   :  { %v10844_v26 = vpop.eup %10843 }
0x3590   :  { %v8285_v4 = vrot.slane %v10844_v26, 7  ;;  %v8250_v21 = vrot.slane %v10844_v26, %v11317_v61  ;;  %v3789_v61 = vpop.permute.xlu0 %3788 }
0x3592   :  { %10059 = vmatmul.mubr.msk.f32.vlgmr.msra.gmra.mrb[86].mxu0 %vm220_vm5, %v8285_v4  ;;  %v8251_v38 = vmul.f32 %v11890_v12, %v8250_v21 }
0x3594   :  { %v8252_v27 = vsel %vm220_vm5, %v8251_v38, 0.0  ;;  %v4243_v12 = vpop.permute.xlu0 %4242 }
0x3595   :  { %8253 = vadd.xlane.f32.xlu1 %v8252_v27 }
0x35a6   :  { %2426 = vrot.lane.b32.xlu1 %v11569_v16, %s10915_s28 }
0x35aa   :  { %7455 = vrot.lane.b32.xlu1 %v12554_v43, %s10917_s4 }
0x35ae   :  { %7908 = vrot.lane.b32.xlu1 %v7906_v8, %s10918_s0 }
0x3622   :  { %v8254_v45 = vpop.xlane.xlu1 %8253 }
0x3623   :  { %v8255_v22 = vrot.slane %v8254_v45, 4 }
0x3625   :  { %v8256_v28 = vmax.f32 %v8254_v45, %v8255_v22 }
0x3626   :  { %v2427_v33 = vpop.permute.xlu1 %2426 }
0x3627   :  { %v8257_v19 = vrot.slane %v8256_v28, 2  ;;  %2430 = vst.msk [vmem:[%s12751_s22] sm:$0x1] %vm2429_vm10, %v2427_v33 }
0x3628   :  { %2884 = vst.msk [vmem:[%s12751_s22] sm:$0x1] %vm2883_vm11, %v12647_v3 }
0x3629   :  { %v8258_v16 = vmax.f32 %v8256_v28, %v8257_v19  ;;  %3338 = vst.msk [vmem:[%s12751_s22] sm:$0x1] %vm3337_vm12, %v3335_v32 }
0x362a   :  { %v7456_v43 = vpop.permute.xlu1 %7455  ;;  %3792 = vst.msk [vmem:[%s12751_s22] sm:$0x1] %vm3791_vm13, %v3789_v61 }
0x362b   :  { %v8259_v48 = vrot.slane %v8258_v16, 1  ;;  %7458 = vst.msk [vmem:[%s12751_s22 + $0x1] sm:$0x1] %vm3337_vm12, %v7456_v43 }
0x362c   :  { %4246 = vst.msk [vmem:[%s12751_s22] sm:$0x1] %vm4245_vm14, %v4243_v12 }
0x362d   :  { %v8260_v3 = vmax.f32 %v8258_v16, %v8259_v48 }
0x362e   :  { %v7909_v25 = vpop.permute.xlu1 %7908 }
0x362f   :  { %v8261_v58 = vsub.f32 %v8254_v45, %v8260_v3  ;;  %7911 = vst.msk [vmem:[%s12751_s22 + $0x1] sm:$0x1] %vm3791_vm13, %v7909_v25 }
0x3631   :  { %v8262_v54 = vmul.f32 1.442695, %v8261_v58 }
0x3633   :  { %10845 = vpow2.f32 %v8262_v54 }
0x363d   :  { %v10846_v46 = vpop.eup %10845 }
0x363e   :  { %v8264_v50 = vrot.slane %v10846_v46, 4 }
0x3640   :  { %v8265_v10 = vadd.f32 %v10846_v46, %v8264_v50 }
0x3642   :  { %v8266_v59 = vrot.slane %v8265_v10, 2 }
0x3644   :  { %v8267_v24 = vadd.f32 %v8266_v59, %v8265_v10 }
0x3646   :  { %v8268_v60 = vrot.slane %v8267_v24, 1 }
0x3648   :  { %v8269_v14 = vadd.f32 %v8268_v60, %v8267_v24 }
0x364a   :  { %10847 = vrcp.f32 %v8269_v14 }
0x3654   :  { %v10848_v62 = vpop.eup %10847 }
0x3655   :  { %v8271_v49 = vmul.f32 %v10848_v62, %v10846_v46 }
0x3657   :  { %v8272_v8 = vmul.f32 %v8271_v49, %v12029_v40 }
0x3659   :  { %v8273_v11 = vsel %vm978_vm6, %v8272_v8, 0.0 }
0x365a   :  { %v8274_v0 = vrot.slane %v8273_v11, 4 }
0x365c   :  { %v8275_v31 = vadd.f32 %v8274_v0, %v8273_v11 }
0x365e   :  { %v8276_v34 = vrot.slane %v8275_v31, 2 }
0x3660   :  { %v8277_v13 = vadd.f32 %v8276_v34, %v8275_v31 }
0x3662   :  { %v8278_v53 = vrot.slane %v8277_v13, 1 }
0x3664   :  { %v8279_v35 = vadd.f32 %v8278_v53, %v8277_v13 }
0x3665   :  { %v8354_v39 = vpop.f32.mrb[86].mxu0 }
0x3666   :  { %v8355_v51 = vadd.f32 %v8354_v39, %v8279_v35  ;;  %v10060_v29 = vpop.f32.mrb[87].mxu0 }
0x3668   :  { %v8359_v15 = vadd.f32 %v8358_v36, %v8355_v51 }
0x366a   :  { %8361 = vrot.lane.b32.xlu1 %v8359_v15, %s10919_s25 }
0x36dc   :  { %v8362_v20 = vpop.permute.xlu1 %8361 }
0x36dd   :  { %8364 = vst.msk [vmem:[%s12751_s22 + $0x1] sm:$0x1] %vm4245_vm14, %v8362_v20 }
0x36de   :  { %8369 = vsyncpa [#allocation3], 1 }
0x36df   :  { %8370 = vsyncpa [#allocation5], 1 }
0x36e0   :  { %8371 = vsyncpa [#allocation8], 1 }

</bundles_post_ra>
